<compile_context>
chip_gen: v7x
topology: tpu7x:2x2x1
jax: 0.10.0
libtpu: 0.0.40
codegen_flags: <defaults>
</compile_context>

<pallas_src>
import functools
import math
from typing import NamedTuple

import jax
import jax.numpy as jnp
from jax.experimental import pallas as pl
from jax.experimental.pallas import tpu as pltpu


class GenConfig(NamedTuple):
    input_size: int
    cond_input_size: int
    hidden_size: int
    num_layers: int
    bidirectional: bool
    output_size: int


# Whole-array VMEM memory space (fallback for older pltpu spellings).
_MS = getattr(pltpu, "MemorySpace", None)
_VMEM_SPACE = _MS.VMEM if _MS is not None else pltpu.VMEM


# ---------------------------------------------------------------------------
# Fused forward kernel builder.
# ---------------------------------------------------------------------------
def _build_fused_kernel(*, T, B, H, num_layers, bidirectional):
    nd = 2 if bidirectional else 1

    def act(z):
        # tanh followed by LeakyReLU(0.2), as in the reference forward().
        y = jnp.tanh(z)
        return jnp.where(y >= 0.0, y, 0.2 * y)

    def kernel(*refs):
        it = iter(refs)
        inp_ref = next(it)                      # (B*T, input_size)  batch-major rows
        emb_ref = next(it)                      # (B*T, cond_size)   batch-major rows
        gru_w = []                              # [gru][layer][dir] -> (wih, whh, bih, bhh)
        for _ in range(2):
            gru_w.append([[tuple(next(it) for _ in range(4))
                           for _ in range(nd)]
                          for _ in range(num_layers)])
        fc1_w, fc1_b = next(it), next(it)
        fc2_w, fc2_b = next(it), next(it)
        out_ref = next(it)                      # (B*T, cond_size + out_dim)

        def gate(w, g):
            # One-time gate column-block extraction (gate-aligned layout); this
            # happens before the unrolled loop, off the serial critical path.
            return w[:, g * H:(g + 1) * H]

        def input_gates(parts, wih_ref, bih_ref):
            """Hoisted per-gate input projections: three dense (B*T, H) matmuls.

            Split matmul over weight row blocks replaces feature concatenation.
            b_ih is folded in here (PyTorch semantics).
            """
            wih, bih = wih_ref[...], bih_ref[...]
            out = []
            for g in range(3):                  # gate order [r | z | n]
                wg = gate(wih, g)
                off, acc = 0, None
                for p in parts:
                    d = p.shape[-1]
                    y = jnp.dot(p, wg[off:off + d, :],
                                preferred_element_type=jnp.float32)
                    acc = y if acc is None else acc + y
                    off += d
                out.append(acc + bih[:, g * H:(g + 1) * H])
            return out

        def split_matmul(parts, w_ref, b_ref):
            w = w_ref[...]
            off, acc = 0, None
            for p in parts:
                d = p.shape[-1]
                y = jnp.dot(p, w[off:off + d, :], preferred_element_type=jnp.float32)
                acc = y if acc is None else acc + y
                off += d
            return acc + b_ref[...]

        def run_gru(layers, parts):
            """parts: list of dense (B*T, d_i) batch-major values; returns
            per-direction sequence outputs as dense (B*T, H) batch-major values."""
            for layer in layers:
                # Build nd*B independent recurrence chains (per direction, per
                # batch row).  Gate-split weights/biases are hoisted once.
                chains = []
                for d, (wih_ref, whh_ref, bih_ref, bhh_ref) in enumerate(layer):
                    gx = input_gates(parts, wih_ref, bih_ref)     # 3 x (B*T, H)
                    whh, bhh = whh_ref[...], bhh_ref[...]
                    w_g = tuple(gate(whh, g) for g in range(3))
                    b_g = tuple(bhh[:, g * H:(g + 1) * H] for g in range(3))
                    for b in range(B):
                        chains.append({
                            # batch-major rows b*T .. b*T+T-1 are time-contiguous
                            "gx": tuple(g[b * T:(b + 1) * T, :] for g in gx),
                            "w": w_g, "b": b_g,
                            "rev": (d == 1),
                            "h": jnp.zeros((1, H), jnp.float32),   # h0 = 0
                            "hs": [None] * T,
                        })
                # Statically-unrolled recurrence: all nd*B independent chains
                # advance together at each step so their MXU/EUP latencies
                # overlap (review: interleave directions).
                for s in range(T):
                    for c in chains:
                        t = T - 1 - s if c["rev"] else s
                        gxr, gxz, gxn = c["gx"]
                        wr, wz, wn = c["w"]
                        br, bz, bn = c["b"]
                        h = c["h"]
                        ghr = jnp.dot(h, wr, preferred_element_type=jnp.float32) + br
                        ghz = jnp.dot(h, wz, preferred_element_type=jnp.float32) + bz
                        ghn = jnp.dot(h, wn, preferred_element_type=jnp.float32) + bn
                        r = jax.nn.sigmoid(gxr[t:t + 1, :] + ghr)
                        z = jax.nn.sigmoid(gxz[t:t + 1, :] + ghz)
                        n = jnp.tanh(gxn[t:t + 1, :] + r * ghn)
                        h = (1.0 - z) * n + z * h
                        c["h"] = h
                        c["hs"][t] = h
                # Dense sequence assembly (batch-major rows); no per-step scratch
                # stores anywhere.
                parts = []
                for d in range(nd):
                    blocks = [jnp.concatenate(chains[d * B + b]["hs"], axis=0)
                              for b in range(B)]                   # (T, H) each
                    parts.append(jnp.concatenate(blocks, axis=0))  # (B*T, H)
            return parts

        y = run_gru(gru_w[0], [inp_ref[...], emb_ref[...]])     # rnn1 (input||emb)
        y = [act(split_matmul(y, fc1_w, fc1_b))]                 # fc1 -> tanh -> leaky
        y = run_gru(gru_w[1], y)                                 # rnn2
        y = act(split_matmul(y, fc2_w, fc2_b))                   # fc2 -> tanh -> leaky
        # torch.cat((embedding, out), dim=2) emitted directly in batch-major form.
        out_ref[...] = jnp.concatenate([emb_ref[...], y], axis=1)

    return kernel


def _flops_estimate(*, rows, H, nd, num_layers, d_in1, out_dim):
    fl = 0
    din = d_in1
    for stage in range(2):
        for _ in range(num_layers):
            fl += nd * 3 * 2 * rows * din * H    # hoisted input projections
            fl += nd * 3 * 2 * rows * H * H      # recurrent projections
            din = nd * H
        if stage == 0:
            fl += 2 * rows * (nd * H) * (2 * H)  # fc1
            din = 2 * H
    fl += 2 * rows * (nd * H) * out_dim          # fc2
    return fl


# ---------------------------------------------------------------------------
# Forward wrapper: only free reshapes around one fused pallas_call.
# ---------------------------------------------------------------------------
def generator_gru_cond_forward(inp, emb, params, *, cfg):
    B, T, in_size = inp.shape
    cond = cfg.cond_input_size
    H = cfg.hidden_size
    nd = 2 if cfg.bidirectional else 1
    out_dim = cfg.output_size - cfg.cond_input_size
    rows = B * T

    # Row-major (B,T,D)->(B*T,D) reshapes are bitcasts; all real work is in-kernel.
    flat = [inp.reshape(rows, in_size), emb.reshape(rows, cond)]
    for name in ("rnn1", "rnn2"):
        for layer in params[name]:
            for wih, whh, bih, bhh in layer:
                flat += [wih, whh, bih, bhh]
    flat += [params["fc1"][0], params["fc1"][1],
             params["fc2"][0], params["fc2"][1]]

    kernel = _build_fused_kernel(T=T, B=B, H=H, num_layers=cfg.num_layers,
                                 bidirectional=cfg.bidirectional)

    flops = _flops_estimate(rows=rows, H=H, nd=nd, num_layers=cfg.num_layers,
                            d_in1=in_size + cond, out_dim=out_dim)
    trans = 2 * cfg.num_layers * nd * rows * 3 * H + rows * (2 * H + out_dim)
    bytes_acc = 4 * (sum(int(a.size) for a in flat) + rows * (cond + out_dim))

    out2 = pl.pallas_call(
        kernel,
        out_shape=jax.ShapeDtypeStruct((rows, cond + out_dim), jnp.float32),
        in_specs=[pl.BlockSpec(memory_space=_VMEM_SPACE) for _ in flat],
        out_specs=pl.BlockSpec(memory_space=_VMEM_SPACE),
        cost_estimate=pl.CostEstimate(flops=flops, transcendentals=trans,
                                      bytes_accessed=bytes_acc),
    )(*flat)

    return out2.reshape(B, T, cond + out_dim)


# ---------------------------------------------------------------------------
# Parameter construction (deterministic, PyTorch-style uniform init).
# Weights stored pre-transposed: W_ih^T -> (D_in, 3H), W_hh^T -> (H, 3H),
# gate column order [r | z | n]; biases as (1, 3H).  Linear: (in, out), (1, out).
# ---------------------------------------------------------------------------
def init_gru_params(key, input_dim, hidden, num_layers, bidirectional):
    nd = 2 if bidirectional else 1
    k = 1.0 / math.sqrt(hidden)
    layers = []
    for l in range(num_layers):
        d_in = input_dim if l == 0 else nd * hidden
        dirs = []
        for _ in range(nd):
            key, k0, k1, k2, k3 = jax.random.split(key, 5)
            dirs.append((
                jax.random.uniform(k0, (d_in, 3 * hidden), jnp.float32, -k, k),
                jax.random.uniform(k1, (hidden, 3 * hidden), jnp.float32, -k, k),
                jax.random.uniform(k2, (1, 3 * hidden), jnp.float32, -k, k),
                jax.random.uniform(k3, (1, 3 * hidden), jnp.float32, -k, k),
            ))
        layers.append(dirs)
    return key, layers


def init_linear_params(key, d_in, d_out):
    k = 1.0 / math.sqrt(d_in)
    key, kw, kb = jax.random.split(key, 3)
    w = jax.random.uniform(kw, (d_in, d_out), jnp.float32, -k, k)
    b = jax.random.uniform(kb, (1, d_out), jnp.float32, -k, k)
    return key, (w, b)


def make_params(key, cfg):
    nd = 2 if cfg.bidirectional else 1
    H = cfg.hidden_size
    input_dim = cfg.input_size + cfg.cond_input_size
    output_dim = cfg.output_size - cfg.cond_input_size
    key, rnn1 = init_gru_params(key, input_dim, H, cfg.num_layers, cfg.bidirectional)
    key, fc1 = init_linear_params(key, nd * H, 2 * H)
    key, rnn2 = init_gru_params(key, 2 * H, H, cfg.num_layers, cfg.bidirectional)
    key, fc2 = init_linear_params(key, nd * H, output_dim)
    return {"rnn1": rnn1, "fc1": fc1, "rnn2": rnn2, "fc2": fc2}


if __name__ == "__main__":
    # Small shapes consistent with the module's constructor.
    batch_size = 2
    seq_len = 8
    input_size = 4
    cond_input_size = 4
    hidden_size = 32
    num_layers = 1
    bidirectional = True       # num_states = 2 (matches the torch `(_, _)` unpack)
    output_size = 8            # output_dim = output_size - cond_input_size = 4

    cfg = GenConfig(input_size, cond_input_size, hidden_size, num_layers,
                    bidirectional, output_size)

    key = jax.random.PRNGKey(0)
    key, k_in, k_emb = jax.random.split(key, 3)
    inp = jax.random.normal(k_in, (batch_size, seq_len, input_size), jnp.float32)
    emb = jax.random.normal(k_emb, (batch_size, seq_len, cond_input_size), jnp.float32)

    params = make_params(key, cfg)

    forward = jax.jit(functools.partial(generator_gru_cond_forward, cfg=cfg))
    out = jax.block_until_ready(forward(inp, emb, params))

    expected = (batch_size, seq_len,
                cond_input_size + (output_size - cond_input_size))
    assert out.shape == expected, (out.shape, expected)
    assert out.dtype == jnp.float32
    assert bool(jnp.all(jnp.isfinite(out)))
    print("KERNEL_OK")
</pallas_src>

<mosaic_0001>
module attributes {stable_mosaic.version = 11 : i64} {
  func.func @kernel(%arg0: memref<16x4xf32, #tpu.memory_space<vmem>>, %arg1: memref<16x4xf32, #tpu.memory_space<vmem>>, %arg2: memref<8x96xf32, #tpu.memory_space<vmem>>, %arg3: memref<32x96xf32, #tpu.memory_space<vmem>>, %arg4: memref<1x96xf32, #tpu.memory_space<vmem>>, %arg5: memref<1x96xf32, #tpu.memory_space<vmem>>, %arg6: memref<8x96xf32, #tpu.memory_space<vmem>>, %arg7: memref<32x96xf32, #tpu.memory_space<vmem>>, %arg8: memref<1x96xf32, #tpu.memory_space<vmem>>, %arg9: memref<1x96xf32, #tpu.memory_space<vmem>>, %arg10: memref<64x96xf32, #tpu.memory_space<vmem>>, %arg11: memref<32x96xf32, #tpu.memory_space<vmem>>, %arg12: memref<1x96xf32, #tpu.memory_space<vmem>>, %arg13: memref<1x96xf32, #tpu.memory_space<vmem>>, %arg14: memref<64x96xf32, #tpu.memory_space<vmem>>, %arg15: memref<32x96xf32, #tpu.memory_space<vmem>>, %arg16: memref<1x96xf32, #tpu.memory_space<vmem>>, %arg17: memref<1x96xf32, #tpu.memory_space<vmem>>, %arg18: memref<64x64xf32, #tpu.memory_space<vmem>>, %arg19: memref<1x64xf32, #tpu.memory_space<vmem>>, %arg20: memref<64x4xf32, #tpu.memory_space<vmem>>, %arg21: memref<1x4xf32, #tpu.memory_space<vmem>>, %arg22: memref<16x8xf32, #tpu.memory_space<vmem>>) attributes {dimension_semantics = [], scalar_prefetch = 0 : i64, scratch_operands = 0 : i64, tpu.core_type = #tpu.core_type<tc>} {
    %c0 = arith.constant 0 : index
    %c0_0 = arith.constant 0 : index
    %0 = vector.load %arg0[%c0, %c0_0] : memref<16x4xf32, #tpu.memory_space<vmem>>, vector<16x4xf32>
    %c0_1 = arith.constant 0 : index
    %c0_2 = arith.constant 0 : index
    %1 = vector.load %arg1[%c0_1, %c0_2] : memref<16x4xf32, #tpu.memory_space<vmem>>, vector<16x4xf32>
    %c0_3 = arith.constant 0 : index
    %c0_4 = arith.constant 0 : index
    %2 = vector.load %arg2[%c0_3, %c0_4] : memref<8x96xf32, #tpu.memory_space<vmem>>, vector<8x96xf32>
    %c0_5 = arith.constant 0 : index
    %c0_6 = arith.constant 0 : index
    %3 = vector.load %arg4[%c0_5, %c0_6] : memref<1x96xf32, #tpu.memory_space<vmem>>, vector<1x96xf32>
    %4 = vector.extract_strided_slice %2 {offsets = [0, 0], sizes = [8, 32], strides = [1, 1]} : vector<8x96xf32> to vector<8x32xf32>
    %5 = vector.extract_strided_slice %4 {offsets = [0, 0], sizes = [4, 32], strides = [1, 1]} : vector<8x32xf32> to vector<4x32xf32>
    %cst = arith.constant dense<0.000000e+00> : vector<16x32xf32>
    %6 = tpu.matmul %0, %5, %cst {dimension_numbers = #tpu.dot_dimension_numbers<[1], [0], [0], [1], [0, 0, 1, 1], [], []>} : vector<16x4xf32>, vector<4x32xf32>, vector<16x32xf32> -> vector<16x32xf32>
    %7 = vector.extract_strided_slice %4 {offsets = [4, 0], sizes = [4, 32], strides = [1, 1]} : vector<8x32xf32> to vector<4x32xf32>
    %cst_7 = arith.constant dense<0.000000e+00> : vector<16x32xf32>
    %8 = tpu.matmul %1, %7, %cst_7 {dimension_numbers = #tpu.dot_dimension_numbers<[1], [0], [0], [1], [0, 0, 1, 1], [], []>} : vector<16x4xf32>, vector<4x32xf32>, vector<16x32xf32> -> vector<16x32xf32>
    %9 = arith.addf %6, %8 : vector<16x32xf32>
    %10 = vector.extract_strided_slice %3 {offsets = [0, 0], sizes = [1, 32], strides = [1, 1]} : vector<1x96xf32> to vector<1x32xf32>
    %11 = vector.broadcast %10 : vector<1x32xf32> to vector<16x32xf32>
    %12 = arith.addf %9, %11 : vector<16x32xf32>
    %13 = vector.extract_strided_slice %2 {offsets = [0, 32], sizes = [8, 32], strides = [1, 1]} : vector<8x96xf32> to vector<8x32xf32>
    %14 = vector.extract_strided_slice %13 {offsets = [0, 0], sizes = [4, 32], strides = [1, 1]} : vector<8x32xf32> to vector<4x32xf32>
    %cst_8 = arith.constant dense<0.000000e+00> : vector<16x32xf32>
    %15 = tpu.matmul %0, %14, %cst_8 {dimension_numbers = #tpu.dot_dimension_numbers<[1], [0], [0], [1], [0, 0, 1, 1], [], []>} : vector<16x4xf32>, vector<4x32xf32>, vector<16x32xf32> -> vector<16x32xf32>
    %16 = vector.extract_strided_slice %13 {offsets = [4, 0], sizes = [4, 32], strides = [1, 1]} : vector<8x32xf32> to vector<4x32xf32>
    %cst_9 = arith.constant dense<0.000000e+00> : vector<16x32xf32>
    %17 = tpu.matmul %1, %16, %cst_9 {dimension_numbers = #tpu.dot_dimension_numbers<[1], [0], [0], [1], [0, 0, 1, 1], [], []>} : vector<16x4xf32>, vector<4x32xf32>, vector<16x32xf32> -> vector<16x32xf32>
    %18 = arith.addf %15, %17 : vector<16x32xf32>
    %19 = vector.extract_strided_slice %3 {offsets = [0, 32], sizes = [1, 32], strides = [1, 1]} : vector<1x96xf32> to vector<1x32xf32>
    %20 = vector.broadcast %19 : vector<1x32xf32> to vector<16x32xf32>
    %21 = arith.addf %18, %20 : vector<16x32xf32>
    %22 = vector.extract_strided_slice %2 {offsets = [0, 64], sizes = [8, 32], strides = [1, 1]} : vector<8x96xf32> to vector<8x32xf32>
    %23 = vector.extract_strided_slice %22 {offsets = [0, 0], sizes = [4, 32], strides = [1, 1]} : vector<8x32xf32> to vector<4x32xf32>
    %cst_10 = arith.constant dense<0.000000e+00> : vector<16x32xf32>
    %24 = tpu.matmul %0, %23, %cst_10 {dimension_numbers = #tpu.dot_dimension_numbers<[1], [0], [0], [1], [0, 0, 1, 1], [], []>} : vector<16x4xf32>, vector<4x32xf32>, vector<16x32xf32> -> vector<16x32xf32>
    %25 = vector.extract_strided_slice %22 {offsets = [4, 0], sizes = [4, 32], strides = [1, 1]} : vector<8x32xf32> to vector<4x32xf32>
    %cst_11 = arith.constant dense<0.000000e+00> : vector<16x32xf32>
    %26 = tpu.matmul %1, %25, %cst_11 {dimension_numbers = #tpu.dot_dimension_numbers<[1], [0], [0], [1], [0, 0, 1, 1], [], []>} : vector<16x4xf32>, vector<4x32xf32>, vector<16x32xf32> -> vector<16x32xf32>
    %27 = arith.addf %24, %26 : vector<16x32xf32>
    %28 = vector.extract_strided_slice %3 {offsets = [0, 64], sizes = [1, 32], strides = [1, 1]} : vector<1x96xf32> to vector<1x32xf32>
    %29 = vector.broadcast %28 : vector<1x32xf32> to vector<16x32xf32>
    %30 = arith.addf %27, %29 : vector<16x32xf32>
    %c0_12 = arith.constant 0 : index
    %c0_13 = arith.constant 0 : index
    %31 = vector.load %arg3[%c0_12, %c0_13] : memref<32x96xf32, #tpu.memory_space<vmem>>, vector<32x96xf32>
    %c0_14 = arith.constant 0 : index
    %c0_15 = arith.constant 0 : index
    %32 = vector.load %arg5[%c0_14, %c0_15] : memref<1x96xf32, #tpu.memory_space<vmem>>, vector<1x96xf32>
    %33 = vector.extract_strided_slice %31 {offsets = [0, 0], sizes = [32, 32], strides = [1, 1]} : vector<32x96xf32> to vector<32x32xf32>
    %34 = vector.extract_strided_slice %31 {offsets = [0, 32], sizes = [32, 32], strides = [1, 1]} : vector<32x96xf32> to vector<32x32xf32>
    %35 = vector.extract_strided_slice %31 {offsets = [0, 64], sizes = [32, 32], strides = [1, 1]} : vector<32x96xf32> to vector<32x32xf32>
    %36 = vector.extract_strided_slice %32 {offsets = [0, 0], sizes = [1, 32], strides = [1, 1]} : vector<1x96xf32> to vector<1x32xf32>
    %37 = vector.extract_strided_slice %32 {offsets = [0, 32], sizes = [1, 32], strides = [1, 1]} : vector<1x96xf32> to vector<1x32xf32>
    %38 = vector.extract_strided_slice %32 {offsets = [0, 64], sizes = [1, 32], strides = [1, 1]} : vector<1x96xf32> to vector<1x32xf32>
    %39 = vector.extract_strided_slice %12 {offsets = [0, 0], sizes = [8, 32], strides = [1, 1]} : vector<16x32xf32> to vector<8x32xf32>
    %40 = vector.extract_strided_slice %21 {offsets = [0, 0], sizes = [8, 32], strides = [1, 1]} : vector<16x32xf32> to vector<8x32xf32>
    %41 = vector.extract_strided_slice %30 {offsets = [0, 0], sizes = [8, 32], strides = [1, 1]} : vector<16x32xf32> to vector<8x32xf32>
    %cst_16 = arith.constant 0.000000e+00 : f32
    %42 = vector.broadcast %cst_16 : f32 to vector<1x32xf32>
    %43 = vector.extract_strided_slice %12 {offsets = [8, 0], sizes = [8, 32], strides = [1, 1]} : vector<16x32xf32> to vector<8x32xf32>
    %44 = vector.extract_strided_slice %21 {offsets = [8, 0], sizes = [8, 32], strides = [1, 1]} : vector<16x32xf32> to vector<8x32xf32>
    %45 = vector.extract_strided_slice %30 {offsets = [8, 0], sizes = [8, 32], strides = [1, 1]} : vector<16x32xf32> to vector<8x32xf32>
    %cst_17 = arith.constant 0.000000e+00 : f32
    %46 = vector.broadcast %cst_17 : f32 to vector<1x32xf32>
    %c0_18 = arith.constant 0 : index
    %c0_19 = arith.constant 0 : index
    %47 = vector.load %arg6[%c0_18, %c0_19] : memref<8x96xf32, #tpu.memory_space<vmem>>, vector<8x96xf32>
    %c0_20 = arith.constant 0 : index
    %c0_21 = arith.constant 0 : index
    %48 = vector.load %arg8[%c0_20, %c0_21] : memref<1x96xf32, #tpu.memory_space<vmem>>, vector<1x96xf32>
    %49 = vector.extract_strided_slice %47 {offsets = [0, 0], sizes = [8, 32], strides = [1, 1]} : vector<8x96xf32> to vector<8x32xf32>
    %50 = vector.extract_strided_slice %49 {offsets = [0, 0], sizes = [4, 32], strides = [1, 1]} : vector<8x32xf32> to vector<4x32xf32>
    %cst_22 = arith.constant dense<0.000000e+00> : vector<16x32xf32>
    %51 = tpu.matmul %0, %50, %cst_22 {dimension_numbers = #tpu.dot_dimension_numbers<[1], [0], [0], [1], [0, 0, 1, 1], [], []>} : vector<16x4xf32>, vector<4x32xf32>, vector<16x32xf32> -> vector<16x32xf32>
    %52 = vector.extract_strided_slice %49 {offsets = [4, 0], sizes = [4, 32], strides = [1, 1]} : vector<8x32xf32> to vector<4x32xf32>
    %cst_23 = arith.constant dense<0.000000e+00> : vector<16x32xf32>
    %53 = tpu.matmul %1, %52, %cst_23 {dimension_numbers = #tpu.dot_dimension_numbers<[1], [0], [0], [1], [0, 0, 1, 1], [], []>} : vector<16x4xf32>, vector<4x32xf32>, vector<16x32xf32> -> vector<16x32xf32>
    %54 = arith.addf %51, %53 : vector<16x32xf32>
    %55 = vector.extract_strided_slice %48 {offsets = [0, 0], sizes = [1, 32], strides = [1, 1]} : vector<1x96xf32> to vector<1x32xf32>
    %56 = vector.broadcast %55 : vector<1x32xf32> to vector<16x32xf32>
    %57 = arith.addf %54, %56 : vector<16x32xf32>
    %58 = vector.extract_strided_slice %47 {offsets = [0, 32], sizes = [8, 32], strides = [1, 1]} : vector<8x96xf32> to vector<8x32xf32>
    %59 = vector.extract_strided_slice %58 {offsets = [0, 0], sizes = [4, 32], strides = [1, 1]} : vector<8x32xf32> to vector<4x32xf32>
    %cst_24 = arith.constant dense<0.000000e+00> : vector<16x32xf32>
    %60 = tpu.matmul %0, %59, %cst_24 {dimension_numbers = #tpu.dot_dimension_numbers<[1], [0], [0], [1], [0, 0, 1, 1], [], []>} : vector<16x4xf32>, vector<4x32xf32>, vector<16x32xf32> -> vector<16x32xf32>
    %61 = vector.extract_strided_slice %58 {offsets = [4, 0], sizes = [4, 32], strides = [1, 1]} : vector<8x32xf32> to vector<4x32xf32>
    %cst_25 = arith.constant dense<0.000000e+00> : vector<16x32xf32>
    %62 = tpu.matmul %1, %61, %cst_25 {dimension_numbers = #tpu.dot_dimension_numbers<[1], [0], [0], [1], [0, 0, 1, 1], [], []>} : vector<16x4xf32>, vector<4x32xf32>, vector<16x32xf32> -> vector<16x32xf32>
    %63 = arith.addf %60, %62 : vector<16x32xf32>
    %64 = vector.extract_strided_slice %48 {offsets = [0, 32], sizes = [1, 32], strides = [1, 1]} : vector<1x96xf32> to vector<1x32xf32>
    %65 = vector.broadcast %64 : vector<1x32xf32> to vector<16x32xf32>
    %66 = arith.addf %63, %65 : vector<16x32xf32>
    %67 = vector.extract_strided_slice %47 {offsets = [0, 64], sizes = [8, 32], strides = [1, 1]} : vector<8x96xf32> to vector<8x32xf32>
    %68 = vector.extract_strided_slice %67 {offsets = [0, 0], sizes = [4, 32], strides = [1, 1]} : vector<8x32xf32> to vector<4x32xf32>
    %cst_26 = arith.constant dense<0.000000e+00> : vector<16x32xf32>
    %69 = tpu.matmul %0, %68, %cst_26 {dimension_numbers = #tpu.dot_dimension_numbers<[1], [0], [0], [1], [0, 0, 1, 1], [], []>} : vector<16x4xf32>, vector<4x32xf32>, vector<16x32xf32> -> vector<16x32xf32>
    %70 = vector.extract_strided_slice %67 {offsets = [4, 0], sizes = [4, 32], strides = [1, 1]} : vector<8x32xf32> to vector<4x32xf32>
    %cst_27 = arith.constant dense<0.000000e+00> : vector<16x32xf32>
    %71 = tpu.matmul %1, %70, %cst_27 {dimension_numbers = #tpu.dot_dimension_numbers<[1], [0], [0], [1], [0, 0, 1, 1], [], []>} : vector<16x4xf32>, vector<4x32xf32>, vector<16x32xf32> -> vector<16x32xf32>
    %72 = arith.addf %69, %71 : vector<16x32xf32>
    %73 = vector.extract_strided_slice %48 {offsets = [0, 64], sizes = [1, 32], strides = [1, 1]} : vector<1x96xf32> to vector<1x32xf32>
    %74 = vector.broadcast %73 : vector<1x32xf32> to vector<16x32xf32>
    %75 = arith.addf %72, %74 : vector<16x32xf32>
    %c0_28 = arith.constant 0 : index
    %c0_29 = arith.constant 0 : index
    %76 = vector.load %arg7[%c0_28, %c0_29] : memref<32x96xf32, #tpu.memory_space<vmem>>, vector<32x96xf32>
    %c0_30 = arith.constant 0 : index
    %c0_31 = arith.constant 0 : index
    %77 = vector.load %arg9[%c0_30, %c0_31] : memref<1x96xf32, #tpu.memory_space<vmem>>, vector<1x96xf32>
    %78 = vector.extract_strided_slice %76 {offsets = [0, 0], sizes = [32, 32], strides = [1, 1]} : vector<32x96xf32> to vector<32x32xf32>
    %79 = vector.extract_strided_slice %76 {offsets = [0, 32], sizes = [32, 32], strides = [1, 1]} : vector<32x96xf32> to vector<32x32xf32>
    %80 = vector.extract_strided_slice %76 {offsets = [0, 64], sizes = [32, 32], strides = [1, 1]} : vector<32x96xf32> to vector<32x32xf32>
    %81 = vector.extract_strided_slice %77 {offsets = [0, 0], sizes = [1, 32], strides = [1, 1]} : vector<1x96xf32> to vector<1x32xf32>
    %82 = vector.extract_strided_slice %77 {offsets = [0, 32], sizes = [1, 32], strides = [1, 1]} : vector<1x96xf32> to vector<1x32xf32>
    %83 = vector.extract_strided_slice %77 {offsets = [0, 64], sizes = [1, 32], strides = [1, 1]} : vector<1x96xf32> to vector<1x32xf32>
    %84 = vector.extract_strided_slice %57 {offsets = [0, 0], sizes = [8, 32], strides = [1, 1]} : vector<16x32xf32> to vector<8x32xf32>
    %85 = vector.extract_strided_slice %66 {offsets = [0, 0], sizes = [8, 32], strides = [1, 1]} : vector<16x32xf32> to vector<8x32xf32>
    %86 = vector.extract_strided_slice %75 {offsets = [0, 0], sizes = [8, 32], strides = [1, 1]} : vector<16x32xf32> to vector<8x32xf32>
    %cst_32 = arith.constant 0.000000e+00 : f32
    %87 = vector.broadcast %cst_32 : f32 to vector<1x32xf32>
    %88 = vector.extract_strided_slice %57 {offsets = [8, 0], sizes = [8, 32], strides = [1, 1]} : vector<16x32xf32> to vector<8x32xf32>
    %89 = vector.extract_strided_slice %66 {offsets = [8, 0], sizes = [8, 32], strides = [1, 1]} : vector<16x32xf32> to vector<8x32xf32>
    %90 = vector.extract_strided_slice %75 {offsets = [8, 0], sizes = [8, 32], strides = [1, 1]} : vector<16x32xf32> to vector<8x32xf32>
    %cst_33 = arith.constant 0.000000e+00 : f32
    %91 = vector.broadcast %cst_33 : f32 to vector<1x32xf32>
    %cst_34 = arith.constant dense<0.000000e+00> : vector<1x32xf32>
    %92 = tpu.matmul %42, %33, %cst_34 {dimension_numbers = #tpu.dot_dimension_numbers<[1], [0], [0], [1], [0, 0, 1, 1], [], []>} : vector<1x32xf32>, vector<32x32xf32>, vector<1x32xf32> -> vector<1x32xf32>
    %93 = arith.addf %92, %36 : vector<1x32xf32>
    %cst_35 = arith.constant dense<0.000000e+00> : vector<1x32xf32>
    %94 = tpu.matmul %42, %34, %cst_35 {dimension_numbers = #tpu.dot_dimension_numbers<[1], [0], [0], [1], [0, 0, 1, 1], [], []>} : vector<1x32xf32>, vector<32x32xf32>, vector<1x32xf32> -> vector<1x32xf32>
    %95 = arith.addf %94, %37 : vector<1x32xf32>
    %cst_36 = arith.constant dense<0.000000e+00> : vector<1x32xf32>
    %96 = tpu.matmul %42, %35, %cst_36 {dimension_numbers = #tpu.dot_dimension_numbers<[1], [0], [0], [1], [0, 0, 1, 1], [], []>} : vector<1x32xf32>, vector<32x32xf32>, vector<1x32xf32> -> vector<1x32xf32>
    %97 = arith.addf %96, %38 : vector<1x32xf32>
    %98 = vector.extract_strided_slice %39 {offsets = [0, 0], sizes = [1, 32], strides = [1, 1]} : vector<8x32xf32> to vector<1x32xf32>
    %99 = arith.addf %98, %93 : vector<1x32xf32>
    %100 = arith.negf %99 : vector<1x32xf32>
    %101 = math.exp %100 : vector<1x32xf32>
    %cst_37 = arith.constant 1.000000e+00 : f32
    %102 = vector.broadcast %cst_37 : f32 to vector<1x32xf32>
    %103 = arith.addf %102, %101 : vector<1x32xf32>
    %104 = arith.divf %102, %103 : vector<1x32xf32>
    %105 = vector.extract_strided_slice %40 {offsets = [0, 0], sizes = [1, 32], strides = [1, 1]} : vector<8x32xf32> to vector<1x32xf32>
    %106 = arith.addf %105, %95 : vector<1x32xf32>
    %107 = arith.negf %106 : vector<1x32xf32>
    %108 = math.exp %107 : vector<1x32xf32>
    %cst_38 = arith.constant 1.000000e+00 : f32
    %109 = vector.broadcast %cst_38 : f32 to vector<1x32xf32>
    %110 = arith.addf %109, %108 : vector<1x32xf32>
    %111 = arith.divf %109, %110 : vector<1x32xf32>
    %112 = vector.extract_strided_slice %41 {offsets = [0, 0], sizes = [1, 32], strides = [1, 1]} : vector<8x32xf32> to vector<1x32xf32>
    %113 = arith.mulf %104, %97 : vector<1x32xf32>
    %114 = arith.addf %112, %113 : vector<1x32xf32>
    %115 = math.tanh %114 : vector<1x32xf32>
    %cst_39 = arith.constant 1.000000e+00 : f32
    %116 = vector.broadcast %cst_39 : f32 to vector<1x32xf32>
    %117 = arith.subf %116, %111 : vector<1x32xf32>
    %118 = arith.mulf %117, %115 : vector<1x32xf32>
    %119 = arith.mulf %111, %42 : vector<1x32xf32>
    %120 = arith.addf %118, %119 : vector<1x32xf32>
    %cst_40 = arith.constant dense<0.000000e+00> : vector<1x32xf32>
    %121 = tpu.matmul %46, %33, %cst_40 {dimension_numbers = #tpu.dot_dimension_numbers<[1], [0], [0], [1], [0, 0, 1, 1], [], []>} : vector<1x32xf32>, vector<32x32xf32>, vector<1x32xf32> -> vector<1x32xf32>
    %122 = arith.addf %121, %36 : vector<1x32xf32>
    %cst_41 = arith.constant dense<0.000000e+00> : vector<1x32xf32>
    %123 = tpu.matmul %46, %34, %cst_41 {dimension_numbers = #tpu.dot_dimension_numbers<[1], [0], [0], [1], [0, 0, 1, 1], [], []>} : vector<1x32xf32>, vector<32x32xf32>, vector<1x32xf32> -> vector<1x32xf32>
    %124 = arith.addf %123, %37 : vector<1x32xf32>
    %cst_42 = arith.constant dense<0.000000e+00> : vector<1x32xf32>
    %125 = tpu.matmul %46, %35, %cst_42 {dimension_numbers = #tpu.dot_dimension_numbers<[1], [0], [0], [1], [0, 0, 1, 1], [], []>} : vector<1x32xf32>, vector<32x32xf32>, vector<1x32xf32> -> vector<1x32xf32>
    %126 = arith.addf %125, %38 : vector<1x32xf32>
    %127 = vector.extract_strided_slice %43 {offsets = [0, 0], sizes = [1, 32], strides = [1, 1]} : vector<8x32xf32> to vector<1x32xf32>
    %128 = arith.addf %127, %122 : vector<1x32xf32>
    %129 = arith.negf %128 : vector<1x32xf32>
    %130 = math.exp %129 : vector<1x32xf32>
    %cst_43 = arith.constant 1.000000e+00 : f32
    %131 = vector.broadcast %cst_43 : f32 to vector<1x32xf32>
    %132 = arith.addf %131, %130 : vector<1x32xf32>
    %133 = arith.divf %131, %132 : vector<1x32xf32>
    %134 = vector.extract_strided_slice %44 {offsets = [0, 0], sizes = [1, 32], strides = [1, 1]} : vector<8x32xf32> to vector<1x32xf32>
    %135 = arith.addf %134, %124 : vector<1x32xf32>
    %136 = arith.negf %135 : vector<1x32xf32>
    %137 = math.exp %136 : vector<1x32xf32>
    %cst_44 = arith.constant 1.000000e+00 : f32
    %138 = vector.broadcast %cst_44 : f32 to vector<1x32xf32>
    %139 = arith.addf %138, %137 : vector<1x32xf32>
    %140 = arith.divf %138, %139 : vector<1x32xf32>
    %141 = vector.extract_strided_slice %45 {offsets = [0, 0], sizes = [1, 32], strides = [1, 1]} : vector<8x32xf32> to vector<1x32xf32>
    %142 = arith.mulf %133, %126 : vector<1x32xf32>
    %143 = arith.addf %141, %142 : vector<1x32xf32>
    %144 = math.tanh %143 : vector<1x32xf32>
    %cst_45 = arith.constant 1.000000e+00 : f32
    %145 = vector.broadcast %cst_45 : f32 to vector<1x32xf32>
    %146 = arith.subf %145, %140 : vector<1x32xf32>
    %147 = arith.mulf %146, %144 : vector<1x32xf32>
    %148 = arith.mulf %140, %46 : vector<1x32xf32>
    %149 = arith.addf %147, %148 : vector<1x32xf32>
    %cst_46 = arith.constant dense<0.000000e+00> : vector<1x32xf32>
    %150 = tpu.matmul %87, %78, %cst_46 {dimension_numbers = #tpu.dot_dimension_numbers<[1], [0], [0], [1], [0, 0, 1, 1], [], []>} : vector<1x32xf32>, vector<32x32xf32>, vector<1x32xf32> -> vector<1x32xf32>
    %151 = arith.addf %150, %81 : vector<1x32xf32>
    %cst_47 = arith.constant dense<0.000000e+00> : vector<1x32xf32>
    %152 = tpu.matmul %87, %79, %cst_47 {dimension_numbers = #tpu.dot_dimension_numbers<[1], [0], [0], [1], [0, 0, 1, 1], [], []>} : vector<1x32xf32>, vector<32x32xf32>, vector<1x32xf32> -> vector<1x32xf32>
    %153 = arith.addf %152, %82 : vector<1x32xf32>
    %cst_48 = arith.constant dense<0.000000e+00> : vector<1x32xf32>
    %154 = tpu.matmul %87, %80, %cst_48 {dimension_numbers = #tpu.dot_dimension_numbers<[1], [0], [0], [1], [0, 0, 1, 1], [], []>} : vector<1x32xf32>, vector<32x32xf32>, vector<1x32xf32> -> vector<1x32xf32>
    %155 = arith.addf %154, %83 : vector<1x32xf32>
    %156 = vector.extract_strided_slice %84 {offsets = [7, 0], sizes = [1, 32], strides = [1, 1]} : vector<8x32xf32> to vector<1x32xf32>
    %157 = arith.addf %156, %151 : vector<1x32xf32>
    %158 = arith.negf %157 : vector<1x32xf32>
    %159 = math.exp %158 : vector<1x32xf32>
    %cst_49 = arith.constant 1.000000e+00 : f32
    %160 = vector.broadcast %cst_49 : f32 to vector<1x32xf32>
    %161 = arith.addf %160, %159 : vector<1x32xf32>
    %162 = arith.divf %160, %161 : vector<1x32xf32>
    %163 = vector.extract_strided_slice %85 {offsets = [7, 0], sizes = [1, 32], strides = [1, 1]} : vector<8x32xf32> to vector<1x32xf32>
    %164 = arith.addf %163, %153 : vector<1x32xf32>
    %165 = arith.negf %164 : vector<1x32xf32>
    %166 = math.exp %165 : vector<1x32xf32>
    %cst_50 = arith.constant 1.000000e+00 : f32
    %167 = vector.broadcast %cst_50 : f32 to vector<1x32xf32>
    %168 = arith.addf %167, %166 : vector<1x32xf32>
    %169 = arith.divf %167, %168 : vector<1x32xf32>
    %170 = vector.extract_strided_slice %86 {offsets = [7, 0], sizes = [1, 32], strides = [1, 1]} : vector<8x32xf32> to vector<1x32xf32>
    %171 = arith.mulf %162, %155 : vector<1x32xf32>
    %172 = arith.addf %170, %171 : vector<1x32xf32>
    %173 = math.tanh %172 : vector<1x32xf32>
    %cst_51 = arith.constant 1.000000e+00 : f32
    %174 = vector.broadcast %cst_51 : f32 to vector<1x32xf32>
    %175 = arith.subf %174, %169 : vector<1x32xf32>
    %176 = arith.mulf %175, %173 : vector<1x32xf32>
    %177 = arith.mulf %169, %87 : vector<1x32xf32>
    %178 = arith.addf %176, %177 : vector<1x32xf32>
    %cst_52 = arith.constant dense<0.000000e+00> : vector<1x32xf32>
    %179 = tpu.matmul %91, %78, %cst_52 {dimension_numbers = #tpu.dot_dimension_numbers<[1], [0], [0], [1], [0, 0, 1, 1], [], []>} : vector<1x32xf32>, vector<32x32xf32>, vector<1x32xf32> -> vector<1x32xf32>
    %180 = arith.addf %179, %81 : vector<1x32xf32>
    %cst_53 = arith.constant dense<0.000000e+00> : vector<1x32xf32>
    %181 = tpu.matmul %91, %79, %cst_53 {dimension_numbers = #tpu.dot_dimension_numbers<[1], [0], [0], [1], [0, 0, 1, 1], [], []>} : vector<1x32xf32>, vector<32x32xf32>, vector<1x32xf32> -> vector<1x32xf32>
    %182 = arith.addf %181, %82 : vector<1x32xf32>
    %cst_54 = arith.constant dense<0.000000e+00> : vector<1x32xf32>
    %183 = tpu.matmul %91, %80, %cst_54 {dimension_numbers = #tpu.dot_dimension_numbers<[1], [0], [0], [1], [0, 0, 1, 1], [], []>} : vector<1x32xf32>, vector<32x32xf32>, vector<1x32xf32> -> vector<1x32xf32>
    %184 = arith.addf %183, %83 : vector<1x32xf32>
    %185 = vector.extract_strided_slice %88 {offsets = [7, 0], sizes = [1, 32], strides = [1, 1]} : vector<8x32xf32> to vector<1x32xf32>
    %186 = arith.addf %185, %180 : vector<1x32xf32>
    %187 = arith.negf %186 : vector<1x32xf32>
    %188 = math.exp %187 : vector<1x32xf32>
    %cst_55 = arith.constant 1.000000e+00 : f32
    %189 = vector.broadcast %cst_55 : f32 to vector<1x32xf32>
    %190 = arith.addf %189, %188 : vector<1x32xf32>
    %191 = arith.divf %189, %190 : vector<1x32xf32>
    %192 = vector.extract_strided_slice %89 {offsets = [7, 0], sizes = [1, 32], strides = [1, 1]} : vector<8x32xf32> to vector<1x32xf32>
    %193 = arith.addf %192, %182 : vector<1x32xf32>
    %194 = arith.negf %193 : vector<1x32xf32>
    %195 = math.exp %194 : vector<1x32xf32>
    %cst_56 = arith.constant 1.000000e+00 : f32
    %196 = vector.broadcast %cst_56 : f32 to vector<1x32xf32>
    %197 = arith.addf %196, %195 : vector<1x32xf32>
    %198 = arith.divf %196, %197 : vector<1x32xf32>
    %199 = vector.extract_strided_slice %90 {offsets = [7, 0], sizes = [1, 32], strides = [1, 1]} : vector<8x32xf32> to vector<1x32xf32>
    %200 = arith.mulf %191, %184 : vector<1x32xf32>
    %201 = arith.addf %199, %200 : vector<1x32xf32>
    %202 = math.tanh %201 : vector<1x32xf32>
    %cst_57 = arith.constant 1.000000e+00 : f32
    %203 = vector.broadcast %cst_57 : f32 to vector<1x32xf32>
    %204 = arith.subf %203, %198 : vector<1x32xf32>
    %205 = arith.mulf %204, %202 : vector<1x32xf32>
    %206 = arith.mulf %198, %91 : vector<1x32xf32>
    %207 = arith.addf %205, %206 : vector<1x32xf32>
    %cst_58 = arith.constant dense<0.000000e+00> : vector<1x32xf32>
    %208 = tpu.matmul %120, %33, %cst_58 {dimension_numbers = #tpu.dot_dimension_numbers<[1], [0], [0], [1], [0, 0, 1, 1], [], []>} : vector<1x32xf32>, vector<32x32xf32>, vector<1x32xf32> -> vector<1x32xf32>
    %209 = arith.addf %208, %36 : vector<1x32xf32>
    %cst_59 = arith.constant dense<0.000000e+00> : vector<1x32xf32>
    %210 = tpu.matmul %120, %34, %cst_59 {dimension_numbers = #tpu.dot_dimension_numbers<[1], [0], [0], [1], [0, 0, 1, 1], [], []>} : vector<1x32xf32>, vector<32x32xf32>, vector<1x32xf32> -> vector<1x32xf32>
    %211 = arith.addf %210, %37 : vector<1x32xf32>
    %cst_60 = arith.constant dense<0.000000e+00> : vector<1x32xf32>
    %212 = tpu.matmul %120, %35, %cst_60 {dimension_numbers = #tpu.dot_dimension_numbers<[1], [0], [0], [1], [0, 0, 1, 1], [], []>} : vector<1x32xf32>, vector<32x32xf32>, vector<1x32xf32> -> vector<1x32xf32>
    %213 = arith.addf %212, %38 : vector<1x32xf32>
    %214 = vector.extract_strided_slice %39 {offsets = [1, 0], sizes = [1, 32], strides = [1, 1]} : vector<8x32xf32> to vector<1x32xf32>
    %215 = arith.addf %214, %209 : vector<1x32xf32>
    %216 = arith.negf %215 : vector<1x32xf32>
    %217 = math.exp %216 : vector<1x32xf32>
    %cst_61 = arith.constant 1.000000e+00 : f32
    %218 = vector.broadcast %cst_61 : f32 to vector<1x32xf32>
    %219 = arith.addf %218, %217 : vector<1x32xf32>
    %220 = arith.divf %218, %219 : vector<1x32xf32>
    %221 = vector.extract_strided_slice %40 {offsets = [1, 0], sizes = [1, 32], strides = [1, 1]} : vector<8x32xf32> to vector<1x32xf32>
    %222 = arith.addf %221, %211 : vector<1x32xf32>
    %223 = arith.negf %222 : vector<1x32xf32>
    %224 = math.exp %223 : vector<1x32xf32>
    %cst_62 = arith.constant 1.000000e+00 : f32
    %225 = vector.broadcast %cst_62 : f32 to vector<1x32xf32>
    %226 = arith.addf %225, %224 : vector<1x32xf32>
    %227 = arith.divf %225, %226 : vector<1x32xf32>
    %228 = vector.extract_strided_slice %41 {offsets = [1, 0], sizes = [1, 32], strides = [1, 1]} : vector<8x32xf32> to vector<1x32xf32>
    %229 = arith.mulf %220, %213 : vector<1x32xf32>
    %230 = arith.addf %228, %229 : vector<1x32xf32>
    %231 = math.tanh %230 : vector<1x32xf32>
    %cst_63 = arith.constant 1.000000e+00 : f32
    %232 = vector.broadcast %cst_63 : f32 to vector<1x32xf32>
    %233 = arith.subf %232, %227 : vector<1x32xf32>
    %234 = arith.mulf %233, %231 : vector<1x32xf32>
    %235 = arith.mulf %227, %120 : vector<1x32xf32>
    %236 = arith.addf %234, %235 : vector<1x32xf32>
    %cst_64 = arith.constant dense<0.000000e+00> : vector<1x32xf32>
    %237 = tpu.matmul %149, %33, %cst_64 {dimension_numbers = #tpu.dot_dimension_numbers<[1], [0], [0], [1], [0, 0, 1, 1], [], []>} : vector<1x32xf32>, vector<32x32xf32>, vector<1x32xf32> -> vector<1x32xf32>
    %238 = arith.addf %237, %36 : vector<1x32xf32>
    %cst_65 = arith.constant dense<0.000000e+00> : vector<1x32xf32>
    %239 = tpu.matmul %149, %34, %cst_65 {dimension_numbers = #tpu.dot_dimension_numbers<[1], [0], [0], [1], [0, 0, 1, 1], [], []>} : vector<1x32xf32>, vector<32x32xf32>, vector<1x32xf32> -> vector<1x32xf32>
    %240 = arith.addf %239, %37 : vector<1x32xf32>
    %cst_66 = arith.constant dense<0.000000e+00> : vector<1x32xf32>
    %241 = tpu.matmul %149, %35, %cst_66 {dimension_numbers = #tpu.dot_dimension_numbers<[1], [0], [0], [1], [0, 0, 1, 1], [], []>} : vector<1x32xf32>, vector<32x32xf32>, vector<1x32xf32> -> vector<1x32xf32>
    %242 = arith.addf %241, %38 : vector<1x32xf32>
    %243 = vector.extract_strided_slice %43 {offsets = [1, 0], sizes = [1, 32], strides = [1, 1]} : vector<8x32xf32> to vector<1x32xf32>
    %244 = arith.addf %243, %238 : vector<1x32xf32>
    %245 = arith.negf %244 : vector<1x32xf32>
    %246 = math.exp %245 : vector<1x32xf32>
    %cst_67 = arith.constant 1.000000e+00 : f32
    %247 = vector.broadcast %cst_67 : f32 to vector<1x32xf32>
    %248 = arith.addf %247, %246 : vector<1x32xf32>
    %249 = arith.divf %247, %248 : vector<1x32xf32>
    %250 = vector.extract_strided_slice %44 {offsets = [1, 0], sizes = [1, 32], strides = [1, 1]} : vector<8x32xf32> to vector<1x32xf32>
    %251 = arith.addf %250, %240 : vector<1x32xf32>
    %252 = arith.negf %251 : vector<1x32xf32>
    %253 = math.exp %252 : vector<1x32xf32>
    %cst_68 = arith.constant 1.000000e+00 : f32
    %254 = vector.broadcast %cst_68 : f32 to vector<1x32xf32>
    %255 = arith.addf %254, %253 : vector<1x32xf32>
    %256 = arith.divf %254, %255 : vector<1x32xf32>
    %257 = vector.extract_strided_slice %45 {offsets = [1, 0], sizes = [1, 32], strides = [1, 1]} : vector<8x32xf32> to vector<1x32xf32>
    %258 = arith.mulf %249, %242 : vector<1x32xf32>
    %259 = arith.addf %257, %258 : vector<1x32xf32>
    %260 = math.tanh %259 : vector<1x32xf32>
    %cst_69 = arith.constant 1.000000e+00 : f32
    %261 = vector.broadcast %cst_69 : f32 to vector<1x32xf32>
    %262 = arith.subf %261, %256 : vector<1x32xf32>
    %263 = arith.mulf %262, %260 : vector<1x32xf32>
    %264 = arith.mulf %256, %149 : vector<1x32xf32>
    %265 = arith.addf %263, %264 : vector<1x32xf32>
    %cst_70 = arith.constant dense<0.000000e+00> : vector<1x32xf32>
    %266 = tpu.matmul %178, %78, %cst_70 {dimension_numbers = #tpu.dot_dimension_numbers<[1], [0], [0], [1], [0, 0, 1, 1], [], []>} : vector<1x32xf32>, vector<32x32xf32>, vector<1x32xf32> -> vector<1x32xf32>
    %267 = arith.addf %266, %81 : vector<1x32xf32>
    %cst_71 = arith.constant dense<0.000000e+00> : vector<1x32xf32>
    %268 = tpu.matmul %178, %79, %cst_71 {dimension_numbers = #tpu.dot_dimension_numbers<[1], [0], [0], [1], [0, 0, 1, 1], [], []>} : vector<1x32xf32>, vector<32x32xf32>, vector<1x32xf32> -> vector<1x32xf32>
    %269 = arith.addf %268, %82 : vector<1x32xf32>
    %cst_72 = arith.constant dense<0.000000e+00> : vector<1x32xf32>
    %270 = tpu.matmul %178, %80, %cst_72 {dimension_numbers = #tpu.dot_dimension_numbers<[1], [0], [0], [1], [0, 0, 1, 1], [], []>} : vector<1x32xf32>, vector<32x32xf32>, vector<1x32xf32> -> vector<1x32xf32>
    %271 = arith.addf %270, %83 : vector<1x32xf32>
    %272 = vector.extract_strided_slice %84 {offsets = [6, 0], sizes = [1, 32], strides = [1, 1]} : vector<8x32xf32> to vector<1x32xf32>
    %273 = arith.addf %272, %267 : vector<1x32xf32>
    %274 = arith.negf %273 : vector<1x32xf32>
    %275 = math.exp %274 : vector<1x32xf32>
    %cst_73 = arith.constant 1.000000e+00 : f32
    %276 = vector.broadcast %cst_73 : f32 to vector<1x32xf32>
    %277 = arith.addf %276, %275 : vector<1x32xf32>
    %278 = arith.divf %276, %277 : vector<1x32xf32>
    %279 = vector.extract_strided_slice %85 {offsets = [6, 0], sizes = [1, 32], strides = [1, 1]} : vector<8x32xf32> to vector<1x32xf32>
    %280 = arith.addf %279, %269 : vector<1x32xf32>
    %281 = arith.negf %280 : vector<1x32xf32>
    %282 = math.exp %281 : vector<1x32xf32>
    %cst_74 = arith.constant 1.000000e+00 : f32
    %283 = vector.broadcast %cst_74 : f32 to vector<1x32xf32>
    %284 = arith.addf %283, %282 : vector<1x32xf32>
    %285 = arith.divf %283, %284 : vector<1x32xf32>
    %286 = vector.extract_strided_slice %86 {offsets = [6, 0], sizes = [1, 32], strides = [1, 1]} : vector<8x32xf32> to vector<1x32xf32>
    %287 = arith.mulf %278, %271 : vector<1x32xf32>
    %288 = arith.addf %286, %287 : vector<1x32xf32>
    %289 = math.tanh %288 : vector<1x32xf32>
    %cst_75 = arith.constant 1.000000e+00 : f32
    %290 = vector.broadcast %cst_75 : f32 to vector<1x32xf32>
    %291 = arith.subf %290, %285 : vector<1x32xf32>
    %292 = arith.mulf %291, %289 : vector<1x32xf32>
    %293 = arith.mulf %285, %178 : vector<1x32xf32>
    %294 = arith.addf %292, %293 : vector<1x32xf32>
    %cst_76 = arith.constant dense<0.000000e+00> : vector<1x32xf32>
    %295 = tpu.matmul %207, %78, %cst_76 {dimension_numbers = #tpu.dot_dimension_numbers<[1], [0], [0], [1], [0, 0, 1, 1], [], []>} : vector<1x32xf32>, vector<32x32xf32>, vector<1x32xf32> -> vector<1x32xf32>
    %296 = arith.addf %295, %81 : vector<1x32xf32>
    %cst_77 = arith.constant dense<0.000000e+00> : vector<1x32xf32>
    %297 = tpu.matmul %207, %79, %cst_77 {dimension_numbers = #tpu.dot_dimension_numbers<[1], [0], [0], [1], [0, 0, 1, 1], [], []>} : vector<1x32xf32>, vector<32x32xf32>, vector<1x32xf32> -> vector<1x32xf32>
    %298 = arith.addf %297, %82 : vector<1x32xf32>
    %cst_78 = arith.constant dense<0.000000e+00> : vector<1x32xf32>
    %299 = tpu.matmul %207, %80, %cst_78 {dimension_numbers = #tpu.dot_dimension_numbers<[1], [0], [0], [1], [0, 0, 1, 1], [], []>} : vector<1x32xf32>, vector<32x32xf32>, vector<1x32xf32> -> vector<1x32xf32>
    %300 = arith.addf %299, %83 : vector<1x32xf32>
    %301 = vector.extract_strided_slice %88 {offsets = [6, 0], sizes = [1, 32], strides = [1, 1]} : vector<8x32xf32> to vector<1x32xf32>
    %302 = arith.addf %301, %296 : vector<1x32xf32>
    %303 = arith.negf %302 : vector<1x32xf32>
    %304 = math.exp %303 : vector<1x32xf32>
    %cst_79 = arith.constant 1.000000e+00 : f32
    %305 = vector.broadcast %cst_79 : f32 to vector<1x32xf32>
    %306 = arith.addf %305, %304 : vector<1x32xf32>
    %307 = arith.divf %305, %306 : vector<1x32xf32>
    %308 = vector.extract_strided_slice %89 {offsets = [6, 0], sizes = [1, 32], strides = [1, 1]} : vector<8x32xf32> to vector<1x32xf32>
    %309 = arith.addf %308, %298 : vector<1x32xf32>
    %310 = arith.negf %309 : vector<1x32xf32>
    %311 = math.exp %310 : vector<1x32xf32>
    %cst_80 = arith.constant 1.000000e+00 : f32
    %312 = vector.broadcast %cst_80 : f32 to vector<1x32xf32>
    %313 = arith.addf %312, %311 : vector<1x32xf32>
    %314 = arith.divf %312, %313 : vector<1x32xf32>
    %315 = vector.extract_strided_slice %90 {offsets = [6, 0], sizes = [1, 32], strides = [1, 1]} : vector<8x32xf32> to vector<1x32xf32>
    %316 = arith.mulf %307, %300 : vector<1x32xf32>
    %317 = arith.addf %315, %316 : vector<1x32xf32>
    %318 = math.tanh %317 : vector<1x32xf32>
    %cst_81 = arith.constant 1.000000e+00 : f32
    %319 = vector.broadcast %cst_81 : f32 to vector<1x32xf32>
    %320 = arith.subf %319, %314 : vector<1x32xf32>
    %321 = arith.mulf %320, %318 : vector<1x32xf32>
    %322 = arith.mulf %314, %207 : vector<1x32xf32>
    %323 = arith.addf %321, %322 : vector<1x32xf32>
    %cst_82 = arith.constant dense<0.000000e+00> : vector<1x32xf32>
    %324 = tpu.matmul %236, %33, %cst_82 {dimension_numbers = #tpu.dot_dimension_numbers<[1], [0], [0], [1], [0, 0, 1, 1], [], []>} : vector<1x32xf32>, vector<32x32xf32>, vector<1x32xf32> -> vector<1x32xf32>
    %325 = arith.addf %324, %36 : vector<1x32xf32>
    %cst_83 = arith.constant dense<0.000000e+00> : vector<1x32xf32>
    %326 = tpu.matmul %236, %34, %cst_83 {dimension_numbers = #tpu.dot_dimension_numbers<[1], [0], [0], [1], [0, 0, 1, 1], [], []>} : vector<1x32xf32>, vector<32x32xf32>, vector<1x32xf32> -> vector<1x32xf32>
    %327 = arith.addf %326, %37 : vector<1x32xf32>
    %cst_84 = arith.constant dense<0.000000e+00> : vector<1x32xf32>
    %328 = tpu.matmul %236, %35, %cst_84 {dimension_numbers = #tpu.dot_dimension_numbers<[1], [0], [0], [1], [0, 0, 1, 1], [], []>} : vector<1x32xf32>, vector<32x32xf32>, vector<1x32xf32> -> vector<1x32xf32>
    %329 = arith.addf %328, %38 : vector<1x32xf32>
    %330 = vector.extract_strided_slice %39 {offsets = [2, 0], sizes = [1, 32], strides = [1, 1]} : vector<8x32xf32> to vector<1x32xf32>
    %331 = arith.addf %330, %325 : vector<1x32xf32>
    %332 = arith.negf %331 : vector<1x32xf32>
    %333 = math.exp %332 : vector<1x32xf32>
    %cst_85 = arith.constant 1.000000e+00 : f32
    %334 = vector.broadcast %cst_85 : f32 to vector<1x32xf32>
    %335 = arith.addf %334, %333 : vector<1x32xf32>
    %336 = arith.divf %334, %335 : vector<1x32xf32>
    %337 = vector.extract_strided_slice %40 {offsets = [2, 0], sizes = [1, 32], strides = [1, 1]} : vector<8x32xf32> to vector<1x32xf32>
    %338 = arith.addf %337, %327 : vector<1x32xf32>
    %339 = arith.negf %338 : vector<1x32xf32>
    %340 = math.exp %339 : vector<1x32xf32>
    %cst_86 = arith.constant 1.000000e+00 : f32
    %341 = vector.broadcast %cst_86 : f32 to vector<1x32xf32>
    %342 = arith.addf %341, %340 : vector<1x32xf32>
    %343 = arith.divf %341, %342 : vector<1x32xf32>
    %344 = vector.extract_strided_slice %41 {offsets = [2, 0], sizes = [1, 32], strides = [1, 1]} : vector<8x32xf32> to vector<1x32xf32>
    %345 = arith.mulf %336, %329 : vector<1x32xf32>
    %346 = arith.addf %344, %345 : vector<1x32xf32>
    %347 = math.tanh %346 : vector<1x32xf32>
    %cst_87 = arith.constant 1.000000e+00 : f32
    %348 = vector.broadcast %cst_87 : f32 to vector<1x32xf32>
    %349 = arith.subf %348, %343 : vector<1x32xf32>
    %350 = arith.mulf %349, %347 : vector<1x32xf32>
    %351 = arith.mulf %343, %236 : vector<1x32xf32>
    %352 = arith.addf %350, %351 : vector<1x32xf32>
    %cst_88 = arith.constant dense<0.000000e+00> : vector<1x32xf32>
    %353 = tpu.matmul %265, %33, %cst_88 {dimension_numbers = #tpu.dot_dimension_numbers<[1], [0], [0], [1], [0, 0, 1, 1], [], []>} : vector<1x32xf32>, vector<32x32xf32>, vector<1x32xf32> -> vector<1x32xf32>
    %354 = arith.addf %353, %36 : vector<1x32xf32>
    %cst_89 = arith.constant dense<0.000000e+00> : vector<1x32xf32>
    %355 = tpu.matmul %265, %34, %cst_89 {dimension_numbers = #tpu.dot_dimension_numbers<[1], [0], [0], [1], [0, 0, 1, 1], [], []>} : vector<1x32xf32>, vector<32x32xf32>, vector<1x32xf32> -> vector<1x32xf32>
    %356 = arith.addf %355, %37 : vector<1x32xf32>
    %cst_90 = arith.constant dense<0.000000e+00> : vector<1x32xf32>
    %357 = tpu.matmul %265, %35, %cst_90 {dimension_numbers = #tpu.dot_dimension_numbers<[1], [0], [0], [1], [0, 0, 1, 1], [], []>} : vector<1x32xf32>, vector<32x32xf32>, vector<1x32xf32> -> vector<1x32xf32>
    %358 = arith.addf %357, %38 : vector<1x32xf32>
    %359 = vector.extract_strided_slice %43 {offsets = [2, 0], sizes = [1, 32], strides = [1, 1]} : vector<8x32xf32> to vector<1x32xf32>
    %360 = arith.addf %359, %354 : vector<1x32xf32>
    %361 = arith.negf %360 : vector<1x32xf32>
    %362 = math.exp %361 : vector<1x32xf32>
    %cst_91 = arith.constant 1.000000e+00 : f32
    %363 = vector.broadcast %cst_91 : f32 to vector<1x32xf32>
    %364 = arith.addf %363, %362 : vector<1x32xf32>
    %365 = arith.divf %363, %364 : vector<1x32xf32>
    %366 = vector.extract_strided_slice %44 {offsets = [2, 0], sizes = [1, 32], strides = [1, 1]} : vector<8x32xf32> to vector<1x32xf32>
    %367 = arith.addf %366, %356 : vector<1x32xf32>
    %368 = arith.negf %367 : vector<1x32xf32>
    %369 = math.exp %368 : vector<1x32xf32>
    %cst_92 = arith.constant 1.000000e+00 : f32
    %370 = vector.broadcast %cst_92 : f32 to vector<1x32xf32>
    %371 = arith.addf %370, %369 : vector<1x32xf32>
    %372 = arith.divf %370, %371 : vector<1x32xf32>
    %373 = vector.extract_strided_slice %45 {offsets = [2, 0], sizes = [1, 32], strides = [1, 1]} : vector<8x32xf32> to vector<1x32xf32>
    %374 = arith.mulf %365, %358 : vector<1x32xf32>
    %375 = arith.addf %373, %374 : vector<1x32xf32>
    %376 = math.tanh %375 : vector<1x32xf32>
    %cst_93 = arith.constant 1.000000e+00 : f32
    %377 = vector.broadcast %cst_93 : f32 to vector<1x32xf32>
    %378 = arith.subf %377, %372 : vector<1x32xf32>
    %379 = arith.mulf %378, %376 : vector<1x32xf32>
    %380 = arith.mulf %372, %265 : vector<1x32xf32>
    %381 = arith.addf %379, %380 : vector<1x32xf32>
    %cst_94 = arith.constant dense<0.000000e+00> : vector<1x32xf32>
    %382 = tpu.matmul %294, %78, %cst_94 {dimension_numbers = #tpu.dot_dimension_numbers<[1], [0], [0], [1], [0, 0, 1, 1], [], []>} : vector<1x32xf32>, vector<32x32xf32>, vector<1x32xf32> -> vector<1x32xf32>
    %383 = arith.addf %382, %81 : vector<1x32xf32>
    %cst_95 = arith.constant dense<0.000000e+00> : vector<1x32xf32>
    %384 = tpu.matmul %294, %79, %cst_95 {dimension_numbers = #tpu.dot_dimension_numbers<[1], [0], [0], [1], [0, 0, 1, 1], [], []>} : vector<1x32xf32>, vector<32x32xf32>, vector<1x32xf32> -> vector<1x32xf32>
    %385 = arith.addf %384, %82 : vector<1x32xf32>
    %cst_96 = arith.constant dense<0.000000e+00> : vector<1x32xf32>
    %386 = tpu.matmul %294, %80, %cst_96 {dimension_numbers = #tpu.dot_dimension_numbers<[1], [0], [0], [1], [0, 0, 1, 1], [], []>} : vector<1x32xf32>, vector<32x32xf32>, vector<1x32xf32> -> vector<1x32xf32>
    %387 = arith.addf %386, %83 : vector<1x32xf32>
    %388 = vector.extract_strided_slice %84 {offsets = [5, 0], sizes = [1, 32], strides = [1, 1]} : vector<8x32xf32> to vector<1x32xf32>
    %389 = arith.addf %388, %383 : vector<1x32xf32>
    %390 = arith.negf %389 : vector<1x32xf32>
    %391 = math.exp %390 : vector<1x32xf32>
    %cst_97 = arith.constant 1.000000e+00 : f32
    %392 = vector.broadcast %cst_97 : f32 to vector<1x32xf32>
    %393 = arith.addf %392, %391 : vector<1x32xf32>
    %394 = arith.divf %392, %393 : vector<1x32xf32>
    %395 = vector.extract_strided_slice %85 {offsets = [5, 0], sizes = [1, 32], strides = [1, 1]} : vector<8x32xf32> to vector<1x32xf32>
    %396 = arith.addf %395, %385 : vector<1x32xf32>
    %397 = arith.negf %396 : vector<1x32xf32>
    %398 = math.exp %397 : vector<1x32xf32>
    %cst_98 = arith.constant 1.000000e+00 : f32
    %399 = vector.broadcast %cst_98 : f32 to vector<1x32xf32>
    %400 = arith.addf %399, %398 : vector<1x32xf32>
    %401 = arith.divf %399, %400 : vector<1x32xf32>
    %402 = vector.extract_strided_slice %86 {offsets = [5, 0], sizes = [1, 32], strides = [1, 1]} : vector<8x32xf32> to vector<1x32xf32>
    %403 = arith.mulf %394, %387 : vector<1x32xf32>
    %404 = arith.addf %402, %403 : vector<1x32xf32>
    %405 = math.tanh %404 : vector<1x32xf32>
    %cst_99 = arith.constant 1.000000e+00 : f32
    %406 = vector.broadcast %cst_99 : f32 to vector<1x32xf32>
    %407 = arith.subf %406, %401 : vector<1x32xf32>
    %408 = arith.mulf %407, %405 : vector<1x32xf32>
    %409 = arith.mulf %401, %294 : vector<1x32xf32>
    %410 = arith.addf %408, %409 : vector<1x32xf32>
    %cst_100 = arith.constant dense<0.000000e+00> : vector<1x32xf32>
    %411 = tpu.matmul %323, %78, %cst_100 {dimension_numbers = #tpu.dot_dimension_numbers<[1], [0], [0], [1], [0, 0, 1, 1], [], []>} : vector<1x32xf32>, vector<32x32xf32>, vector<1x32xf32> -> vector<1x32xf32>
    %412 = arith.addf %411, %81 : vector<1x32xf32>
    %cst_101 = arith.constant dense<0.000000e+00> : vector<1x32xf32>
    %413 = tpu.matmul %323, %79, %cst_101 {dimension_numbers = #tpu.dot_dimension_numbers<[1], [0], [0], [1], [0, 0, 1, 1], [], []>} : vector<1x32xf32>, vector<32x32xf32>, vector<1x32xf32> -> vector<1x32xf32>
    %414 = arith.addf %413, %82 : vector<1x32xf32>
    %cst_102 = arith.constant dense<0.000000e+00> : vector<1x32xf32>
    %415 = tpu.matmul %323, %80, %cst_102 {dimension_numbers = #tpu.dot_dimension_numbers<[1], [0], [0], [1], [0, 0, 1, 1], [], []>} : vector<1x32xf32>, vector<32x32xf32>, vector<1x32xf32> -> vector<1x32xf32>
    %416 = arith.addf %415, %83 : vector<1x32xf32>
    %417 = vector.extract_strided_slice %88 {offsets = [5, 0], sizes = [1, 32], strides = [1, 1]} : vector<8x32xf32> to vector<1x32xf32>
    %418 = arith.addf %417, %412 : vector<1x32xf32>
    %419 = arith.negf %418 : vector<1x32xf32>
    %420 = math.exp %419 : vector<1x32xf32>
    %cst_103 = arith.constant 1.000000e+00 : f32
    %421 = vector.broadcast %cst_103 : f32 to vector<1x32xf32>
    %422 = arith.addf %421, %420 : vector<1x32xf32>
    %423 = arith.divf %421, %422 : vector<1x32xf32>
    %424 = vector.extract_strided_slice %89 {offsets = [5, 0], sizes = [1, 32], strides = [1, 1]} : vector<8x32xf32> to vector<1x32xf32>
    %425 = arith.addf %424, %414 : vector<1x32xf32>
    %426 = arith.negf %425 : vector<1x32xf32>
    %427 = math.exp %426 : vector<1x32xf32>
    %cst_104 = arith.constant 1.000000e+00 : f32
    %428 = vector.broadcast %cst_104 : f32 to vector<1x32xf32>
    %429 = arith.addf %428, %427 : vector<1x32xf32>
    %430 = arith.divf %428, %429 : vector<1x32xf32>
    %431 = vector.extract_strided_slice %90 {offsets = [5, 0], sizes = [1, 32], strides = [1, 1]} : vector<8x32xf32> to vector<1x32xf32>
    %432 = arith.mulf %423, %416 : vector<1x32xf32>
    %433 = arith.addf %431, %432 : vector<1x32xf32>
    %434 = math.tanh %433 : vector<1x32xf32>
    %cst_105 = arith.constant 1.000000e+00 : f32
    %435 = vector.broadcast %cst_105 : f32 to vector<1x32xf32>
    %436 = arith.subf %435, %430 : vector<1x32xf32>
    %437 = arith.mulf %436, %434 : vector<1x32xf32>
    %438 = arith.mulf %430, %323 : vector<1x32xf32>
    %439 = arith.addf %437, %438 : vector<1x32xf32>
    %cst_106 = arith.constant dense<0.000000e+00> : vector<1x32xf32>
    %440 = tpu.matmul %352, %33, %cst_106 {dimension_numbers = #tpu.dot_dimension_numbers<[1], [0], [0], [1], [0, 0, 1, 1], [], []>} : vector<1x32xf32>, vector<32x32xf32>, vector<1x32xf32> -> vector<1x32xf32>
    %441 = arith.addf %440, %36 : vector<1x32xf32>
    %cst_107 = arith.constant dense<0.000000e+00> : vector<1x32xf32>
    %442 = tpu.matmul %352, %34, %cst_107 {dimension_numbers = #tpu.dot_dimension_numbers<[1], [0], [0], [1], [0, 0, 1, 1], [], []>} : vector<1x32xf32>, vector<32x32xf32>, vector<1x32xf32> -> vector<1x32xf32>
    %443 = arith.addf %442, %37 : vector<1x32xf32>
    %cst_108 = arith.constant dense<0.000000e+00> : vector<1x32xf32>
    %444 = tpu.matmul %352, %35, %cst_108 {dimension_numbers = #tpu.dot_dimension_numbers<[1], [0], [0], [1], [0, 0, 1, 1], [], []>} : vector<1x32xf32>, vector<32x32xf32>, vector<1x32xf32> -> vector<1x32xf32>
    %445 = arith.addf %444, %38 : vector<1x32xf32>
    %446 = vector.extract_strided_slice %39 {offsets = [3, 0], sizes = [1, 32], strides = [1, 1]} : vector<8x32xf32> to vector<1x32xf32>
    %447 = arith.addf %446, %441 : vector<1x32xf32>
    %448 = arith.negf %447 : vector<1x32xf32>
    %449 = math.exp %448 : vector<1x32xf32>
    %cst_109 = arith.constant 1.000000e+00 : f32
    %450 = vector.broadcast %cst_109 : f32 to vector<1x32xf32>
    %451 = arith.addf %450, %449 : vector<1x32xf32>
    %452 = arith.divf %450, %451 : vector<1x32xf32>
    %453 = vector.extract_strided_slice %40 {offsets = [3, 0], sizes = [1, 32], strides = [1, 1]} : vector<8x32xf32> to vector<1x32xf32>
    %454 = arith.addf %453, %443 : vector<1x32xf32>
    %455 = arith.negf %454 : vector<1x32xf32>
    %456 = math.exp %455 : vector<1x32xf32>
    %cst_110 = arith.constant 1.000000e+00 : f32
    %457 = vector.broadcast %cst_110 : f32 to vector<1x32xf32>
    %458 = arith.addf %457, %456 : vector<1x32xf32>
    %459 = arith.divf %457, %458 : vector<1x32xf32>
    %460 = vector.extract_strided_slice %41 {offsets = [3, 0], sizes = [1, 32], strides = [1, 1]} : vector<8x32xf32> to vector<1x32xf32>
    %461 = arith.mulf %452, %445 : vector<1x32xf32>
    %462 = arith.addf %460, %461 : vector<1x32xf32>
    %463 = math.tanh %462 : vector<1x32xf32>
    %cst_111 = arith.constant 1.000000e+00 : f32
    %464 = vector.broadcast %cst_111 : f32 to vector<1x32xf32>
    %465 = arith.subf %464, %459 : vector<1x32xf32>
    %466 = arith.mulf %465, %463 : vector<1x32xf32>
    %467 = arith.mulf %459, %352 : vector<1x32xf32>
    %468 = arith.addf %466, %467 : vector<1x32xf32>
    %cst_112 = arith.constant dense<0.000000e+00> : vector<1x32xf32>
    %469 = tpu.matmul %381, %33, %cst_112 {dimension_numbers = #tpu.dot_dimension_numbers<[1], [0], [0], [1], [0, 0, 1, 1], [], []>} : vector<1x32xf32>, vector<32x32xf32>, vector<1x32xf32> -> vector<1x32xf32>
    %470 = arith.addf %469, %36 : vector<1x32xf32>
    %cst_113 = arith.constant dense<0.000000e+00> : vector<1x32xf32>
    %471 = tpu.matmul %381, %34, %cst_113 {dimension_numbers = #tpu.dot_dimension_numbers<[1], [0], [0], [1], [0, 0, 1, 1], [], []>} : vector<1x32xf32>, vector<32x32xf32>, vector<1x32xf32> -> vector<1x32xf32>
    %472 = arith.addf %471, %37 : vector<1x32xf32>
    %cst_114 = arith.constant dense<0.000000e+00> : vector<1x32xf32>
    %473 = tpu.matmul %381, %35, %cst_114 {dimension_numbers = #tpu.dot_dimension_numbers<[1], [0], [0], [1], [0, 0, 1, 1], [], []>} : vector<1x32xf32>, vector<32x32xf32>, vector<1x32xf32> -> vector<1x32xf32>
    %474 = arith.addf %473, %38 : vector<1x32xf32>
    %475 = vector.extract_strided_slice %43 {offsets = [3, 0], sizes = [1, 32], strides = [1, 1]} : vector<8x32xf32> to vector<1x32xf32>
    %476 = arith.addf %475, %470 : vector<1x32xf32>
    %477 = arith.negf %476 : vector<1x32xf32>
    %478 = math.exp %477 : vector<1x32xf32>
    %cst_115 = arith.constant 1.000000e+00 : f32
    %479 = vector.broadcast %cst_115 : f32 to vector<1x32xf32>
    %480 = arith.addf %479, %478 : vector<1x32xf32>
    %481 = arith.divf %479, %480 : vector<1x32xf32>
    %482 = vector.extract_strided_slice %44 {offsets = [3, 0], sizes = [1, 32], strides = [1, 1]} : vector<8x32xf32> to vector<1x32xf32>
    %483 = arith.addf %482, %472 : vector<1x32xf32>
    %484 = arith.negf %483 : vector<1x32xf32>
    %485 = math.exp %484 : vector<1x32xf32>
    %cst_116 = arith.constant 1.000000e+00 : f32
    %486 = vector.broadcast %cst_116 : f32 to vector<1x32xf32>
    %487 = arith.addf %486, %485 : vector<1x32xf32>
    %488 = arith.divf %486, %487 : vector<1x32xf32>
    %489 = vector.extract_strided_slice %45 {offsets = [3, 0], sizes = [1, 32], strides = [1, 1]} : vector<8x32xf32> to vector<1x32xf32>
    %490 = arith.mulf %481, %474 : vector<1x32xf32>
    %491 = arith.addf %489, %490 : vector<1x32xf32>
    %492 = math.tanh %491 : vector<1x32xf32>
    %cst_117 = arith.constant 1.000000e+00 : f32
    %493 = vector.broadcast %cst_117 : f32 to vector<1x32xf32>
    %494 = arith.subf %493, %488 : vector<1x32xf32>
    %495 = arith.mulf %494, %492 : vector<1x32xf32>
    %496 = arith.mulf %488, %381 : vector<1x32xf32>
    %497 = arith.addf %495, %496 : vector<1x32xf32>
    %cst_118 = arith.constant dense<0.000000e+00> : vector<1x32xf32>
    %498 = tpu.matmul %410, %78, %cst_118 {dimension_numbers = #tpu.dot_dimension_numbers<[1], [0], [0], [1], [0, 0, 1, 1], [], []>} : vector<1x32xf32>, vector<32x32xf32>, vector<1x32xf32> -> vector<1x32xf32>
    %499 = arith.addf %498, %81 : vector<1x32xf32>
    %cst_119 = arith.constant dense<0.000000e+00> : vector<1x32xf32>
    %500 = tpu.matmul %410, %79, %cst_119 {dimension_numbers = #tpu.dot_dimension_numbers<[1], [0], [0], [1], [0, 0, 1, 1], [], []>} : vector<1x32xf32>, vector<32x32xf32>, vector<1x32xf32> -> vector<1x32xf32>
    %501 = arith.addf %500, %82 : vector<1x32xf32>
    %cst_120 = arith.constant dense<0.000000e+00> : vector<1x32xf32>
    %502 = tpu.matmul %410, %80, %cst_120 {dimension_numbers = #tpu.dot_dimension_numbers<[1], [0], [0], [1], [0, 0, 1, 1], [], []>} : vector<1x32xf32>, vector<32x32xf32>, vector<1x32xf32> -> vector<1x32xf32>
    %503 = arith.addf %502, %83 : vector<1x32xf32>
    %504 = vector.extract_strided_slice %84 {offsets = [4, 0], sizes = [1, 32], strides = [1, 1]} : vector<8x32xf32> to vector<1x32xf32>
    %505 = arith.addf %504, %499 : vector<1x32xf32>
    %506 = arith.negf %505 : vector<1x32xf32>
    %507 = math.exp %506 : vector<1x32xf32>
    %cst_121 = arith.constant 1.000000e+00 : f32
    %508 = vector.broadcast %cst_121 : f32 to vector<1x32xf32>
    %509 = arith.addf %508, %507 : vector<1x32xf32>
    %510 = arith.divf %508, %509 : vector<1x32xf32>
    %511 = vector.extract_strided_slice %85 {offsets = [4, 0], sizes = [1, 32], strides = [1, 1]} : vector<8x32xf32> to vector<1x32xf32>
    %512 = arith.addf %511, %501 : vector<1x32xf32>
    %513 = arith.negf %512 : vector<1x32xf32>
    %514 = math.exp %513 : vector<1x32xf32>
    %cst_122 = arith.constant 1.000000e+00 : f32
    %515 = vector.broadcast %cst_122 : f32 to vector<1x32xf32>
    %516 = arith.addf %515, %514 : vector<1x32xf32>
    %517 = arith.divf %515, %516 : vector<1x32xf32>
    %518 = vector.extract_strided_slice %86 {offsets = [4, 0], sizes = [1, 32], strides = [1, 1]} : vector<8x32xf32> to vector<1x32xf32>
    %519 = arith.mulf %510, %503 : vector<1x32xf32>
    %520 = arith.addf %518, %519 : vector<1x32xf32>
    %521 = math.tanh %520 : vector<1x32xf32>
    %cst_123 = arith.constant 1.000000e+00 : f32
    %522 = vector.broadcast %cst_123 : f32 to vector<1x32xf32>
    %523 = arith.subf %522, %517 : vector<1x32xf32>
    %524 = arith.mulf %523, %521 : vector<1x32xf32>
    %525 = arith.mulf %517, %410 : vector<1x32xf32>
    %526 = arith.addf %524, %525 : vector<1x32xf32>
    %cst_124 = arith.constant dense<0.000000e+00> : vector<1x32xf32>
    %527 = tpu.matmul %439, %78, %cst_124 {dimension_numbers = #tpu.dot_dimension_numbers<[1], [0], [0], [1], [0, 0, 1, 1], [], []>} : vector<1x32xf32>, vector<32x32xf32>, vector<1x32xf32> -> vector<1x32xf32>
    %528 = arith.addf %527, %81 : vector<1x32xf32>
    %cst_125 = arith.constant dense<0.000000e+00> : vector<1x32xf32>
    %529 = tpu.matmul %439, %79, %cst_125 {dimension_numbers = #tpu.dot_dimension_numbers<[1], [0], [0], [1], [0, 0, 1, 1], [], []>} : vector<1x32xf32>, vector<32x32xf32>, vector<1x32xf32> -> vector<1x32xf32>
    %530 = arith.addf %529, %82 : vector<1x32xf32>
    %cst_126 = arith.constant dense<0.000000e+00> : vector<1x32xf32>
    %531 = tpu.matmul %439, %80, %cst_126 {dimension_numbers = #tpu.dot_dimension_numbers<[1], [0], [0], [1], [0, 0, 1, 1], [], []>} : vector<1x32xf32>, vector<32x32xf32>, vector<1x32xf32> -> vector<1x32xf32>
    %532 = arith.addf %531, %83 : vector<1x32xf32>
    %533 = vector.extract_strided_slice %88 {offsets = [4, 0], sizes = [1, 32], strides = [1, 1]} : vector<8x32xf32> to vector<1x32xf32>
    %534 = arith.addf %533, %528 : vector<1x32xf32>
    %535 = arith.negf %534 : vector<1x32xf32>
    %536 = math.exp %535 : vector<1x32xf32>
    %cst_127 = arith.constant 1.000000e+00 : f32
    %537 = vector.broadcast %cst_127 : f32 to vector<1x32xf32>
    %538 = arith.addf %537, %536 : vector<1x32xf32>
    %539 = arith.divf %537, %538 : vector<1x32xf32>
    %540 = vector.extract_strided_slice %89 {offsets = [4, 0], sizes = [1, 32], strides = [1, 1]} : vector<8x32xf32> to vector<1x32xf32>
    %541 = arith.addf %540, %530 : vector<1x32xf32>
    %542 = arith.negf %541 : vector<1x32xf32>
    %543 = math.exp %542 : vector<1x32xf32>
    %cst_128 = arith.constant 1.000000e+00 : f32
    %544 = vector.broadcast %cst_128 : f32 to vector<1x32xf32>
    %545 = arith.addf %544, %543 : vector<1x32xf32>
    %546 = arith.divf %544, %545 : vector<1x32xf32>
    %547 = vector.extract_strided_slice %90 {offsets = [4, 0], sizes = [1, 32], strides = [1, 1]} : vector<8x32xf32> to vector<1x32xf32>
    %548 = arith.mulf %539, %532 : vector<1x32xf32>
    %549 = arith.addf %547, %548 : vector<1x32xf32>
    %550 = math.tanh %549 : vector<1x32xf32>
    %cst_129 = arith.constant 1.000000e+00 : f32
    %551 = vector.broadcast %cst_129 : f32 to vector<1x32xf32>
    %552 = arith.subf %551, %546 : vector<1x32xf32>
    %553 = arith.mulf %552, %550 : vector<1x32xf32>
    %554 = arith.mulf %546, %439 : vector<1x32xf32>
    %555 = arith.addf %553, %554 : vector<1x32xf32>
    %cst_130 = arith.constant dense<0.000000e+00> : vector<1x32xf32>
    %556 = tpu.matmul %468, %33, %cst_130 {dimension_numbers = #tpu.dot_dimension_numbers<[1], [0], [0], [1], [0, 0, 1, 1], [], []>} : vector<1x32xf32>, vector<32x32xf32>, vector<1x32xf32> -> vector<1x32xf32>
    %557 = arith.addf %556, %36 : vector<1x32xf32>
    %cst_131 = arith.constant dense<0.000000e+00> : vector<1x32xf32>
    %558 = tpu.matmul %468, %34, %cst_131 {dimension_numbers = #tpu.dot_dimension_numbers<[1], [0], [0], [1], [0, 0, 1, 1], [], []>} : vector<1x32xf32>, vector<32x32xf32>, vector<1x32xf32> -> vector<1x32xf32>
    %559 = arith.addf %558, %37 : vector<1x32xf32>
    %cst_132 = arith.constant dense<0.000000e+00> : vector<1x32xf32>
    %560 = tpu.matmul %468, %35, %cst_132 {dimension_numbers = #tpu.dot_dimension_numbers<[1], [0], [0], [1], [0, 0, 1, 1], [], []>} : vector<1x32xf32>, vector<32x32xf32>, vector<1x32xf32> -> vector<1x32xf32>
    %561 = arith.addf %560, %38 : vector<1x32xf32>
    %562 = vector.extract_strided_slice %39 {offsets = [4, 0], sizes = [1, 32], strides = [1, 1]} : vector<8x32xf32> to vector<1x32xf32>
    %563 = arith.addf %562, %557 : vector<1x32xf32>
    %564 = arith.negf %563 : vector<1x32xf32>
    %565 = math.exp %564 : vector<1x32xf32>
    %cst_133 = arith.constant 1.000000e+00 : f32
    %566 = vector.broadcast %cst_133 : f32 to vector<1x32xf32>
    %567 = arith.addf %566, %565 : vector<1x32xf32>
    %568 = arith.divf %566, %567 : vector<1x32xf32>
    %569 = vector.extract_strided_slice %40 {offsets = [4, 0], sizes = [1, 32], strides = [1, 1]} : vector<8x32xf32> to vector<1x32xf32>
    %570 = arith.addf %569, %559 : vector<1x32xf32>
    %571 = arith.negf %570 : vector<1x32xf32>
    %572 = math.exp %571 : vector<1x32xf32>
    %cst_134 = arith.constant 1.000000e+00 : f32
    %573 = vector.broadcast %cst_134 : f32 to vector<1x32xf32>
    %574 = arith.addf %573, %572 : vector<1x32xf32>
    %575 = arith.divf %573, %574 : vector<1x32xf32>
    %576 = vector.extract_strided_slice %41 {offsets = [4, 0], sizes = [1, 32], strides = [1, 1]} : vector<8x32xf32> to vector<1x32xf32>
    %577 = arith.mulf %568, %561 : vector<1x32xf32>
    %578 = arith.addf %576, %577 : vector<1x32xf32>
    %579 = math.tanh %578 : vector<1x32xf32>
    %cst_135 = arith.constant 1.000000e+00 : f32
    %580 = vector.broadcast %cst_135 : f32 to vector<1x32xf32>
    %581 = arith.subf %580, %575 : vector<1x32xf32>
    %582 = arith.mulf %581, %579 : vector<1x32xf32>
    %583 = arith.mulf %575, %468 : vector<1x32xf32>
    %584 = arith.addf %582, %583 : vector<1x32xf32>
    %cst_136 = arith.constant dense<0.000000e+00> : vector<1x32xf32>
    %585 = tpu.matmul %497, %33, %cst_136 {dimension_numbers = #tpu.dot_dimension_numbers<[1], [0], [0], [1], [0, 0, 1, 1], [], []>} : vector<1x32xf32>, vector<32x32xf32>, vector<1x32xf32> -> vector<1x32xf32>
    %586 = arith.addf %585, %36 : vector<1x32xf32>
    %cst_137 = arith.constant dense<0.000000e+00> : vector<1x32xf32>
    %587 = tpu.matmul %497, %34, %cst_137 {dimension_numbers = #tpu.dot_dimension_numbers<[1], [0], [0], [1], [0, 0, 1, 1], [], []>} : vector<1x32xf32>, vector<32x32xf32>, vector<1x32xf32> -> vector<1x32xf32>
    %588 = arith.addf %587, %37 : vector<1x32xf32>
    %cst_138 = arith.constant dense<0.000000e+00> : vector<1x32xf32>
    %589 = tpu.matmul %497, %35, %cst_138 {dimension_numbers = #tpu.dot_dimension_numbers<[1], [0], [0], [1], [0, 0, 1, 1], [], []>} : vector<1x32xf32>, vector<32x32xf32>, vector<1x32xf32> -> vector<1x32xf32>
    %590 = arith.addf %589, %38 : vector<1x32xf32>
    %591 = vector.extract_strided_slice %43 {offsets = [4, 0], sizes = [1, 32], strides = [1, 1]} : vector<8x32xf32> to vector<1x32xf32>
    %592 = arith.addf %591, %586 : vector<1x32xf32>
    %593 = arith.negf %592 : vector<1x32xf32>
    %594 = math.exp %593 : vector<1x32xf32>
    %cst_139 = arith.constant 1.000000e+00 : f32
    %595 = vector.broadcast %cst_139 : f32 to vector<1x32xf32>
    %596 = arith.addf %595, %594 : vector<1x32xf32>
    %597 = arith.divf %595, %596 : vector<1x32xf32>
    %598 = vector.extract_strided_slice %44 {offsets = [4, 0], sizes = [1, 32], strides = [1, 1]} : vector<8x32xf32> to vector<1x32xf32>
    %599 = arith.addf %598, %588 : vector<1x32xf32>
    %600 = arith.negf %599 : vector<1x32xf32>
    %601 = math.exp %600 : vector<1x32xf32>
    %cst_140 = arith.constant 1.000000e+00 : f32
    %602 = vector.broadcast %cst_140 : f32 to vector<1x32xf32>
    %603 = arith.addf %602, %601 : vector<1x32xf32>
    %604 = arith.divf %602, %603 : vector<1x32xf32>
    %605 = vector.extract_strided_slice %45 {offsets = [4, 0], sizes = [1, 32], strides = [1, 1]} : vector<8x32xf32> to vector<1x32xf32>
    %606 = arith.mulf %597, %590 : vector<1x32xf32>
    %607 = arith.addf %605, %606 : vector<1x32xf32>
    %608 = math.tanh %607 : vector<1x32xf32>
    %cst_141 = arith.constant 1.000000e+00 : f32
    %609 = vector.broadcast %cst_141 : f32 to vector<1x32xf32>
    %610 = arith.subf %609, %604 : vector<1x32xf32>
    %611 = arith.mulf %610, %608 : vector<1x32xf32>
    %612 = arith.mulf %604, %497 : vector<1x32xf32>
    %613 = arith.addf %611, %612 : vector<1x32xf32>
    %cst_142 = arith.constant dense<0.000000e+00> : vector<1x32xf32>
    %614 = tpu.matmul %526, %78, %cst_142 {dimension_numbers = #tpu.dot_dimension_numbers<[1], [0], [0], [1], [0, 0, 1, 1], [], []>} : vector<1x32xf32>, vector<32x32xf32>, vector<1x32xf32> -> vector<1x32xf32>
    %615 = arith.addf %614, %81 : vector<1x32xf32>
    %cst_143 = arith.constant dense<0.000000e+00> : vector<1x32xf32>
    %616 = tpu.matmul %526, %79, %cst_143 {dimension_numbers = #tpu.dot_dimension_numbers<[1], [0], [0], [1], [0, 0, 1, 1], [], []>} : vector<1x32xf32>, vector<32x32xf32>, vector<1x32xf32> -> vector<1x32xf32>
    %617 = arith.addf %616, %82 : vector<1x32xf32>
    %cst_144 = arith.constant dense<0.000000e+00> : vector<1x32xf32>
    %618 = tpu.matmul %526, %80, %cst_144 {dimension_numbers = #tpu.dot_dimension_numbers<[1], [0], [0], [1], [0, 0, 1, 1], [], []>} : vector<1x32xf32>, vector<32x32xf32>, vector<1x32xf32> -> vector<1x32xf32>
    %619 = arith.addf %618, %83 : vector<1x32xf32>
    %620 = vector.extract_strided_slice %84 {offsets = [3, 0], sizes = [1, 32], strides = [1, 1]} : vector<8x32xf32> to vector<1x32xf32>
    %621 = arith.addf %620, %615 : vector<1x32xf32>
    %622 = arith.negf %621 : vector<1x32xf32>
    %623 = math.exp %622 : vector<1x32xf32>
    %cst_145 = arith.constant 1.000000e+00 : f32
    %624 = vector.broadcast %cst_145 : f32 to vector<1x32xf32>
    %625 = arith.addf %624, %623 : vector<1x32xf32>
    %626 = arith.divf %624, %625 : vector<1x32xf32>
    %627 = vector.extract_strided_slice %85 {offsets = [3, 0], sizes = [1, 32], strides = [1, 1]} : vector<8x32xf32> to vector<1x32xf32>
    %628 = arith.addf %627, %617 : vector<1x32xf32>
    %629 = arith.negf %628 : vector<1x32xf32>
    %630 = math.exp %629 : vector<1x32xf32>
    %cst_146 = arith.constant 1.000000e+00 : f32
    %631 = vector.broadcast %cst_146 : f32 to vector<1x32xf32>
    %632 = arith.addf %631, %630 : vector<1x32xf32>
    %633 = arith.divf %631, %632 : vector<1x32xf32>
    %634 = vector.extract_strided_slice %86 {offsets = [3, 0], sizes = [1, 32], strides = [1, 1]} : vector<8x32xf32> to vector<1x32xf32>
    %635 = arith.mulf %626, %619 : vector<1x32xf32>
    %636 = arith.addf %634, %635 : vector<1x32xf32>
    %637 = math.tanh %636 : vector<1x32xf32>
    %cst_147 = arith.constant 1.000000e+00 : f32
    %638 = vector.broadcast %cst_147 : f32 to vector<1x32xf32>
    %639 = arith.subf %638, %633 : vector<1x32xf32>
    %640 = arith.mulf %639, %637 : vector<1x32xf32>
    %641 = arith.mulf %633, %526 : vector<1x32xf32>
    %642 = arith.addf %640, %641 : vector<1x32xf32>
    %cst_148 = arith.constant dense<0.000000e+00> : vector<1x32xf32>
    %643 = tpu.matmul %555, %78, %cst_148 {dimension_numbers = #tpu.dot_dimension_numbers<[1], [0], [0], [1], [0, 0, 1, 1], [], []>} : vector<1x32xf32>, vector<32x32xf32>, vector<1x32xf32> -> vector<1x32xf32>
    %644 = arith.addf %643, %81 : vector<1x32xf32>
    %cst_149 = arith.constant dense<0.000000e+00> : vector<1x32xf32>
    %645 = tpu.matmul %555, %79, %cst_149 {dimension_numbers = #tpu.dot_dimension_numbers<[1], [0], [0], [1], [0, 0, 1, 1], [], []>} : vector<1x32xf32>, vector<32x32xf32>, vector<1x32xf32> -> vector<1x32xf32>
    %646 = arith.addf %645, %82 : vector<1x32xf32>
    %cst_150 = arith.constant dense<0.000000e+00> : vector<1x32xf32>
    %647 = tpu.matmul %555, %80, %cst_150 {dimension_numbers = #tpu.dot_dimension_numbers<[1], [0], [0], [1], [0, 0, 1, 1], [], []>} : vector<1x32xf32>, vector<32x32xf32>, vector<1x32xf32> -> vector<1x32xf32>
    %648 = arith.addf %647, %83 : vector<1x32xf32>
    %649 = vector.extract_strided_slice %88 {offsets = [3, 0], sizes = [1, 32], strides = [1, 1]} : vector<8x32xf32> to vector<1x32xf32>
    %650 = arith.addf %649, %644 : vector<1x32xf32>
    %651 = arith.negf %650 : vector<1x32xf32>
    %652 = math.exp %651 : vector<1x32xf32>
    %cst_151 = arith.constant 1.000000e+00 : f32
    %653 = vector.broadcast %cst_151 : f32 to vector<1x32xf32>
    %654 = arith.addf %653, %652 : vector<1x32xf32>
    %655 = arith.divf %653, %654 : vector<1x32xf32>
    %656 = vector.extract_strided_slice %89 {offsets = [3, 0], sizes = [1, 32], strides = [1, 1]} : vector<8x32xf32> to vector<1x32xf32>
    %657 = arith.addf %656, %646 : vector<1x32xf32>
    %658 = arith.negf %657 : vector<1x32xf32>
    %659 = math.exp %658 : vector<1x32xf32>
    %cst_152 = arith.constant 1.000000e+00 : f32
    %660 = vector.broadcast %cst_152 : f32 to vector<1x32xf32>
    %661 = arith.addf %660, %659 : vector<1x32xf32>
    %662 = arith.divf %660, %661 : vector<1x32xf32>
    %663 = vector.extract_strided_slice %90 {offsets = [3, 0], sizes = [1, 32], strides = [1, 1]} : vector<8x32xf32> to vector<1x32xf32>
    %664 = arith.mulf %655, %648 : vector<1x32xf32>
    %665 = arith.addf %663, %664 : vector<1x32xf32>
    %666 = math.tanh %665 : vector<1x32xf32>
    %cst_153 = arith.constant 1.000000e+00 : f32
    %667 = vector.broadcast %cst_153 : f32 to vector<1x32xf32>
    %668 = arith.subf %667, %662 : vector<1x32xf32>
    %669 = arith.mulf %668, %666 : vector<1x32xf32>
    %670 = arith.mulf %662, %555 : vector<1x32xf32>
    %671 = arith.addf %669, %670 : vector<1x32xf32>
    %cst_154 = arith.constant dense<0.000000e+00> : vector<1x32xf32>
    %672 = tpu.matmul %584, %33, %cst_154 {dimension_numbers = #tpu.dot_dimension_numbers<[1], [0], [0], [1], [0, 0, 1, 1], [], []>} : vector<1x32xf32>, vector<32x32xf32>, vector<1x32xf32> -> vector<1x32xf32>
    %673 = arith.addf %672, %36 : vector<1x32xf32>
    %cst_155 = arith.constant dense<0.000000e+00> : vector<1x32xf32>
    %674 = tpu.matmul %584, %34, %cst_155 {dimension_numbers = #tpu.dot_dimension_numbers<[1], [0], [0], [1], [0, 0, 1, 1], [], []>} : vector<1x32xf32>, vector<32x32xf32>, vector<1x32xf32> -> vector<1x32xf32>
    %675 = arith.addf %674, %37 : vector<1x32xf32>
    %cst_156 = arith.constant dense<0.000000e+00> : vector<1x32xf32>
    %676 = tpu.matmul %584, %35, %cst_156 {dimension_numbers = #tpu.dot_dimension_numbers<[1], [0], [0], [1], [0, 0, 1, 1], [], []>} : vector<1x32xf32>, vector<32x32xf32>, vector<1x32xf32> -> vector<1x32xf32>
    %677 = arith.addf %676, %38 : vector<1x32xf32>
    %678 = vector.extract_strided_slice %39 {offsets = [5, 0], sizes = [1, 32], strides = [1, 1]} : vector<8x32xf32> to vector<1x32xf32>
    %679 = arith.addf %678, %673 : vector<1x32xf32>
    %680 = arith.negf %679 : vector<1x32xf32>
    %681 = math.exp %680 : vector<1x32xf32>
    %cst_157 = arith.constant 1.000000e+00 : f32
    %682 = vector.broadcast %cst_157 : f32 to vector<1x32xf32>
    %683 = arith.addf %682, %681 : vector<1x32xf32>
    %684 = arith.divf %682, %683 : vector<1x32xf32>
    %685 = vector.extract_strided_slice %40 {offsets = [5, 0], sizes = [1, 32], strides = [1, 1]} : vector<8x32xf32> to vector<1x32xf32>
    %686 = arith.addf %685, %675 : vector<1x32xf32>
    %687 = arith.negf %686 : vector<1x32xf32>
    %688 = math.exp %687 : vector<1x32xf32>
    %cst_158 = arith.constant 1.000000e+00 : f32
    %689 = vector.broadcast %cst_158 : f32 to vector<1x32xf32>
    %690 = arith.addf %689, %688 : vector<1x32xf32>
    %691 = arith.divf %689, %690 : vector<1x32xf32>
    %692 = vector.extract_strided_slice %41 {offsets = [5, 0], sizes = [1, 32], strides = [1, 1]} : vector<8x32xf32> to vector<1x32xf32>
    %693 = arith.mulf %684, %677 : vector<1x32xf32>
    %694 = arith.addf %692, %693 : vector<1x32xf32>
    %695 = math.tanh %694 : vector<1x32xf32>
    %cst_159 = arith.constant 1.000000e+00 : f32
    %696 = vector.broadcast %cst_159 : f32 to vector<1x32xf32>
    %697 = arith.subf %696, %691 : vector<1x32xf32>
    %698 = arith.mulf %697, %695 : vector<1x32xf32>
    %699 = arith.mulf %691, %584 : vector<1x32xf32>
    %700 = arith.addf %698, %699 : vector<1x32xf32>
    %cst_160 = arith.constant dense<0.000000e+00> : vector<1x32xf32>
    %701 = tpu.matmul %613, %33, %cst_160 {dimension_numbers = #tpu.dot_dimension_numbers<[1], [0], [0], [1], [0, 0, 1, 1], [], []>} : vector<1x32xf32>, vector<32x32xf32>, vector<1x32xf32> -> vector<1x32xf32>
    %702 = arith.addf %701, %36 : vector<1x32xf32>
    %cst_161 = arith.constant dense<0.000000e+00> : vector<1x32xf32>
    %703 = tpu.matmul %613, %34, %cst_161 {dimension_numbers = #tpu.dot_dimension_numbers<[1], [0], [0], [1], [0, 0, 1, 1], [], []>} : vector<1x32xf32>, vector<32x32xf32>, vector<1x32xf32> -> vector<1x32xf32>
    %704 = arith.addf %703, %37 : vector<1x32xf32>
    %cst_162 = arith.constant dense<0.000000e+00> : vector<1x32xf32>
    %705 = tpu.matmul %613, %35, %cst_162 {dimension_numbers = #tpu.dot_dimension_numbers<[1], [0], [0], [1], [0, 0, 1, 1], [], []>} : vector<1x32xf32>, vector<32x32xf32>, vector<1x32xf32> -> vector<1x32xf32>
    %706 = arith.addf %705, %38 : vector<1x32xf32>
    %707 = vector.extract_strided_slice %43 {offsets = [5, 0], sizes = [1, 32], strides = [1, 1]} : vector<8x32xf32> to vector<1x32xf32>
    %708 = arith.addf %707, %702 : vector<1x32xf32>
    %709 = arith.negf %708 : vector<1x32xf32>
    %710 = math.exp %709 : vector<1x32xf32>
    %cst_163 = arith.constant 1.000000e+00 : f32
    %711 = vector.broadcast %cst_163 : f32 to vector<1x32xf32>
    %712 = arith.addf %711, %710 : vector<1x32xf32>
    %713 = arith.divf %711, %712 : vector<1x32xf32>
    %714 = vector.extract_strided_slice %44 {offsets = [5, 0], sizes = [1, 32], strides = [1, 1]} : vector<8x32xf32> to vector<1x32xf32>
    %715 = arith.addf %714, %704 : vector<1x32xf32>
    %716 = arith.negf %715 : vector<1x32xf32>
    %717 = math.exp %716 : vector<1x32xf32>
    %cst_164 = arith.constant 1.000000e+00 : f32
    %718 = vector.broadcast %cst_164 : f32 to vector<1x32xf32>
    %719 = arith.addf %718, %717 : vector<1x32xf32>
    %720 = arith.divf %718, %719 : vector<1x32xf32>
    %721 = vector.extract_strided_slice %45 {offsets = [5, 0], sizes = [1, 32], strides = [1, 1]} : vector<8x32xf32> to vector<1x32xf32>
    %722 = arith.mulf %713, %706 : vector<1x32xf32>
    %723 = arith.addf %721, %722 : vector<1x32xf32>
    %724 = math.tanh %723 : vector<1x32xf32>
    %cst_165 = arith.constant 1.000000e+00 : f32
    %725 = vector.broadcast %cst_165 : f32 to vector<1x32xf32>
    %726 = arith.subf %725, %720 : vector<1x32xf32>
    %727 = arith.mulf %726, %724 : vector<1x32xf32>
    %728 = arith.mulf %720, %613 : vector<1x32xf32>
    %729 = arith.addf %727, %728 : vector<1x32xf32>
    %cst_166 = arith.constant dense<0.000000e+00> : vector<1x32xf32>
    %730 = tpu.matmul %642, %78, %cst_166 {dimension_numbers = #tpu.dot_dimension_numbers<[1], [0], [0], [1], [0, 0, 1, 1], [], []>} : vector<1x32xf32>, vector<32x32xf32>, vector<1x32xf32> -> vector<1x32xf32>
    %731 = arith.addf %730, %81 : vector<1x32xf32>
    %cst_167 = arith.constant dense<0.000000e+00> : vector<1x32xf32>
    %732 = tpu.matmul %642, %79, %cst_167 {dimension_numbers = #tpu.dot_dimension_numbers<[1], [0], [0], [1], [0, 0, 1, 1], [], []>} : vector<1x32xf32>, vector<32x32xf32>, vector<1x32xf32> -> vector<1x32xf32>
    %733 = arith.addf %732, %82 : vector<1x32xf32>
    %cst_168 = arith.constant dense<0.000000e+00> : vector<1x32xf32>
    %734 = tpu.matmul %642, %80, %cst_168 {dimension_numbers = #tpu.dot_dimension_numbers<[1], [0], [0], [1], [0, 0, 1, 1], [], []>} : vector<1x32xf32>, vector<32x32xf32>, vector<1x32xf32> -> vector<1x32xf32>
    %735 = arith.addf %734, %83 : vector<1x32xf32>
    %736 = vector.extract_strided_slice %84 {offsets = [2, 0], sizes = [1, 32], strides = [1, 1]} : vector<8x32xf32> to vector<1x32xf32>
    %737 = arith.addf %736, %731 : vector<1x32xf32>
    %738 = arith.negf %737 : vector<1x32xf32>
    %739 = math.exp %738 : vector<1x32xf32>
    %cst_169 = arith.constant 1.000000e+00 : f32
    %740 = vector.broadcast %cst_169 : f32 to vector<1x32xf32>
    %741 = arith.addf %740, %739 : vector<1x32xf32>
    %742 = arith.divf %740, %741 : vector<1x32xf32>
    %743 = vector.extract_strided_slice %85 {offsets = [2, 0], sizes = [1, 32], strides = [1, 1]} : vector<8x32xf32> to vector<1x32xf32>
    %744 = arith.addf %743, %733 : vector<1x32xf32>
    %745 = arith.negf %744 : vector<1x32xf32>
    %746 = math.exp %745 : vector<1x32xf32>
    %cst_170 = arith.constant 1.000000e+00 : f32
    %747 = vector.broadcast %cst_170 : f32 to vector<1x32xf32>
    %748 = arith.addf %747, %746 : vector<1x32xf32>
    %749 = arith.divf %747, %748 : vector<1x32xf32>
    %750 = vector.extract_strided_slice %86 {offsets = [2, 0], sizes = [1, 32], strides = [1, 1]} : vector<8x32xf32> to vector<1x32xf32>
    %751 = arith.mulf %742, %735 : vector<1x32xf32>
    %752 = arith.addf %750, %751 : vector<1x32xf32>
    %753 = math.tanh %752 : vector<1x32xf32>
    %cst_171 = arith.constant 1.000000e+00 : f32
    %754 = vector.broadcast %cst_171 : f32 to vector<1x32xf32>
    %755 = arith.subf %754, %749 : vector<1x32xf32>
    %756 = arith.mulf %755, %753 : vector<1x32xf32>
    %757 = arith.mulf %749, %642 : vector<1x32xf32>
    %758 = arith.addf %756, %757 : vector<1x32xf32>
    %cst_172 = arith.constant dense<0.000000e+00> : vector<1x32xf32>
    %759 = tpu.matmul %671, %78, %cst_172 {dimension_numbers = #tpu.dot_dimension_numbers<[1], [0], [0], [1], [0, 0, 1, 1], [], []>} : vector<1x32xf32>, vector<32x32xf32>, vector<1x32xf32> -> vector<1x32xf32>
    %760 = arith.addf %759, %81 : vector<1x32xf32>
    %cst_173 = arith.constant dense<0.000000e+00> : vector<1x32xf32>
    %761 = tpu.matmul %671, %79, %cst_173 {dimension_numbers = #tpu.dot_dimension_numbers<[1], [0], [0], [1], [0, 0, 1, 1], [], []>} : vector<1x32xf32>, vector<32x32xf32>, vector<1x32xf32> -> vector<1x32xf32>
    %762 = arith.addf %761, %82 : vector<1x32xf32>
    %cst_174 = arith.constant dense<0.000000e+00> : vector<1x32xf32>
    %763 = tpu.matmul %671, %80, %cst_174 {dimension_numbers = #tpu.dot_dimension_numbers<[1], [0], [0], [1], [0, 0, 1, 1], [], []>} : vector<1x32xf32>, vector<32x32xf32>, vector<1x32xf32> -> vector<1x32xf32>
    %764 = arith.addf %763, %83 : vector<1x32xf32>
    %765 = vector.extract_strided_slice %88 {offsets = [2, 0], sizes = [1, 32], strides = [1, 1]} : vector<8x32xf32> to vector<1x32xf32>
    %766 = arith.addf %765, %760 : vector<1x32xf32>
    %767 = arith.negf %766 : vector<1x32xf32>
    %768 = math.exp %767 : vector<1x32xf32>
    %cst_175 = arith.constant 1.000000e+00 : f32
    %769 = vector.broadcast %cst_175 : f32 to vector<1x32xf32>
    %770 = arith.addf %769, %768 : vector<1x32xf32>
    %771 = arith.divf %769, %770 : vector<1x32xf32>
    %772 = vector.extract_strided_slice %89 {offsets = [2, 0], sizes = [1, 32], strides = [1, 1]} : vector<8x32xf32> to vector<1x32xf32>
    %773 = arith.addf %772, %762 : vector<1x32xf32>
    %774 = arith.negf %773 : vector<1x32xf32>
    %775 = math.exp %774 : vector<1x32xf32>
    %cst_176 = arith.constant 1.000000e+00 : f32
    %776 = vector.broadcast %cst_176 : f32 to vector<1x32xf32>
    %777 = arith.addf %776, %775 : vector<1x32xf32>
    %778 = arith.divf %776, %777 : vector<1x32xf32>
    %779 = vector.extract_strided_slice %90 {offsets = [2, 0], sizes = [1, 32], strides = [1, 1]} : vector<8x32xf32> to vector<1x32xf32>
    %780 = arith.mulf %771, %764 : vector<1x32xf32>
    %781 = arith.addf %779, %780 : vector<1x32xf32>
    %782 = math.tanh %781 : vector<1x32xf32>
    %cst_177 = arith.constant 1.000000e+00 : f32
    %783 = vector.broadcast %cst_177 : f32 to vector<1x32xf32>
    %784 = arith.subf %783, %778 : vector<1x32xf32>
    %785 = arith.mulf %784, %782 : vector<1x32xf32>
    %786 = arith.mulf %778, %671 : vector<1x32xf32>
    %787 = arith.addf %785, %786 : vector<1x32xf32>
    %cst_178 = arith.constant dense<0.000000e+00> : vector<1x32xf32>
    %788 = tpu.matmul %700, %33, %cst_178 {dimension_numbers = #tpu.dot_dimension_numbers<[1], [0], [0], [1], [0, 0, 1, 1], [], []>} : vector<1x32xf32>, vector<32x32xf32>, vector<1x32xf32> -> vector<1x32xf32>
    %789 = arith.addf %788, %36 : vector<1x32xf32>
    %cst_179 = arith.constant dense<0.000000e+00> : vector<1x32xf32>
    %790 = tpu.matmul %700, %34, %cst_179 {dimension_numbers = #tpu.dot_dimension_numbers<[1], [0], [0], [1], [0, 0, 1, 1], [], []>} : vector<1x32xf32>, vector<32x32xf32>, vector<1x32xf32> -> vector<1x32xf32>
    %791 = arith.addf %790, %37 : vector<1x32xf32>
    %cst_180 = arith.constant dense<0.000000e+00> : vector<1x32xf32>
    %792 = tpu.matmul %700, %35, %cst_180 {dimension_numbers = #tpu.dot_dimension_numbers<[1], [0], [0], [1], [0, 0, 1, 1], [], []>} : vector<1x32xf32>, vector<32x32xf32>, vector<1x32xf32> -> vector<1x32xf32>
    %793 = arith.addf %792, %38 : vector<1x32xf32>
    %794 = vector.extract_strided_slice %39 {offsets = [6, 0], sizes = [1, 32], strides = [1, 1]} : vector<8x32xf32> to vector<1x32xf32>
    %795 = arith.addf %794, %789 : vector<1x32xf32>
    %796 = arith.negf %795 : vector<1x32xf32>
    %797 = math.exp %796 : vector<1x32xf32>
    %cst_181 = arith.constant 1.000000e+00 : f32
    %798 = vector.broadcast %cst_181 : f32 to vector<1x32xf32>
    %799 = arith.addf %798, %797 : vector<1x32xf32>
    %800 = arith.divf %798, %799 : vector<1x32xf32>
    %801 = vector.extract_strided_slice %40 {offsets = [6, 0], sizes = [1, 32], strides = [1, 1]} : vector<8x32xf32> to vector<1x32xf32>
    %802 = arith.addf %801, %791 : vector<1x32xf32>
    %803 = arith.negf %802 : vector<1x32xf32>
    %804 = math.exp %803 : vector<1x32xf32>
    %cst_182 = arith.constant 1.000000e+00 : f32
    %805 = vector.broadcast %cst_182 : f32 to vector<1x32xf32>
    %806 = arith.addf %805, %804 : vector<1x32xf32>
    %807 = arith.divf %805, %806 : vector<1x32xf32>
    %808 = vector.extract_strided_slice %41 {offsets = [6, 0], sizes = [1, 32], strides = [1, 1]} : vector<8x32xf32> to vector<1x32xf32>
    %809 = arith.mulf %800, %793 : vector<1x32xf32>
    %810 = arith.addf %808, %809 : vector<1x32xf32>
    %811 = math.tanh %810 : vector<1x32xf32>
    %cst_183 = arith.constant 1.000000e+00 : f32
    %812 = vector.broadcast %cst_183 : f32 to vector<1x32xf32>
    %813 = arith.subf %812, %807 : vector<1x32xf32>
    %814 = arith.mulf %813, %811 : vector<1x32xf32>
    %815 = arith.mulf %807, %700 : vector<1x32xf32>
    %816 = arith.addf %814, %815 : vector<1x32xf32>
    %cst_184 = arith.constant dense<0.000000e+00> : vector<1x32xf32>
    %817 = tpu.matmul %729, %33, %cst_184 {dimension_numbers = #tpu.dot_dimension_numbers<[1], [0], [0], [1], [0, 0, 1, 1], [], []>} : vector<1x32xf32>, vector<32x32xf32>, vector<1x32xf32> -> vector<1x32xf32>
    %818 = arith.addf %817, %36 : vector<1x32xf32>
    %cst_185 = arith.constant dense<0.000000e+00> : vector<1x32xf32>
    %819 = tpu.matmul %729, %34, %cst_185 {dimension_numbers = #tpu.dot_dimension_numbers<[1], [0], [0], [1], [0, 0, 1, 1], [], []>} : vector<1x32xf32>, vector<32x32xf32>, vector<1x32xf32> -> vector<1x32xf32>
    %820 = arith.addf %819, %37 : vector<1x32xf32>
    %cst_186 = arith.constant dense<0.000000e+00> : vector<1x32xf32>
    %821 = tpu.matmul %729, %35, %cst_186 {dimension_numbers = #tpu.dot_dimension_numbers<[1], [0], [0], [1], [0, 0, 1, 1], [], []>} : vector<1x32xf32>, vector<32x32xf32>, vector<1x32xf32> -> vector<1x32xf32>
    %822 = arith.addf %821, %38 : vector<1x32xf32>
    %823 = vector.extract_strided_slice %43 {offsets = [6, 0], sizes = [1, 32], strides = [1, 1]} : vector<8x32xf32> to vector<1x32xf32>
    %824 = arith.addf %823, %818 : vector<1x32xf32>
    %825 = arith.negf %824 : vector<1x32xf32>
    %826 = math.exp %825 : vector<1x32xf32>
    %cst_187 = arith.constant 1.000000e+00 : f32
    %827 = vector.broadcast %cst_187 : f32 to vector<1x32xf32>
    %828 = arith.addf %827, %826 : vector<1x32xf32>
    %829 = arith.divf %827, %828 : vector<1x32xf32>
    %830 = vector.extract_strided_slice %44 {offsets = [6, 0], sizes = [1, 32], strides = [1, 1]} : vector<8x32xf32> to vector<1x32xf32>
    %831 = arith.addf %830, %820 : vector<1x32xf32>
    %832 = arith.negf %831 : vector<1x32xf32>
    %833 = math.exp %832 : vector<1x32xf32>
    %cst_188 = arith.constant 1.000000e+00 : f32
    %834 = vector.broadcast %cst_188 : f32 to vector<1x32xf32>
    %835 = arith.addf %834, %833 : vector<1x32xf32>
    %836 = arith.divf %834, %835 : vector<1x32xf32>
    %837 = vector.extract_strided_slice %45 {offsets = [6, 0], sizes = [1, 32], strides = [1, 1]} : vector<8x32xf32> to vector<1x32xf32>
    %838 = arith.mulf %829, %822 : vector<1x32xf32>
    %839 = arith.addf %837, %838 : vector<1x32xf32>
    %840 = math.tanh %839 : vector<1x32xf32>
    %cst_189 = arith.constant 1.000000e+00 : f32
    %841 = vector.broadcast %cst_189 : f32 to vector<1x32xf32>
    %842 = arith.subf %841, %836 : vector<1x32xf32>
    %843 = arith.mulf %842, %840 : vector<1x32xf32>
    %844 = arith.mulf %836, %729 : vector<1x32xf32>
    %845 = arith.addf %843, %844 : vector<1x32xf32>
    %cst_190 = arith.constant dense<0.000000e+00> : vector<1x32xf32>
    %846 = tpu.matmul %758, %78, %cst_190 {dimension_numbers = #tpu.dot_dimension_numbers<[1], [0], [0], [1], [0, 0, 1, 1], [], []>} : vector<1x32xf32>, vector<32x32xf32>, vector<1x32xf32> -> vector<1x32xf32>
    %847 = arith.addf %846, %81 : vector<1x32xf32>
    %cst_191 = arith.constant dense<0.000000e+00> : vector<1x32xf32>
    %848 = tpu.matmul %758, %79, %cst_191 {dimension_numbers = #tpu.dot_dimension_numbers<[1], [0], [0], [1], [0, 0, 1, 1], [], []>} : vector<1x32xf32>, vector<32x32xf32>, vector<1x32xf32> -> vector<1x32xf32>
    %849 = arith.addf %848, %82 : vector<1x32xf32>
    %cst_192 = arith.constant dense<0.000000e+00> : vector<1x32xf32>
    %850 = tpu.matmul %758, %80, %cst_192 {dimension_numbers = #tpu.dot_dimension_numbers<[1], [0], [0], [1], [0, 0, 1, 1], [], []>} : vector<1x32xf32>, vector<32x32xf32>, vector<1x32xf32> -> vector<1x32xf32>
    %851 = arith.addf %850, %83 : vector<1x32xf32>
    %852 = vector.extract_strided_slice %84 {offsets = [1, 0], sizes = [1, 32], strides = [1, 1]} : vector<8x32xf32> to vector<1x32xf32>
    %853 = arith.addf %852, %847 : vector<1x32xf32>
    %854 = arith.negf %853 : vector<1x32xf32>
    %855 = math.exp %854 : vector<1x32xf32>
    %cst_193 = arith.constant 1.000000e+00 : f32
    %856 = vector.broadcast %cst_193 : f32 to vector<1x32xf32>
    %857 = arith.addf %856, %855 : vector<1x32xf32>
    %858 = arith.divf %856, %857 : vector<1x32xf32>
    %859 = vector.extract_strided_slice %85 {offsets = [1, 0], sizes = [1, 32], strides = [1, 1]} : vector<8x32xf32> to vector<1x32xf32>
    %860 = arith.addf %859, %849 : vector<1x32xf32>
    %861 = arith.negf %860 : vector<1x32xf32>
    %862 = math.exp %861 : vector<1x32xf32>
    %cst_194 = arith.constant 1.000000e+00 : f32
    %863 = vector.broadcast %cst_194 : f32 to vector<1x32xf32>
    %864 = arith.addf %863, %862 : vector<1x32xf32>
    %865 = arith.divf %863, %864 : vector<1x32xf32>
    %866 = vector.extract_strided_slice %86 {offsets = [1, 0], sizes = [1, 32], strides = [1, 1]} : vector<8x32xf32> to vector<1x32xf32>
    %867 = arith.mulf %858, %851 : vector<1x32xf32>
    %868 = arith.addf %866, %867 : vector<1x32xf32>
    %869 = math.tanh %868 : vector<1x32xf32>
    %cst_195 = arith.constant 1.000000e+00 : f32
    %870 = vector.broadcast %cst_195 : f32 to vector<1x32xf32>
    %871 = arith.subf %870, %865 : vector<1x32xf32>
    %872 = arith.mulf %871, %869 : vector<1x32xf32>
    %873 = arith.mulf %865, %758 : vector<1x32xf32>
    %874 = arith.addf %872, %873 : vector<1x32xf32>
    %cst_196 = arith.constant dense<0.000000e+00> : vector<1x32xf32>
    %875 = tpu.matmul %787, %78, %cst_196 {dimension_numbers = #tpu.dot_dimension_numbers<[1], [0], [0], [1], [0, 0, 1, 1], [], []>} : vector<1x32xf32>, vector<32x32xf32>, vector<1x32xf32> -> vector<1x32xf32>
    %876 = arith.addf %875, %81 : vector<1x32xf32>
    %cst_197 = arith.constant dense<0.000000e+00> : vector<1x32xf32>
    %877 = tpu.matmul %787, %79, %cst_197 {dimension_numbers = #tpu.dot_dimension_numbers<[1], [0], [0], [1], [0, 0, 1, 1], [], []>} : vector<1x32xf32>, vector<32x32xf32>, vector<1x32xf32> -> vector<1x32xf32>
    %878 = arith.addf %877, %82 : vector<1x32xf32>
    %cst_198 = arith.constant dense<0.000000e+00> : vector<1x32xf32>
    %879 = tpu.matmul %787, %80, %cst_198 {dimension_numbers = #tpu.dot_dimension_numbers<[1], [0], [0], [1], [0, 0, 1, 1], [], []>} : vector<1x32xf32>, vector<32x32xf32>, vector<1x32xf32> -> vector<1x32xf32>
    %880 = arith.addf %879, %83 : vector<1x32xf32>
    %881 = vector.extract_strided_slice %88 {offsets = [1, 0], sizes = [1, 32], strides = [1, 1]} : vector<8x32xf32> to vector<1x32xf32>
    %882 = arith.addf %881, %876 : vector<1x32xf32>
    %883 = arith.negf %882 : vector<1x32xf32>
    %884 = math.exp %883 : vector<1x32xf32>
    %cst_199 = arith.constant 1.000000e+00 : f32
    %885 = vector.broadcast %cst_199 : f32 to vector<1x32xf32>
    %886 = arith.addf %885, %884 : vector<1x32xf32>
    %887 = arith.divf %885, %886 : vector<1x32xf32>
    %888 = vector.extract_strided_slice %89 {offsets = [1, 0], sizes = [1, 32], strides = [1, 1]} : vector<8x32xf32> to vector<1x32xf32>
    %889 = arith.addf %888, %878 : vector<1x32xf32>
    %890 = arith.negf %889 : vector<1x32xf32>
    %891 = math.exp %890 : vector<1x32xf32>
    %cst_200 = arith.constant 1.000000e+00 : f32
    %892 = vector.broadcast %cst_200 : f32 to vector<1x32xf32>
    %893 = arith.addf %892, %891 : vector<1x32xf32>
    %894 = arith.divf %892, %893 : vector<1x32xf32>
    %895 = vector.extract_strided_slice %90 {offsets = [1, 0], sizes = [1, 32], strides = [1, 1]} : vector<8x32xf32> to vector<1x32xf32>
    %896 = arith.mulf %887, %880 : vector<1x32xf32>
    %897 = arith.addf %895, %896 : vector<1x32xf32>
    %898 = math.tanh %897 : vector<1x32xf32>
    %cst_201 = arith.constant 1.000000e+00 : f32
    %899 = vector.broadcast %cst_201 : f32 to vector<1x32xf32>
    %900 = arith.subf %899, %894 : vector<1x32xf32>
    %901 = arith.mulf %900, %898 : vector<1x32xf32>
    %902 = arith.mulf %894, %787 : vector<1x32xf32>
    %903 = arith.addf %901, %902 : vector<1x32xf32>
    %cst_202 = arith.constant dense<0.000000e+00> : vector<1x32xf32>
    %904 = tpu.matmul %816, %33, %cst_202 {dimension_numbers = #tpu.dot_dimension_numbers<[1], [0], [0], [1], [0, 0, 1, 1], [], []>} : vector<1x32xf32>, vector<32x32xf32>, vector<1x32xf32> -> vector<1x32xf32>
    %905 = arith.addf %904, %36 : vector<1x32xf32>
    %cst_203 = arith.constant dense<0.000000e+00> : vector<1x32xf32>
    %906 = tpu.matmul %816, %34, %cst_203 {dimension_numbers = #tpu.dot_dimension_numbers<[1], [0], [0], [1], [0, 0, 1, 1], [], []>} : vector<1x32xf32>, vector<32x32xf32>, vector<1x32xf32> -> vector<1x32xf32>
    %907 = arith.addf %906, %37 : vector<1x32xf32>
    %cst_204 = arith.constant dense<0.000000e+00> : vector<1x32xf32>
    %908 = tpu.matmul %816, %35, %cst_204 {dimension_numbers = #tpu.dot_dimension_numbers<[1], [0], [0], [1], [0, 0, 1, 1], [], []>} : vector<1x32xf32>, vector<32x32xf32>, vector<1x32xf32> -> vector<1x32xf32>
    %909 = arith.addf %908, %38 : vector<1x32xf32>
    %910 = vector.extract_strided_slice %39 {offsets = [7, 0], sizes = [1, 32], strides = [1, 1]} : vector<8x32xf32> to vector<1x32xf32>
    %911 = arith.addf %910, %905 : vector<1x32xf32>
    %912 = arith.negf %911 : vector<1x32xf32>
    %913 = math.exp %912 : vector<1x32xf32>
    %cst_205 = arith.constant 1.000000e+00 : f32
    %914 = vector.broadcast %cst_205 : f32 to vector<1x32xf32>
    %915 = arith.addf %914, %913 : vector<1x32xf32>
    %916 = arith.divf %914, %915 : vector<1x32xf32>
    %917 = vector.extract_strided_slice %40 {offsets = [7, 0], sizes = [1, 32], strides = [1, 1]} : vector<8x32xf32> to vector<1x32xf32>
    %918 = arith.addf %917, %907 : vector<1x32xf32>
    %919 = arith.negf %918 : vector<1x32xf32>
    %920 = math.exp %919 : vector<1x32xf32>
    %cst_206 = arith.constant 1.000000e+00 : f32
    %921 = vector.broadcast %cst_206 : f32 to vector<1x32xf32>
    %922 = arith.addf %921, %920 : vector<1x32xf32>
    %923 = arith.divf %921, %922 : vector<1x32xf32>
    %924 = vector.extract_strided_slice %41 {offsets = [7, 0], sizes = [1, 32], strides = [1, 1]} : vector<8x32xf32> to vector<1x32xf32>
    %925 = arith.mulf %916, %909 : vector<1x32xf32>
    %926 = arith.addf %924, %925 : vector<1x32xf32>
    %927 = math.tanh %926 : vector<1x32xf32>
    %cst_207 = arith.constant 1.000000e+00 : f32
    %928 = vector.broadcast %cst_207 : f32 to vector<1x32xf32>
    %929 = arith.subf %928, %923 : vector<1x32xf32>
    %930 = arith.mulf %929, %927 : vector<1x32xf32>
    %931 = arith.mulf %923, %816 : vector<1x32xf32>
    %932 = arith.addf %930, %931 : vector<1x32xf32>
    %cst_208 = arith.constant dense<0.000000e+00> : vector<1x32xf32>
    %933 = tpu.matmul %845, %33, %cst_208 {dimension_numbers = #tpu.dot_dimension_numbers<[1], [0], [0], [1], [0, 0, 1, 1], [], []>} : vector<1x32xf32>, vector<32x32xf32>, vector<1x32xf32> -> vector<1x32xf32>
    %934 = arith.addf %933, %36 : vector<1x32xf32>
    %cst_209 = arith.constant dense<0.000000e+00> : vector<1x32xf32>
    %935 = tpu.matmul %845, %34, %cst_209 {dimension_numbers = #tpu.dot_dimension_numbers<[1], [0], [0], [1], [0, 0, 1, 1], [], []>} : vector<1x32xf32>, vector<32x32xf32>, vector<1x32xf32> -> vector<1x32xf32>
    %936 = arith.addf %935, %37 : vector<1x32xf32>
    %cst_210 = arith.constant dense<0.000000e+00> : vector<1x32xf32>
    %937 = tpu.matmul %845, %35, %cst_210 {dimension_numbers = #tpu.dot_dimension_numbers<[1], [0], [0], [1], [0, 0, 1, 1], [], []>} : vector<1x32xf32>, vector<32x32xf32>, vector<1x32xf32> -> vector<1x32xf32>
    %938 = arith.addf %937, %38 : vector<1x32xf32>
    %939 = vector.extract_strided_slice %43 {offsets = [7, 0], sizes = [1, 32], strides = [1, 1]} : vector<8x32xf32> to vector<1x32xf32>
    %940 = arith.addf %939, %934 : vector<1x32xf32>
    %941 = arith.negf %940 : vector<1x32xf32>
    %942 = math.exp %941 : vector<1x32xf32>
    %cst_211 = arith.constant 1.000000e+00 : f32
    %943 = vector.broadcast %cst_211 : f32 to vector<1x32xf32>
    %944 = arith.addf %943, %942 : vector<1x32xf32>
    %945 = arith.divf %943, %944 : vector<1x32xf32>
    %946 = vector.extract_strided_slice %44 {offsets = [7, 0], sizes = [1, 32], strides = [1, 1]} : vector<8x32xf32> to vector<1x32xf32>
    %947 = arith.addf %946, %936 : vector<1x32xf32>
    %948 = arith.negf %947 : vector<1x32xf32>
    %949 = math.exp %948 : vector<1x32xf32>
    %cst_212 = arith.constant 1.000000e+00 : f32
    %950 = vector.broadcast %cst_212 : f32 to vector<1x32xf32>
    %951 = arith.addf %950, %949 : vector<1x32xf32>
    %952 = arith.divf %950, %951 : vector<1x32xf32>
    %953 = vector.extract_strided_slice %45 {offsets = [7, 0], sizes = [1, 32], strides = [1, 1]} : vector<8x32xf32> to vector<1x32xf32>
    %954 = arith.mulf %945, %938 : vector<1x32xf32>
    %955 = arith.addf %953, %954 : vector<1x32xf32>
    %956 = math.tanh %955 : vector<1x32xf32>
    %cst_213 = arith.constant 1.000000e+00 : f32
    %957 = vector.broadcast %cst_213 : f32 to vector<1x32xf32>
    %958 = arith.subf %957, %952 : vector<1x32xf32>
    %959 = arith.mulf %958, %956 : vector<1x32xf32>
    %960 = arith.mulf %952, %845 : vector<1x32xf32>
    %961 = arith.addf %959, %960 : vector<1x32xf32>
    %cst_214 = arith.constant dense<0.000000e+00> : vector<1x32xf32>
    %962 = tpu.matmul %874, %78, %cst_214 {dimension_numbers = #tpu.dot_dimension_numbers<[1], [0], [0], [1], [0, 0, 1, 1], [], []>} : vector<1x32xf32>, vector<32x32xf32>, vector<1x32xf32> -> vector<1x32xf32>
    %963 = arith.addf %962, %81 : vector<1x32xf32>
    %cst_215 = arith.constant dense<0.000000e+00> : vector<1x32xf32>
    %964 = tpu.matmul %874, %79, %cst_215 {dimension_numbers = #tpu.dot_dimension_numbers<[1], [0], [0], [1], [0, 0, 1, 1], [], []>} : vector<1x32xf32>, vector<32x32xf32>, vector<1x32xf32> -> vector<1x32xf32>
    %965 = arith.addf %964, %82 : vector<1x32xf32>
    %cst_216 = arith.constant dense<0.000000e+00> : vector<1x32xf32>
    %966 = tpu.matmul %874, %80, %cst_216 {dimension_numbers = #tpu.dot_dimension_numbers<[1], [0], [0], [1], [0, 0, 1, 1], [], []>} : vector<1x32xf32>, vector<32x32xf32>, vector<1x32xf32> -> vector<1x32xf32>
    %967 = arith.addf %966, %83 : vector<1x32xf32>
    %968 = vector.extract_strided_slice %84 {offsets = [0, 0], sizes = [1, 32], strides = [1, 1]} : vector<8x32xf32> to vector<1x32xf32>
    %969 = arith.addf %968, %963 : vector<1x32xf32>
    %970 = arith.negf %969 : vector<1x32xf32>
    %971 = math.exp %970 : vector<1x32xf32>
    %cst_217 = arith.constant 1.000000e+00 : f32
    %972 = vector.broadcast %cst_217 : f32 to vector<1x32xf32>
    %973 = arith.addf %972, %971 : vector<1x32xf32>
    %974 = arith.divf %972, %973 : vector<1x32xf32>
    %975 = vector.extract_strided_slice %85 {offsets = [0, 0], sizes = [1, 32], strides = [1, 1]} : vector<8x32xf32> to vector<1x32xf32>
    %976 = arith.addf %975, %965 : vector<1x32xf32>
    %977 = arith.negf %976 : vector<1x32xf32>
    %978 = math.exp %977 : vector<1x32xf32>
    %cst_218 = arith.constant 1.000000e+00 : f32
    %979 = vector.broadcast %cst_218 : f32 to vector<1x32xf32>
    %980 = arith.addf %979, %978 : vector<1x32xf32>
    %981 = arith.divf %979, %980 : vector<1x32xf32>
    %982 = vector.extract_strided_slice %86 {offsets = [0, 0], sizes = [1, 32], strides = [1, 1]} : vector<8x32xf32> to vector<1x32xf32>
    %983 = arith.mulf %974, %967 : vector<1x32xf32>
    %984 = arith.addf %982, %983 : vector<1x32xf32>
    %985 = math.tanh %984 : vector<1x32xf32>
    %cst_219 = arith.constant 1.000000e+00 : f32
    %986 = vector.broadcast %cst_219 : f32 to vector<1x32xf32>
    %987 = arith.subf %986, %981 : vector<1x32xf32>
    %988 = arith.mulf %987, %985 : vector<1x32xf32>
    %989 = arith.mulf %981, %874 : vector<1x32xf32>
    %990 = arith.addf %988, %989 : vector<1x32xf32>
    %cst_220 = arith.constant dense<0.000000e+00> : vector<1x32xf32>
    %991 = tpu.matmul %903, %78, %cst_220 {dimension_numbers = #tpu.dot_dimension_numbers<[1], [0], [0], [1], [0, 0, 1, 1], [], []>} : vector<1x32xf32>, vector<32x32xf32>, vector<1x32xf32> -> vector<1x32xf32>
    %992 = arith.addf %991, %81 : vector<1x32xf32>
    %cst_221 = arith.constant dense<0.000000e+00> : vector<1x32xf32>
    %993 = tpu.matmul %903, %79, %cst_221 {dimension_numbers = #tpu.dot_dimension_numbers<[1], [0], [0], [1], [0, 0, 1, 1], [], []>} : vector<1x32xf32>, vector<32x32xf32>, vector<1x32xf32> -> vector<1x32xf32>
    %994 = arith.addf %993, %82 : vector<1x32xf32>
    %cst_222 = arith.constant dense<0.000000e+00> : vector<1x32xf32>
    %995 = tpu.matmul %903, %80, %cst_222 {dimension_numbers = #tpu.dot_dimension_numbers<[1], [0], [0], [1], [0, 0, 1, 1], [], []>} : vector<1x32xf32>, vector<32x32xf32>, vector<1x32xf32> -> vector<1x32xf32>
    %996 = arith.addf %995, %83 : vector<1x32xf32>
    %997 = vector.extract_strided_slice %88 {offsets = [0, 0], sizes = [1, 32], strides = [1, 1]} : vector<8x32xf32> to vector<1x32xf32>
    %998 = arith.addf %997, %992 : vector<1x32xf32>
    %999 = arith.negf %998 : vector<1x32xf32>
    %1000 = math.exp %999 : vector<1x32xf32>
    %cst_223 = arith.constant 1.000000e+00 : f32
    %1001 = vector.broadcast %cst_223 : f32 to vector<1x32xf32>
    %1002 = arith.addf %1001, %1000 : vector<1x32xf32>
    %1003 = arith.divf %1001, %1002 : vector<1x32xf32>
    %1004 = vector.extract_strided_slice %89 {offsets = [0, 0], sizes = [1, 32], strides = [1, 1]} : vector<8x32xf32> to vector<1x32xf32>
    %1005 = arith.addf %1004, %994 : vector<1x32xf32>
    %1006 = arith.negf %1005 : vector<1x32xf32>
    %1007 = math.exp %1006 : vector<1x32xf32>
    %cst_224 = arith.constant 1.000000e+00 : f32
    %1008 = vector.broadcast %cst_224 : f32 to vector<1x32xf32>
    %1009 = arith.addf %1008, %1007 : vector<1x32xf32>
    %1010 = arith.divf %1008, %1009 : vector<1x32xf32>
    %1011 = vector.extract_strided_slice %90 {offsets = [0, 0], sizes = [1, 32], strides = [1, 1]} : vector<8x32xf32> to vector<1x32xf32>
    %1012 = arith.mulf %1003, %996 : vector<1x32xf32>
    %1013 = arith.addf %1011, %1012 : vector<1x32xf32>
    %1014 = math.tanh %1013 : vector<1x32xf32>
    %cst_225 = arith.constant 1.000000e+00 : f32
    %1015 = vector.broadcast %cst_225 : f32 to vector<1x32xf32>
    %1016 = arith.subf %1015, %1010 : vector<1x32xf32>
    %1017 = arith.mulf %1016, %1014 : vector<1x32xf32>
    %1018 = arith.mulf %1010, %903 : vector<1x32xf32>
    %1019 = arith.addf %1017, %1018 : vector<1x32xf32>
    %1020 = tpu.concatenate %120, %236, %352, %468, %584, %700, %816, %932 in 0 : vector<1x32xf32>, vector<1x32xf32>, vector<1x32xf32>, vector<1x32xf32>, vector<1x32xf32>, vector<1x32xf32>, vector<1x32xf32>, vector<1x32xf32> -> vector<8x32xf32>
    %1021 = tpu.concatenate %149, %265, %381, %497, %613, %729, %845, %961 in 0 : vector<1x32xf32>, vector<1x32xf32>, vector<1x32xf32>, vector<1x32xf32>, vector<1x32xf32>, vector<1x32xf32>, vector<1x32xf32>, vector<1x32xf32> -> vector<8x32xf32>
    %1022 = tpu.concatenate %1020, %1021 in 0 : vector<8x32xf32>, vector<8x32xf32> -> vector<16x32xf32>
    %1023 = tpu.concatenate %990, %874, %758, %642, %526, %410, %294, %178 in 0 : vector<1x32xf32>, vector<1x32xf32>, vector<1x32xf32>, vector<1x32xf32>, vector<1x32xf32>, vector<1x32xf32>, vector<1x32xf32>, vector<1x32xf32> -> vector<8x32xf32>
    %1024 = tpu.concatenate %1019, %903, %787, %671, %555, %439, %323, %207 in 0 : vector<1x32xf32>, vector<1x32xf32>, vector<1x32xf32>, vector<1x32xf32>, vector<1x32xf32>, vector<1x32xf32>, vector<1x32xf32>, vector<1x32xf32> -> vector<8x32xf32>
    %1025 = tpu.concatenate %1023, %1024 in 0 : vector<8x32xf32>, vector<8x32xf32> -> vector<16x32xf32>
    %c0_226 = arith.constant 0 : index
    %c0_227 = arith.constant 0 : index
    %1026 = vector.load %arg18[%c0_226, %c0_227] : memref<64x64xf32, #tpu.memory_space<vmem>>, vector<64x64xf32>
    %1027 = vector.extract_strided_slice %1026 {offsets = [0, 0], sizes = [32, 64], strides = [1, 1]} : vector<64x64xf32> to vector<32x64xf32>
    %cst_228 = arith.constant dense<0.000000e+00> : vector<16x64xf32>
    %1028 = tpu.matmul %1022, %1027, %cst_228 {dimension_numbers = #tpu.dot_dimension_numbers<[1], [0], [0], [1], [0, 0, 1, 1], [], []>} : vector<16x32xf32>, vector<32x64xf32>, vector<16x64xf32> -> vector<16x64xf32>
    %1029 = vector.extract_strided_slice %1026 {offsets = [32, 0], sizes = [32, 64], strides = [1, 1]} : vector<64x64xf32> to vector<32x64xf32>
    %cst_229 = arith.constant dense<0.000000e+00> : vector<16x64xf32>
    %1030 = tpu.matmul %1025, %1029, %cst_229 {dimension_numbers = #tpu.dot_dimension_numbers<[1], [0], [0], [1], [0, 0, 1, 1], [], []>} : vector<16x32xf32>, vector<32x64xf32>, vector<16x64xf32> -> vector<16x64xf32>
    %1031 = arith.addf %1028, %1030 : vector<16x64xf32>
    %c0_230 = arith.constant 0 : index
    %c0_231 = arith.constant 0 : index
    %1032 = vector.load %arg19[%c0_230, %c0_231] : memref<1x64xf32, #tpu.memory_space<vmem>>, vector<1x64xf32>
    %1033 = vector.broadcast %1032 : vector<1x64xf32> to vector<16x64xf32>
    %1034 = arith.addf %1031, %1033 : vector<16x64xf32>
    %1035 = math.tanh %1034 : vector<16x64xf32>
    %cst_232 = arith.constant 0.000000e+00 : f32
    %1036 = vector.broadcast %cst_232 : f32 to vector<16x64xf32>
    %1037 = arith.cmpf oge, %1035, %1036 : vector<16x64xf32>
    %cst_233 = arith.constant 2.000000e-01 : f32
    %1038 = vector.broadcast %cst_233 : f32 to vector<16x64xf32>
    %1039 = arith.mulf %1038, %1035 : vector<16x64xf32>
    %1040 = arith.select %1037, %1035, %1039 : vector<16x64xi1>, vector<16x64xf32>
    %c0_234 = arith.constant 0 : index
    %c0_235 = arith.constant 0 : index
    %1041 = vector.load %arg10[%c0_234, %c0_235] : memref<64x96xf32, #tpu.memory_space<vmem>>, vector<64x96xf32>
    %c0_236 = arith.constant 0 : index
    %c0_237 = arith.constant 0 : index
    %1042 = vector.load %arg12[%c0_236, %c0_237] : memref<1x96xf32, #tpu.memory_space<vmem>>, vector<1x96xf32>
    %1043 = vector.extract_strided_slice %1041 {offsets = [0, 0], sizes = [64, 32], strides = [1, 1]} : vector<64x96xf32> to vector<64x32xf32>
    %cst_238 = arith.constant dense<0.000000e+00> : vector<16x32xf32>
    %1044 = tpu.matmul %1040, %1043, %cst_238 {dimension_numbers = #tpu.dot_dimension_numbers<[1], [0], [0], [1], [0, 0, 1, 1], [], []>} : vector<16x64xf32>, vector<64x32xf32>, vector<16x32xf32> -> vector<16x32xf32>
    %1045 = vector.extract_strided_slice %1042 {offsets = [0, 0], sizes = [1, 32], strides = [1, 1]} : vector<1x96xf32> to vector<1x32xf32>
    %1046 = vector.broadcast %1045 : vector<1x32xf32> to vector<16x32xf32>
    %1047 = arith.addf %1044, %1046 : vector<16x32xf32>
    %1048 = vector.extract_strided_slice %1041 {offsets = [0, 32], sizes = [64, 32], strides = [1, 1]} : vector<64x96xf32> to vector<64x32xf32>
    %cst_239 = arith.constant dense<0.000000e+00> : vector<16x32xf32>
    %1049 = tpu.matmul %1040, %1048, %cst_239 {dimension_numbers = #tpu.dot_dimension_numbers<[1], [0], [0], [1], [0, 0, 1, 1], [], []>} : vector<16x64xf32>, vector<64x32xf32>, vector<16x32xf32> -> vector<16x32xf32>
    %1050 = vector.extract_strided_slice %1042 {offsets = [0, 32], sizes = [1, 32], strides = [1, 1]} : vector<1x96xf32> to vector<1x32xf32>
    %1051 = vector.broadcast %1050 : vector<1x32xf32> to vector<16x32xf32>
    %1052 = arith.addf %1049, %1051 : vector<16x32xf32>
    %1053 = vector.extract_strided_slice %1041 {offsets = [0, 64], sizes = [64, 32], strides = [1, 1]} : vector<64x96xf32> to vector<64x32xf32>
    %cst_240 = arith.constant dense<0.000000e+00> : vector<16x32xf32>
    %1054 = tpu.matmul %1040, %1053, %cst_240 {dimension_numbers = #tpu.dot_dimension_numbers<[1], [0], [0], [1], [0, 0, 1, 1], [], []>} : vector<16x64xf32>, vector<64x32xf32>, vector<16x32xf32> -> vector<16x32xf32>
    %1055 = vector.extract_strided_slice %1042 {offsets = [0, 64], sizes = [1, 32], strides = [1, 1]} : vector<1x96xf32> to vector<1x32xf32>
    %1056 = vector.broadcast %1055 : vector<1x32xf32> to vector<16x32xf32>
    %1057 = arith.addf %1054, %1056 : vector<16x32xf32>
    %c0_241 = arith.constant 0 : index
    %c0_242 = arith.constant 0 : index
    %1058 = vector.load %arg11[%c0_241, %c0_242] : memref<32x96xf32, #tpu.memory_space<vmem>>, vector<32x96xf32>
    %c0_243 = arith.constant 0 : index
    %c0_244 = arith.constant 0 : index
    %1059 = vector.load %arg13[%c0_243, %c0_244] : memref<1x96xf32, #tpu.memory_space<vmem>>, vector<1x96xf32>
    %1060 = vector.extract_strided_slice %1058 {offsets = [0, 0], sizes = [32, 32], strides = [1, 1]} : vector<32x96xf32> to vector<32x32xf32>
    %1061 = vector.extract_strided_slice %1058 {offsets = [0, 32], sizes = [32, 32], strides = [1, 1]} : vector<32x96xf32> to vector<32x32xf32>
    %1062 = vector.extract_strided_slice %1058 {offsets = [0, 64], sizes = [32, 32], strides = [1, 1]} : vector<32x96xf32> to vector<32x32xf32>
    %1063 = vector.extract_strided_slice %1059 {offsets = [0, 0], sizes = [1, 32], strides = [1, 1]} : vector<1x96xf32> to vector<1x32xf32>
    %1064 = vector.extract_strided_slice %1059 {offsets = [0, 32], sizes = [1, 32], strides = [1, 1]} : vector<1x96xf32> to vector<1x32xf32>
    %1065 = vector.extract_strided_slice %1059 {offsets = [0, 64], sizes = [1, 32], strides = [1, 1]} : vector<1x96xf32> to vector<1x32xf32>
    %1066 = vector.extract_strided_slice %1047 {offsets = [0, 0], sizes = [8, 32], strides = [1, 1]} : vector<16x32xf32> to vector<8x32xf32>
    %1067 = vector.extract_strided_slice %1052 {offsets = [0, 0], sizes = [8, 32], strides = [1, 1]} : vector<16x32xf32> to vector<8x32xf32>
    %1068 = vector.extract_strided_slice %1057 {offsets = [0, 0], sizes = [8, 32], strides = [1, 1]} : vector<16x32xf32> to vector<8x32xf32>
    %cst_245 = arith.constant 0.000000e+00 : f32
    %1069 = vector.broadcast %cst_245 : f32 to vector<1x32xf32>
    %1070 = vector.extract_strided_slice %1047 {offsets = [8, 0], sizes = [8, 32], strides = [1, 1]} : vector<16x32xf32> to vector<8x32xf32>
    %1071 = vector.extract_strided_slice %1052 {offsets = [8, 0], sizes = [8, 32], strides = [1, 1]} : vector<16x32xf32> to vector<8x32xf32>
    %1072 = vector.extract_strided_slice %1057 {offsets = [8, 0], sizes = [8, 32], strides = [1, 1]} : vector<16x32xf32> to vector<8x32xf32>
    %cst_246 = arith.constant 0.000000e+00 : f32
    %1073 = vector.broadcast %cst_246 : f32 to vector<1x32xf32>
    %c0_247 = arith.constant 0 : index
    %c0_248 = arith.constant 0 : index
    %1074 = vector.load %arg14[%c0_247, %c0_248] : memref<64x96xf32, #tpu.memory_space<vmem>>, vector<64x96xf32>
    %c0_249 = arith.constant 0 : index
    %c0_250 = arith.constant 0 : index
    %1075 = vector.load %arg16[%c0_249, %c0_250] : memref<1x96xf32, #tpu.memory_space<vmem>>, vector<1x96xf32>
    %1076 = vector.extract_strided_slice %1074 {offsets = [0, 0], sizes = [64, 32], strides = [1, 1]} : vector<64x96xf32> to vector<64x32xf32>
    %cst_251 = arith.constant dense<0.000000e+00> : vector<16x32xf32>
    %1077 = tpu.matmul %1040, %1076, %cst_251 {dimension_numbers = #tpu.dot_dimension_numbers<[1], [0], [0], [1], [0, 0, 1, 1], [], []>} : vector<16x64xf32>, vector<64x32xf32>, vector<16x32xf32> -> vector<16x32xf32>
    %1078 = vector.extract_strided_slice %1075 {offsets = [0, 0], sizes = [1, 32], strides = [1, 1]} : vector<1x96xf32> to vector<1x32xf32>
    %1079 = vector.broadcast %1078 : vector<1x32xf32> to vector<16x32xf32>
    %1080 = arith.addf %1077, %1079 : vector<16x32xf32>
    %1081 = vector.extract_strided_slice %1074 {offsets = [0, 32], sizes = [64, 32], strides = [1, 1]} : vector<64x96xf32> to vector<64x32xf32>
    %cst_252 = arith.constant dense<0.000000e+00> : vector<16x32xf32>
    %1082 = tpu.matmul %1040, %1081, %cst_252 {dimension_numbers = #tpu.dot_dimension_numbers<[1], [0], [0], [1], [0, 0, 1, 1], [], []>} : vector<16x64xf32>, vector<64x32xf32>, vector<16x32xf32> -> vector<16x32xf32>
    %1083 = vector.extract_strided_slice %1075 {offsets = [0, 32], sizes = [1, 32], strides = [1, 1]} : vector<1x96xf32> to vector<1x32xf32>
    %1084 = vector.broadcast %1083 : vector<1x32xf32> to vector<16x32xf32>
    %1085 = arith.addf %1082, %1084 : vector<16x32xf32>
    %1086 = vector.extract_strided_slice %1074 {offsets = [0, 64], sizes = [64, 32], strides = [1, 1]} : vector<64x96xf32> to vector<64x32xf32>
    %cst_253 = arith.constant dense<0.000000e+00> : vector<16x32xf32>
    %1087 = tpu.matmul %1040, %1086, %cst_253 {dimension_numbers = #tpu.dot_dimension_numbers<[1], [0], [0], [1], [0, 0, 1, 1], [], []>} : vector<16x64xf32>, vector<64x32xf32>, vector<16x32xf32> -> vector<16x32xf32>
    %1088 = vector.extract_strided_slice %1075 {offsets = [0, 64], sizes = [1, 32], strides = [1, 1]} : vector<1x96xf32> to vector<1x32xf32>
    %1089 = vector.broadcast %1088 : vector<1x32xf32> to vector<16x32xf32>
    %1090 = arith.addf %1087, %1089 : vector<16x32xf32>
    %c0_254 = arith.constant 0 : index
    %c0_255 = arith.constant 0 : index
    %1091 = vector.load %arg15[%c0_254, %c0_255] : memref<32x96xf32, #tpu.memory_space<vmem>>, vector<32x96xf32>
    %c0_256 = arith.constant 0 : index
    %c0_257 = arith.constant 0 : index
    %1092 = vector.load %arg17[%c0_256, %c0_257] : memref<1x96xf32, #tpu.memory_space<vmem>>, vector<1x96xf32>
    %1093 = vector.extract_strided_slice %1091 {offsets = [0, 0], sizes = [32, 32], strides = [1, 1]} : vector<32x96xf32> to vector<32x32xf32>
    %1094 = vector.extract_strided_slice %1091 {offsets = [0, 32], sizes = [32, 32], strides = [1, 1]} : vector<32x96xf32> to vector<32x32xf32>
    %1095 = vector.extract_strided_slice %1091 {offsets = [0, 64], sizes = [32, 32], strides = [1, 1]} : vector<32x96xf32> to vector<32x32xf32>
    %1096 = vector.extract_strided_slice %1092 {offsets = [0, 0], sizes = [1, 32], strides = [1, 1]} : vector<1x96xf32> to vector<1x32xf32>
    %1097 = vector.extract_strided_slice %1092 {offsets = [0, 32], sizes = [1, 32], strides = [1, 1]} : vector<1x96xf32> to vector<1x32xf32>
    %1098 = vector.extract_strided_slice %1092 {offsets = [0, 64], sizes = [1, 32], strides = [1, 1]} : vector<1x96xf32> to vector<1x32xf32>
    %1099 = vector.extract_strided_slice %1080 {offsets = [0, 0], sizes = [8, 32], strides = [1, 1]} : vector<16x32xf32> to vector<8x32xf32>
    %1100 = vector.extract_strided_slice %1085 {offsets = [0, 0], sizes = [8, 32], strides = [1, 1]} : vector<16x32xf32> to vector<8x32xf32>
    %1101 = vector.extract_strided_slice %1090 {offsets = [0, 0], sizes = [8, 32], strides = [1, 1]} : vector<16x32xf32> to vector<8x32xf32>
    %cst_258 = arith.constant 0.000000e+00 : f32
    %1102 = vector.broadcast %cst_258 : f32 to vector<1x32xf32>
    %1103 = vector.extract_strided_slice %1080 {offsets = [8, 0], sizes = [8, 32], strides = [1, 1]} : vector<16x32xf32> to vector<8x32xf32>
    %1104 = vector.extract_strided_slice %1085 {offsets = [8, 0], sizes = [8, 32], strides = [1, 1]} : vector<16x32xf32> to vector<8x32xf32>
    %1105 = vector.extract_strided_slice %1090 {offsets = [8, 0], sizes = [8, 32], strides = [1, 1]} : vector<16x32xf32> to vector<8x32xf32>
    %cst_259 = arith.constant 0.000000e+00 : f32
    %1106 = vector.broadcast %cst_259 : f32 to vector<1x32xf32>
    %cst_260 = arith.constant dense<0.000000e+00> : vector<1x32xf32>
    %1107 = tpu.matmul %1069, %1060, %cst_260 {dimension_numbers = #tpu.dot_dimension_numbers<[1], [0], [0], [1], [0, 0, 1, 1], [], []>} : vector<1x32xf32>, vector<32x32xf32>, vector<1x32xf32> -> vector<1x32xf32>
    %1108 = arith.addf %1107, %1063 : vector<1x32xf32>
    %cst_261 = arith.constant dense<0.000000e+00> : vector<1x32xf32>
    %1109 = tpu.matmul %1069, %1061, %cst_261 {dimension_numbers = #tpu.dot_dimension_numbers<[1], [0], [0], [1], [0, 0, 1, 1], [], []>} : vector<1x32xf32>, vector<32x32xf32>, vector<1x32xf32> -> vector<1x32xf32>
    %1110 = arith.addf %1109, %1064 : vector<1x32xf32>
    %cst_262 = arith.constant dense<0.000000e+00> : vector<1x32xf32>
    %1111 = tpu.matmul %1069, %1062, %cst_262 {dimension_numbers = #tpu.dot_dimension_numbers<[1], [0], [0], [1], [0, 0, 1, 1], [], []>} : vector<1x32xf32>, vector<32x32xf32>, vector<1x32xf32> -> vector<1x32xf32>
    %1112 = arith.addf %1111, %1065 : vector<1x32xf32>
    %1113 = vector.extract_strided_slice %1066 {offsets = [0, 0], sizes = [1, 32], strides = [1, 1]} : vector<8x32xf32> to vector<1x32xf32>
    %1114 = arith.addf %1113, %1108 : vector<1x32xf32>
    %1115 = arith.negf %1114 : vector<1x32xf32>
    %1116 = math.exp %1115 : vector<1x32xf32>
    %cst_263 = arith.constant 1.000000e+00 : f32
    %1117 = vector.broadcast %cst_263 : f32 to vector<1x32xf32>
    %1118 = arith.addf %1117, %1116 : vector<1x32xf32>
    %1119 = arith.divf %1117, %1118 : vector<1x32xf32>
    %1120 = vector.extract_strided_slice %1067 {offsets = [0, 0], sizes = [1, 32], strides = [1, 1]} : vector<8x32xf32> to vector<1x32xf32>
    %1121 = arith.addf %1120, %1110 : vector<1x32xf32>
    %1122 = arith.negf %1121 : vector<1x32xf32>
    %1123 = math.exp %1122 : vector<1x32xf32>
    %cst_264 = arith.constant 1.000000e+00 : f32
    %1124 = vector.broadcast %cst_264 : f32 to vector<1x32xf32>
    %1125 = arith.addf %1124, %1123 : vector<1x32xf32>
    %1126 = arith.divf %1124, %1125 : vector<1x32xf32>
    %1127 = vector.extract_strided_slice %1068 {offsets = [0, 0], sizes = [1, 32], strides = [1, 1]} : vector<8x32xf32> to vector<1x32xf32>
    %1128 = arith.mulf %1119, %1112 : vector<1x32xf32>
    %1129 = arith.addf %1127, %1128 : vector<1x32xf32>
    %1130 = math.tanh %1129 : vector<1x32xf32>
    %cst_265 = arith.constant 1.000000e+00 : f32
    %1131 = vector.broadcast %cst_265 : f32 to vector<1x32xf32>
    %1132 = arith.subf %1131, %1126 : vector<1x32xf32>
    %1133 = arith.mulf %1132, %1130 : vector<1x32xf32>
    %1134 = arith.mulf %1126, %1069 : vector<1x32xf32>
    %1135 = arith.addf %1133, %1134 : vector<1x32xf32>
    %cst_266 = arith.constant dense<0.000000e+00> : vector<1x32xf32>
    %1136 = tpu.matmul %1073, %1060, %cst_266 {dimension_numbers = #tpu.dot_dimension_numbers<[1], [0], [0], [1], [0, 0, 1, 1], [], []>} : vector<1x32xf32>, vector<32x32xf32>, vector<1x32xf32> -> vector<1x32xf32>
    %1137 = arith.addf %1136, %1063 : vector<1x32xf32>
    %cst_267 = arith.constant dense<0.000000e+00> : vector<1x32xf32>
    %1138 = tpu.matmul %1073, %1061, %cst_267 {dimension_numbers = #tpu.dot_dimension_numbers<[1], [0], [0], [1], [0, 0, 1, 1], [], []>} : vector<1x32xf32>, vector<32x32xf32>, vector<1x32xf32> -> vector<1x32xf32>
    %1139 = arith.addf %1138, %1064 : vector<1x32xf32>
    %cst_268 = arith.constant dense<0.000000e+00> : vector<1x32xf32>
    %1140 = tpu.matmul %1073, %1062, %cst_268 {dimension_numbers = #tpu.dot_dimension_numbers<[1], [0], [0], [1], [0, 0, 1, 1], [], []>} : vector<1x32xf32>, vector<32x32xf32>, vector<1x32xf32> -> vector<1x32xf32>
    %1141 = arith.addf %1140, %1065 : vector<1x32xf32>
    %1142 = vector.extract_strided_slice %1070 {offsets = [0, 0], sizes = [1, 32], strides = [1, 1]} : vector<8x32xf32> to vector<1x32xf32>
    %1143 = arith.addf %1142, %1137 : vector<1x32xf32>
    %1144 = arith.negf %1143 : vector<1x32xf32>
    %1145 = math.exp %1144 : vector<1x32xf32>
    %cst_269 = arith.constant 1.000000e+00 : f32
    %1146 = vector.broadcast %cst_269 : f32 to vector<1x32xf32>
    %1147 = arith.addf %1146, %1145 : vector<1x32xf32>
    %1148 = arith.divf %1146, %1147 : vector<1x32xf32>
    %1149 = vector.extract_strided_slice %1071 {offsets = [0, 0], sizes = [1, 32], strides = [1, 1]} : vector<8x32xf32> to vector<1x32xf32>
    %1150 = arith.addf %1149, %1139 : vector<1x32xf32>
    %1151 = arith.negf %1150 : vector<1x32xf32>
    %1152 = math.exp %1151 : vector<1x32xf32>
    %cst_270 = arith.constant 1.000000e+00 : f32
    %1153 = vector.broadcast %cst_270 : f32 to vector<1x32xf32>
    %1154 = arith.addf %1153, %1152 : vector<1x32xf32>
    %1155 = arith.divf %1153, %1154 : vector<1x32xf32>
    %1156 = vector.extract_strided_slice %1072 {offsets = [0, 0], sizes = [1, 32], strides = [1, 1]} : vector<8x32xf32> to vector<1x32xf32>
    %1157 = arith.mulf %1148, %1141 : vector<1x32xf32>
    %1158 = arith.addf %1156, %1157 : vector<1x32xf32>
    %1159 = math.tanh %1158 : vector<1x32xf32>
    %cst_271 = arith.constant 1.000000e+00 : f32
    %1160 = vector.broadcast %cst_271 : f32 to vector<1x32xf32>
    %1161 = arith.subf %1160, %1155 : vector<1x32xf32>
    %1162 = arith.mulf %1161, %1159 : vector<1x32xf32>
    %1163 = arith.mulf %1155, %1073 : vector<1x32xf32>
    %1164 = arith.addf %1162, %1163 : vector<1x32xf32>
    %cst_272 = arith.constant dense<0.000000e+00> : vector<1x32xf32>
    %1165 = tpu.matmul %1102, %1093, %cst_272 {dimension_numbers = #tpu.dot_dimension_numbers<[1], [0], [0], [1], [0, 0, 1, 1], [], []>} : vector<1x32xf32>, vector<32x32xf32>, vector<1x32xf32> -> vector<1x32xf32>
    %1166 = arith.addf %1165, %1096 : vector<1x32xf32>
    %cst_273 = arith.constant dense<0.000000e+00> : vector<1x32xf32>
    %1167 = tpu.matmul %1102, %1094, %cst_273 {dimension_numbers = #tpu.dot_dimension_numbers<[1], [0], [0], [1], [0, 0, 1, 1], [], []>} : vector<1x32xf32>, vector<32x32xf32>, vector<1x32xf32> -> vector<1x32xf32>
    %1168 = arith.addf %1167, %1097 : vector<1x32xf32>
    %cst_274 = arith.constant dense<0.000000e+00> : vector<1x32xf32>
    %1169 = tpu.matmul %1102, %1095, %cst_274 {dimension_numbers = #tpu.dot_dimension_numbers<[1], [0], [0], [1], [0, 0, 1, 1], [], []>} : vector<1x32xf32>, vector<32x32xf32>, vector<1x32xf32> -> vector<1x32xf32>
    %1170 = arith.addf %1169, %1098 : vector<1x32xf32>
    %1171 = vector.extract_strided_slice %1099 {offsets = [7, 0], sizes = [1, 32], strides = [1, 1]} : vector<8x32xf32> to vector<1x32xf32>
    %1172 = arith.addf %1171, %1166 : vector<1x32xf32>
    %1173 = arith.negf %1172 : vector<1x32xf32>
    %1174 = math.exp %1173 : vector<1x32xf32>
    %cst_275 = arith.constant 1.000000e+00 : f32
    %1175 = vector.broadcast %cst_275 : f32 to vector<1x32xf32>
    %1176 = arith.addf %1175, %1174 : vector<1x32xf32>
    %1177 = arith.divf %1175, %1176 : vector<1x32xf32>
    %1178 = vector.extract_strided_slice %1100 {offsets = [7, 0], sizes = [1, 32], strides = [1, 1]} : vector<8x32xf32> to vector<1x32xf32>
    %1179 = arith.addf %1178, %1168 : vector<1x32xf32>
    %1180 = arith.negf %1179 : vector<1x32xf32>
    %1181 = math.exp %1180 : vector<1x32xf32>
    %cst_276 = arith.constant 1.000000e+00 : f32
    %1182 = vector.broadcast %cst_276 : f32 to vector<1x32xf32>
    %1183 = arith.addf %1182, %1181 : vector<1x32xf32>
    %1184 = arith.divf %1182, %1183 : vector<1x32xf32>
    %1185 = vector.extract_strided_slice %1101 {offsets = [7, 0], sizes = [1, 32], strides = [1, 1]} : vector<8x32xf32> to vector<1x32xf32>
    %1186 = arith.mulf %1177, %1170 : vector<1x32xf32>
    %1187 = arith.addf %1185, %1186 : vector<1x32xf32>
    %1188 = math.tanh %1187 : vector<1x32xf32>
    %cst_277 = arith.constant 1.000000e+00 : f32
    %1189 = vector.broadcast %cst_277 : f32 to vector<1x32xf32>
    %1190 = arith.subf %1189, %1184 : vector<1x32xf32>
    %1191 = arith.mulf %1190, %1188 : vector<1x32xf32>
    %1192 = arith.mulf %1184, %1102 : vector<1x32xf32>
    %1193 = arith.addf %1191, %1192 : vector<1x32xf32>
    %cst_278 = arith.constant dense<0.000000e+00> : vector<1x32xf32>
    %1194 = tpu.matmul %1106, %1093, %cst_278 {dimension_numbers = #tpu.dot_dimension_numbers<[1], [0], [0], [1], [0, 0, 1, 1], [], []>} : vector<1x32xf32>, vector<32x32xf32>, vector<1x32xf32> -> vector<1x32xf32>
    %1195 = arith.addf %1194, %1096 : vector<1x32xf32>
    %cst_279 = arith.constant dense<0.000000e+00> : vector<1x32xf32>
    %1196 = tpu.matmul %1106, %1094, %cst_279 {dimension_numbers = #tpu.dot_dimension_numbers<[1], [0], [0], [1], [0, 0, 1, 1], [], []>} : vector<1x32xf32>, vector<32x32xf32>, vector<1x32xf32> -> vector<1x32xf32>
    %1197 = arith.addf %1196, %1097 : vector<1x32xf32>
    %cst_280 = arith.constant dense<0.000000e+00> : vector<1x32xf32>
    %1198 = tpu.matmul %1106, %1095, %cst_280 {dimension_numbers = #tpu.dot_dimension_numbers<[1], [0], [0], [1], [0, 0, 1, 1], [], []>} : vector<1x32xf32>, vector<32x32xf32>, vector<1x32xf32> -> vector<1x32xf32>
    %1199 = arith.addf %1198, %1098 : vector<1x32xf32>
    %1200 = vector.extract_strided_slice %1103 {offsets = [7, 0], sizes = [1, 32], strides = [1, 1]} : vector<8x32xf32> to vector<1x32xf32>
    %1201 = arith.addf %1200, %1195 : vector<1x32xf32>
    %1202 = arith.negf %1201 : vector<1x32xf32>
    %1203 = math.exp %1202 : vector<1x32xf32>
    %cst_281 = arith.constant 1.000000e+00 : f32
    %1204 = vector.broadcast %cst_281 : f32 to vector<1x32xf32>
    %1205 = arith.addf %1204, %1203 : vector<1x32xf32>
    %1206 = arith.divf %1204, %1205 : vector<1x32xf32>
    %1207 = vector.extract_strided_slice %1104 {offsets = [7, 0], sizes = [1, 32], strides = [1, 1]} : vector<8x32xf32> to vector<1x32xf32>
    %1208 = arith.addf %1207, %1197 : vector<1x32xf32>
    %1209 = arith.negf %1208 : vector<1x32xf32>
    %1210 = math.exp %1209 : vector<1x32xf32>
    %cst_282 = arith.constant 1.000000e+00 : f32
    %1211 = vector.broadcast %cst_282 : f32 to vector<1x32xf32>
    %1212 = arith.addf %1211, %1210 : vector<1x32xf32>
    %1213 = arith.divf %1211, %1212 : vector<1x32xf32>
    %1214 = vector.extract_strided_slice %1105 {offsets = [7, 0], sizes = [1, 32], strides = [1, 1]} : vector<8x32xf32> to vector<1x32xf32>
    %1215 = arith.mulf %1206, %1199 : vector<1x32xf32>
    %1216 = arith.addf %1214, %1215 : vector<1x32xf32>
    %1217 = math.tanh %1216 : vector<1x32xf32>
    %cst_283 = arith.constant 1.000000e+00 : f32
    %1218 = vector.broadcast %cst_283 : f32 to vector<1x32xf32>
    %1219 = arith.subf %1218, %1213 : vector<1x32xf32>
    %1220 = arith.mulf %1219, %1217 : vector<1x32xf32>
    %1221 = arith.mulf %1213, %1106 : vector<1x32xf32>
    %1222 = arith.addf %1220, %1221 : vector<1x32xf32>
    %cst_284 = arith.constant dense<0.000000e+00> : vector<1x32xf32>
    %1223 = tpu.matmul %1135, %1060, %cst_284 {dimension_numbers = #tpu.dot_dimension_numbers<[1], [0], [0], [1], [0, 0, 1, 1], [], []>} : vector<1x32xf32>, vector<32x32xf32>, vector<1x32xf32> -> vector<1x32xf32>
    %1224 = arith.addf %1223, %1063 : vector<1x32xf32>
    %cst_285 = arith.constant dense<0.000000e+00> : vector<1x32xf32>
    %1225 = tpu.matmul %1135, %1061, %cst_285 {dimension_numbers = #tpu.dot_dimension_numbers<[1], [0], [0], [1], [0, 0, 1, 1], [], []>} : vector<1x32xf32>, vector<32x32xf32>, vector<1x32xf32> -> vector<1x32xf32>
    %1226 = arith.addf %1225, %1064 : vector<1x32xf32>
    %cst_286 = arith.constant dense<0.000000e+00> : vector<1x32xf32>
    %1227 = tpu.matmul %1135, %1062, %cst_286 {dimension_numbers = #tpu.dot_dimension_numbers<[1], [0], [0], [1], [0, 0, 1, 1], [], []>} : vector<1x32xf32>, vector<32x32xf32>, vector<1x32xf32> -> vector<1x32xf32>
    %1228 = arith.addf %1227, %1065 : vector<1x32xf32>
    %1229 = vector.extract_strided_slice %1066 {offsets = [1, 0], sizes = [1, 32], strides = [1, 1]} : vector<8x32xf32> to vector<1x32xf32>
    %1230 = arith.addf %1229, %1224 : vector<1x32xf32>
    %1231 = arith.negf %1230 : vector<1x32xf32>
    %1232 = math.exp %1231 : vector<1x32xf32>
    %cst_287 = arith.constant 1.000000e+00 : f32
    %1233 = vector.broadcast %cst_287 : f32 to vector<1x32xf32>
    %1234 = arith.addf %1233, %1232 : vector<1x32xf32>
    %1235 = arith.divf %1233, %1234 : vector<1x32xf32>
    %1236 = vector.extract_strided_slice %1067 {offsets = [1, 0], sizes = [1, 32], strides = [1, 1]} : vector<8x32xf32> to vector<1x32xf32>
    %1237 = arith.addf %1236, %1226 : vector<1x32xf32>
    %1238 = arith.negf %1237 : vector<1x32xf32>
    %1239 = math.exp %1238 : vector<1x32xf32>
    %cst_288 = arith.constant 1.000000e+00 : f32
    %1240 = vector.broadcast %cst_288 : f32 to vector<1x32xf32>
    %1241 = arith.addf %1240, %1239 : vector<1x32xf32>
    %1242 = arith.divf %1240, %1241 : vector<1x32xf32>
    %1243 = vector.extract_strided_slice %1068 {offsets = [1, 0], sizes = [1, 32], strides = [1, 1]} : vector<8x32xf32> to vector<1x32xf32>
    %1244 = arith.mulf %1235, %1228 : vector<1x32xf32>
    %1245 = arith.addf %1243, %1244 : vector<1x32xf32>
    %1246 = math.tanh %1245 : vector<1x32xf32>
    %cst_289 = arith.constant 1.000000e+00 : f32
    %1247 = vector.broadcast %cst_289 : f32 to vector<1x32xf32>
    %1248 = arith.subf %1247, %1242 : vector<1x32xf32>
    %1249 = arith.mulf %1248, %1246 : vector<1x32xf32>
    %1250 = arith.mulf %1242, %1135 : vector<1x32xf32>
    %1251 = arith.addf %1249, %1250 : vector<1x32xf32>
    %cst_290 = arith.constant dense<0.000000e+00> : vector<1x32xf32>
    %1252 = tpu.matmul %1164, %1060, %cst_290 {dimension_numbers = #tpu.dot_dimension_numbers<[1], [0], [0], [1], [0, 0, 1, 1], [], []>} : vector<1x32xf32>, vector<32x32xf32>, vector<1x32xf32> -> vector<1x32xf32>
    %1253 = arith.addf %1252, %1063 : vector<1x32xf32>
    %cst_291 = arith.constant dense<0.000000e+00> : vector<1x32xf32>
    %1254 = tpu.matmul %1164, %1061, %cst_291 {dimension_numbers = #tpu.dot_dimension_numbers<[1], [0], [0], [1], [0, 0, 1, 1], [], []>} : vector<1x32xf32>, vector<32x32xf32>, vector<1x32xf32> -> vector<1x32xf32>
    %1255 = arith.addf %1254, %1064 : vector<1x32xf32>
    %cst_292 = arith.constant dense<0.000000e+00> : vector<1x32xf32>
    %1256 = tpu.matmul %1164, %1062, %cst_292 {dimension_numbers = #tpu.dot_dimension_numbers<[1], [0], [0], [1], [0, 0, 1, 1], [], []>} : vector<1x32xf32>, vector<32x32xf32>, vector<1x32xf32> -> vector<1x32xf32>
    %1257 = arith.addf %1256, %1065 : vector<1x32xf32>
    %1258 = vector.extract_strided_slice %1070 {offsets = [1, 0], sizes = [1, 32], strides = [1, 1]} : vector<8x32xf32> to vector<1x32xf32>
    %1259 = arith.addf %1258, %1253 : vector<1x32xf32>
    %1260 = arith.negf %1259 : vector<1x32xf32>
    %1261 = math.exp %1260 : vector<1x32xf32>
    %cst_293 = arith.constant 1.000000e+00 : f32
    %1262 = vector.broadcast %cst_293 : f32 to vector<1x32xf32>
    %1263 = arith.addf %1262, %1261 : vector<1x32xf32>
    %1264 = arith.divf %1262, %1263 : vector<1x32xf32>
    %1265 = vector.extract_strided_slice %1071 {offsets = [1, 0], sizes = [1, 32], strides = [1, 1]} : vector<8x32xf32> to vector<1x32xf32>
    %1266 = arith.addf %1265, %1255 : vector<1x32xf32>
    %1267 = arith.negf %1266 : vector<1x32xf32>
    %1268 = math.exp %1267 : vector<1x32xf32>
    %cst_294 = arith.constant 1.000000e+00 : f32
    %1269 = vector.broadcast %cst_294 : f32 to vector<1x32xf32>
    %1270 = arith.addf %1269, %1268 : vector<1x32xf32>
    %1271 = arith.divf %1269, %1270 : vector<1x32xf32>
    %1272 = vector.extract_strided_slice %1072 {offsets = [1, 0], sizes = [1, 32], strides = [1, 1]} : vector<8x32xf32> to vector<1x32xf32>
    %1273 = arith.mulf %1264, %1257 : vector<1x32xf32>
    %1274 = arith.addf %1272, %1273 : vector<1x32xf32>
    %1275 = math.tanh %1274 : vector<1x32xf32>
    %cst_295 = arith.constant 1.000000e+00 : f32
    %1276 = vector.broadcast %cst_295 : f32 to vector<1x32xf32>
    %1277 = arith.subf %1276, %1271 : vector<1x32xf32>
    %1278 = arith.mulf %1277, %1275 : vector<1x32xf32>
    %1279 = arith.mulf %1271, %1164 : vector<1x32xf32>
    %1280 = arith.addf %1278, %1279 : vector<1x32xf32>
    %cst_296 = arith.constant dense<0.000000e+00> : vector<1x32xf32>
    %1281 = tpu.matmul %1193, %1093, %cst_296 {dimension_numbers = #tpu.dot_dimension_numbers<[1], [0], [0], [1], [0, 0, 1, 1], [], []>} : vector<1x32xf32>, vector<32x32xf32>, vector<1x32xf32> -> vector<1x32xf32>
    %1282 = arith.addf %1281, %1096 : vector<1x32xf32>
    %cst_297 = arith.constant dense<0.000000e+00> : vector<1x32xf32>
    %1283 = tpu.matmul %1193, %1094, %cst_297 {dimension_numbers = #tpu.dot_dimension_numbers<[1], [0], [0], [1], [0, 0, 1, 1], [], []>} : vector<1x32xf32>, vector<32x32xf32>, vector<1x32xf32> -> vector<1x32xf32>
    %1284 = arith.addf %1283, %1097 : vector<1x32xf32>
    %cst_298 = arith.constant dense<0.000000e+00> : vector<1x32xf32>
    %1285 = tpu.matmul %1193, %1095, %cst_298 {dimension_numbers = #tpu.dot_dimension_numbers<[1], [0], [0], [1], [0, 0, 1, 1], [], []>} : vector<1x32xf32>, vector<32x32xf32>, vector<1x32xf32> -> vector<1x32xf32>
    %1286 = arith.addf %1285, %1098 : vector<1x32xf32>
    %1287 = vector.extract_strided_slice %1099 {offsets = [6, 0], sizes = [1, 32], strides = [1, 1]} : vector<8x32xf32> to vector<1x32xf32>
    %1288 = arith.addf %1287, %1282 : vector<1x32xf32>
    %1289 = arith.negf %1288 : vector<1x32xf32>
    %1290 = math.exp %1289 : vector<1x32xf32>
    %cst_299 = arith.constant 1.000000e+00 : f32
    %1291 = vector.broadcast %cst_299 : f32 to vector<1x32xf32>
    %1292 = arith.addf %1291, %1290 : vector<1x32xf32>
    %1293 = arith.divf %1291, %1292 : vector<1x32xf32>
    %1294 = vector.extract_strided_slice %1100 {offsets = [6, 0], sizes = [1, 32], strides = [1, 1]} : vector<8x32xf32> to vector<1x32xf32>
    %1295 = arith.addf %1294, %1284 : vector<1x32xf32>
    %1296 = arith.negf %1295 : vector<1x32xf32>
    %1297 = math.exp %1296 : vector<1x32xf32>
    %cst_300 = arith.constant 1.000000e+00 : f32
    %1298 = vector.broadcast %cst_300 : f32 to vector<1x32xf32>
    %1299 = arith.addf %1298, %1297 : vector<1x32xf32>
    %1300 = arith.divf %1298, %1299 : vector<1x32xf32>
    %1301 = vector.extract_strided_slice %1101 {offsets = [6, 0], sizes = [1, 32], strides = [1, 1]} : vector<8x32xf32> to vector<1x32xf32>
    %1302 = arith.mulf %1293, %1286 : vector<1x32xf32>
    %1303 = arith.addf %1301, %1302 : vector<1x32xf32>
    %1304 = math.tanh %1303 : vector<1x32xf32>
    %cst_301 = arith.constant 1.000000e+00 : f32
    %1305 = vector.broadcast %cst_301 : f32 to vector<1x32xf32>
    %1306 = arith.subf %1305, %1300 : vector<1x32xf32>
    %1307 = arith.mulf %1306, %1304 : vector<1x32xf32>
    %1308 = arith.mulf %1300, %1193 : vector<1x32xf32>
    %1309 = arith.addf %1307, %1308 : vector<1x32xf32>
    %cst_302 = arith.constant dense<0.000000e+00> : vector<1x32xf32>
    %1310 = tpu.matmul %1222, %1093, %cst_302 {dimension_numbers = #tpu.dot_dimension_numbers<[1], [0], [0], [1], [0, 0, 1, 1], [], []>} : vector<1x32xf32>, vector<32x32xf32>, vector<1x32xf32> -> vector<1x32xf32>
    %1311 = arith.addf %1310, %1096 : vector<1x32xf32>
    %cst_303 = arith.constant dense<0.000000e+00> : vector<1x32xf32>
    %1312 = tpu.matmul %1222, %1094, %cst_303 {dimension_numbers = #tpu.dot_dimension_numbers<[1], [0], [0], [1], [0, 0, 1, 1], [], []>} : vector<1x32xf32>, vector<32x32xf32>, vector<1x32xf32> -> vector<1x32xf32>
    %1313 = arith.addf %1312, %1097 : vector<1x32xf32>
    %cst_304 = arith.constant dense<0.000000e+00> : vector<1x32xf32>
    %1314 = tpu.matmul %1222, %1095, %cst_304 {dimension_numbers = #tpu.dot_dimension_numbers<[1], [0], [0], [1], [0, 0, 1, 1], [], []>} : vector<1x32xf32>, vector<32x32xf32>, vector<1x32xf32> -> vector<1x32xf32>
    %1315 = arith.addf %1314, %1098 : vector<1x32xf32>
    %1316 = vector.extract_strided_slice %1103 {offsets = [6, 0], sizes = [1, 32], strides = [1, 1]} : vector<8x32xf32> to vector<1x32xf32>
    %1317 = arith.addf %1316, %1311 : vector<1x32xf32>
    %1318 = arith.negf %1317 : vector<1x32xf32>
    %1319 = math.exp %1318 : vector<1x32xf32>
    %cst_305 = arith.constant 1.000000e+00 : f32
    %1320 = vector.broadcast %cst_305 : f32 to vector<1x32xf32>
    %1321 = arith.addf %1320, %1319 : vector<1x32xf32>
    %1322 = arith.divf %1320, %1321 : vector<1x32xf32>
    %1323 = vector.extract_strided_slice %1104 {offsets = [6, 0], sizes = [1, 32], strides = [1, 1]} : vector<8x32xf32> to vector<1x32xf32>
    %1324 = arith.addf %1323, %1313 : vector<1x32xf32>
    %1325 = arith.negf %1324 : vector<1x32xf32>
    %1326 = math.exp %1325 : vector<1x32xf32>
    %cst_306 = arith.constant 1.000000e+00 : f32
    %1327 = vector.broadcast %cst_306 : f32 to vector<1x32xf32>
    %1328 = arith.addf %1327, %1326 : vector<1x32xf32>
    %1329 = arith.divf %1327, %1328 : vector<1x32xf32>
    %1330 = vector.extract_strided_slice %1105 {offsets = [6, 0], sizes = [1, 32], strides = [1, 1]} : vector<8x32xf32> to vector<1x32xf32>
    %1331 = arith.mulf %1322, %1315 : vector<1x32xf32>
    %1332 = arith.addf %1330, %1331 : vector<1x32xf32>
    %1333 = math.tanh %1332 : vector<1x32xf32>
    %cst_307 = arith.constant 1.000000e+00 : f32
    %1334 = vector.broadcast %cst_307 : f32 to vector<1x32xf32>
    %1335 = arith.subf %1334, %1329 : vector<1x32xf32>
    %1336 = arith.mulf %1335, %1333 : vector<1x32xf32>
    %1337 = arith.mulf %1329, %1222 : vector<1x32xf32>
    %1338 = arith.addf %1336, %1337 : vector<1x32xf32>
    %cst_308 = arith.constant dense<0.000000e+00> : vector<1x32xf32>
    %1339 = tpu.matmul %1251, %1060, %cst_308 {dimension_numbers = #tpu.dot_dimension_numbers<[1], [0], [0], [1], [0, 0, 1, 1], [], []>} : vector<1x32xf32>, vector<32x32xf32>, vector<1x32xf32> -> vector<1x32xf32>
    %1340 = arith.addf %1339, %1063 : vector<1x32xf32>
    %cst_309 = arith.constant dense<0.000000e+00> : vector<1x32xf32>
    %1341 = tpu.matmul %1251, %1061, %cst_309 {dimension_numbers = #tpu.dot_dimension_numbers<[1], [0], [0], [1], [0, 0, 1, 1], [], []>} : vector<1x32xf32>, vector<32x32xf32>, vector<1x32xf32> -> vector<1x32xf32>
    %1342 = arith.addf %1341, %1064 : vector<1x32xf32>
    %cst_310 = arith.constant dense<0.000000e+00> : vector<1x32xf32>
    %1343 = tpu.matmul %1251, %1062, %cst_310 {dimension_numbers = #tpu.dot_dimension_numbers<[1], [0], [0], [1], [0, 0, 1, 1], [], []>} : vector<1x32xf32>, vector<32x32xf32>, vector<1x32xf32> -> vector<1x32xf32>
    %1344 = arith.addf %1343, %1065 : vector<1x32xf32>
    %1345 = vector.extract_strided_slice %1066 {offsets = [2, 0], sizes = [1, 32], strides = [1, 1]} : vector<8x32xf32> to vector<1x32xf32>
    %1346 = arith.addf %1345, %1340 : vector<1x32xf32>
    %1347 = arith.negf %1346 : vector<1x32xf32>
    %1348 = math.exp %1347 : vector<1x32xf32>
    %cst_311 = arith.constant 1.000000e+00 : f32
    %1349 = vector.broadcast %cst_311 : f32 to vector<1x32xf32>
    %1350 = arith.addf %1349, %1348 : vector<1x32xf32>
    %1351 = arith.divf %1349, %1350 : vector<1x32xf32>
    %1352 = vector.extract_strided_slice %1067 {offsets = [2, 0], sizes = [1, 32], strides = [1, 1]} : vector<8x32xf32> to vector<1x32xf32>
    %1353 = arith.addf %1352, %1342 : vector<1x32xf32>
    %1354 = arith.negf %1353 : vector<1x32xf32>
    %1355 = math.exp %1354 : vector<1x32xf32>
    %cst_312 = arith.constant 1.000000e+00 : f32
    %1356 = vector.broadcast %cst_312 : f32 to vector<1x32xf32>
    %1357 = arith.addf %1356, %1355 : vector<1x32xf32>
    %1358 = arith.divf %1356, %1357 : vector<1x32xf32>
    %1359 = vector.extract_strided_slice %1068 {offsets = [2, 0], sizes = [1, 32], strides = [1, 1]} : vector<8x32xf32> to vector<1x32xf32>
    %1360 = arith.mulf %1351, %1344 : vector<1x32xf32>
    %1361 = arith.addf %1359, %1360 : vector<1x32xf32>
    %1362 = math.tanh %1361 : vector<1x32xf32>
    %cst_313 = arith.constant 1.000000e+00 : f32
    %1363 = vector.broadcast %cst_313 : f32 to vector<1x32xf32>
    %1364 = arith.subf %1363, %1358 : vector<1x32xf32>
    %1365 = arith.mulf %1364, %1362 : vector<1x32xf32>
    %1366 = arith.mulf %1358, %1251 : vector<1x32xf32>
    %1367 = arith.addf %1365, %1366 : vector<1x32xf32>
    %cst_314 = arith.constant dense<0.000000e+00> : vector<1x32xf32>
    %1368 = tpu.matmul %1280, %1060, %cst_314 {dimension_numbers = #tpu.dot_dimension_numbers<[1], [0], [0], [1], [0, 0, 1, 1], [], []>} : vector<1x32xf32>, vector<32x32xf32>, vector<1x32xf32> -> vector<1x32xf32>
    %1369 = arith.addf %1368, %1063 : vector<1x32xf32>
    %cst_315 = arith.constant dense<0.000000e+00> : vector<1x32xf32>
    %1370 = tpu.matmul %1280, %1061, %cst_315 {dimension_numbers = #tpu.dot_dimension_numbers<[1], [0], [0], [1], [0, 0, 1, 1], [], []>} : vector<1x32xf32>, vector<32x32xf32>, vector<1x32xf32> -> vector<1x32xf32>
    %1371 = arith.addf %1370, %1064 : vector<1x32xf32>
    %cst_316 = arith.constant dense<0.000000e+00> : vector<1x32xf32>
    %1372 = tpu.matmul %1280, %1062, %cst_316 {dimension_numbers = #tpu.dot_dimension_numbers<[1], [0], [0], [1], [0, 0, 1, 1], [], []>} : vector<1x32xf32>, vector<32x32xf32>, vector<1x32xf32> -> vector<1x32xf32>
    %1373 = arith.addf %1372, %1065 : vector<1x32xf32>
    %1374 = vector.extract_strided_slice %1070 {offsets = [2, 0], sizes = [1, 32], strides = [1, 1]} : vector<8x32xf32> to vector<1x32xf32>
    %1375 = arith.addf %1374, %1369 : vector<1x32xf32>
    %1376 = arith.negf %1375 : vector<1x32xf32>
    %1377 = math.exp %1376 : vector<1x32xf32>
    %cst_317 = arith.constant 1.000000e+00 : f32
    %1378 = vector.broadcast %cst_317 : f32 to vector<1x32xf32>
    %1379 = arith.addf %1378, %1377 : vector<1x32xf32>
    %1380 = arith.divf %1378, %1379 : vector<1x32xf32>
    %1381 = vector.extract_strided_slice %1071 {offsets = [2, 0], sizes = [1, 32], strides = [1, 1]} : vector<8x32xf32> to vector<1x32xf32>
    %1382 = arith.addf %1381, %1371 : vector<1x32xf32>
    %1383 = arith.negf %1382 : vector<1x32xf32>
    %1384 = math.exp %1383 : vector<1x32xf32>
    %cst_318 = arith.constant 1.000000e+00 : f32
    %1385 = vector.broadcast %cst_318 : f32 to vector<1x32xf32>
    %1386 = arith.addf %1385, %1384 : vector<1x32xf32>
    %1387 = arith.divf %1385, %1386 : vector<1x32xf32>
    %1388 = vector.extract_strided_slice %1072 {offsets = [2, 0], sizes = [1, 32], strides = [1, 1]} : vector<8x32xf32> to vector<1x32xf32>
    %1389 = arith.mulf %1380, %1373 : vector<1x32xf32>
    %1390 = arith.addf %1388, %1389 : vector<1x32xf32>
    %1391 = math.tanh %1390 : vector<1x32xf32>
    %cst_319 = arith.constant 1.000000e+00 : f32
    %1392 = vector.broadcast %cst_319 : f32 to vector<1x32xf32>
    %1393 = arith.subf %1392, %1387 : vector<1x32xf32>
    %1394 = arith.mulf %1393, %1391 : vector<1x32xf32>
    %1395 = arith.mulf %1387, %1280 : vector<1x32xf32>
    %1396 = arith.addf %1394, %1395 : vector<1x32xf32>
    %cst_320 = arith.constant dense<0.000000e+00> : vector<1x32xf32>
    %1397 = tpu.matmul %1309, %1093, %cst_320 {dimension_numbers = #tpu.dot_dimension_numbers<[1], [0], [0], [1], [0, 0, 1, 1], [], []>} : vector<1x32xf32>, vector<32x32xf32>, vector<1x32xf32> -> vector<1x32xf32>
    %1398 = arith.addf %1397, %1096 : vector<1x32xf32>
    %cst_321 = arith.constant dense<0.000000e+00> : vector<1x32xf32>
    %1399 = tpu.matmul %1309, %1094, %cst_321 {dimension_numbers = #tpu.dot_dimension_numbers<[1], [0], [0], [1], [0, 0, 1, 1], [], []>} : vector<1x32xf32>, vector<32x32xf32>, vector<1x32xf32> -> vector<1x32xf32>
    %1400 = arith.addf %1399, %1097 : vector<1x32xf32>
    %cst_322 = arith.constant dense<0.000000e+00> : vector<1x32xf32>
    %1401 = tpu.matmul %1309, %1095, %cst_322 {dimension_numbers = #tpu.dot_dimension_numbers<[1], [0], [0], [1], [0, 0, 1, 1], [], []>} : vector<1x32xf32>, vector<32x32xf32>, vector<1x32xf32> -> vector<1x32xf32>
    %1402 = arith.addf %1401, %1098 : vector<1x32xf32>
    %1403 = vector.extract_strided_slice %1099 {offsets = [5, 0], sizes = [1, 32], strides = [1, 1]} : vector<8x32xf32> to vector<1x32xf32>
    %1404 = arith.addf %1403, %1398 : vector<1x32xf32>
    %1405 = arith.negf %1404 : vector<1x32xf32>
    %1406 = math.exp %1405 : vector<1x32xf32>
    %cst_323 = arith.constant 1.000000e+00 : f32
    %1407 = vector.broadcast %cst_323 : f32 to vector<1x32xf32>
    %1408 = arith.addf %1407, %1406 : vector<1x32xf32>
    %1409 = arith.divf %1407, %1408 : vector<1x32xf32>
    %1410 = vector.extract_strided_slice %1100 {offsets = [5, 0], sizes = [1, 32], strides = [1, 1]} : vector<8x32xf32> to vector<1x32xf32>
    %1411 = arith.addf %1410, %1400 : vector<1x32xf32>
    %1412 = arith.negf %1411 : vector<1x32xf32>
    %1413 = math.exp %1412 : vector<1x32xf32>
    %cst_324 = arith.constant 1.000000e+00 : f32
    %1414 = vector.broadcast %cst_324 : f32 to vector<1x32xf32>
    %1415 = arith.addf %1414, %1413 : vector<1x32xf32>
    %1416 = arith.divf %1414, %1415 : vector<1x32xf32>
    %1417 = vector.extract_strided_slice %1101 {offsets = [5, 0], sizes = [1, 32], strides = [1, 1]} : vector<8x32xf32> to vector<1x32xf32>
    %1418 = arith.mulf %1409, %1402 : vector<1x32xf32>
    %1419 = arith.addf %1417, %1418 : vector<1x32xf32>
    %1420 = math.tanh %1419 : vector<1x32xf32>
    %cst_325 = arith.constant 1.000000e+00 : f32
    %1421 = vector.broadcast %cst_325 : f32 to vector<1x32xf32>
    %1422 = arith.subf %1421, %1416 : vector<1x32xf32>
    %1423 = arith.mulf %1422, %1420 : vector<1x32xf32>
    %1424 = arith.mulf %1416, %1309 : vector<1x32xf32>
    %1425 = arith.addf %1423, %1424 : vector<1x32xf32>
    %cst_326 = arith.constant dense<0.000000e+00> : vector<1x32xf32>
    %1426 = tpu.matmul %1338, %1093, %cst_326 {dimension_numbers = #tpu.dot_dimension_numbers<[1], [0], [0], [1], [0, 0, 1, 1], [], []>} : vector<1x32xf32>, vector<32x32xf32>, vector<1x32xf32> -> vector<1x32xf32>
    %1427 = arith.addf %1426, %1096 : vector<1x32xf32>
    %cst_327 = arith.constant dense<0.000000e+00> : vector<1x32xf32>
    %1428 = tpu.matmul %1338, %1094, %cst_327 {dimension_numbers = #tpu.dot_dimension_numbers<[1], [0], [0], [1], [0, 0, 1, 1], [], []>} : vector<1x32xf32>, vector<32x32xf32>, vector<1x32xf32> -> vector<1x32xf32>
    %1429 = arith.addf %1428, %1097 : vector<1x32xf32>
    %cst_328 = arith.constant dense<0.000000e+00> : vector<1x32xf32>
    %1430 = tpu.matmul %1338, %1095, %cst_328 {dimension_numbers = #tpu.dot_dimension_numbers<[1], [0], [0], [1], [0, 0, 1, 1], [], []>} : vector<1x32xf32>, vector<32x32xf32>, vector<1x32xf32> -> vector<1x32xf32>
    %1431 = arith.addf %1430, %1098 : vector<1x32xf32>
    %1432 = vector.extract_strided_slice %1103 {offsets = [5, 0], sizes = [1, 32], strides = [1, 1]} : vector<8x32xf32> to vector<1x32xf32>
    %1433 = arith.addf %1432, %1427 : vector<1x32xf32>
    %1434 = arith.negf %1433 : vector<1x32xf32>
    %1435 = math.exp %1434 : vector<1x32xf32>
    %cst_329 = arith.constant 1.000000e+00 : f32
    %1436 = vector.broadcast %cst_329 : f32 to vector<1x32xf32>
    %1437 = arith.addf %1436, %1435 : vector<1x32xf32>
    %1438 = arith.divf %1436, %1437 : vector<1x32xf32>
    %1439 = vector.extract_strided_slice %1104 {offsets = [5, 0], sizes = [1, 32], strides = [1, 1]} : vector<8x32xf32> to vector<1x32xf32>
    %1440 = arith.addf %1439, %1429 : vector<1x32xf32>
    %1441 = arith.negf %1440 : vector<1x32xf32>
    %1442 = math.exp %1441 : vector<1x32xf32>
    %cst_330 = arith.constant 1.000000e+00 : f32
    %1443 = vector.broadcast %cst_330 : f32 to vector<1x32xf32>
    %1444 = arith.addf %1443, %1442 : vector<1x32xf32>
    %1445 = arith.divf %1443, %1444 : vector<1x32xf32>
    %1446 = vector.extract_strided_slice %1105 {offsets = [5, 0], sizes = [1, 32], strides = [1, 1]} : vector<8x32xf32> to vector<1x32xf32>
    %1447 = arith.mulf %1438, %1431 : vector<1x32xf32>
    %1448 = arith.addf %1446, %1447 : vector<1x32xf32>
    %1449 = math.tanh %1448 : vector<1x32xf32>
    %cst_331 = arith.constant 1.000000e+00 : f32
    %1450 = vector.broadcast %cst_331 : f32 to vector<1x32xf32>
    %1451 = arith.subf %1450, %1445 : vector<1x32xf32>
    %1452 = arith.mulf %1451, %1449 : vector<1x32xf32>
    %1453 = arith.mulf %1445, %1338 : vector<1x32xf32>
    %1454 = arith.addf %1452, %1453 : vector<1x32xf32>
    %cst_332 = arith.constant dense<0.000000e+00> : vector<1x32xf32>
    %1455 = tpu.matmul %1367, %1060, %cst_332 {dimension_numbers = #tpu.dot_dimension_numbers<[1], [0], [0], [1], [0, 0, 1, 1], [], []>} : vector<1x32xf32>, vector<32x32xf32>, vector<1x32xf32> -> vector<1x32xf32>
    %1456 = arith.addf %1455, %1063 : vector<1x32xf32>
    %cst_333 = arith.constant dense<0.000000e+00> : vector<1x32xf32>
    %1457 = tpu.matmul %1367, %1061, %cst_333 {dimension_numbers = #tpu.dot_dimension_numbers<[1], [0], [0], [1], [0, 0, 1, 1], [], []>} : vector<1x32xf32>, vector<32x32xf32>, vector<1x32xf32> -> vector<1x32xf32>
    %1458 = arith.addf %1457, %1064 : vector<1x32xf32>
    %cst_334 = arith.constant dense<0.000000e+00> : vector<1x32xf32>
    %1459 = tpu.matmul %1367, %1062, %cst_334 {dimension_numbers = #tpu.dot_dimension_numbers<[1], [0], [0], [1], [0, 0, 1, 1], [], []>} : vector<1x32xf32>, vector<32x32xf32>, vector<1x32xf32> -> vector<1x32xf32>
    %1460 = arith.addf %1459, %1065 : vector<1x32xf32>
    %1461 = vector.extract_strided_slice %1066 {offsets = [3, 0], sizes = [1, 32], strides = [1, 1]} : vector<8x32xf32> to vector<1x32xf32>
    %1462 = arith.addf %1461, %1456 : vector<1x32xf32>
    %1463 = arith.negf %1462 : vector<1x32xf32>
    %1464 = math.exp %1463 : vector<1x32xf32>
    %cst_335 = arith.constant 1.000000e+00 : f32
    %1465 = vector.broadcast %cst_335 : f32 to vector<1x32xf32>
    %1466 = arith.addf %1465, %1464 : vector<1x32xf32>
    %1467 = arith.divf %1465, %1466 : vector<1x32xf32>
    %1468 = vector.extract_strided_slice %1067 {offsets = [3, 0], sizes = [1, 32], strides = [1, 1]} : vector<8x32xf32> to vector<1x32xf32>
    %1469 = arith.addf %1468, %1458 : vector<1x32xf32>
    %1470 = arith.negf %1469 : vector<1x32xf32>
    %1471 = math.exp %1470 : vector<1x32xf32>
    %cst_336 = arith.constant 1.000000e+00 : f32
    %1472 = vector.broadcast %cst_336 : f32 to vector<1x32xf32>
    %1473 = arith.addf %1472, %1471 : vector<1x32xf32>
    %1474 = arith.divf %1472, %1473 : vector<1x32xf32>
    %1475 = vector.extract_strided_slice %1068 {offsets = [3, 0], sizes = [1, 32], strides = [1, 1]} : vector<8x32xf32> to vector<1x32xf32>
    %1476 = arith.mulf %1467, %1460 : vector<1x32xf32>
    %1477 = arith.addf %1475, %1476 : vector<1x32xf32>
    %1478 = math.tanh %1477 : vector<1x32xf32>
    %cst_337 = arith.constant 1.000000e+00 : f32
    %1479 = vector.broadcast %cst_337 : f32 to vector<1x32xf32>
    %1480 = arith.subf %1479, %1474 : vector<1x32xf32>
    %1481 = arith.mulf %1480, %1478 : vector<1x32xf32>
    %1482 = arith.mulf %1474, %1367 : vector<1x32xf32>
    %1483 = arith.addf %1481, %1482 : vector<1x32xf32>
    %cst_338 = arith.constant dense<0.000000e+00> : vector<1x32xf32>
    %1484 = tpu.matmul %1396, %1060, %cst_338 {dimension_numbers = #tpu.dot_dimension_numbers<[1], [0], [0], [1], [0, 0, 1, 1], [], []>} : vector<1x32xf32>, vector<32x32xf32>, vector<1x32xf32> -> vector<1x32xf32>
    %1485 = arith.addf %1484, %1063 : vector<1x32xf32>
    %cst_339 = arith.constant dense<0.000000e+00> : vector<1x32xf32>
    %1486 = tpu.matmul %1396, %1061, %cst_339 {dimension_numbers = #tpu.dot_dimension_numbers<[1], [0], [0], [1], [0, 0, 1, 1], [], []>} : vector<1x32xf32>, vector<32x32xf32>, vector<1x32xf32> -> vector<1x32xf32>
    %1487 = arith.addf %1486, %1064 : vector<1x32xf32>
    %cst_340 = arith.constant dense<0.000000e+00> : vector<1x32xf32>
    %1488 = tpu.matmul %1396, %1062, %cst_340 {dimension_numbers = #tpu.dot_dimension_numbers<[1], [0], [0], [1], [0, 0, 1, 1], [], []>} : vector<1x32xf32>, vector<32x32xf32>, vector<1x32xf32> -> vector<1x32xf32>
    %1489 = arith.addf %1488, %1065 : vector<1x32xf32>
    %1490 = vector.extract_strided_slice %1070 {offsets = [3, 0], sizes = [1, 32], strides = [1, 1]} : vector<8x32xf32> to vector<1x32xf32>
    %1491 = arith.addf %1490, %1485 : vector<1x32xf32>
    %1492 = arith.negf %1491 : vector<1x32xf32>
    %1493 = math.exp %1492 : vector<1x32xf32>
    %cst_341 = arith.constant 1.000000e+00 : f32
    %1494 = vector.broadcast %cst_341 : f32 to vector<1x32xf32>
    %1495 = arith.addf %1494, %1493 : vector<1x32xf32>
    %1496 = arith.divf %1494, %1495 : vector<1x32xf32>
    %1497 = vector.extract_strided_slice %1071 {offsets = [3, 0], sizes = [1, 32], strides = [1, 1]} : vector<8x32xf32> to vector<1x32xf32>
    %1498 = arith.addf %1497, %1487 : vector<1x32xf32>
    %1499 = arith.negf %1498 : vector<1x32xf32>
    %1500 = math.exp %1499 : vector<1x32xf32>
    %cst_342 = arith.constant 1.000000e+00 : f32
    %1501 = vector.broadcast %cst_342 : f32 to vector<1x32xf32>
    %1502 = arith.addf %1501, %1500 : vector<1x32xf32>
    %1503 = arith.divf %1501, %1502 : vector<1x32xf32>
    %1504 = vector.extract_strided_slice %1072 {offsets = [3, 0], sizes = [1, 32], strides = [1, 1]} : vector<8x32xf32> to vector<1x32xf32>
    %1505 = arith.mulf %1496, %1489 : vector<1x32xf32>
    %1506 = arith.addf %1504, %1505 : vector<1x32xf32>
    %1507 = math.tanh %1506 : vector<1x32xf32>
    %cst_343 = arith.constant 1.000000e+00 : f32
    %1508 = vector.broadcast %cst_343 : f32 to vector<1x32xf32>
    %1509 = arith.subf %1508, %1503 : vector<1x32xf32>
    %1510 = arith.mulf %1509, %1507 : vector<1x32xf32>
    %1511 = arith.mulf %1503, %1396 : vector<1x32xf32>
    %1512 = arith.addf %1510, %1511 : vector<1x32xf32>
    %cst_344 = arith.constant dense<0.000000e+00> : vector<1x32xf32>
    %1513 = tpu.matmul %1425, %1093, %cst_344 {dimension_numbers = #tpu.dot_dimension_numbers<[1], [0], [0], [1], [0, 0, 1, 1], [], []>} : vector<1x32xf32>, vector<32x32xf32>, vector<1x32xf32> -> vector<1x32xf32>
    %1514 = arith.addf %1513, %1096 : vector<1x32xf32>
    %cst_345 = arith.constant dense<0.000000e+00> : vector<1x32xf32>
    %1515 = tpu.matmul %1425, %1094, %cst_345 {dimension_numbers = #tpu.dot_dimension_numbers<[1], [0], [0], [1], [0, 0, 1, 1], [], []>} : vector<1x32xf32>, vector<32x32xf32>, vector<1x32xf32> -> vector<1x32xf32>
    %1516 = arith.addf %1515, %1097 : vector<1x32xf32>
    %cst_346 = arith.constant dense<0.000000e+00> : vector<1x32xf32>
    %1517 = tpu.matmul %1425, %1095, %cst_346 {dimension_numbers = #tpu.dot_dimension_numbers<[1], [0], [0], [1], [0, 0, 1, 1], [], []>} : vector<1x32xf32>, vector<32x32xf32>, vector<1x32xf32> -> vector<1x32xf32>
    %1518 = arith.addf %1517, %1098 : vector<1x32xf32>
    %1519 = vector.extract_strided_slice %1099 {offsets = [4, 0], sizes = [1, 32], strides = [1, 1]} : vector<8x32xf32> to vector<1x32xf32>
    %1520 = arith.addf %1519, %1514 : vector<1x32xf32>
    %1521 = arith.negf %1520 : vector<1x32xf32>
    %1522 = math.exp %1521 : vector<1x32xf32>
    %cst_347 = arith.constant 1.000000e+00 : f32
    %1523 = vector.broadcast %cst_347 : f32 to vector<1x32xf32>
    %1524 = arith.addf %1523, %1522 : vector<1x32xf32>
    %1525 = arith.divf %1523, %1524 : vector<1x32xf32>
    %1526 = vector.extract_strided_slice %1100 {offsets = [4, 0], sizes = [1, 32], strides = [1, 1]} : vector<8x32xf32> to vector<1x32xf32>
    %1527 = arith.addf %1526, %1516 : vector<1x32xf32>
    %1528 = arith.negf %1527 : vector<1x32xf32>
    %1529 = math.exp %1528 : vector<1x32xf32>
    %cst_348 = arith.constant 1.000000e+00 : f32
    %1530 = vector.broadcast %cst_348 : f32 to vector<1x32xf32>
    %1531 = arith.addf %1530, %1529 : vector<1x32xf32>
    %1532 = arith.divf %1530, %1531 : vector<1x32xf32>
    %1533 = vector.extract_strided_slice %1101 {offsets = [4, 0], sizes = [1, 32], strides = [1, 1]} : vector<8x32xf32> to vector<1x32xf32>
    %1534 = arith.mulf %1525, %1518 : vector<1x32xf32>
    %1535 = arith.addf %1533, %1534 : vector<1x32xf32>
    %1536 = math.tanh %1535 : vector<1x32xf32>
    %cst_349 = arith.constant 1.000000e+00 : f32
    %1537 = vector.broadcast %cst_349 : f32 to vector<1x32xf32>
    %1538 = arith.subf %1537, %1532 : vector<1x32xf32>
    %1539 = arith.mulf %1538, %1536 : vector<1x32xf32>
    %1540 = arith.mulf %1532, %1425 : vector<1x32xf32>
    %1541 = arith.addf %1539, %1540 : vector<1x32xf32>
    %cst_350 = arith.constant dense<0.000000e+00> : vector<1x32xf32>
    %1542 = tpu.matmul %1454, %1093, %cst_350 {dimension_numbers = #tpu.dot_dimension_numbers<[1], [0], [0], [1], [0, 0, 1, 1], [], []>} : vector<1x32xf32>, vector<32x32xf32>, vector<1x32xf32> -> vector<1x32xf32>
    %1543 = arith.addf %1542, %1096 : vector<1x32xf32>
    %cst_351 = arith.constant dense<0.000000e+00> : vector<1x32xf32>
    %1544 = tpu.matmul %1454, %1094, %cst_351 {dimension_numbers = #tpu.dot_dimension_numbers<[1], [0], [0], [1], [0, 0, 1, 1], [], []>} : vector<1x32xf32>, vector<32x32xf32>, vector<1x32xf32> -> vector<1x32xf32>
    %1545 = arith.addf %1544, %1097 : vector<1x32xf32>
    %cst_352 = arith.constant dense<0.000000e+00> : vector<1x32xf32>
    %1546 = tpu.matmul %1454, %1095, %cst_352 {dimension_numbers = #tpu.dot_dimension_numbers<[1], [0], [0], [1], [0, 0, 1, 1], [], []>} : vector<1x32xf32>, vector<32x32xf32>, vector<1x32xf32> -> vector<1x32xf32>
    %1547 = arith.addf %1546, %1098 : vector<1x32xf32>
    %1548 = vector.extract_strided_slice %1103 {offsets = [4, 0], sizes = [1, 32], strides = [1, 1]} : vector<8x32xf32> to vector<1x32xf32>
    %1549 = arith.addf %1548, %1543 : vector<1x32xf32>
    %1550 = arith.negf %1549 : vector<1x32xf32>
    %1551 = math.exp %1550 : vector<1x32xf32>
    %cst_353 = arith.constant 1.000000e+00 : f32
    %1552 = vector.broadcast %cst_353 : f32 to vector<1x32xf32>
    %1553 = arith.addf %1552, %1551 : vector<1x32xf32>
    %1554 = arith.divf %1552, %1553 : vector<1x32xf32>
    %1555 = vector.extract_strided_slice %1104 {offsets = [4, 0], sizes = [1, 32], strides = [1, 1]} : vector<8x32xf32> to vector<1x32xf32>
    %1556 = arith.addf %1555, %1545 : vector<1x32xf32>
    %1557 = arith.negf %1556 : vector<1x32xf32>
    %1558 = math.exp %1557 : vector<1x32xf32>
    %cst_354 = arith.constant 1.000000e+00 : f32
    %1559 = vector.broadcast %cst_354 : f32 to vector<1x32xf32>
    %1560 = arith.addf %1559, %1558 : vector<1x32xf32>
    %1561 = arith.divf %1559, %1560 : vector<1x32xf32>
    %1562 = vector.extract_strided_slice %1105 {offsets = [4, 0], sizes = [1, 32], strides = [1, 1]} : vector<8x32xf32> to vector<1x32xf32>
    %1563 = arith.mulf %1554, %1547 : vector<1x32xf32>
    %1564 = arith.addf %1562, %1563 : vector<1x32xf32>
    %1565 = math.tanh %1564 : vector<1x32xf32>
    %cst_355 = arith.constant 1.000000e+00 : f32
    %1566 = vector.broadcast %cst_355 : f32 to vector<1x32xf32>
    %1567 = arith.subf %1566, %1561 : vector<1x32xf32>
    %1568 = arith.mulf %1567, %1565 : vector<1x32xf32>
    %1569 = arith.mulf %1561, %1454 : vector<1x32xf32>
    %1570 = arith.addf %1568, %1569 : vector<1x32xf32>
    %cst_356 = arith.constant dense<0.000000e+00> : vector<1x32xf32>
    %1571 = tpu.matmul %1483, %1060, %cst_356 {dimension_numbers = #tpu.dot_dimension_numbers<[1], [0], [0], [1], [0, 0, 1, 1], [], []>} : vector<1x32xf32>, vector<32x32xf32>, vector<1x32xf32> -> vector<1x32xf32>
    %1572 = arith.addf %1571, %1063 : vector<1x32xf32>
    %cst_357 = arith.constant dense<0.000000e+00> : vector<1x32xf32>
    %1573 = tpu.matmul %1483, %1061, %cst_357 {dimension_numbers = #tpu.dot_dimension_numbers<[1], [0], [0], [1], [0, 0, 1, 1], [], []>} : vector<1x32xf32>, vector<32x32xf32>, vector<1x32xf32> -> vector<1x32xf32>
    %1574 = arith.addf %1573, %1064 : vector<1x32xf32>
    %cst_358 = arith.constant dense<0.000000e+00> : vector<1x32xf32>
    %1575 = tpu.matmul %1483, %1062, %cst_358 {dimension_numbers = #tpu.dot_dimension_numbers<[1], [0], [0], [1], [0, 0, 1, 1], [], []>} : vector<1x32xf32>, vector<32x32xf32>, vector<1x32xf32> -> vector<1x32xf32>
    %1576 = arith.addf %1575, %1065 : vector<1x32xf32>
    %1577 = vector.extract_strided_slice %1066 {offsets = [4, 0], sizes = [1, 32], strides = [1, 1]} : vector<8x32xf32> to vector<1x32xf32>
    %1578 = arith.addf %1577, %1572 : vector<1x32xf32>
    %1579 = arith.negf %1578 : vector<1x32xf32>
    %1580 = math.exp %1579 : vector<1x32xf32>
    %cst_359 = arith.constant 1.000000e+00 : f32
    %1581 = vector.broadcast %cst_359 : f32 to vector<1x32xf32>
    %1582 = arith.addf %1581, %1580 : vector<1x32xf32>
    %1583 = arith.divf %1581, %1582 : vector<1x32xf32>
    %1584 = vector.extract_strided_slice %1067 {offsets = [4, 0], sizes = [1, 32], strides = [1, 1]} : vector<8x32xf32> to vector<1x32xf32>
    %1585 = arith.addf %1584, %1574 : vector<1x32xf32>
    %1586 = arith.negf %1585 : vector<1x32xf32>
    %1587 = math.exp %1586 : vector<1x32xf32>
    %cst_360 = arith.constant 1.000000e+00 : f32
    %1588 = vector.broadcast %cst_360 : f32 to vector<1x32xf32>
    %1589 = arith.addf %1588, %1587 : vector<1x32xf32>
    %1590 = arith.divf %1588, %1589 : vector<1x32xf32>
    %1591 = vector.extract_strided_slice %1068 {offsets = [4, 0], sizes = [1, 32], strides = [1, 1]} : vector<8x32xf32> to vector<1x32xf32>
    %1592 = arith.mulf %1583, %1576 : vector<1x32xf32>
    %1593 = arith.addf %1591, %1592 : vector<1x32xf32>
    %1594 = math.tanh %1593 : vector<1x32xf32>
    %cst_361 = arith.constant 1.000000e+00 : f32
    %1595 = vector.broadcast %cst_361 : f32 to vector<1x32xf32>
    %1596 = arith.subf %1595, %1590 : vector<1x32xf32>
    %1597 = arith.mulf %1596, %1594 : vector<1x32xf32>
    %1598 = arith.mulf %1590, %1483 : vector<1x32xf32>
    %1599 = arith.addf %1597, %1598 : vector<1x32xf32>
    %cst_362 = arith.constant dense<0.000000e+00> : vector<1x32xf32>
    %1600 = tpu.matmul %1512, %1060, %cst_362 {dimension_numbers = #tpu.dot_dimension_numbers<[1], [0], [0], [1], [0, 0, 1, 1], [], []>} : vector<1x32xf32>, vector<32x32xf32>, vector<1x32xf32> -> vector<1x32xf32>
    %1601 = arith.addf %1600, %1063 : vector<1x32xf32>
    %cst_363 = arith.constant dense<0.000000e+00> : vector<1x32xf32>
    %1602 = tpu.matmul %1512, %1061, %cst_363 {dimension_numbers = #tpu.dot_dimension_numbers<[1], [0], [0], [1], [0, 0, 1, 1], [], []>} : vector<1x32xf32>, vector<32x32xf32>, vector<1x32xf32> -> vector<1x32xf32>
    %1603 = arith.addf %1602, %1064 : vector<1x32xf32>
    %cst_364 = arith.constant dense<0.000000e+00> : vector<1x32xf32>
    %1604 = tpu.matmul %1512, %1062, %cst_364 {dimension_numbers = #tpu.dot_dimension_numbers<[1], [0], [0], [1], [0, 0, 1, 1], [], []>} : vector<1x32xf32>, vector<32x32xf32>, vector<1x32xf32> -> vector<1x32xf32>
    %1605 = arith.addf %1604, %1065 : vector<1x32xf32>
    %1606 = vector.extract_strided_slice %1070 {offsets = [4, 0], sizes = [1, 32], strides = [1, 1]} : vector<8x32xf32> to vector<1x32xf32>
    %1607 = arith.addf %1606, %1601 : vector<1x32xf32>
    %1608 = arith.negf %1607 : vector<1x32xf32>
    %1609 = math.exp %1608 : vector<1x32xf32>
    %cst_365 = arith.constant 1.000000e+00 : f32
    %1610 = vector.broadcast %cst_365 : f32 to vector<1x32xf32>
    %1611 = arith.addf %1610, %1609 : vector<1x32xf32>
    %1612 = arith.divf %1610, %1611 : vector<1x32xf32>
    %1613 = vector.extract_strided_slice %1071 {offsets = [4, 0], sizes = [1, 32], strides = [1, 1]} : vector<8x32xf32> to vector<1x32xf32>
    %1614 = arith.addf %1613, %1603 : vector<1x32xf32>
    %1615 = arith.negf %1614 : vector<1x32xf32>
    %1616 = math.exp %1615 : vector<1x32xf32>
    %cst_366 = arith.constant 1.000000e+00 : f32
    %1617 = vector.broadcast %cst_366 : f32 to vector<1x32xf32>
    %1618 = arith.addf %1617, %1616 : vector<1x32xf32>
    %1619 = arith.divf %1617, %1618 : vector<1x32xf32>
    %1620 = vector.extract_strided_slice %1072 {offsets = [4, 0], sizes = [1, 32], strides = [1, 1]} : vector<8x32xf32> to vector<1x32xf32>
    %1621 = arith.mulf %1612, %1605 : vector<1x32xf32>
    %1622 = arith.addf %1620, %1621 : vector<1x32xf32>
    %1623 = math.tanh %1622 : vector<1x32xf32>
    %cst_367 = arith.constant 1.000000e+00 : f32
    %1624 = vector.broadcast %cst_367 : f32 to vector<1x32xf32>
    %1625 = arith.subf %1624, %1619 : vector<1x32xf32>
    %1626 = arith.mulf %1625, %1623 : vector<1x32xf32>
    %1627 = arith.mulf %1619, %1512 : vector<1x32xf32>
    %1628 = arith.addf %1626, %1627 : vector<1x32xf32>
    %cst_368 = arith.constant dense<0.000000e+00> : vector<1x32xf32>
    %1629 = tpu.matmul %1541, %1093, %cst_368 {dimension_numbers = #tpu.dot_dimension_numbers<[1], [0], [0], [1], [0, 0, 1, 1], [], []>} : vector<1x32xf32>, vector<32x32xf32>, vector<1x32xf32> -> vector<1x32xf32>
    %1630 = arith.addf %1629, %1096 : vector<1x32xf32>
    %cst_369 = arith.constant dense<0.000000e+00> : vector<1x32xf32>
    %1631 = tpu.matmul %1541, %1094, %cst_369 {dimension_numbers = #tpu.dot_dimension_numbers<[1], [0], [0], [1], [0, 0, 1, 1], [], []>} : vector<1x32xf32>, vector<32x32xf32>, vector<1x32xf32> -> vector<1x32xf32>
    %1632 = arith.addf %1631, %1097 : vector<1x32xf32>
    %cst_370 = arith.constant dense<0.000000e+00> : vector<1x32xf32>
    %1633 = tpu.matmul %1541, %1095, %cst_370 {dimension_numbers = #tpu.dot_dimension_numbers<[1], [0], [0], [1], [0, 0, 1, 1], [], []>} : vector<1x32xf32>, vector<32x32xf32>, vector<1x32xf32> -> vector<1x32xf32>
    %1634 = arith.addf %1633, %1098 : vector<1x32xf32>
    %1635 = vector.extract_strided_slice %1099 {offsets = [3, 0], sizes = [1, 32], strides = [1, 1]} : vector<8x32xf32> to vector<1x32xf32>
    %1636 = arith.addf %1635, %1630 : vector<1x32xf32>
    %1637 = arith.negf %1636 : vector<1x32xf32>
    %1638 = math.exp %1637 : vector<1x32xf32>
    %cst_371 = arith.constant 1.000000e+00 : f32
    %1639 = vector.broadcast %cst_371 : f32 to vector<1x32xf32>
    %1640 = arith.addf %1639, %1638 : vector<1x32xf32>
    %1641 = arith.divf %1639, %1640 : vector<1x32xf32>
    %1642 = vector.extract_strided_slice %1100 {offsets = [3, 0], sizes = [1, 32], strides = [1, 1]} : vector<8x32xf32> to vector<1x32xf32>
    %1643 = arith.addf %1642, %1632 : vector<1x32xf32>
    %1644 = arith.negf %1643 : vector<1x32xf32>
    %1645 = math.exp %1644 : vector<1x32xf32>
    %cst_372 = arith.constant 1.000000e+00 : f32
    %1646 = vector.broadcast %cst_372 : f32 to vector<1x32xf32>
    %1647 = arith.addf %1646, %1645 : vector<1x32xf32>
    %1648 = arith.divf %1646, %1647 : vector<1x32xf32>
    %1649 = vector.extract_strided_slice %1101 {offsets = [3, 0], sizes = [1, 32], strides = [1, 1]} : vector<8x32xf32> to vector<1x32xf32>
    %1650 = arith.mulf %1641, %1634 : vector<1x32xf32>
    %1651 = arith.addf %1649, %1650 : vector<1x32xf32>
    %1652 = math.tanh %1651 : vector<1x32xf32>
    %cst_373 = arith.constant 1.000000e+00 : f32
    %1653 = vector.broadcast %cst_373 : f32 to vector<1x32xf32>
    %1654 = arith.subf %1653, %1648 : vector<1x32xf32>
    %1655 = arith.mulf %1654, %1652 : vector<1x32xf32>
    %1656 = arith.mulf %1648, %1541 : vector<1x32xf32>
    %1657 = arith.addf %1655, %1656 : vector<1x32xf32>
    %cst_374 = arith.constant dense<0.000000e+00> : vector<1x32xf32>
    %1658 = tpu.matmul %1570, %1093, %cst_374 {dimension_numbers = #tpu.dot_dimension_numbers<[1], [0], [0], [1], [0, 0, 1, 1], [], []>} : vector<1x32xf32>, vector<32x32xf32>, vector<1x32xf32> -> vector<1x32xf32>
    %1659 = arith.addf %1658, %1096 : vector<1x32xf32>
    %cst_375 = arith.constant dense<0.000000e+00> : vector<1x32xf32>
    %1660 = tpu.matmul %1570, %1094, %cst_375 {dimension_numbers = #tpu.dot_dimension_numbers<[1], [0], [0], [1], [0, 0, 1, 1], [], []>} : vector<1x32xf32>, vector<32x32xf32>, vector<1x32xf32> -> vector<1x32xf32>
    %1661 = arith.addf %1660, %1097 : vector<1x32xf32>
    %cst_376 = arith.constant dense<0.000000e+00> : vector<1x32xf32>
    %1662 = tpu.matmul %1570, %1095, %cst_376 {dimension_numbers = #tpu.dot_dimension_numbers<[1], [0], [0], [1], [0, 0, 1, 1], [], []>} : vector<1x32xf32>, vector<32x32xf32>, vector<1x32xf32> -> vector<1x32xf32>
    %1663 = arith.addf %1662, %1098 : vector<1x32xf32>
    %1664 = vector.extract_strided_slice %1103 {offsets = [3, 0], sizes = [1, 32], strides = [1, 1]} : vector<8x32xf32> to vector<1x32xf32>
    %1665 = arith.addf %1664, %1659 : vector<1x32xf32>
    %1666 = arith.negf %1665 : vector<1x32xf32>
    %1667 = math.exp %1666 : vector<1x32xf32>
    %cst_377 = arith.constant 1.000000e+00 : f32
    %1668 = vector.broadcast %cst_377 : f32 to vector<1x32xf32>
    %1669 = arith.addf %1668, %1667 : vector<1x32xf32>
    %1670 = arith.divf %1668, %1669 : vector<1x32xf32>
    %1671 = vector.extract_strided_slice %1104 {offsets = [3, 0], sizes = [1, 32], strides = [1, 1]} : vector<8x32xf32> to vector<1x32xf32>
    %1672 = arith.addf %1671, %1661 : vector<1x32xf32>
    %1673 = arith.negf %1672 : vector<1x32xf32>
    %1674 = math.exp %1673 : vector<1x32xf32>
    %cst_378 = arith.constant 1.000000e+00 : f32
    %1675 = vector.broadcast %cst_378 : f32 to vector<1x32xf32>
    %1676 = arith.addf %1675, %1674 : vector<1x32xf32>
    %1677 = arith.divf %1675, %1676 : vector<1x32xf32>
    %1678 = vector.extract_strided_slice %1105 {offsets = [3, 0], sizes = [1, 32], strides = [1, 1]} : vector<8x32xf32> to vector<1x32xf32>
    %1679 = arith.mulf %1670, %1663 : vector<1x32xf32>
    %1680 = arith.addf %1678, %1679 : vector<1x32xf32>
    %1681 = math.tanh %1680 : vector<1x32xf32>
    %cst_379 = arith.constant 1.000000e+00 : f32
    %1682 = vector.broadcast %cst_379 : f32 to vector<1x32xf32>
    %1683 = arith.subf %1682, %1677 : vector<1x32xf32>
    %1684 = arith.mulf %1683, %1681 : vector<1x32xf32>
    %1685 = arith.mulf %1677, %1570 : vector<1x32xf32>
    %1686 = arith.addf %1684, %1685 : vector<1x32xf32>
    %cst_380 = arith.constant dense<0.000000e+00> : vector<1x32xf32>
    %1687 = tpu.matmul %1599, %1060, %cst_380 {dimension_numbers = #tpu.dot_dimension_numbers<[1], [0], [0], [1], [0, 0, 1, 1], [], []>} : vector<1x32xf32>, vector<32x32xf32>, vector<1x32xf32> -> vector<1x32xf32>
    %1688 = arith.addf %1687, %1063 : vector<1x32xf32>
    %cst_381 = arith.constant dense<0.000000e+00> : vector<1x32xf32>
    %1689 = tpu.matmul %1599, %1061, %cst_381 {dimension_numbers = #tpu.dot_dimension_numbers<[1], [0], [0], [1], [0, 0, 1, 1], [], []>} : vector<1x32xf32>, vector<32x32xf32>, vector<1x32xf32> -> vector<1x32xf32>
    %1690 = arith.addf %1689, %1064 : vector<1x32xf32>
    %cst_382 = arith.constant dense<0.000000e+00> : vector<1x32xf32>
    %1691 = tpu.matmul %1599, %1062, %cst_382 {dimension_numbers = #tpu.dot_dimension_numbers<[1], [0], [0], [1], [0, 0, 1, 1], [], []>} : vector<1x32xf32>, vector<32x32xf32>, vector<1x32xf32> -> vector<1x32xf32>
    %1692 = arith.addf %1691, %1065 : vector<1x32xf32>
    %1693 = vector.extract_strided_slice %1066 {offsets = [5, 0], sizes = [1, 32], strides = [1, 1]} : vector<8x32xf32> to vector<1x32xf32>
    %1694 = arith.addf %1693, %1688 : vector<1x32xf32>
    %1695 = arith.negf %1694 : vector<1x32xf32>
    %1696 = math.exp %1695 : vector<1x32xf32>
    %cst_383 = arith.constant 1.000000e+00 : f32
    %1697 = vector.broadcast %cst_383 : f32 to vector<1x32xf32>
    %1698 = arith.addf %1697, %1696 : vector<1x32xf32>
    %1699 = arith.divf %1697, %1698 : vector<1x32xf32>
    %1700 = vector.extract_strided_slice %1067 {offsets = [5, 0], sizes = [1, 32], strides = [1, 1]} : vector<8x32xf32> to vector<1x32xf32>
    %1701 = arith.addf %1700, %1690 : vector<1x32xf32>
    %1702 = arith.negf %1701 : vector<1x32xf32>
    %1703 = math.exp %1702 : vector<1x32xf32>
    %cst_384 = arith.constant 1.000000e+00 : f32
    %1704 = vector.broadcast %cst_384 : f32 to vector<1x32xf32>
    %1705 = arith.addf %1704, %1703 : vector<1x32xf32>
    %1706 = arith.divf %1704, %1705 : vector<1x32xf32>
    %1707 = vector.extract_strided_slice %1068 {offsets = [5, 0], sizes = [1, 32], strides = [1, 1]} : vector<8x32xf32> to vector<1x32xf32>
    %1708 = arith.mulf %1699, %1692 : vector<1x32xf32>
    %1709 = arith.addf %1707, %1708 : vector<1x32xf32>
    %1710 = math.tanh %1709 : vector<1x32xf32>
    %cst_385 = arith.constant 1.000000e+00 : f32
    %1711 = vector.broadcast %cst_385 : f32 to vector<1x32xf32>
    %1712 = arith.subf %1711, %1706 : vector<1x32xf32>
    %1713 = arith.mulf %1712, %1710 : vector<1x32xf32>
    %1714 = arith.mulf %1706, %1599 : vector<1x32xf32>
    %1715 = arith.addf %1713, %1714 : vector<1x32xf32>
    %cst_386 = arith.constant dense<0.000000e+00> : vector<1x32xf32>
    %1716 = tpu.matmul %1628, %1060, %cst_386 {dimension_numbers = #tpu.dot_dimension_numbers<[1], [0], [0], [1], [0, 0, 1, 1], [], []>} : vector<1x32xf32>, vector<32x32xf32>, vector<1x32xf32> -> vector<1x32xf32>
    %1717 = arith.addf %1716, %1063 : vector<1x32xf32>
    %cst_387 = arith.constant dense<0.000000e+00> : vector<1x32xf32>
    %1718 = tpu.matmul %1628, %1061, %cst_387 {dimension_numbers = #tpu.dot_dimension_numbers<[1], [0], [0], [1], [0, 0, 1, 1], [], []>} : vector<1x32xf32>, vector<32x32xf32>, vector<1x32xf32> -> vector<1x32xf32>
    %1719 = arith.addf %1718, %1064 : vector<1x32xf32>
    %cst_388 = arith.constant dense<0.000000e+00> : vector<1x32xf32>
    %1720 = tpu.matmul %1628, %1062, %cst_388 {dimension_numbers = #tpu.dot_dimension_numbers<[1], [0], [0], [1], [0, 0, 1, 1], [], []>} : vector<1x32xf32>, vector<32x32xf32>, vector<1x32xf32> -> vector<1x32xf32>
    %1721 = arith.addf %1720, %1065 : vector<1x32xf32>
    %1722 = vector.extract_strided_slice %1070 {offsets = [5, 0], sizes = [1, 32], strides = [1, 1]} : vector<8x32xf32> to vector<1x32xf32>
    %1723 = arith.addf %1722, %1717 : vector<1x32xf32>
    %1724 = arith.negf %1723 : vector<1x32xf32>
    %1725 = math.exp %1724 : vector<1x32xf32>
    %cst_389 = arith.constant 1.000000e+00 : f32
    %1726 = vector.broadcast %cst_389 : f32 to vector<1x32xf32>
    %1727 = arith.addf %1726, %1725 : vector<1x32xf32>
    %1728 = arith.divf %1726, %1727 : vector<1x32xf32>
    %1729 = vector.extract_strided_slice %1071 {offsets = [5, 0], sizes = [1, 32], strides = [1, 1]} : vector<8x32xf32> to vector<1x32xf32>
    %1730 = arith.addf %1729, %1719 : vector<1x32xf32>
    %1731 = arith.negf %1730 : vector<1x32xf32>
    %1732 = math.exp %1731 : vector<1x32xf32>
    %cst_390 = arith.constant 1.000000e+00 : f32
    %1733 = vector.broadcast %cst_390 : f32 to vector<1x32xf32>
    %1734 = arith.addf %1733, %1732 : vector<1x32xf32>
    %1735 = arith.divf %1733, %1734 : vector<1x32xf32>
    %1736 = vector.extract_strided_slice %1072 {offsets = [5, 0], sizes = [1, 32], strides = [1, 1]} : vector<8x32xf32> to vector<1x32xf32>
    %1737 = arith.mulf %1728, %1721 : vector<1x32xf32>
    %1738 = arith.addf %1736, %1737 : vector<1x32xf32>
    %1739 = math.tanh %1738 : vector<1x32xf32>
    %cst_391 = arith.constant 1.000000e+00 : f32
    %1740 = vector.broadcast %cst_391 : f32 to vector<1x32xf32>
    %1741 = arith.subf %1740, %1735 : vector<1x32xf32>
    %1742 = arith.mulf %1741, %1739 : vector<1x32xf32>
    %1743 = arith.mulf %1735, %1628 : vector<1x32xf32>
    %1744 = arith.addf %1742, %1743 : vector<1x32xf32>
    %cst_392 = arith.constant dense<0.000000e+00> : vector<1x32xf32>
    %1745 = tpu.matmul %1657, %1093, %cst_392 {dimension_numbers = #tpu.dot_dimension_numbers<[1], [0], [0], [1], [0, 0, 1, 1], [], []>} : vector<1x32xf32>, vector<32x32xf32>, vector<1x32xf32> -> vector<1x32xf32>
    %1746 = arith.addf %1745, %1096 : vector<1x32xf32>
    %cst_393 = arith.constant dense<0.000000e+00> : vector<1x32xf32>
    %1747 = tpu.matmul %1657, %1094, %cst_393 {dimension_numbers = #tpu.dot_dimension_numbers<[1], [0], [0], [1], [0, 0, 1, 1], [], []>} : vector<1x32xf32>, vector<32x32xf32>, vector<1x32xf32> -> vector<1x32xf32>
    %1748 = arith.addf %1747, %1097 : vector<1x32xf32>
    %cst_394 = arith.constant dense<0.000000e+00> : vector<1x32xf32>
    %1749 = tpu.matmul %1657, %1095, %cst_394 {dimension_numbers = #tpu.dot_dimension_numbers<[1], [0], [0], [1], [0, 0, 1, 1], [], []>} : vector<1x32xf32>, vector<32x32xf32>, vector<1x32xf32> -> vector<1x32xf32>
    %1750 = arith.addf %1749, %1098 : vector<1x32xf32>
    %1751 = vector.extract_strided_slice %1099 {offsets = [2, 0], sizes = [1, 32], strides = [1, 1]} : vector<8x32xf32> to vector<1x32xf32>
    %1752 = arith.addf %1751, %1746 : vector<1x32xf32>
    %1753 = arith.negf %1752 : vector<1x32xf32>
    %1754 = math.exp %1753 : vector<1x32xf32>
    %cst_395 = arith.constant 1.000000e+00 : f32
    %1755 = vector.broadcast %cst_395 : f32 to vector<1x32xf32>
    %1756 = arith.addf %1755, %1754 : vector<1x32xf32>
    %1757 = arith.divf %1755, %1756 : vector<1x32xf32>
    %1758 = vector.extract_strided_slice %1100 {offsets = [2, 0], sizes = [1, 32], strides = [1, 1]} : vector<8x32xf32> to vector<1x32xf32>
    %1759 = arith.addf %1758, %1748 : vector<1x32xf32>
    %1760 = arith.negf %1759 : vector<1x32xf32>
    %1761 = math.exp %1760 : vector<1x32xf32>
    %cst_396 = arith.constant 1.000000e+00 : f32
    %1762 = vector.broadcast %cst_396 : f32 to vector<1x32xf32>
    %1763 = arith.addf %1762, %1761 : vector<1x32xf32>
    %1764 = arith.divf %1762, %1763 : vector<1x32xf32>
    %1765 = vector.extract_strided_slice %1101 {offsets = [2, 0], sizes = [1, 32], strides = [1, 1]} : vector<8x32xf32> to vector<1x32xf32>
    %1766 = arith.mulf %1757, %1750 : vector<1x32xf32>
    %1767 = arith.addf %1765, %1766 : vector<1x32xf32>
    %1768 = math.tanh %1767 : vector<1x32xf32>
    %cst_397 = arith.constant 1.000000e+00 : f32
    %1769 = vector.broadcast %cst_397 : f32 to vector<1x32xf32>
    %1770 = arith.subf %1769, %1764 : vector<1x32xf32>
    %1771 = arith.mulf %1770, %1768 : vector<1x32xf32>
    %1772 = arith.mulf %1764, %1657 : vector<1x32xf32>
    %1773 = arith.addf %1771, %1772 : vector<1x32xf32>
    %cst_398 = arith.constant dense<0.000000e+00> : vector<1x32xf32>
    %1774 = tpu.matmul %1686, %1093, %cst_398 {dimension_numbers = #tpu.dot_dimension_numbers<[1], [0], [0], [1], [0, 0, 1, 1], [], []>} : vector<1x32xf32>, vector<32x32xf32>, vector<1x32xf32> -> vector<1x32xf32>
    %1775 = arith.addf %1774, %1096 : vector<1x32xf32>
    %cst_399 = arith.constant dense<0.000000e+00> : vector<1x32xf32>
    %1776 = tpu.matmul %1686, %1094, %cst_399 {dimension_numbers = #tpu.dot_dimension_numbers<[1], [0], [0], [1], [0, 0, 1, 1], [], []>} : vector<1x32xf32>, vector<32x32xf32>, vector<1x32xf32> -> vector<1x32xf32>
    %1777 = arith.addf %1776, %1097 : vector<1x32xf32>
    %cst_400 = arith.constant dense<0.000000e+00> : vector<1x32xf32>
    %1778 = tpu.matmul %1686, %1095, %cst_400 {dimension_numbers = #tpu.dot_dimension_numbers<[1], [0], [0], [1], [0, 0, 1, 1], [], []>} : vector<1x32xf32>, vector<32x32xf32>, vector<1x32xf32> -> vector<1x32xf32>
    %1779 = arith.addf %1778, %1098 : vector<1x32xf32>
    %1780 = vector.extract_strided_slice %1103 {offsets = [2, 0], sizes = [1, 32], strides = [1, 1]} : vector<8x32xf32> to vector<1x32xf32>
    %1781 = arith.addf %1780, %1775 : vector<1x32xf32>
    %1782 = arith.negf %1781 : vector<1x32xf32>
    %1783 = math.exp %1782 : vector<1x32xf32>
    %cst_401 = arith.constant 1.000000e+00 : f32
    %1784 = vector.broadcast %cst_401 : f32 to vector<1x32xf32>
    %1785 = arith.addf %1784, %1783 : vector<1x32xf32>
    %1786 = arith.divf %1784, %1785 : vector<1x32xf32>
    %1787 = vector.extract_strided_slice %1104 {offsets = [2, 0], sizes = [1, 32], strides = [1, 1]} : vector<8x32xf32> to vector<1x32xf32>
    %1788 = arith.addf %1787, %1777 : vector<1x32xf32>
    %1789 = arith.negf %1788 : vector<1x32xf32>
    %1790 = math.exp %1789 : vector<1x32xf32>
    %cst_402 = arith.constant 1.000000e+00 : f32
    %1791 = vector.broadcast %cst_402 : f32 to vector<1x32xf32>
    %1792 = arith.addf %1791, %1790 : vector<1x32xf32>
    %1793 = arith.divf %1791, %1792 : vector<1x32xf32>
    %1794 = vector.extract_strided_slice %1105 {offsets = [2, 0], sizes = [1, 32], strides = [1, 1]} : vector<8x32xf32> to vector<1x32xf32>
    %1795 = arith.mulf %1786, %1779 : vector<1x32xf32>
    %1796 = arith.addf %1794, %1795 : vector<1x32xf32>
    %1797 = math.tanh %1796 : vector<1x32xf32>
    %cst_403 = arith.constant 1.000000e+00 : f32
    %1798 = vector.broadcast %cst_403 : f32 to vector<1x32xf32>
    %1799 = arith.subf %1798, %1793 : vector<1x32xf32>
    %1800 = arith.mulf %1799, %1797 : vector<1x32xf32>
    %1801 = arith.mulf %1793, %1686 : vector<1x32xf32>
    %1802 = arith.addf %1800, %1801 : vector<1x32xf32>
    %cst_404 = arith.constant dense<0.000000e+00> : vector<1x32xf32>
    %1803 = tpu.matmul %1715, %1060, %cst_404 {dimension_numbers = #tpu.dot_dimension_numbers<[1], [0], [0], [1], [0, 0, 1, 1], [], []>} : vector<1x32xf32>, vector<32x32xf32>, vector<1x32xf32> -> vector<1x32xf32>
    %1804 = arith.addf %1803, %1063 : vector<1x32xf32>
    %cst_405 = arith.constant dense<0.000000e+00> : vector<1x32xf32>
    %1805 = tpu.matmul %1715, %1061, %cst_405 {dimension_numbers = #tpu.dot_dimension_numbers<[1], [0], [0], [1], [0, 0, 1, 1], [], []>} : vector<1x32xf32>, vector<32x32xf32>, vector<1x32xf32> -> vector<1x32xf32>
    %1806 = arith.addf %1805, %1064 : vector<1x32xf32>
    %cst_406 = arith.constant dense<0.000000e+00> : vector<1x32xf32>
    %1807 = tpu.matmul %1715, %1062, %cst_406 {dimension_numbers = #tpu.dot_dimension_numbers<[1], [0], [0], [1], [0, 0, 1, 1], [], []>} : vector<1x32xf32>, vector<32x32xf32>, vector<1x32xf32> -> vector<1x32xf32>
    %1808 = arith.addf %1807, %1065 : vector<1x32xf32>
    %1809 = vector.extract_strided_slice %1066 {offsets = [6, 0], sizes = [1, 32], strides = [1, 1]} : vector<8x32xf32> to vector<1x32xf32>
    %1810 = arith.addf %1809, %1804 : vector<1x32xf32>
    %1811 = arith.negf %1810 : vector<1x32xf32>
    %1812 = math.exp %1811 : vector<1x32xf32>
    %cst_407 = arith.constant 1.000000e+00 : f32
    %1813 = vector.broadcast %cst_407 : f32 to vector<1x32xf32>
    %1814 = arith.addf %1813, %1812 : vector<1x32xf32>
    %1815 = arith.divf %1813, %1814 : vector<1x32xf32>
    %1816 = vector.extract_strided_slice %1067 {offsets = [6, 0], sizes = [1, 32], strides = [1, 1]} : vector<8x32xf32> to vector<1x32xf32>
    %1817 = arith.addf %1816, %1806 : vector<1x32xf32>
    %1818 = arith.negf %1817 : vector<1x32xf32>
    %1819 = math.exp %1818 : vector<1x32xf32>
    %cst_408 = arith.constant 1.000000e+00 : f32
    %1820 = vector.broadcast %cst_408 : f32 to vector<1x32xf32>
    %1821 = arith.addf %1820, %1819 : vector<1x32xf32>
    %1822 = arith.divf %1820, %1821 : vector<1x32xf32>
    %1823 = vector.extract_strided_slice %1068 {offsets = [6, 0], sizes = [1, 32], strides = [1, 1]} : vector<8x32xf32> to vector<1x32xf32>
    %1824 = arith.mulf %1815, %1808 : vector<1x32xf32>
    %1825 = arith.addf %1823, %1824 : vector<1x32xf32>
    %1826 = math.tanh %1825 : vector<1x32xf32>
    %cst_409 = arith.constant 1.000000e+00 : f32
    %1827 = vector.broadcast %cst_409 : f32 to vector<1x32xf32>
    %1828 = arith.subf %1827, %1822 : vector<1x32xf32>
    %1829 = arith.mulf %1828, %1826 : vector<1x32xf32>
    %1830 = arith.mulf %1822, %1715 : vector<1x32xf32>
    %1831 = arith.addf %1829, %1830 : vector<1x32xf32>
    %cst_410 = arith.constant dense<0.000000e+00> : vector<1x32xf32>
    %1832 = tpu.matmul %1744, %1060, %cst_410 {dimension_numbers = #tpu.dot_dimension_numbers<[1], [0], [0], [1], [0, 0, 1, 1], [], []>} : vector<1x32xf32>, vector<32x32xf32>, vector<1x32xf32> -> vector<1x32xf32>
    %1833 = arith.addf %1832, %1063 : vector<1x32xf32>
    %cst_411 = arith.constant dense<0.000000e+00> : vector<1x32xf32>
    %1834 = tpu.matmul %1744, %1061, %cst_411 {dimension_numbers = #tpu.dot_dimension_numbers<[1], [0], [0], [1], [0, 0, 1, 1], [], []>} : vector<1x32xf32>, vector<32x32xf32>, vector<1x32xf32> -> vector<1x32xf32>
    %1835 = arith.addf %1834, %1064 : vector<1x32xf32>
    %cst_412 = arith.constant dense<0.000000e+00> : vector<1x32xf32>
    %1836 = tpu.matmul %1744, %1062, %cst_412 {dimension_numbers = #tpu.dot_dimension_numbers<[1], [0], [0], [1], [0, 0, 1, 1], [], []>} : vector<1x32xf32>, vector<32x32xf32>, vector<1x32xf32> -> vector<1x32xf32>
    %1837 = arith.addf %1836, %1065 : vector<1x32xf32>
    %1838 = vector.extract_strided_slice %1070 {offsets = [6, 0], sizes = [1, 32], strides = [1, 1]} : vector<8x32xf32> to vector<1x32xf32>
    %1839 = arith.addf %1838, %1833 : vector<1x32xf32>
    %1840 = arith.negf %1839 : vector<1x32xf32>
    %1841 = math.exp %1840 : vector<1x32xf32>
    %cst_413 = arith.constant 1.000000e+00 : f32
    %1842 = vector.broadcast %cst_413 : f32 to vector<1x32xf32>
    %1843 = arith.addf %1842, %1841 : vector<1x32xf32>
    %1844 = arith.divf %1842, %1843 : vector<1x32xf32>
    %1845 = vector.extract_strided_slice %1071 {offsets = [6, 0], sizes = [1, 32], strides = [1, 1]} : vector<8x32xf32> to vector<1x32xf32>
    %1846 = arith.addf %1845, %1835 : vector<1x32xf32>
    %1847 = arith.negf %1846 : vector<1x32xf32>
    %1848 = math.exp %1847 : vector<1x32xf32>
    %cst_414 = arith.constant 1.000000e+00 : f32
    %1849 = vector.broadcast %cst_414 : f32 to vector<1x32xf32>
    %1850 = arith.addf %1849, %1848 : vector<1x32xf32>
    %1851 = arith.divf %1849, %1850 : vector<1x32xf32>
    %1852 = vector.extract_strided_slice %1072 {offsets = [6, 0], sizes = [1, 32], strides = [1, 1]} : vector<8x32xf32> to vector<1x32xf32>
    %1853 = arith.mulf %1844, %1837 : vector<1x32xf32>
    %1854 = arith.addf %1852, %1853 : vector<1x32xf32>
    %1855 = math.tanh %1854 : vector<1x32xf32>
    %cst_415 = arith.constant 1.000000e+00 : f32
    %1856 = vector.broadcast %cst_415 : f32 to vector<1x32xf32>
    %1857 = arith.subf %1856, %1851 : vector<1x32xf32>
    %1858 = arith.mulf %1857, %1855 : vector<1x32xf32>
    %1859 = arith.mulf %1851, %1744 : vector<1x32xf32>
    %1860 = arith.addf %1858, %1859 : vector<1x32xf32>
    %cst_416 = arith.constant dense<0.000000e+00> : vector<1x32xf32>
    %1861 = tpu.matmul %1773, %1093, %cst_416 {dimension_numbers = #tpu.dot_dimension_numbers<[1], [0], [0], [1], [0, 0, 1, 1], [], []>} : vector<1x32xf32>, vector<32x32xf32>, vector<1x32xf32> -> vector<1x32xf32>
    %1862 = arith.addf %1861, %1096 : vector<1x32xf32>
    %cst_417 = arith.constant dense<0.000000e+00> : vector<1x32xf32>
    %1863 = tpu.matmul %1773, %1094, %cst_417 {dimension_numbers = #tpu.dot_dimension_numbers<[1], [0], [0], [1], [0, 0, 1, 1], [], []>} : vector<1x32xf32>, vector<32x32xf32>, vector<1x32xf32> -> vector<1x32xf32>
    %1864 = arith.addf %1863, %1097 : vector<1x32xf32>
    %cst_418 = arith.constant dense<0.000000e+00> : vector<1x32xf32>
    %1865 = tpu.matmul %1773, %1095, %cst_418 {dimension_numbers = #tpu.dot_dimension_numbers<[1], [0], [0], [1], [0, 0, 1, 1], [], []>} : vector<1x32xf32>, vector<32x32xf32>, vector<1x32xf32> -> vector<1x32xf32>
    %1866 = arith.addf %1865, %1098 : vector<1x32xf32>
    %1867 = vector.extract_strided_slice %1099 {offsets = [1, 0], sizes = [1, 32], strides = [1, 1]} : vector<8x32xf32> to vector<1x32xf32>
    %1868 = arith.addf %1867, %1862 : vector<1x32xf32>
    %1869 = arith.negf %1868 : vector<1x32xf32>
    %1870 = math.exp %1869 : vector<1x32xf32>
    %cst_419 = arith.constant 1.000000e+00 : f32
    %1871 = vector.broadcast %cst_419 : f32 to vector<1x32xf32>
    %1872 = arith.addf %1871, %1870 : vector<1x32xf32>
    %1873 = arith.divf %1871, %1872 : vector<1x32xf32>
    %1874 = vector.extract_strided_slice %1100 {offsets = [1, 0], sizes = [1, 32], strides = [1, 1]} : vector<8x32xf32> to vector<1x32xf32>
    %1875 = arith.addf %1874, %1864 : vector<1x32xf32>
    %1876 = arith.negf %1875 : vector<1x32xf32>
    %1877 = math.exp %1876 : vector<1x32xf32>
    %cst_420 = arith.constant 1.000000e+00 : f32
    %1878 = vector.broadcast %cst_420 : f32 to vector<1x32xf32>
    %1879 = arith.addf %1878, %1877 : vector<1x32xf32>
    %1880 = arith.divf %1878, %1879 : vector<1x32xf32>
    %1881 = vector.extract_strided_slice %1101 {offsets = [1, 0], sizes = [1, 32], strides = [1, 1]} : vector<8x32xf32> to vector<1x32xf32>
    %1882 = arith.mulf %1873, %1866 : vector<1x32xf32>
    %1883 = arith.addf %1881, %1882 : vector<1x32xf32>
    %1884 = math.tanh %1883 : vector<1x32xf32>
    %cst_421 = arith.constant 1.000000e+00 : f32
    %1885 = vector.broadcast %cst_421 : f32 to vector<1x32xf32>
    %1886 = arith.subf %1885, %1880 : vector<1x32xf32>
    %1887 = arith.mulf %1886, %1884 : vector<1x32xf32>
    %1888 = arith.mulf %1880, %1773 : vector<1x32xf32>
    %1889 = arith.addf %1887, %1888 : vector<1x32xf32>
    %cst_422 = arith.constant dense<0.000000e+00> : vector<1x32xf32>
    %1890 = tpu.matmul %1802, %1093, %cst_422 {dimension_numbers = #tpu.dot_dimension_numbers<[1], [0], [0], [1], [0, 0, 1, 1], [], []>} : vector<1x32xf32>, vector<32x32xf32>, vector<1x32xf32> -> vector<1x32xf32>
    %1891 = arith.addf %1890, %1096 : vector<1x32xf32>
    %cst_423 = arith.constant dense<0.000000e+00> : vector<1x32xf32>
    %1892 = tpu.matmul %1802, %1094, %cst_423 {dimension_numbers = #tpu.dot_dimension_numbers<[1], [0], [0], [1], [0, 0, 1, 1], [], []>} : vector<1x32xf32>, vector<32x32xf32>, vector<1x32xf32> -> vector<1x32xf32>
    %1893 = arith.addf %1892, %1097 : vector<1x32xf32>
    %cst_424 = arith.constant dense<0.000000e+00> : vector<1x32xf32>
    %1894 = tpu.matmul %1802, %1095, %cst_424 {dimension_numbers = #tpu.dot_dimension_numbers<[1], [0], [0], [1], [0, 0, 1, 1], [], []>} : vector<1x32xf32>, vector<32x32xf32>, vector<1x32xf32> -> vector<1x32xf32>
    %1895 = arith.addf %1894, %1098 : vector<1x32xf32>
    %1896 = vector.extract_strided_slice %1103 {offsets = [1, 0], sizes = [1, 32], strides = [1, 1]} : vector<8x32xf32> to vector<1x32xf32>
    %1897 = arith.addf %1896, %1891 : vector<1x32xf32>
    %1898 = arith.negf %1897 : vector<1x32xf32>
    %1899 = math.exp %1898 : vector<1x32xf32>
    %cst_425 = arith.constant 1.000000e+00 : f32
    %1900 = vector.broadcast %cst_425 : f32 to vector<1x32xf32>
    %1901 = arith.addf %1900, %1899 : vector<1x32xf32>
    %1902 = arith.divf %1900, %1901 : vector<1x32xf32>
    %1903 = vector.extract_strided_slice %1104 {offsets = [1, 0], sizes = [1, 32], strides = [1, 1]} : vector<8x32xf32> to vector<1x32xf32>
    %1904 = arith.addf %1903, %1893 : vector<1x32xf32>
    %1905 = arith.negf %1904 : vector<1x32xf32>
    %1906 = math.exp %1905 : vector<1x32xf32>
    %cst_426 = arith.constant 1.000000e+00 : f32
    %1907 = vector.broadcast %cst_426 : f32 to vector<1x32xf32>
    %1908 = arith.addf %1907, %1906 : vector<1x32xf32>
    %1909 = arith.divf %1907, %1908 : vector<1x32xf32>
    %1910 = vector.extract_strided_slice %1105 {offsets = [1, 0], sizes = [1, 32], strides = [1, 1]} : vector<8x32xf32> to vector<1x32xf32>
    %1911 = arith.mulf %1902, %1895 : vector<1x32xf32>
    %1912 = arith.addf %1910, %1911 : vector<1x32xf32>
    %1913 = math.tanh %1912 : vector<1x32xf32>
    %cst_427 = arith.constant 1.000000e+00 : f32
    %1914 = vector.broadcast %cst_427 : f32 to vector<1x32xf32>
    %1915 = arith.subf %1914, %1909 : vector<1x32xf32>
    %1916 = arith.mulf %1915, %1913 : vector<1x32xf32>
    %1917 = arith.mulf %1909, %1802 : vector<1x32xf32>
    %1918 = arith.addf %1916, %1917 : vector<1x32xf32>
    %cst_428 = arith.constant dense<0.000000e+00> : vector<1x32xf32>
    %1919 = tpu.matmul %1831, %1060, %cst_428 {dimension_numbers = #tpu.dot_dimension_numbers<[1], [0], [0], [1], [0, 0, 1, 1], [], []>} : vector<1x32xf32>, vector<32x32xf32>, vector<1x32xf32> -> vector<1x32xf32>
    %1920 = arith.addf %1919, %1063 : vector<1x32xf32>
    %cst_429 = arith.constant dense<0.000000e+00> : vector<1x32xf32>
    %1921 = tpu.matmul %1831, %1061, %cst_429 {dimension_numbers = #tpu.dot_dimension_numbers<[1], [0], [0], [1], [0, 0, 1, 1], [], []>} : vector<1x32xf32>, vector<32x32xf32>, vector<1x32xf32> -> vector<1x32xf32>
    %1922 = arith.addf %1921, %1064 : vector<1x32xf32>
    %cst_430 = arith.constant dense<0.000000e+00> : vector<1x32xf32>
    %1923 = tpu.matmul %1831, %1062, %cst_430 {dimension_numbers = #tpu.dot_dimension_numbers<[1], [0], [0], [1], [0, 0, 1, 1], [], []>} : vector<1x32xf32>, vector<32x32xf32>, vector<1x32xf32> -> vector<1x32xf32>
    %1924 = arith.addf %1923, %1065 : vector<1x32xf32>
    %1925 = vector.extract_strided_slice %1066 {offsets = [7, 0], sizes = [1, 32], strides = [1, 1]} : vector<8x32xf32> to vector<1x32xf32>
    %1926 = arith.addf %1925, %1920 : vector<1x32xf32>
    %1927 = arith.negf %1926 : vector<1x32xf32>
    %1928 = math.exp %1927 : vector<1x32xf32>
    %cst_431 = arith.constant 1.000000e+00 : f32
    %1929 = vector.broadcast %cst_431 : f32 to vector<1x32xf32>
    %1930 = arith.addf %1929, %1928 : vector<1x32xf32>
    %1931 = arith.divf %1929, %1930 : vector<1x32xf32>
    %1932 = vector.extract_strided_slice %1067 {offsets = [7, 0], sizes = [1, 32], strides = [1, 1]} : vector<8x32xf32> to vector<1x32xf32>
    %1933 = arith.addf %1932, %1922 : vector<1x32xf32>
    %1934 = arith.negf %1933 : vector<1x32xf32>
    %1935 = math.exp %1934 : vector<1x32xf32>
    %cst_432 = arith.constant 1.000000e+00 : f32
    %1936 = vector.broadcast %cst_432 : f32 to vector<1x32xf32>
    %1937 = arith.addf %1936, %1935 : vector<1x32xf32>
    %1938 = arith.divf %1936, %1937 : vector<1x32xf32>
    %1939 = vector.extract_strided_slice %1068 {offsets = [7, 0], sizes = [1, 32], strides = [1, 1]} : vector<8x32xf32> to vector<1x32xf32>
    %1940 = arith.mulf %1931, %1924 : vector<1x32xf32>
    %1941 = arith.addf %1939, %1940 : vector<1x32xf32>
    %1942 = math.tanh %1941 : vector<1x32xf32>
    %cst_433 = arith.constant 1.000000e+00 : f32
    %1943 = vector.broadcast %cst_433 : f32 to vector<1x32xf32>
    %1944 = arith.subf %1943, %1938 : vector<1x32xf32>
    %1945 = arith.mulf %1944, %1942 : vector<1x32xf32>
    %1946 = arith.mulf %1938, %1831 : vector<1x32xf32>
    %1947 = arith.addf %1945, %1946 : vector<1x32xf32>
    %cst_434 = arith.constant dense<0.000000e+00> : vector<1x32xf32>
    %1948 = tpu.matmul %1860, %1060, %cst_434 {dimension_numbers = #tpu.dot_dimension_numbers<[1], [0], [0], [1], [0, 0, 1, 1], [], []>} : vector<1x32xf32>, vector<32x32xf32>, vector<1x32xf32> -> vector<1x32xf32>
    %1949 = arith.addf %1948, %1063 : vector<1x32xf32>
    %cst_435 = arith.constant dense<0.000000e+00> : vector<1x32xf32>
    %1950 = tpu.matmul %1860, %1061, %cst_435 {dimension_numbers = #tpu.dot_dimension_numbers<[1], [0], [0], [1], [0, 0, 1, 1], [], []>} : vector<1x32xf32>, vector<32x32xf32>, vector<1x32xf32> -> vector<1x32xf32>
    %1951 = arith.addf %1950, %1064 : vector<1x32xf32>
    %cst_436 = arith.constant dense<0.000000e+00> : vector<1x32xf32>
    %1952 = tpu.matmul %1860, %1062, %cst_436 {dimension_numbers = #tpu.dot_dimension_numbers<[1], [0], [0], [1], [0, 0, 1, 1], [], []>} : vector<1x32xf32>, vector<32x32xf32>, vector<1x32xf32> -> vector<1x32xf32>
    %1953 = arith.addf %1952, %1065 : vector<1x32xf32>
    %1954 = vector.extract_strided_slice %1070 {offsets = [7, 0], sizes = [1, 32], strides = [1, 1]} : vector<8x32xf32> to vector<1x32xf32>
    %1955 = arith.addf %1954, %1949 : vector<1x32xf32>
    %1956 = arith.negf %1955 : vector<1x32xf32>
    %1957 = math.exp %1956 : vector<1x32xf32>
    %cst_437 = arith.constant 1.000000e+00 : f32
    %1958 = vector.broadcast %cst_437 : f32 to vector<1x32xf32>
    %1959 = arith.addf %1958, %1957 : vector<1x32xf32>
    %1960 = arith.divf %1958, %1959 : vector<1x32xf32>
    %1961 = vector.extract_strided_slice %1071 {offsets = [7, 0], sizes = [1, 32], strides = [1, 1]} : vector<8x32xf32> to vector<1x32xf32>
    %1962 = arith.addf %1961, %1951 : vector<1x32xf32>
    %1963 = arith.negf %1962 : vector<1x32xf32>
    %1964 = math.exp %1963 : vector<1x32xf32>
    %cst_438 = arith.constant 1.000000e+00 : f32
    %1965 = vector.broadcast %cst_438 : f32 to vector<1x32xf32>
    %1966 = arith.addf %1965, %1964 : vector<1x32xf32>
    %1967 = arith.divf %1965, %1966 : vector<1x32xf32>
    %1968 = vector.extract_strided_slice %1072 {offsets = [7, 0], sizes = [1, 32], strides = [1, 1]} : vector<8x32xf32> to vector<1x32xf32>
    %1969 = arith.mulf %1960, %1953 : vector<1x32xf32>
    %1970 = arith.addf %1968, %1969 : vector<1x32xf32>
    %1971 = math.tanh %1970 : vector<1x32xf32>
    %cst_439 = arith.constant 1.000000e+00 : f32
    %1972 = vector.broadcast %cst_439 : f32 to vector<1x32xf32>
    %1973 = arith.subf %1972, %1967 : vector<1x32xf32>
    %1974 = arith.mulf %1973, %1971 : vector<1x32xf32>
    %1975 = arith.mulf %1967, %1860 : vector<1x32xf32>
    %1976 = arith.addf %1974, %1975 : vector<1x32xf32>
    %cst_440 = arith.constant dense<0.000000e+00> : vector<1x32xf32>
    %1977 = tpu.matmul %1889, %1093, %cst_440 {dimension_numbers = #tpu.dot_dimension_numbers<[1], [0], [0], [1], [0, 0, 1, 1], [], []>} : vector<1x32xf32>, vector<32x32xf32>, vector<1x32xf32> -> vector<1x32xf32>
    %1978 = arith.addf %1977, %1096 : vector<1x32xf32>
    %cst_441 = arith.constant dense<0.000000e+00> : vector<1x32xf32>
    %1979 = tpu.matmul %1889, %1094, %cst_441 {dimension_numbers = #tpu.dot_dimension_numbers<[1], [0], [0], [1], [0, 0, 1, 1], [], []>} : vector<1x32xf32>, vector<32x32xf32>, vector<1x32xf32> -> vector<1x32xf32>
    %1980 = arith.addf %1979, %1097 : vector<1x32xf32>
    %cst_442 = arith.constant dense<0.000000e+00> : vector<1x32xf32>
    %1981 = tpu.matmul %1889, %1095, %cst_442 {dimension_numbers = #tpu.dot_dimension_numbers<[1], [0], [0], [1], [0, 0, 1, 1], [], []>} : vector<1x32xf32>, vector<32x32xf32>, vector<1x32xf32> -> vector<1x32xf32>
    %1982 = arith.addf %1981, %1098 : vector<1x32xf32>
    %1983 = vector.extract_strided_slice %1099 {offsets = [0, 0], sizes = [1, 32], strides = [1, 1]} : vector<8x32xf32> to vector<1x32xf32>
    %1984 = arith.addf %1983, %1978 : vector<1x32xf32>
    %1985 = arith.negf %1984 : vector<1x32xf32>
    %1986 = math.exp %1985 : vector<1x32xf32>
    %cst_443 = arith.constant 1.000000e+00 : f32
    %1987 = vector.broadcast %cst_443 : f32 to vector<1x32xf32>
    %1988 = arith.addf %1987, %1986 : vector<1x32xf32>
    %1989 = arith.divf %1987, %1988 : vector<1x32xf32>
    %1990 = vector.extract_strided_slice %1100 {offsets = [0, 0], sizes = [1, 32], strides = [1, 1]} : vector<8x32xf32> to vector<1x32xf32>
    %1991 = arith.addf %1990, %1980 : vector<1x32xf32>
    %1992 = arith.negf %1991 : vector<1x32xf32>
    %1993 = math.exp %1992 : vector<1x32xf32>
    %cst_444 = arith.constant 1.000000e+00 : f32
    %1994 = vector.broadcast %cst_444 : f32 to vector<1x32xf32>
    %1995 = arith.addf %1994, %1993 : vector<1x32xf32>
    %1996 = arith.divf %1994, %1995 : vector<1x32xf32>
    %1997 = vector.extract_strided_slice %1101 {offsets = [0, 0], sizes = [1, 32], strides = [1, 1]} : vector<8x32xf32> to vector<1x32xf32>
    %1998 = arith.mulf %1989, %1982 : vector<1x32xf32>
    %1999 = arith.addf %1997, %1998 : vector<1x32xf32>
    %2000 = math.tanh %1999 : vector<1x32xf32>
    %cst_445 = arith.constant 1.000000e+00 : f32
    %2001 = vector.broadcast %cst_445 : f32 to vector<1x32xf32>
    %2002 = arith.subf %2001, %1996 : vector<1x32xf32>
    %2003 = arith.mulf %2002, %2000 : vector<1x32xf32>
    %2004 = arith.mulf %1996, %1889 : vector<1x32xf32>
    %2005 = arith.addf %2003, %2004 : vector<1x32xf32>
    %cst_446 = arith.constant dense<0.000000e+00> : vector<1x32xf32>
    %2006 = tpu.matmul %1918, %1093, %cst_446 {dimension_numbers = #tpu.dot_dimension_numbers<[1], [0], [0], [1], [0, 0, 1, 1], [], []>} : vector<1x32xf32>, vector<32x32xf32>, vector<1x32xf32> -> vector<1x32xf32>
    %2007 = arith.addf %2006, %1096 : vector<1x32xf32>
    %cst_447 = arith.constant dense<0.000000e+00> : vector<1x32xf32>
    %2008 = tpu.matmul %1918, %1094, %cst_447 {dimension_numbers = #tpu.dot_dimension_numbers<[1], [0], [0], [1], [0, 0, 1, 1], [], []>} : vector<1x32xf32>, vector<32x32xf32>, vector<1x32xf32> -> vector<1x32xf32>
    %2009 = arith.addf %2008, %1097 : vector<1x32xf32>
    %cst_448 = arith.constant dense<0.000000e+00> : vector<1x32xf32>
    %2010 = tpu.matmul %1918, %1095, %cst_448 {dimension_numbers = #tpu.dot_dimension_numbers<[1], [0], [0], [1], [0, 0, 1, 1], [], []>} : vector<1x32xf32>, vector<32x32xf32>, vector<1x32xf32> -> vector<1x32xf32>
    %2011 = arith.addf %2010, %1098 : vector<1x32xf32>
    %2012 = vector.extract_strided_slice %1103 {offsets = [0, 0], sizes = [1, 32], strides = [1, 1]} : vector<8x32xf32> to vector<1x32xf32>
    %2013 = arith.addf %2012, %2007 : vector<1x32xf32>
    %2014 = arith.negf %2013 : vector<1x32xf32>
    %2015 = math.exp %2014 : vector<1x32xf32>
    %cst_449 = arith.constant 1.000000e+00 : f32
    %2016 = vector.broadcast %cst_449 : f32 to vector<1x32xf32>
    %2017 = arith.addf %2016, %2015 : vector<1x32xf32>
    %2018 = arith.divf %2016, %2017 : vector<1x32xf32>
    %2019 = vector.extract_strided_slice %1104 {offsets = [0, 0], sizes = [1, 32], strides = [1, 1]} : vector<8x32xf32> to vector<1x32xf32>
    %2020 = arith.addf %2019, %2009 : vector<1x32xf32>
    %2021 = arith.negf %2020 : vector<1x32xf32>
    %2022 = math.exp %2021 : vector<1x32xf32>
    %cst_450 = arith.constant 1.000000e+00 : f32
    %2023 = vector.broadcast %cst_450 : f32 to vector<1x32xf32>
    %2024 = arith.addf %2023, %2022 : vector<1x32xf32>
    %2025 = arith.divf %2023, %2024 : vector<1x32xf32>
    %2026 = vector.extract_strided_slice %1105 {offsets = [0, 0], sizes = [1, 32], strides = [1, 1]} : vector<8x32xf32> to vector<1x32xf32>
    %2027 = arith.mulf %2018, %2011 : vector<1x32xf32>
    %2028 = arith.addf %2026, %2027 : vector<1x32xf32>
    %2029 = math.tanh %2028 : vector<1x32xf32>
    %cst_451 = arith.constant 1.000000e+00 : f32
    %2030 = vector.broadcast %cst_451 : f32 to vector<1x32xf32>
    %2031 = arith.subf %2030, %2025 : vector<1x32xf32>
    %2032 = arith.mulf %2031, %2029 : vector<1x32xf32>
    %2033 = arith.mulf %2025, %1918 : vector<1x32xf32>
    %2034 = arith.addf %2032, %2033 : vector<1x32xf32>
    %2035 = tpu.concatenate %1135, %1251, %1367, %1483, %1599, %1715, %1831, %1947 in 0 : vector<1x32xf32>, vector<1x32xf32>, vector<1x32xf32>, vector<1x32xf32>, vector<1x32xf32>, vector<1x32xf32>, vector<1x32xf32>, vector<1x32xf32> -> vector<8x32xf32>
    %2036 = tpu.concatenate %1164, %1280, %1396, %1512, %1628, %1744, %1860, %1976 in 0 : vector<1x32xf32>, vector<1x32xf32>, vector<1x32xf32>, vector<1x32xf32>, vector<1x32xf32>, vector<1x32xf32>, vector<1x32xf32>, vector<1x32xf32> -> vector<8x32xf32>
    %2037 = tpu.concatenate %2035, %2036 in 0 : vector<8x32xf32>, vector<8x32xf32> -> vector<16x32xf32>
    %2038 = tpu.concatenate %2005, %1889, %1773, %1657, %1541, %1425, %1309, %1193 in 0 : vector<1x32xf32>, vector<1x32xf32>, vector<1x32xf32>, vector<1x32xf32>, vector<1x32xf32>, vector<1x32xf32>, vector<1x32xf32>, vector<1x32xf32> -> vector<8x32xf32>
    %2039 = tpu.concatenate %2034, %1918, %1802, %1686, %1570, %1454, %1338, %1222 in 0 : vector<1x32xf32>, vector<1x32xf32>, vector<1x32xf32>, vector<1x32xf32>, vector<1x32xf32>, vector<1x32xf32>, vector<1x32xf32>, vector<1x32xf32> -> vector<8x32xf32>
    %2040 = tpu.concatenate %2038, %2039 in 0 : vector<8x32xf32>, vector<8x32xf32> -> vector<16x32xf32>
    %c0_452 = arith.constant 0 : index
    %c0_453 = arith.constant 0 : index
    %2041 = vector.load %arg20[%c0_452, %c0_453] : memref<64x4xf32, #tpu.memory_space<vmem>>, vector<64x4xf32>
    %2042 = vector.extract_strided_slice %2041 {offsets = [0, 0], sizes = [32, 4], strides = [1, 1]} : vector<64x4xf32> to vector<32x4xf32>
    %cst_454 = arith.constant dense<0.000000e+00> : vector<16x4xf32>
    %2043 = tpu.matmul %2037, %2042, %cst_454 {dimension_numbers = #tpu.dot_dimension_numbers<[1], [0], [0], [1], [0, 0, 1, 1], [], []>} : vector<16x32xf32>, vector<32x4xf32>, vector<16x4xf32> -> vector<16x4xf32>
    %2044 = vector.extract_strided_slice %2041 {offsets = [32, 0], sizes = [32, 4], strides = [1, 1]} : vector<64x4xf32> to vector<32x4xf32>
    %cst_455 = arith.constant dense<0.000000e+00> : vector<16x4xf32>
    %2045 = tpu.matmul %2040, %2044, %cst_455 {dimension_numbers = #tpu.dot_dimension_numbers<[1], [0], [0], [1], [0, 0, 1, 1], [], []>} : vector<16x32xf32>, vector<32x4xf32>, vector<16x4xf32> -> vector<16x4xf32>
    %2046 = arith.addf %2043, %2045 : vector<16x4xf32>
    %c0_456 = arith.constant 0 : index
    %c0_457 = arith.constant 0 : index
    %2047 = vector.load %arg21[%c0_456, %c0_457] : memref<1x4xf32, #tpu.memory_space<vmem>>, vector<1x4xf32>
    %2048 = vector.broadcast %2047 : vector<1x4xf32> to vector<16x4xf32>
    %2049 = arith.addf %2046, %2048 : vector<16x4xf32>
    %2050 = math.tanh %2049 : vector<16x4xf32>
    %cst_458 = arith.constant 0.000000e+00 : f32
    %2051 = vector.broadcast %cst_458 : f32 to vector<16x4xf32>
    %2052 = arith.cmpf oge, %2050, %2051 : vector<16x4xf32>
    %cst_459 = arith.constant 2.000000e-01 : f32
    %2053 = vector.broadcast %cst_459 : f32 to vector<16x4xf32>
    %2054 = arith.mulf %2053, %2050 : vector<16x4xf32>
    %2055 = arith.select %2052, %2050, %2054 : vector<16x4xi1>, vector<16x4xf32>
    %c0_460 = arith.constant 0 : index
    %c0_461 = arith.constant 0 : index
    %2056 = vector.load %arg1[%c0_460, %c0_461] : memref<16x4xf32, #tpu.memory_space<vmem>>, vector<16x4xf32>
    %2057 = tpu.concatenate %2056, %2055 in 1 : vector<16x4xf32>, vector<16x4xf32> -> vector<16x8xf32>
    %c0_462 = arith.constant 0 : index
    %c0_463 = arith.constant 0 : index
    %2058 = vector.load %arg22[%c0_462, %c0_463] : memref<16x8xf32, #tpu.memory_space<vmem>>, vector<16x8xf32>
    tpu.vector_store %arg22[%c0_462, %c0_463], %2057 {strides = array<i32>} : memref<16x8xf32, #tpu.memory_space<vmem>>, vector<16x8xf32>,
    return
  }
}

</mosaic_0001>

<bundles_post_ra>
// kernel: generator_gru_cond_forward.1
= control target key start
LH: loop header
LB: loop body
LE: loop exit
PB: predicated region body
PF: predicated region fallthrough
CT: control target
= control target key end

     0   :  { %s26070_s0 = inlined_call_operand.vmem [shape: f32[16,4], index: 0, kind: input, shape index: {}]   ;;  %s26071_s1 = inlined_call_operand.vmem [shape: f32[16,4], index: 1, kind: input, shape index: {}]   ;;  %s26072_s2 = inlined_call_operand.hbm [shape: f32[8,96], index: 2, kind: input, shape index: {}]   ;;  %s26073_s3 = inlined_call_operand.hbm [shape: f32[32,96], index: 3, kind: input, shape index: {}]   ;;  %s26074_s4 = inlined_call_operand.vmem [shape: f32[1,96], index: 4, kind: input, shape index: {}]   ;;  %s26075_s5 = inlined_call_operand.hbm [shape: f32[1,96], index: 5, kind: input, shape index: {}]   ;;  %s26076_s6 = inlined_call_operand.hbm [shape: f32[8,96], index: 6, kind: input, shape index: {}]   ;;  %s26077_s7 = inlined_call_operand.vmem [shape: f32[32,96], index: 7, kind: input, shape index: {}]   ;;  %s26078_s8 = inlined_call_operand.vmem [shape: f32[1,96], index: 8, kind: input, shape index: {}]   ;;  %s26079_s9 = inlined_call_operand.vmem [shape: f32[1,96], index: 9, kind: input, shape index: {}]   ;;  %s26080_s10 = inlined_call_operand.vmem [shape: f32[64,96], index: 10, kind: input, shape index: {}]   ;;  %s26081_s11 = inlined_call_operand.hbm [shape: f32[32,96], index: 11, kind: input, shape index: {}]   ;;  %s26082_s12 = inlined_call_operand.hbm [shape: f32[1,96], index: 12, kind: input, shape index: {}]   ;;  %s26083_s13 = inlined_call_operand.hbm [shape: f32[1,96], index: 13, kind: input, shape index: {}]   ;;  %s26084_s14 = inlined_call_operand.vmem [shape: f32[64,96], index: 14, kind: input, shape index: {}]   ;;  %s26085_s15 = inlined_call_operand.vmem [shape: f32[32,96], index: 15, kind: input, shape index: {}]   ;;  %s26086_s16 = inlined_call_operand.vmem [shape: f32[1,96], index: 16, kind: input, shape index: {}]   ;;  %s26087_s17 = inlined_call_operand.vmem [shape: f32[1,96], index: 17, kind: input, shape index: {}]   ;;  %s26088_s18 = inlined_call_operand.hbm [shape: f32[64,64], index: 18, kind: input, shape index: {}]   ;;  %s26089_s19 = inlined_call_operand.hbm [shape: f32[1,64], index: 19, kind: input, shape index: {}]   ;;  %s26090_s20 = inlined_call_operand.vmem [shape: f32[64,4], index: 20, kind: input, shape index: {}]   ;;  %s26091_s21 = inlined_call_operand.hbm [shape: f32[1,4], index: 21, kind: input, shape index: {}]   ;;  %s26092_s22 = inlined_call_operand.hbm [shape: f32[16,8], index: 22, kind: output, shape index: {}]  }
   0x1   :  { %26130 = sst [smem:[#allocation44_spill]] %s26070_s0 }
   0x2   :  { %26131 = sst [smem:[#allocation45_spill]] %s26071_s1 }
   0x3   :  { %26132 = sst [smem:[#allocation46_spill]] %s26072_s2 }
   0x4   :  { %26133 = sst [smem:[#allocation47_spill]] %s26073_s3 }
   0x5   :  { %26134 = sst [smem:[#allocation48_spill]] %s26074_s4 }
   0x6   :  { %26135 = sst [smem:[#allocation49_spill]] %s26075_s5 }
   0x7   :  { %26136 = sst [smem:[#allocation50_spill]] %s26076_s6 }
   0x8   :  { %26137 = sst [smem:[#allocation51_spill]] %s26086_s16 }
   0x9   :  { %26138 = sst [smem:[#allocation52_spill]] %s26090_s20 }
   0xa   :  { %26139 = sst [smem:[#allocation53_spill]] %s26092_s22 }
   0xb   :  { %27 = vsyncpa [#allocation3], 0 }
   0xc   :  { %28 = vsyncpa [#allocation6], 0 }
   0xd   :  { %29 = vsyncpa [#allocation9], 0 }
   0xe   :  { %30 = vsyncpa [#allocation12], 0 }
   0xf   :  { %31 = vsyncpa [#allocation15], 0 }
  0x10   :  { %32 = vsyncpa [#allocation18], 0 }
  0x11   :  { %33 = vsyncpa [#allocation4], 0  ;;  %s23111_s3 = smov [#allocation5]   ;;  %s26140_s4 = sld [smem:[#allocation47_spill]] }
  0x12   :  { %s53_s28 = sshll.u32 %s23111_s3, 4  ;;  %s54_s28 = int_to_ptr.vmem [resolvable:$true] %s53_s28 }
  0x17   :  { %s22855_s0 = scalar_lea.hbm %s26140_s4, 512 }
  0x18   :  { %p22856_p0 = scmp.ne.s32.totalorder %s26140_s4, %s22855_s0  ;;  %p22859_p1 = scmp.lt.u32.totalorder %s22855_s0, %s26140_s4 }
  0x1a   :  { %p22861_p2 = pnand %p22859_p1, %p22856_p0 }
  0x1c   :  { %22864 = shalt.err (!%p22861_p2)
}
  0x1d   :  { %s22865_s6 = scalar_lea.vmem %s54_s28, 512  ;;  %p22870_p4 = scmp.lt.s32.totalorder %s54_s28, %s54_s28 }
  0x1e   :  { %p22866_p3 = scmp.ne.s32.totalorder %s54_s28, %s22865_s6  ;;  %p22871_p5 = scmp.lt.s32.totalorder %s22865_s6, %s22865_s6 }
  0x20   :  { %p22872_p6 = por %p22871_p5, %p22870_p4 }
  0x22   :  { %p22873_p7 = pnand %p22872_p6, %p22866_p3 }
  0x24   :  { %22876 = shalt.err (!%p22873_p7)
}
  0x25   :  { %s23112_s25 = smov 128   ;;  %s23113_s26 = smov 8  }
  0x26   :  { %59 = dma.hbm_to_vmem [thread:$0]  %s26140_s4, 512, %s54_s28, [#allocation6], %s23112_s25, %s23112_s25, %s23113_s26  }
  0x27   :  { %s23114_s3 = smov [#allocation8]   ;;  %s23115_s30 = smov [#allocation11]  }
  0x28   :  { %s78_s29 = sshll.u32 %s23114_s3, 4  ;;  %s108_s0 = sshll.u32 %s23115_s30, 4  ;;  %s79_s29 = int_to_ptr.vmem [resolvable:$true] %s78_s29  ;;  %s109_s0 = int_to_ptr.vmem [resolvable:$true] %s108_s0 }
  0x29   :  { %s26141_s5 = sld [smem:[#allocation50_spill]] }
  0x2f   :  { %s22877_s24 = scalar_lea.hbm %s26141_s5, 128 }
  0x30   :  { %p22878_p8 = scmp.ne.s32.totalorder %s26141_s5, %s22877_s24  ;;  %p22881_p9 = scmp.lt.u32.totalorder %s22877_s24, %s26141_s5 }
  0x32   :  { %p22883_p10 = pnand %p22881_p9, %p22878_p8 }
  0x34   :  { %22886 = shalt.err (!%p22883_p10)
}
  0x35   :  { %s22887_s28 = scalar_lea.vmem %s79_s29, 128  ;;  %p22892_p12 = scmp.lt.s32.totalorder %s79_s29, %s79_s29 }
  0x36   :  { %p22888_p11 = scmp.ne.s32.totalorder %s79_s29, %s22887_s28  ;;  %p22893_p13 = scmp.lt.s32.totalorder %s22887_s28, %s22887_s28 }
  0x38   :  { %p22894_p0 = por %p22893_p13, %p22892_p12 }
  0x3a   :  { %p22895_p1 = pnand %p22894_p0, %p22888_p11 }
  0x3c   :  { %22898 = shalt.err (!%p22895_p1)
}
  0x3d   :  { %81 = dma.hbm_to_vmem [thread:$0]  %s26141_s5, 128, %s79_s29, [#allocation9]  }
  0x3e   :  { %s22899_s3 = scalar_lea.hbm %s26082_s12, 16 }
  0x3f   :  { %p22900_p2 = scmp.ne.s32.totalorder %s26082_s12, %s22899_s3  ;;  %p22903_p3 = scmp.lt.u32.totalorder %s22899_s3, %s26082_s12 }
  0x41   :  { %p22905_p4 = pnand %p22903_p3, %p22900_p2 }
  0x43   :  { %22908 = shalt.err (!%p22905_p4)
}
  0x44   :  { %s22909_s1 = scalar_lea.vmem %s109_s0, 16  ;;  %s22913_s24 = scalar_lea.vmem %s109_s0, 32 }
  0x45   :  { %p22910_p5 = scmp.ne.s32.totalorder %s109_s0, %s22909_s1  ;;  %p22914_p6 = scmp.lt.s32.totalorder %s109_s0, %s109_s0 }
  0x46   :  { %p22915_p7 = scmp.lt.s32.totalorder %s22913_s24, %s22909_s1 }
  0x48   :  { %p22916_p8 = por %p22915_p7, %p22914_p6 }
  0x4a   :  { %p22917_p9 = pnand %p22916_p8, %p22910_p5 }
  0x4c   :  { %22920 = shalt.err (!%p22917_p9)
}
  0x4d   :  { %111 = dma.hbm_to_vmem [thread:$0]  %s26082_s12, 16, %s109_s0, [#allocation12]  }
  0x4e   :  { %s23116_s6 = smov [#allocation14]   ;;  %s23117_s4 = smov [#allocation2]  }
  0x4f   :  { %s135_s28 = sshll.u32 %s23116_s6, 4  ;;  %s44_s2 = sshll.u32 %s23117_s4, 4  ;;  %s136_s28 = int_to_ptr.vmem [resolvable:$true] %s135_s28  ;;  %s45_s2 = int_to_ptr.vmem [resolvable:$true] %s44_s2 }
  0x50   :  { %s22921_s3 = scalar_lea.hbm %s26088_s18, 1024 }
  0x51   :  { %p22922_p10 = scmp.ne.s32.totalorder %s26088_s18, %s22921_s3  ;;  %p22925_p11 = scmp.lt.u32.totalorder %s22921_s3, %s26088_s18 }
  0x53   :  { %p22927_p12 = pnand %p22925_p11, %p22922_p10 }
  0x55   :  { %22930 = shalt.err (!%p22927_p12)
}
  0x56   :  { %s22931_s12 = scalar_lea.vmem %s136_s28, 1024  ;;  %p22936_p0 = scmp.lt.s32.totalorder %s136_s28, %s136_s28 }
  0x57   :  { %p22932_p13 = scmp.ne.s32.totalorder %s136_s28, %s22931_s12  ;;  %p22937_p1 = scmp.lt.s32.totalorder %s22931_s12, %s22931_s12 }
  0x59   :  { %p22938_p2 = por %p22937_p1, %p22936_p0 }
  0x5b   :  { %p22939_p3 = pnand %p22938_p2, %p22932_p13 }
  0x5d   :  { %22942 = shalt.err (!%p22939_p3)
}
  0x5e   :  { %141 = dma.hbm_to_vmem [thread:$0]  %s26088_s18, 1024, %s136_s28, [#allocation15], %s23112_s25, %s23112_s25, %s23113_s26  }
  0x5f   :  { %s26142_s5 = sld [smem:[#allocation46_spill]] }
  0x65   :  { %s22943_s6 = scalar_lea.hbm %s26142_s5, 128 }
  0x66   :  { %p22944_p4 = scmp.ne.s32.totalorder %s26142_s5, %s22943_s6  ;;  %p22947_p5 = scmp.lt.u32.totalorder %s22943_s6, %s26142_s5 }
  0x68   :  { %p22949_p6 = pnand %p22947_p5, %p22944_p4 }
  0x6a   :  { %22952 = shalt.err (!%p22949_p6)
}
  0x6b   :  { %s22953_s16 = scalar_lea.vmem %s45_s2, 128  ;;  %p22958_p8 = scmp.lt.s32.totalorder %s45_s2, %s45_s2 }
  0x6c   :  { %p22954_p7 = scmp.ne.s32.totalorder %s45_s2, %s22953_s16  ;;  %p22959_p9 = scmp.lt.s32.totalorder %s22953_s16, %s22953_s16 }
  0x6e   :  { %p22960_p10 = por %p22959_p9, %p22958_p8 }
  0x70   :  { %p22961_p11 = pnand %p22960_p10, %p22954_p7 }
  0x72   :  { %22964 = shalt.err (!%p22961_p11)
}
  0x73   :  { %47 = dma.hbm_to_vmem [thread:$0]  %s26142_s5, 128, %s45_s2, [#allocation3]  }
  0x74   :  { %s23118_s20 = smov [#allocation7]   ;;  %s23119_s23 = smov [#allocation10]  }
  0x75   :  { %s68_s30 = sshll.u32 %s23118_s20, 4  ;;  %s95_s12 = sshll.u32 %s23119_s23, 4  ;;  %s69_s30 = int_to_ptr.vmem [resolvable:$true] %s68_s30  ;;  %s96_s12 = int_to_ptr.vmem [resolvable:$true] %s95_s12 }
  0x76   :  { %s26143_s24 = sld [smem:[#allocation49_spill]] }
  0x7c   :  { %s22965_s29 = scalar_lea.hbm %s26143_s24, 16 }
  0x7d   :  { %p22966_p12 = scmp.ne.s32.totalorder %s26143_s24, %s22965_s29  ;;  %p22969_p13 = scmp.lt.u32.totalorder %s22965_s29, %s26143_s24 }
  0x7f   :  { %p22971_p0 = pnand %p22969_p13, %p22966_p12 }
  0x81   :  { %22974 = shalt.err (!%p22971_p0)
}
  0x82   :  { %s22975_s2 = scalar_lea.vmem %s69_s30, 16  ;;  %s22979_s5 = scalar_lea.vmem %s69_s30, 32 }
  0x83   :  { %p22976_p1 = scmp.ne.s32.totalorder %s69_s30, %s22975_s2  ;;  %p22980_p2 = scmp.lt.s32.totalorder %s69_s30, %s69_s30 }
  0x84   :  { %p22981_p3 = scmp.lt.s32.totalorder %s22979_s5, %s22975_s2 }
  0x86   :  { %p22982_p4 = por %p22981_p3, %p22980_p2 }
  0x88   :  { %p22983_p5 = pnand %p22982_p4, %p22976_p1 }
  0x8a   :  { %22986 = shalt.err (!%p22983_p5)
}
  0x8b   :  { %71 = dma.hbm_to_vmem [thread:$0]  %s26143_s24, 16, %s69_s30, [#allocation6]  }
  0x8c   :  { %s22987_s20 = scalar_lea.hbm %s26081_s11, 512 }
  0x8d   :  { %p22988_p6 = scmp.ne.s32.totalorder %s26081_s11, %s22987_s20  ;;  %p22991_p7 = scmp.lt.u32.totalorder %s22987_s20, %s26081_s11 }
  0x8f   :  { %p22993_p8 = pnand %p22991_p7, %p22988_p6 }
  0x91   :  { %22996 = shalt.err (!%p22993_p8)
}
  0x92   :  { %s22997_s6 = scalar_lea.vmem %s96_s12, 512  ;;  %p23002_p10 = scmp.lt.s32.totalorder %s96_s12, %s96_s12 }
  0x93   :  { %p22998_p9 = scmp.ne.s32.totalorder %s96_s12, %s22997_s6  ;;  %p23003_p11 = scmp.lt.s32.totalorder %s22997_s6, %s22997_s6 }
  0x95   :  { %p23004_p12 = por %p23003_p11, %p23002_p10 }
  0x97   :  { %p23005_p13 = pnand %p23004_p12, %p22998_p9 }
  0x99   :  { %23008 = shalt.err (!%p23005_p13)
}
  0x9a   :  { %101 = dma.hbm_to_vmem [thread:$0]  %s26081_s11, 512, %s96_s12, [#allocation9], %s23112_s25, %s23112_s25, %s23113_s26  }
  0x9b   :  { %s23120_s4 = smov [#allocation13]   ;;  %s23121_s27 = smov [#allocation16]  }
  0x9c   :  { %s118_s22 = sshll.u32 %s23120_s4, 4  ;;  %s148_s2 = sshll.u32 %s23121_s27, 4  ;;  %s119_s22 = int_to_ptr.vmem [resolvable:$true] %s118_s22  ;;  %s149_s2 = int_to_ptr.vmem [resolvable:$true] %s148_s2 }
  0x9d   :  { %s23009_s16 = scalar_lea.hbm %s26083_s13, 16 }
  0x9e   :  { %p23010_p0 = scmp.ne.s32.totalorder %s26083_s13, %s23009_s16  ;;  %p23013_p1 = scmp.lt.u32.totalorder %s23009_s16, %s26083_s13 }
  0xa0   :  { %p23015_p2 = pnand %p23013_p1, %p23010_p0 }
  0xa2   :  { %23018 = shalt.err (!%p23015_p2)
}
  0xa3   :  { %s23019_s11 = scalar_lea.vmem %s119_s22, 16  ;;  %s23023_s12 = scalar_lea.vmem %s119_s22, 32 }
  0xa4   :  { %p23020_p3 = scmp.ne.s32.totalorder %s119_s22, %s23019_s11  ;;  %p23024_p4 = scmp.lt.s32.totalorder %s119_s22, %s119_s22 }
  0xa5   :  { %p23025_p5 = scmp.lt.s32.totalorder %s23023_s12, %s23019_s11 }
  0xa7   :  { %p23026_p6 = por %p23025_p5, %p23024_p4 }
  0xa9   :  { %p23027_p7 = pnand %p23026_p6, %p23020_p3 }
  0xab   :  { %23030 = shalt.err (!%p23027_p7)
}
  0xac   :  { %121 = dma.hbm_to_vmem [thread:$0]  %s26083_s13, 16, %s119_s22, [#allocation12]  }
  0xad   :  { %s23031_s30 = scalar_lea.hbm %s26089_s19, 16 }
  0xae   :  { %p23032_p8 = scmp.ne.s32.totalorder %s26089_s19, %s23031_s30  ;;  %p23035_p9 = scmp.lt.u32.totalorder %s23031_s30, %s26089_s19 }
  0xb0   :  { %p23037_p10 = pnand %p23035_p9, %p23032_p8 }
  0xb2   :  { %23040 = shalt.err (!%p23037_p10)
}
  0xb3   :  { %s23041_s3 = scalar_lea.vmem %s149_s2, 16  ;;  %s23045_s16 = scalar_lea.vmem %s149_s2, 32 }
  0xb4   :  { %p23042_p11 = scmp.ne.s32.totalorder %s149_s2, %s23041_s3  ;;  %p23046_p12 = scmp.lt.s32.totalorder %s149_s2, %s149_s2 }
  0xb5   :  { %p23047_p13 = scmp.lt.s32.totalorder %s23045_s16, %s23041_s3 }
  0xb7   :  { %p23048_p0 = por %p23047_p13, %p23046_p12 }
  0xb9   :  { %p23049_p1 = pnand %p23048_p0, %p23042_p11 }
  0xbb   :  { %23052 = shalt.err (!%p23049_p1)
}
  0xbc   :  { %151 = dma.hbm_to_vmem [thread:$0]  %s26089_s19, 16, %s149_s2, [#allocation15]  }
  0xbd   :  { %s23122_s18 = smov [#allocation17]   ;;  %s23053_s11 = scalar_lea.hbm %s26091_s21, 16 }
  0xbe   :  { %s160_s28 = sshll.u32 %s23122_s18, 4  ;;  %p23054_p2 = scmp.ne.s32.totalorder %s26091_s21, %s23053_s11  ;;  %s161_s28 = int_to_ptr.vmem [resolvable:$true] %s160_s28 }
  0xbf   :  { %p23057_p3 = scmp.lt.u32.totalorder %s23053_s11, %s26091_s21 }
  0xc1   :  { %p23059_p4 = pnand %p23057_p3, %p23054_p2 }
  0xc3   :  { %23062 = shalt.err (!%p23059_p4)
}
  0xc4   :  { %s23063_s6 = scalar_lea.vmem %s161_s28, 16  ;;  %s23067_s19 = scalar_lea.vmem %s161_s28, 32 }
  0xc5   :  { %p23064_p5 = scmp.ne.s32.totalorder %s161_s28, %s23063_s6  ;;  %p23068_p6 = scmp.lt.s32.totalorder %s161_s28, %s161_s28 }
  0xc6   :  { %p23069_p7 = scmp.lt.s32.totalorder %s23067_s19, %s23063_s6 }
  0xc8   :  { %p23070_p8 = por %p23069_p7, %p23068_p6 }
  0xca   :  { %p23071_p9 = pnand %p23070_p8, %p23064_p5 }
  0xcc   :  { %23074 = shalt.err (!%p23071_p9)
}
  0xcd   :  { %163 = dma.hbm_to_vmem [thread:$0]  %s26091_s21, 16, %s161_s28, [#allocation18]  }
  0xce   :  { %23097 = dma.done.wait [#allocation3], 128  }
  0xcf   :  { %23098 = vsyncadd [#allocation3], 4294967168 }
  0xd0   :  { %23099 = dma.done.wait [#allocation6], 528  }
  0xd1   :  { %23100 = vsyncadd [#allocation6], 4294966768 }
  0xd2   :  { %23101 = dma.done.wait [#allocation9], 640  }
  0xd3   :  { %23102 = vsyncadd [#allocation9], 4294966656 }
  0xd4   :  { %23103 = dma.done.wait [#allocation12], 32  }
  0xd5   :  { %23104 = vsyncadd [#allocation12], 4294967264 }
  0xd6   :  { %23105 = dma.done.wait [#allocation15], 1040  }
  0xd7   :  { %23106 = vsyncadd [#allocation15], 4294966256 }
  0xd8   :  { %23107 = dma.done.wait [#allocation18], 16  }
  0xd9   :  { %23108 = vsyncadd [#allocation18], 4294967280  ;;  %v198_v0 = vld [vmem:[#allocation2] sm:$0xff]  ;;  %v23374_v1 = vld [vmem:[#allocation8] sm:$0xff]  ;;  %vm202_vm0 = vcmask 31744   ;;  %vm209_vm1 = vcmask 1043456   ;;  %v1297_v25 = vlaneseq }
  0xda   :  { %v704_v2 = vld [vmem:[#allocation5] sm:$0xff]  ;;  %v201_v3 = vrot.slane %v198_v0, 4  ;;  %v23377_v4 = vrot.slane %v23374_v1, 4  ;;  %v705_v5 = vld [vmem:[#allocation5 + $0x8] sm:$0xff]  ;;  %v706_v6 = vld [vmem:[#allocation5 + $0x10] sm:$0xff]  ;;  %s23123_s16 = smov 96  }
  0xdb   :  { %v707_v7 = vld [vmem:[#allocation5 + $0x18] sm:$0xff]  ;;  %v23379_v8 = vpack.c.bf16 %v705_v5, %v704_v2  ;;  %v1202_v11 = vld [vmem:[%s26077_s7 + $0x8] sm:$0xff]  ;;  %v1203_v12 = vld [vmem:[%s26077_s7 + $0x10] sm:$0xff]  ;;  %s23124_s13 = smov 64   ;;  %s26144_s23 = sld [smem:[#allocation45_spill]]  ;;  %v22035_v19 = vpack.i.bf16 %v705_v5, %v704_v2  ;;  %v1298_v26 = vshrl.u32 %v1297_v25, 7 }
  0xdc   :  { %v23381_v9 = vpack.c.bf16 %v707_v7, %v706_v6  ;;  %v1201_v10 = vld [vmem:[%s26077_s7] sm:$0xff]  ;;  %378 = vrot.lane.b32.xlu0 %v201_v3, %s23123_s16  ;;  %1038 = vrot.lane.b32.xlu1 %v23377_v4, %s23124_s13  ;;  %v1204_v13 = vld [vmem:[%s26077_s7 + $0x18] sm:$0xff]  ;;  %s26145_s1 = sld [smem:[#allocation44_spill]]  ;;  %v22040_v20 = vpack.i.bf16 %v707_v7, %v706_v6  ;;  %s26146_s30 = sld [smem:[#allocation48_spill]]  ;;  %v23462_v27 = vld [vmem:[#allocation7] sm:$0x1] }
  0xdd   :  { %v23403_v15 = vpack.c.bf16 %v1202_v11, %v1201_v10  ;;  %v23405_v16 = vpack.c.bf16 %v1204_v13, %v1203_v12  ;;  %18594 = vmatprep.subr.msk.mxu0 %vm209_vm1, %v201_v3  ;;  %v22055_v22 = vpack.i.bf16 %v1202_v11, %v1201_v10  ;;  %v22060_v23 = vpack.i.bf16 %v1204_v13, %v1203_v12  ;;  %v23469_v29 = vld [vmem:[%s26079_s9] sm:$0x1]  ;;  %s26173_s22 = sld [smem:[#allocation51_spill]]  ;;  %s26191_s11 = sld [smem:[#allocation52_spill]] }
  0xde   :  { %18595 = vmatpush3.msk.msra.mxu0 %vm209_vm1, %v201_v3  ;;  %v23464_v28 = vsub.s32 0, %v1298_v26  ;;  %v23483_v32 = vld [vmem:[%s26078_s8] ss:$0 sm:$0xff]  ;;  %v26103_v47 = vmov 0.0|0.0   ;;  %vm23126_vm2 = vmmov 0   ;;  %v26101_v52 = vmov 0.0  }
  0xdf   :  { %18599 = vmatprep.subr.msk.mxu0 %vm209_vm1, %v198_v0  ;;  %vm1206_vm3 = vcmask 261120   ;;  %vm8667_vm4 = vcmask 1040384   ;;  %vm8669_vm5 = vcmask 1041408   ;;  %vm8671_vm6 = vcmask 1042432   ;;  %s23129_s8 = smov [#allocation19]  }
  0xe0   :  { %457 = vrot.lane.b32.xlu0 %v198_v0, %s23123_s16  ;;  %1117 = vrot.lane.b32.xlu1 %v23374_v1, %s23124_s13  ;;  %26147 = vst [vmem:[#allocation27_spill] sm:$0xff] %v23464_v28  ;;  %v1300_v30 = vrot.slane %v23462_v27, %v23464_v28  ;;  %v1591_v31 = vrot.slane %v23469_v29, %v23464_v28  ;;  %vm8674_vm7 = vcmask 1044480   ;;  %vm8676_vm8 = vcmask 1045504  }
  0xe1   :  { %v23401_v14 = vld [vmem:[%s26144_s23] sm:$0xff]  ;;  %v23412_v17 = vld [vmem:[%s26144_s23 + $0x8] sm:$0xff]  ;;  %vm8678_vm9 = vcmask 1046528   ;;  %vm8903_vm11 = vcmask 523264   ;;  %vm17191_vm15 = vcmask 64512  }
  0xe2   :  { %18606 = vmatprep.mubr.msk.f32.mxu1 %vm202_vm0, %v23401_v14  ;;  %18596 = vmatprep.mubr.msk.f32.mxu0 %vm202_vm0, %v23401_v14  ;;  %v23421_v18 = vld [vmem:[%s26145_s1] sm:$0xff]  ;;  %v23437_v21 = vld [vmem:[%s26145_s1 + $0x8] sm:$0xff] }
  0xe3   :  { %18597 = vmatmul.mubr.msk.f32.vlgmr.msra.gmra.mrb[0].mxu0 %vm202_vm0, %v23412_v17  ;;  %v23458_v24 = vld [vmem:[%s26146_s30] ss:$0 sm:$0xff] }
  0xe4   :  { %18600 = vmatpush3.msk.msra.mxu0 %vm209_vm1, %v198_v0  ;;  %18601 = vmatprep.mubr.msk.f32.mxu0 %vm202_vm0, %v23421_v18 }
  0xe5   :  { %541 = vrot.lane.b32.xlu0 %v201_v3, %s23124_s13  ;;  %22036 = vrot.lane.b32.xlu1 %v22035_v19, %s23123_s16 }
  0xe9   :  { %620 = vrot.lane.b32.xlu0 %v198_v0, %s23124_s13  ;;  %22041 = vrot.lane.b32.xlu1 %v22040_v20, %s23123_s16 }
  0xeb   :  { %18602 = vmatmul.mubr.msk.f32.vlgmr.msra.gmra.mrb[0].mxu0 %vm202_vm0, %v23437_v21 }
  0xec   :  { %18616 = vmatprep.mubr.msk.f32.mxu0 %vm202_vm0, %v23401_v14 }
  0xed   :  { %875 = vrot.lane.b32.xlu0 %v23377_v4, %s23123_s16  ;;  %954 = vrot.lane.b32.xlu1 %v23374_v1, %s23123_s16 }
  0xf1   :  { %22046 = vrot.lane.b32.xlu0 %v22035_v19, %s23124_s13  ;;  %22051 = vrot.lane.b32.xlu1 %v22040_v20, %s23124_s13 }
  0xf5   :  { %22056 = vrot.lane.b32.xlu0 %v22055_v22, %s23123_s16  ;;  %22061 = vrot.lane.b32.xlu1 %v22060_v23, %s23123_s16 }
  0xf9   :  { %22066 = vrot.lane.b32.xlu0 %v22055_v22, %s23124_s13  ;;  %22071 = vrot.lane.b32.xlu1 %v22060_v23, %s23124_s13 }
  0xfd   :  { %536 = vrot.lane.b32.xlu0 %v23458_v24, %s23123_s16  ;;  %1301 = vrot.lane.b32.xlu1 %v1300_v30, %s23123_s16 }
 0x101   :  { %1386 = vrot.lane.b32.xlu0 %v1300_v30, %s23124_s13  ;;  %699 = vrot.lane.b32.xlu1 %v23458_v24, %s23124_s13 }
 0x105   :  { %1592 = vrot.lane.b32.xlu0 %v1591_v31, %s23123_s16  ;;  %1033 = vrot.lane.b32.xlu1 %v23483_v32, %s23123_s16 }
 0x109   :  { %1677 = vrot.lane.b32.xlu0 %v1591_v31, %s23124_s13  ;;  %1196 = vrot.lane.b32.xlu1 %v23483_v32, %s23124_s13 }
 0x14e   :  { %v379_v33 = vpop.permute.xlu0 %378  ;;  %v1039_v34 = vpop.permute.xlu1 %1038 }
 0x14f   :  { %18604 = vmatprep.subr.msk.mxu1 %vm209_vm1, %v379_v33 }
 0x150   :  { %18605 = vmatpush3.msk.msra.mxu1 %vm209_vm1, %v379_v33 }
 0x151   :  { %18607 = vmatmul.mubr.msk.f32.vlgmr.msra.gmra.mrb[0].mxu1 %vm202_vm0, %v23412_v17 }
 0x152   :  { %v458_v35 = vpop.permute.xlu0 %457  ;;  %18611 = vmatprep.mubr.msk.f32.mxu1 %vm202_vm0, %v23421_v18  ;;  %v1118_v36 = vpop.permute.xlu1 %1117 }
 0x153   :  { %18609 = vmatprep.subr.msk.mxu1 %vm209_vm1, %v458_v35 }
 0x154   :  { %18610 = vmatpush3.msk.msra.mxu1 %vm209_vm1, %v458_v35 }
 0x155   :  { %18624 = vmatprep.subr.msk.mxu1 %vm209_vm1, %v23377_v4 }
 0x157   :  { %v542_v37 = vpop.permute.xlu0 %541  ;;  %v23500_v38 = vpop.permute.xlu1 %22036 }
 0x158   :  { %18614 = vmatprep.subr.msk.mxu0 %vm209_vm1, %v542_v37  ;;  %v22039_v57 = vunpack.i.h.bf16 %v23500_v38  ;;  %v22038_v58 = vunpack.i.l.bf16 %v23500_v38 }
 0x159   :  { %18615 = vmatpush3.msk.msra.mxu0 %vm209_vm1, %v542_v37  ;;  %18612 = vmatmul.mubr.msk.f32.vlgmr.msra.gmra.mrb[0].mxu1 %vm202_vm0, %v23437_v21 }
 0x15a   :  { %18617 = vmatmul.mubr.msk.f32.vlgmr.msra.gmra.mrb[2].mxu0 %vm202_vm0, %v23412_v17  ;;  %18625 = vmatpush3.msk.msra.mxu1 %vm209_vm1, %v23377_v4  ;;  %v23574_v62 = vpack.c.bf16 %v22039_v57, %v22038_v58 }
 0x15b   :  { %18626 = vmatprep.mubr.msk.f32.mxu1 %vm202_vm0, %v23401_v14  ;;  %v621_v39 = vpop.permute.xlu0 %620  ;;  %v23512_v40 = vpop.permute.xlu1 %22041  ;;  %18629 = vmatprep.subr.msk.mxu1 %vm209_vm1, %v23374_v1 }
 0x15c   :  { %18619 = vmatprep.subr.msk.mxu0 %vm209_vm1, %v621_v39  ;;  %18621 = vmatprep.mubr.msk.f32.mxu0 %vm202_vm0, %v23421_v18  ;;  %v22044_v63 = vunpack.i.h.bf16 %v23512_v40  ;;  %v22043_v0 = vunpack.i.l.bf16 %v23512_v40 }
 0x15d   :  { %18620 = vmatpush3.msk.msra.mxu0 %vm209_vm1, %v621_v39  ;;  %18627 = vmatmul.mubr.msk.f32.vlgmr.msra.gmra.mrb[2].mxu1 %vm202_vm0, %v23412_v17 }
 0x15e   :  { %18630 = vmatpush3.msk.msra.mxu1 %vm209_vm1, %v23374_v1  ;;  %18631 = vmatprep.mubr.msk.f32.mxu1 %vm202_vm0, %v23421_v18  ;;  %v23588_v2 = vpack.c.bf16 %v22044_v63, %v22043_v0 }
 0x15f   :  { %v876_v41 = vpop.permute.xlu0 %875  ;;  %18644 = vmatprep.subr.msk.mxu1 %vm209_vm1, %v1039_v34  ;;  %v955_v42 = vpop.permute.xlu1 %954 }
 0x160   :  { %18634 = vmatprep.subr.msk.mxu0 %vm209_vm1, %v876_v41 }
 0x162   :  { %18622 = vmatmul.mubr.msk.f32.vlgmr.msra.gmra.mrb[2].mxu0 %vm202_vm0, %v23437_v21 }
 0x163   :  { %18635 = vmatpush3.msk.msra.mxu0 %vm209_vm1, %v876_v41  ;;  %18636 = vmatprep.mubr.msk.f32.mxu0 %vm202_vm0, %v23401_v14  ;;  %v22047_v43 = vpop.permute.xlu0 %22046  ;;  %v22052_v46 = vpop.permute.xlu1 %22051 }
 0x164   :  { %18639 = vmatprep.subr.msk.mxu0 %vm209_vm1, %v955_v42  ;;  %v22049_v44 = vunpack.i.h.bf16 %v22047_v43  ;;  %v22048_v45 = vunpack.i.l.bf16 %v22047_v43  ;;  %v22054_v49 = vunpack.i.h.bf16 %v22052_v46  ;;  %v22053_v50 = vunpack.i.l.bf16 %v22052_v46 }
 0x165   :  { %18632 = vmatmul.mubr.msk.f32.vlgmr.msra.gmra.mrb[2].mxu1 %vm202_vm0, %v23437_v21 }
 0x166   :  { %18637 = vmatmul.mubr.msk.f32.vlgmr.msra.gmra.mrb[4].mxu0 %vm202_vm0, %v23412_v17  ;;  %18645 = vmatpush3.msk.msra.mxu1 %vm209_vm1, %v1039_v34  ;;  %v23549_v48 = vpack.c.bf16 %v22049_v44, %v22048_v45  ;;  %v23559_v53 = vpack.c.bf16 %v22054_v49, %v22053_v50 }
 0x167   :  { %18646 = vmatprep.mubr.msk.f32.mxu1 %vm202_vm0, %v23401_v14  ;;  %18649 = vmatprep.subr.msk.mxu1 %vm209_vm1, %v1118_v36  ;;  %v22057_v51 = vpop.permute.xlu0 %22056  ;;  %v22062_v56 = vpop.permute.xlu1 %22061 }
 0x168   :  { %18640 = vmatpush3.msk.msra.mxu0 %vm209_vm1, %v955_v42  ;;  %18641 = vmatprep.mubr.msk.f32.mxu0 %vm202_vm0, %v23421_v18  ;;  %v22059_v54 = vunpack.i.h.bf16 %v22057_v51  ;;  %v22058_v55 = vunpack.i.l.bf16 %v22057_v51  ;;  %v22064_v60 = vunpack.i.h.bf16 %v22062_v56  ;;  %v22063_v61 = vunpack.i.l.bf16 %v22062_v56 }
 0x169   :  { %20804 = vmatprep.subr.bf16.mxu0 %v26103_v47  ;;  %18647 = vmatmul.mubr.msk.f32.vlgmr.msra.gmra.mrb[4].mxu1 %vm202_vm0, %v23412_v17 }
 0x16a   :  { %18650 = vmatpush3.msk.msra.mxu1 %vm209_vm1, %v1118_v36  ;;  %18651 = vmatprep.mubr.msk.f32.mxu1 %vm202_vm0, %v23421_v18  ;;  %v23570_v59 = vpack.c.bf16 %v22059_v54, %v22058_v55  ;;  %v23581_v1 = vpack.c.bf16 %v22064_v60, %v22063_v61 }
 0x16b   :  { %20792 = vmatprep.subr.bf16.mxu1 %v26103_v47  ;;  %v22067_v3 = vpop.permute.xlu0 %22066  ;;  %v22072_v6 = vpop.permute.xlu1 %22071 }
 0x16c   :  { %v22069_v4 = vunpack.i.h.bf16 %v22067_v3  ;;  %v22068_v5 = vunpack.i.l.bf16 %v22067_v3  ;;  %v22074_v10 = vunpack.i.h.bf16 %v22072_v6  ;;  %v22073_v11 = vunpack.i.l.bf16 %v22072_v6 }
 0x16e   :  { %18642 = vmatmul.mubr.msk.f32.vlgmr.msra.gmra.mrb[4].mxu0 %vm202_vm0, %v23437_v21  ;;  %v23610_v7 = vpack.c.bf16 %v22069_v4, %v22068_v5  ;;  %v23615_v12 = vpack.c.bf16 %v22074_v10, %v22073_v11 }
 0x16f   :  { %20806 = vmatpush3.bf16.msra.mxu0 %v23549_v48  ;;  %18684 = vmatprep.mubr.msk.f32.mxu0 %vm23126_vm2, %v26101_v52  ;;  %v537_v35 = vpop.permute.xlu0 %536  ;;  %v23649_v42 = vpop.permute.xlu1 %1301 }
 0x170   :  { %20807 = vmatprep.subr.bf16.mxu0 %v26103_v47 }
 0x171   :  { %18652 = vmatmul.mubr.msk.f32.vlgmr.msra.gmra.mrb[4].mxu1 %vm202_vm0, %v23437_v21 }
 0x172   :  { %20794 = vmatpush3.bf16.msra.mxu1 %v23379_v8  ;;  %18662 = vmatprep.mubr.msk.f32.mxu1 %vm23126_vm2, %v26101_v52 }
 0x173   :  { %20795 = vmatprep.subr.bf16.mxu1 %v26103_v47  ;;  %20809 = vmatpush3.bf16.msra.mxu0 %v23559_v53  ;;  %v23651_v45 = vpop.permute.xlu0 %1386  ;;  %v700_v56 = vpop.permute.xlu1 %699 }
 0x174   :  { %20816 = vmatprep.subr.bf16.mxu0 %v26103_v47 }
 0x176   :  { %20797 = vmatpush3.bf16.msra.mxu1 %v23381_v9  ;;  %18685 = vmatmul.mubr.f32.vlgmr.msra.gmra.mrb[6].mxu0 %v26101_v52 }
 0x177   :  { %20798 = vmatprep.subr.bf16.mxu1 %v26103_v47  ;;  %20818 = vmatpush3.bf16.msra.mxu0 %v23570_v59  ;;  %v23660_v60 = vpop.permute.xlu0 %1592  ;;  %v1034_v5 = vpop.permute.xlu1 %1033 }
 0x178   :  { %20819 = vmatprep.subr.bf16.mxu0 %v26103_v47  ;;  %18706 = vmatprep.mubr.msk.f32.mxu0 %vm23126_vm2, %v26101_v52 }
 0x179   :  { %18663 = vmatmul.mubr.f32.vlgmr.msra.gmra.mrb[6].mxu1 %v26101_v52 }
 0x17a   :  { %20800 = vmatpush3.bf16.msra.mxu1 %v23574_v62  ;;  %18673 = vmatprep.mubr.msk.f32.mxu1 %vm23126_vm2, %v26101_v52 }
 0x17b   :  { %20801 = vmatprep.subr.bf16.mxu1 %v26103_v47  ;;  %20821 = vmatpush3.bf16.msra.mxu0 %v23581_v1 }
 0x17c   :  { %20828 = vmatprep.subr.bf16.mxu0 %v26103_v47 }
 0x17e   :  { %20803 = vmatpush3.bf16.msra.mxu1 %v23588_v2  ;;  %18707 = vmatmul.mubr.f32.vlgmr.msra.gmra.mrb[8].mxu0 %v26101_v52 }
 0x17f   :  { %20810 = vmatprep.subr.bf16.mxu1 %v26103_v47  ;;  %20830 = vmatpush3.bf16.msra.mxu0 %v23379_v8 }
 0x180   :  { %20831 = vmatprep.subr.bf16.mxu0 %v26103_v47  ;;  %18728 = vmatprep.mubr.msk.f32.mxu0 %vm23126_vm2, %v26101_v52 }
 0x181   :  { %18674 = vmatmul.mubr.f32.vlgmr.msra.gmra.mrb[8].mxu1 %v26101_v52 }
 0x182   :  { %20812 = vmatpush3.bf16.msra.mxu1 %v23403_v15  ;;  %18695 = vmatprep.mubr.msk.f32.mxu1 %vm23126_vm2, %v26101_v52 }
 0x183   :  { %20813 = vmatprep.subr.bf16.mxu1 %v26103_v47  ;;  %20833 = vmatpush3.bf16.msra.mxu0 %v23381_v9 }
 0x184   :  { %20840 = vmatprep.subr.bf16.mxu0 %v26103_v47 }
 0x186   :  { %20815 = vmatpush3.bf16.msra.mxu1 %v23405_v16 }
 0x187   :  { %20822 = vmatprep.subr.bf16.mxu1 %v26103_v47 }
 0x189   :  { %18696 = vmatmul.mubr.f32.vlgmr.msra.gmra.mrb[10].mxu1 %v26101_v52 }
 0x18a   :  { %20824 = vmatpush3.bf16.msra.mxu1 %v23610_v7  ;;  %18717 = vmatprep.mubr.msk.f32.mxu1 %vm23126_vm2, %v26101_v52 }
 0x18b   :  { %20825 = vmatprep.subr.bf16.mxu1 %v26103_v47 }
 0x18e   :  { %20827 = vmatpush3.bf16.msra.mxu1 %v23615_v12 }
 0x18f   :  { %20834 = vmatprep.subr.bf16.mxu1 %v26103_v47 }
 0x191   :  { %18718 = vmatmul.mubr.f32.vlgmr.msra.gmra.mrb[12].mxu1 %v26101_v52 }
 0x192   :  { %20836 = vmatpush3.bf16.msra.mxu1 %v23574_v62  ;;  %18739 = vmatprep.mubr.msk.f32.mxu1 %vm23126_vm2, %v26101_v52 }
 0x193   :  { %20837 = vmatprep.subr.bf16.mxu1 %v26103_v47 }
 0x196   :  { %20839 = vmatpush3.bf16.msra.mxu1 %v23588_v2 }
 0x197   :  { %20846 = vmatprep.subr.bf16.mxu1 %v26103_v47 }
 0x1be   :  { %v18603_v13 = vpop.f32.mrb[0].mxu0 }
 0x1bf   :  { %v361_v14 = vpop.f32.mrb[1].mxu0  ;;  %v23641_v36 = vadd.f32 %v18603_v13, %v23458_v24 }
 0x1c0   :  { %v23644_v37 = vadd.f32 %v23458_v24, %v361_v14 }
 0x22c   :  { %v18613_v17 = vpop.f32.mrb[0].mxu1 }
 0x22d   :  { %v527_v18 = vpop.f32.mrb[1].mxu1  ;;  %v23653_v24 = vadd.f32 %v18613_v17, %v537_v35 }
 0x22e   :  { %v23655_v51 = vadd.f32 %v537_v35, %v527_v18 }
 0x235   :  { %v23630_v19 = vpop.f32.mrb[2].mxu0 }
 0x236   :  { %v23632_v20 = vpop.f32.mrb[3].mxu0 }
 0x238   :  { %v18633_v21 = vpop.f32.mrb[2].mxu1 }
 0x239   :  { %v858_v22 = vpop.f32.mrb[3].mxu1  ;;  %v23667_v18 = vadd.f32 %v18633_v21, %v23483_v32 }
 0x241   :  { %v18643_v23 = vpop.f32.mrb[4].mxu0 }
 0x242   :  { %v1024_v25 = vpop.f32.mrb[5].mxu0 }
 0x243   :  { %v23664_v14 = vadd.f32 %v1034_v5, %v1024_v25 }
 0x244   :  { %v23634_v26 = vpop.f32.mrb[4].mxu1 }
 0x245   :  { %v23636_v30 = vpop.f32.mrb[5].mxu1 }
 0x249   :  { %v23638_v31 = vpop.f32.mrb[6].mxu0 }
 0x24a   :  { %v18686_v33 = vpop.f32.mrb[7].mxu0 }
 0x24b   :  { %v23670_v33 = vadd.f32 %v23483_v32, %v858_v22 }
 0x24c   :  { %v1276_v34 = vpop.f32.mrb[6].mxu1 }
 0x24d   :  { %v1277_v38 = vadd.f32 %v1276_v34, %v23462_v27  ;;  %v18664_v39 = vpop.f32.mrb[7].mxu1 }
 0x24f   :  { %v1459_v40 = vadd.f32 %v1277_v38, %v23644_v37  ;;  %v1480_v41 = vadd.f32 %v1277_v38, %v23641_v36  ;;  %v23672_v38 = vadd.f32 %v18643_v23, %v1034_v5 }
 0x251   :  { %v17254_v43 = vmul.f32 -1.442695, %v1459_v40  ;;  %v17256_v44 = vmul.f32 -1.442695, %v1480_v41  ;;  %v1661_v46 = vpop.f32.mrb[8].mxu0 }
 0x252   :  { %v18708_v49 = vpop.f32.mrb[9].mxu0  ;;  %v1662_v0 = vadd.f32 %v1661_v46, %v23660_v60 }
 0x253   :  { %22195 = vpow2.f32 %v17254_v43 }
 0x254   :  { %22197 = vpow2.f32 %v17256_v44  ;;  %v1370_v50 = vpop.f32.mrb[8].mxu1  ;;  %v1761_v17 = vrot.slane %v1662_v0, 1  ;;  %v23684_v0 = vadd.f32 %v23630_v19, %v700_v56 }
 0x255   :  { %v1371_v54 = vadd.f32 %v1370_v50, %v23649_v42  ;;  %v18675_v55 = vpop.f32.mrb[9].mxu1 }
 0x256   :  { %v1763_v25 = vadd.f32 %v1761_v17, %v23664_v14  ;;  %v1787_v46 = vadd.f32 %v1761_v17, %v23672_v38 }
 0x257   :  { %v1466_v57 = vadd.f32 %v1371_v54, %v23655_v51  ;;  %v1487_v58 = vadd.f32 %v1371_v54, %v23653_v24  ;;  %v1456_v54 = vadd.f32 %v23638_v31, %v23651_v45 }
 0x258   :  { %v17259_v49 = vmul.f32 -1.442695, %v1763_v25  ;;  %v17261_v55 = vmul.f32 -1.442695, %v1787_v46 }
 0x259   :  { %v17255_v61 = vmul.f32 -1.442695, %v1466_v57  ;;  %v17257_v63 = vmul.f32 -1.442695, %v1487_v58 }
 0x25b   :  { %22199 = vpow2.f32 %v17255_v61  ;;  %v23681_v61 = vadd.f32 %v700_v56, %v23632_v20  ;;  %v23688_v20 = vpop.permute.xlu0 %1677 }
 0x25c   :  { %22201 = vpow2.f32 %v17257_v63  ;;  %v1567_v3 = vpop.f32.mrb[10].mxu1 }
 0x25d   :  { %v22196_v4 = vpop.eup %22195  ;;  %v1568_v6 = vadd.f32 %v1567_v3, %v23469_v29  ;;  %v18697_v10 = vpop.f32.mrb[11].mxu1 }
 0x25e   :  { %v22198_v11 = vpop.eup %22197  ;;  %v1463_v13 = vadd.f32 1.0, %v22196_v4 }
 0x25f   :  { %v1484_v34 = vadd.f32 1.0, %v22198_v11  ;;  %v1751_v35 = vrot.slane %v1568_v6, 1 }
 0x260   :  { %22203 = vrcp.f32 %v1463_v13 }
 0x261   :  { %22205 = vrcp.f32 %v1484_v34  ;;  %v1753_v39 = vadd.f32 %v1751_v35, %v23670_v33  ;;  %v1780_v40 = vadd.f32 %v1751_v35, %v23667_v18 }
 0x263   :  { %v17258_v41 = vmul.f32 -1.442695, %v1753_v39  ;;  %v17260_v43 = vmul.f32 -1.442695, %v1780_v40 }
 0x264   :  { %v1746_v44 = vpop.f32.mrb[12].mxu1 }
 0x265   :  { %v22200_v21 = vpop.eup %22199  ;;  %22207 = vpow2.f32 %v17258_v41  ;;  %v18719_v32 = vpop.f32.mrb[13].mxu1  ;;  %v1747_v56 = vadd.f32 %v1746_v44, %v23688_v20 }
 0x266   :  { %v22202_v22 = vpop.eup %22201  ;;  %22209 = vpow2.f32 %v17260_v43  ;;  %v1470_v50 = vadd.f32 1.0, %v22200_v21  ;;  %v1197_v21 = vpop.permute.xlu1 %1196 }
 0x267   :  { %v1491_v23 = vadd.f32 1.0, %v22202_v22  ;;  %22211 = vpow2.f32 %v17259_v49  ;;  %v1771_v25 = vrot.slane %v1747_v56, 1  ;;  %v23694_v44 = vadd.f32 %v1197_v21, %v23636_v30 }
 0x268   :  { %22213 = vrcp.f32 %v1470_v50 }
 0x269   :  { %22215 = vrcp.f32 %v1491_v23 }
 0x26a   :  { %v22204_v57 = vpop.eup %22203  ;;  %22217 = vpow2.f32 %v17261_v55 }
 0x26b   :  { %v22206_v58 = vpop.eup %22205  ;;  %v1473_v63 = vmul.f32 %v22204_v57, %v1456_v54 }
 0x26c   :  { %v1494_v3 = vmul.f32 %v22206_v58, %v1456_v54 }
 0x26d   :  { %v1474_v4 = vadd.f32 %v1473_v63, %v23681_v61  ;;  %v23699_v63 = vadd.f32 %v23634_v26, %v1197_v21 }
 0x26e   :  { %v1495_v5 = vadd.f32 %v1494_v3, %v23684_v0 }
 0x26f   :  { %v22208_v31 = vpop.eup %22207  ;;  %22219 = vtanh.f32 %v1474_v4 }
 0x270   :  { %v22210_v6 = vpop.eup %22209  ;;  %22221 = vtanh.f32 %v1495_v5  ;;  %v1757_v10 = vadd.f32 1.0, %v22208_v31 }
 0x271   :  { %v1784_v11 = vadd.f32 1.0, %v22210_v6  ;;  %v22212_v13 = vpop.eup %22211 }
 0x272   :  { %22223 = vrcp.f32 %v1757_v10  ;;  %v22214_v19 = vpop.eup %22213  ;;  %v1767_v40 = vadd.f32 1.0, %v22212_v13 }
 0x273   :  { %22225 = vrcp.f32 %v1784_v11  ;;  %v22216_v17 = vpop.eup %22215  ;;  %v1476_v35 = vsub.f32 1.0, %v22214_v19  ;;  %v1478_v22 = vmul.f32 0.0, %v22214_v19 }
 0x274   :  { %v22218_v34 = vpop.eup %22217  ;;  %v1497_v41 = vsub.f32 1.0, %v22216_v17  ;;  %v1499_v50 = vmul.f32 0.0, %v22216_v17  ;;  %22227 = vrcp.f32 %v1767_v40 }
 0x275   :  { %v1791_v46 = vadd.f32 1.0, %v22218_v34 }
 0x277   :  { %22229 = vrcp.f32 %v1791_v46 }
 0x279   :  { %v22220_v39 = vpop.eup %22219 }
 0x27a   :  { %v22222_v43 = vpop.eup %22221  ;;  %v1477_v32 = vmul.f32 %v22220_v39, %v1476_v35 }
 0x27b   :  { %v1498_v49 = vmul.f32 %v22222_v43, %v1497_v41 }
 0x27c   :  { %v22224_v23 = vpop.eup %22223  ;;  %v23691_v54 = vadd.f32 %v1478_v22, %v1477_v32 }
 0x27d   :  { %v22226_v55 = vpop.eup %22225  ;;  %v1773_v57 = vmul.f32 %v22224_v23, %v1771_v25  ;;  %v23696_v58 = vadd.f32 %v1499_v50, %v1498_v49 }
 0x27e   :  { %v1794_v3 = vmul.f32 %v22226_v55, %v1771_v25  ;;  %18729 = vmatmul.mubr.msk.f32.vlgmr.msra.gmra.mrb[10].mxu0 %vm1206_vm3, %v23691_v54  ;;  %18740 = vmatmul.mubr.msk.f32.vlgmr.msra.gmra.mrb[14].mxu1 %vm1206_vm3, %v23691_v54  ;;  %v22228_v26 = vpop.eup %22227 }
 0x27f   :  { %v1774_v4 = vadd.f32 %v1773_v57, %v23694_v44  ;;  %20842 = vmatpush3.bf16.msra.mxu0 %v23549_v48  ;;  %20848 = vmatpush3.bf16.msra.mxu1 %v23379_v8  ;;  %v1776_v31 = vsub.f32 1.0, %v22228_v26  ;;  %v1778_v13 = vmul.f32 0.0, %v22228_v26 }
 0x280   :  { %v1795_v30 = vadd.f32 %v1794_v3, %v23699_v63  ;;  %20843 = vmatprep.subr.bf16.mxu0 %v26103_v47  ;;  %20849 = vmatprep.subr.bf16.mxu1 %v26103_v47 }
 0x281   :  { %22231 = vtanh.f32 %v1774_v4  ;;  %18750 = vmatprep.mubr.msk.f32.mxu0 %vm23126_vm2, %v26101_v52  ;;  %18761 = vmatprep.mubr.msk.f32.mxu1 %vm23126_vm2, %v26101_v52  ;;  %v22230_v5 = vpop.eup %22229 }
 0x282   :  { %22233 = vtanh.f32 %v1795_v30  ;;  %v1797_v10 = vsub.f32 1.0, %v22230_v5  ;;  %v1799_v56 = vmul.f32 0.0, %v22230_v5 }
 0x283   :  { %20845 = vmatpush3.bf16.msra.mxu0 %v23559_v53  ;;  %20851 = vmatpush3.bf16.msra.mxu1 %v23381_v9 }
 0x284   :  { %20852 = vmatprep.subr.bf16.mxu0 %v26103_v47  ;;  %20858 = vmatprep.subr.bf16.mxu1 %v26103_v47 }
 0x286   :  { %18751 = vmatmul.mubr.msk.f32.vlgmr.msra.gmra.mrb[12].mxu0 %vm1206_vm3, %v23691_v54  ;;  %18762 = vmatmul.mubr.msk.f32.vlgmr.msra.gmra.mrb[16].mxu1 %vm1206_vm3, %v23696_v58 }
 0x287   :  { %20854 = vmatpush3.bf16.msra.mxu0 %v23574_v62  ;;  %20860 = vmatpush3.bf16.msra.mxu1 %v23549_v48 }
 0x288   :  { %20855 = vmatprep.subr.bf16.mxu0 %v26103_v47  ;;  %20861 = vmatprep.subr.bf16.mxu1 %v26103_v47 }
 0x289   :  { %18772 = vmatprep.mubr.msk.f32.mxu0 %vm23126_vm2, %v26101_v52  ;;  %18783 = vmatprep.mubr.msk.f32.mxu1 %vm23126_vm2, %v26101_v52 }
 0x28b   :  { %v22232_v6 = vpop.eup %22231  ;;  %20857 = vmatpush3.bf16.msra.mxu0 %v23588_v2  ;;  %20863 = vmatpush3.bf16.msra.mxu1 %v23559_v53 }
 0x28c   :  { %v22234_v11 = vpop.eup %22233  ;;  %v1777_v19 = vmul.f32 %v22232_v6, %v1776_v31  ;;  %20864 = vmatprep.subr.bf16.mxu0 %v26103_v47  ;;  %20870 = vmatprep.subr.bf16.mxu1 %v26103_v47 }
 0x28d   :  { %v1798_v17 = vmul.f32 %v22234_v11, %v1797_v10 }
 0x28e   :  { %18773 = vmatmul.mubr.msk.f32.vlgmr.msra.gmra.mrb[14].mxu0 %vm1206_vm3, %v23696_v58  ;;  %18784 = vmatmul.mubr.msk.f32.vlgmr.msra.gmra.mrb[18].mxu1 %vm1206_vm3, %v23696_v58  ;;  %v23739_v34 = vadd.f32 %v1778_v13, %v1777_v19 }
 0x28f   :  { %20866 = vmatpush3.bf16.msra.mxu0 %v23403_v15  ;;  %20872 = vmatpush3.bf16.msra.mxu1 %v23570_v59  ;;  %v23743_v35 = vadd.f32 %v1799_v56, %v1798_v17 }
 0x290   :  { %20867 = vmatprep.subr.bf16.mxu0 %v26103_v47  ;;  %20873 = vmatprep.subr.bf16.mxu1 %v26103_v47  ;;  %v2292_v39 = vrot.slane %v23739_v34, 7 }
 0x291   :  { %26148 = vst [vmem:[#allocation28_spill] sm:$0xff] %v23743_v35  ;;  %18794 = vmatprep.mubr.msk.f32.mxu0 %vm23126_vm2, %v26101_v52  ;;  %18805 = vmatprep.mubr.msk.f32.mxu1 %vm23126_vm2, %v26101_v52  ;;  %v2538_v40 = vrot.slane %v23743_v35, 7 }
 0x293   :  { %20869 = vmatpush3.bf16.msra.mxu0 %v23405_v16  ;;  %20875 = vmatpush3.bf16.msra.mxu1 %v23581_v1 }
 0x294   :  { %20876 = vmatprep.subr.bf16.mxu0 %v26103_v47  ;;  %20882 = vmatprep.subr.bf16.mxu1 %v26103_v47 }
 0x296   :  { %18795 = vmatmul.mubr.msk.f32.vlgmr.msra.gmra.mrb[16].mxu0 %vm1206_vm3, %v2292_v39  ;;  %18806 = vmatmul.mubr.msk.f32.vlgmr.msra.gmra.mrb[20].mxu1 %vm1206_vm3, %v2292_v39 }
 0x297   :  { %20878 = vmatpush3.bf16.msra.mxu0 %v23610_v7  ;;  %20884 = vmatpush3.bf16.msra.mxu1 %v23403_v15 }
 0x298   :  { %20879 = vmatprep.subr.bf16.mxu0 %v26103_v47  ;;  %20885 = vmatprep.subr.bf16.mxu1 %v26103_v47 }
 0x299   :  { %18816 = vmatprep.mubr.msk.f32.mxu0 %vm23126_vm2, %v26101_v52  ;;  %18827 = vmatprep.mubr.msk.f32.mxu1 %vm23126_vm2, %v26101_v52 }
 0x29b   :  { %20881 = vmatpush3.bf16.msra.mxu0 %v23615_v12  ;;  %20887 = vmatpush3.bf16.msra.mxu1 %v23405_v16 }
 0x29c   :  { %20888 = vmatprep.subr.bf16.mxu0 %v26103_v47  ;;  %20894 = vmatprep.subr.bf16.mxu1 %v26103_v47 }
 0x29e   :  { %18817 = vmatmul.mubr.msk.f32.vlgmr.msra.gmra.mrb[18].mxu0 %vm1206_vm3, %v2292_v39  ;;  %18828 = vmatmul.mubr.msk.f32.vlgmr.msra.gmra.mrb[22].mxu1 %vm1206_vm3, %v2538_v40 }
 0x29f   :  { %20890 = vmatpush3.bf16.msra.mxu0 %v23570_v59  ;;  %20896 = vmatpush3.bf16.msra.mxu1 %v23610_v7 }
 0x2a0   :  { %20891 = vmatprep.subr.bf16.mxu0 %v26103_v47  ;;  %20897 = vmatprep.subr.bf16.mxu1 %v26103_v47 }
 0x2a1   :  { %18838 = vmatprep.mubr.msk.f32.mxu0 %vm23126_vm2, %v26101_v52  ;;  %18849 = vmatprep.mubr.msk.f32.mxu1 %vm23126_vm2, %v26101_v52 }
 0x2a3   :  { %20893 = vmatpush3.bf16.msra.mxu0 %v23581_v1  ;;  %20899 = vmatpush3.bf16.msra.mxu1 %v23615_v12 }
 0x2a4   :  { %20906 = vmatprep.subr.bf16.mxu1 %v26103_v47  ;;  %20900 = vmatprep.subr.bf16.mxu0 %v26103_v47 }
 0x2a6   :  { %18839 = vmatmul.mubr.msk.f32.vlgmr.msra.gmra.mrb[20].mxu0 %vm1206_vm3, %v2538_v40  ;;  %18850 = vmatmul.mubr.msk.f32.vlgmr.msra.gmra.mrb[24].mxu1 %vm1206_vm3, %v2538_v40 }
 0x2a7   :  { %20908 = vmatpush3.bf16.msra.mxu1 %v23574_v62  ;;  %20902 = vmatpush3.bf16.msra.mxu0 %v23379_v8 }
 0x2a8   :  { %20909 = vmatprep.subr.bf16.mxu1 %v26103_v47  ;;  %20903 = vmatprep.subr.bf16.mxu0 %v26103_v47 }
 0x2a9   :  { %18860 = vmatprep.mubr.msk.f32.mxu0 %vm23126_vm2, %v26101_v52  ;;  %18871 = vmatprep.mubr.msk.f32.mxu1 %vm23126_vm2, %v26101_v52 }
 0x2ab   :  { %20911 = vmatpush3.bf16.msra.mxu1 %v23588_v2  ;;  %20905 = vmatpush3.bf16.msra.mxu0 %v23381_v9 }
 0x2ac   :  { %20912 = vmatprep.subr.bf16.mxu0 %v26103_v47  ;;  %20918 = vmatprep.subr.bf16.mxu1 %v26103_v47 }
 0x351   :  { %v1870_v25 = vpop.f32.mrb[10].mxu0  ;;  %v1940_v41 = vpop.f32.mrb[14].mxu1 }
 0x352   :  { %v1871_v43 = vadd.f32 %v1870_v25, %v23462_v27  ;;  %v1941_v21 = vadd.f32 %v1940_v41, %v23649_v42  ;;  %v18730_v46 = vpop.f32.mrb[11].mxu0  ;;  %v18741_v32 = vpop.f32.mrb[15].mxu1 }
 0x354   :  { %v2015_v22 = vrot.slane %v1871_v43, 7  ;;  %v2025_v49 = vrot.slane %v1941_v21, 7 }
 0x356   :  { %v2017_v50 = vadd.f32 %v2015_v22, %v23644_v37  ;;  %v2027_v55 = vadd.f32 %v2025_v49, %v23655_v51 }
 0x358   :  { %v17265_v23 = vmul.f32 -1.442695, %v2017_v50  ;;  %v17266_v5 = vmul.f32 -1.442695, %v2027_v55 }
 0x359   :  { %v2010_v57 = vpop.f32.mrb[12].mxu0  ;;  %v2115_v3 = vpop.f32.mrb[16].mxu1 }
 0x35a   :  { %22235 = vpow2.f32 %v17265_v23  ;;  %v2116_v4 = vadd.f32 %v2115_v3, %v23462_v27  ;;  %v18752_v30 = vpop.f32.mrb[13].mxu0  ;;  %v18763_v26 = vpop.f32.mrb[17].mxu1  ;;  %v2011_v55 = vadd.f32 %v2010_v57, %v23651_v45 }
 0x35b   :  { %22237 = vpow2.f32 %v17266_v5 }
 0x35c   :  { %v2260_v31 = vrot.slane %v2116_v4, 7 }
 0x35e   :  { %v2262_v6 = vadd.f32 %v2260_v31, %v23641_v36  ;;  %v2035_v31 = vrot.slane %v2011_v55, 7 }
 0x360   :  { %v17270_v10 = vmul.f32 -1.442695, %v2262_v6 }
 0x361   :  { %v2185_v11 = vpop.f32.mrb[14].mxu0  ;;  %v2255_v13 = vpop.f32.mrb[18].mxu1 }
 0x362   :  { %22239 = vpow2.f32 %v17270_v10  ;;  %v2186_v19 = vadd.f32 %v2185_v11, %v23649_v42  ;;  %v18774_v56 = vpop.f32.mrb[15].mxu0  ;;  %v18785_v17 = vpop.f32.mrb[19].mxu1 }
 0x364   :  { %v22236_v39 = vpop.eup %22235  ;;  %v2270_v40 = vrot.slane %v2186_v19, 7 }
 0x365   :  { %v2021_v25 = vadd.f32 1.0, %v22236_v39  ;;  %v22238_v46 = vpop.eup %22237 }
 0x366   :  { %v2272_v27 = vadd.f32 %v2270_v40, %v23653_v24  ;;  %v2031_v30 = vadd.f32 1.0, %v22238_v46 }
 0x367   :  { %22241 = vrcp.f32 %v2021_v25 }
 0x368   :  { %v17271_v41 = vmul.f32 -1.442695, %v2272_v27 }
 0x369   :  { %v2361_v43 = vpop.f32.mrb[16].mxu0  ;;  %v2431_v21 = vpop.f32.mrb[20].mxu1 }
 0x36a   :  { %22243 = vpow2.f32 %v17271_v41  ;;  %v2362_v32 = vadd.f32 %v2361_v43, %v23469_v29  ;;  %v2432_v22 = vadd.f32 %v2431_v21, %v23660_v60  ;;  %v18796_v49 = vpop.f32.mrb[17].mxu0  ;;  %v18807_v50 = vpop.f32.mrb[21].mxu1  ;;  %v2256_v41 = vadd.f32 %v2255_v13, %v23651_v45 }
 0x36c   :  { %v22240_v23 = vpop.eup %22239  ;;  %v2506_v3 = vrot.slane %v2362_v32, 2  ;;  %v2516_v4 = vrot.slane %v2432_v22, 2  ;;  %v2280_v22 = vrot.slane %v2256_v41, 7 }
 0x36d   :  { %v2266_v26 = vadd.f32 1.0, %v22240_v23 }
 0x36e   :  { %v2508_v5 = vadd.f32 %v2506_v3, %v23670_v33  ;;  %v2518_v10 = vadd.f32 %v2516_v4, %v23664_v14 }
 0x36f   :  { %22245 = vrcp.f32 %v2266_v26 }
 0x370   :  { %v17275_v6 = vmul.f32 -1.442695, %v2508_v5  ;;  %22247 = vrcp.f32 %v2031_v30  ;;  %v17276_v43 = vmul.f32 -1.442695, %v2518_v10 }
 0x371   :  { %v22242_v11 = vpop.eup %22241  ;;  %v2501_v19 = vpop.f32.mrb[18].mxu0 }
 0x372   :  { %v2607_v56 = vpop.f32.mrb[22].mxu1  ;;  %v2037_v17 = vmul.f32 %v22242_v11, %v2035_v31  ;;  %22249 = vpow2.f32 %v17275_v6  ;;  %v18818_v57 = vpop.f32.mrb[19].mxu0 }
 0x373   :  { %v2608_v39 = vadd.f32 %v2607_v56, %v23469_v29  ;;  %v18829_v40 = vpop.f32.mrb[23].mxu1  ;;  %v2042_v56 = vrot.slane %v23691_v54, 7 }
 0x374   :  { %v22244_v25 = vpop.eup %22243  ;;  %v2038_v27 = vadd.f32 %v2037_v17, %v23681_v61 }
 0x375   :  { %v2752_v21 = vrot.slane %v2608_v39, 2  ;;  %v2276_v46 = vadd.f32 1.0, %v22244_v25 }
 0x376   :  { %22251 = vtanh.f32 %v2038_v27 }
 0x377   :  { %v2754_v32 = vadd.f32 %v2752_v21, %v23667_v18  ;;  %22253 = vpow2.f32 %v17276_v43  ;;  %v2502_v21 = vadd.f32 %v2501_v19, %v23688_v20 }
 0x378   :  { %22255 = vrcp.f32 %v2276_v46 }
 0x379   :  { %v17280_v49 = vmul.f32 -1.442695, %v2754_v32  ;;  %v22246_v50 = vpop.eup %22245  ;;  %v2677_v23 = vpop.f32.mrb[20].mxu0 }
 0x37a   :  { %v2747_v29 = vpop.f32.mrb[24].mxu1  ;;  %v2282_v55 = vmul.f32 %v22246_v50, %v2280_v22  ;;  %v2678_v3 = vadd.f32 %v2677_v23, %v23660_v60  ;;  %v18840_v4 = vpop.f32.mrb[21].mxu0  ;;  %v2287_v50 = vrot.slane %v23696_v58, 7 }
 0x37b   :  { %22257 = vpow2.f32 %v17280_v49  ;;  %v18851_v30 = vpop.f32.mrb[25].mxu1  ;;  %v22248_v13 = vpop.eup %22247 }
 0x37c   :  { %v22250_v26 = vpop.eup %22249  ;;  %v2283_v5 = vadd.f32 %v2282_v55, %v23684_v0  ;;  %v2762_v31 = vrot.slane %v2678_v3, 2  ;;  %v2040_v11 = vsub.f32 1.0, %v22248_v13  ;;  %v2044_v57 = vmul.f32 %v22248_v13, %v2042_v56 }
 0x37d   :  { %v2512_v6 = vadd.f32 1.0, %v22250_v26  ;;  %v2526_v55 = vrot.slane %v2502_v21, 2 }
 0x37e   :  { %22259 = vtanh.f32 %v2283_v5  ;;  %v2764_v10 = vadd.f32 %v2762_v31, %v23672_v38  ;;  %v2748_v31 = vadd.f32 %v2747_v29, %v23688_v20 }
 0x37f   :  { %22261 = vrcp.f32 %v2512_v6 }
 0x380   :  { %v22252_v17 = vpop.eup %22251  ;;  %v17281_v39 = vmul.f32 -1.442695, %v2764_v10 }
 0x381   :  { %v2041_v40 = vmul.f32 %v22252_v17, %v2040_v11  ;;  %v22254_v25 = vpop.eup %22253  ;;  %v2772_v11 = vrot.slane %v2748_v31, 2 }
 0x382   :  { %22263 = vpow2.f32 %v17281_v39  ;;  %v22256_v27 = vpop.eup %22255  ;;  %v2522_v22 = vadd.f32 1.0, %v22254_v25 }
 0x383   :  { %v23820_v41 = vadd.f32 %v2044_v57, %v2041_v40  ;;  %v2285_v49 = vsub.f32 1.0, %v22256_v27  ;;  %v2289_v19 = vmul.f32 %v22256_v27, %v2287_v50  ;;  %v2533_v40 = vrot.slane %v23739_v34, 1 }
 0x385   :  { %v22258_v43 = vpop.eup %22257  ;;  %v2784_v32 = vrot.slane %v23820_v41, 1 }
 0x386   :  { %v2758_v46 = vadd.f32 1.0, %v22258_v43 }
 0x387   :  { %18861 = vmatmul.mubr.msk.f32.vlgmr.msra.gmra.mrb[22].mxu0 %vm1206_vm3, %v2784_v32  ;;  %18872 = vmatmul.mubr.msk.f32.vlgmr.msra.gmra.mrb[26].mxu1 %vm1206_vm3, %v2784_v32 }
 0x388   :  { %22265 = vrcp.f32 %v2758_v46  ;;  %v22260_v23 = vpop.eup %22259  ;;  %20914 = vmatpush3.bf16.msra.mxu0 %v23549_v48  ;;  %20920 = vmatpush3.bf16.msra.mxu1 %v23379_v8 }
 0x389   :  { %v22262_v3 = vpop.eup %22261  ;;  %v2286_v4 = vmul.f32 %v22260_v23, %v2285_v49  ;;  %20915 = vmatprep.subr.bf16.mxu0 %v26103_v47  ;;  %20921 = vmatprep.subr.bf16.mxu1 %v26103_v47  ;;  %22267 = vrcp.f32 %v2522_v22  ;;  %v2779_v49 = vrot.slane %v23743_v35, 1 }
 0x38a   :  { %v2528_v30 = vmul.f32 %v22262_v3, %v2526_v55  ;;  %18882 = vmatprep.mubr.msk.f32.mxu0 %vm23126_vm2, %v26101_v52  ;;  %18893 = vmatprep.mubr.msk.f32.mxu1 %vm23126_vm2, %v26101_v52 }
 0x38b   :  { %v23835_v13 = vadd.f32 %v2289_v19, %v2286_v4 }
 0x38c   :  { %v22264_v26 = vpop.eup %22263  ;;  %v2529_v5 = vadd.f32 %v2528_v30, %v23694_v44  ;;  %20917 = vmatpush3.bf16.msra.mxu0 %v23559_v53  ;;  %20923 = vmatpush3.bf16.msra.mxu1 %v23381_v9 }
 0x38d   :  { %v3030_v6 = vrot.slane %v23835_v13, 1  ;;  %20924 = vmatprep.subr.bf16.mxu0 %v26103_v47  ;;  %20930 = vmatprep.subr.bf16.mxu1 %v26103_v47  ;;  %v2768_v10 = vadd.f32 1.0, %v22264_v26  ;;  %v23923_v26 = vld [vmem:[#allocation7] sm:$0x1] }
 0x38e   :  { %22269 = vtanh.f32 %v2529_v5 }
 0x38f   :  { %18883 = vmatmul.mubr.msk.f32.vlgmr.msra.gmra.mrb[24].mxu0 %vm1206_vm3, %v2784_v32  ;;  %18894 = vmatmul.mubr.msk.f32.vlgmr.msra.gmra.mrb[28].mxu1 %vm1206_vm3, %v3030_v6  ;;  %22271 = vrcp.f32 %v2768_v10 }
 0x390   :  { %20926 = vmatpush3.bf16.msra.mxu0 %v23574_v62  ;;  %20932 = vmatpush3.bf16.msra.mxu1 %v23549_v48 }
 0x391   :  { %20927 = vmatprep.subr.bf16.mxu0 %v26103_v47  ;;  %20933 = vmatprep.subr.bf16.mxu1 %v26103_v47 }
 0x392   :  { %v22266_v29 = vpop.eup %22265  ;;  %18904 = vmatprep.mubr.msk.f32.mxu0 %vm23126_vm2, %v26101_v52  ;;  %18915 = vmatprep.mubr.msk.f32.mxu1 %vm23126_vm2, %v26101_v52 }
 0x393   :  { %v2774_v56 = vmul.f32 %v22266_v29, %v2772_v11  ;;  %v22268_v17 = vpop.eup %22267 }
 0x394   :  { %20929 = vmatpush3.bf16.msra.mxu0 %v23588_v2  ;;  %20935 = vmatpush3.bf16.msra.mxu1 %v23559_v53  ;;  %v2531_v57 = vsub.f32 1.0, %v22268_v17  ;;  %v2535_v27 = vmul.f32 %v22268_v17, %v2533_v40 }
 0x395   :  { %v2775_v39 = vadd.f32 %v2774_v56, %v23699_v63  ;;  %20936 = vmatprep.subr.bf16.mxu0 %v26103_v47  ;;  %20942 = vmatprep.subr.bf16.mxu1 %v26103_v47 }
 0x397   :  { %22273 = vtanh.f32 %v2775_v39  ;;  %18905 = vmatmul.mubr.msk.f32.vlgmr.msra.gmra.mrb[26].mxu0 %vm1206_vm3, %v3030_v6  ;;  %18916 = vmatmul.mubr.msk.f32.vlgmr.msra.gmra.mrb[30].mxu1 %vm1206_vm3, %v3030_v6 }
 0x398   :  { %v22270_v25 = vpop.eup %22269  ;;  %20938 = vmatpush3.bf16.msra.mxu0 %v23403_v15  ;;  %20944 = vmatpush3.bf16.msra.mxu1 %v23570_v59 }
 0x399   :  { %v2532_v43 = vmul.f32 %v22270_v25, %v2531_v57  ;;  %20939 = vmatprep.subr.bf16.mxu0 %v26103_v47  ;;  %20945 = vmatprep.subr.bf16.mxu1 %v26103_v47  ;;  %v22272_v46 = vpop.eup %22271 }
 0x39a   :  { %18926 = vmatprep.mubr.msk.f32.mxu0 %vm23126_vm2, %v26101_v52  ;;  %18937 = vmatprep.mubr.msk.f32.mxu1 %vm23126_vm2, %v26101_v52  ;;  %v2777_v22 = vsub.f32 1.0, %v22272_v46  ;;  %v2781_v23 = vmul.f32 %v22272_v46, %v2779_v49 }
 0x39b   :  { %v23870_v21 = vadd.f32 %v2535_v27, %v2532_v43 }
 0x39c   :  { %20941 = vmatpush3.bf16.msra.mxu0 %v23405_v16  ;;  %20947 = vmatpush3.bf16.msra.mxu1 %v23581_v1 }
 0x39d   :  { %v3276_v32 = vrot.slane %v23870_v21, 6  ;;  %20948 = vmatprep.subr.bf16.mxu0 %v26103_v47  ;;  %20954 = vmatprep.subr.bf16.mxu1 %v26103_v47 }
 0x39f   :  { %18927 = vmatmul.mubr.msk.f32.vlgmr.msra.gmra.mrb[28].mxu0 %vm1206_vm3, %v3276_v32  ;;  %18938 = vmatmul.mubr.msk.f32.vlgmr.msra.gmra.mrb[32].mxu1 %vm1206_vm3, %v3276_v32 }
 0x3a0   :  { %20950 = vmatpush3.bf16.msra.mxu0 %v23610_v7  ;;  %20956 = vmatpush3.bf16.msra.mxu1 %v23403_v15 }
 0x3a1   :  { %v22274_v50 = vpop.eup %22273  ;;  %20951 = vmatprep.subr.bf16.mxu0 %v26103_v47  ;;  %20957 = vmatprep.subr.bf16.mxu1 %v26103_v47 }
 0x3a2   :  { %v2778_v55 = vmul.f32 %v22274_v50, %v2777_v22  ;;  %18948 = vmatprep.mubr.msk.f32.mxu0 %vm23126_vm2, %v26101_v52  ;;  %18959 = vmatprep.mubr.msk.f32.mxu1 %vm23126_vm2, %v26101_v52 }
 0x3a4   :  { %v23888_v3 = vadd.f32 %v2781_v23, %v2778_v55  ;;  %20953 = vmatpush3.bf16.msra.mxu0 %v23615_v12  ;;  %20959 = vmatpush3.bf16.msra.mxu1 %v23405_v16 }
 0x3a5   :  { %20960 = vmatprep.subr.bf16.mxu0 %v26103_v47  ;;  %20966 = vmatprep.subr.bf16.mxu1 %v26103_v47 }
 0x3a6   :  { %26149 = vst [vmem:[#allocation29_spill] sm:$0xff] %v23888_v3  ;;  %v3522_v19 = vrot.slane %v23888_v3, 6 }
 0x3a7   :  { %18949 = vmatmul.mubr.msk.f32.vlgmr.msra.gmra.mrb[30].mxu0 %vm1206_vm3, %v3276_v32 }
 0x3a8   :  { %18960 = vmatmul.mubr.msk.f32.vlgmr.msra.gmra.mrb[34].mxu1 %vm1206_vm3, %v3522_v19  ;;  %20962 = vmatpush3.bf16.msra.mxu0 %v23570_v59 }
 0x3a9   :  { %20968 = vmatpush3.bf16.msra.mxu1 %v23610_v7  ;;  %20963 = vmatprep.subr.bf16.mxu0 %v26103_v47 }
 0x3aa   :  { %20969 = vmatprep.subr.bf16.mxu1 %v26103_v47  ;;  %18970 = vmatprep.mubr.msk.f32.mxu0 %vm23126_vm2, %v26101_v52 }
 0x3ab   :  { %18981 = vmatprep.mubr.msk.f32.mxu1 %vm23126_vm2, %v26101_v52 }
 0x3ac   :  { %20965 = vmatpush3.bf16.msra.mxu0 %v23581_v1 }
 0x3ad   :  { %20971 = vmatpush3.bf16.msra.mxu1 %v23615_v12  ;;  %20972 = vmatprep.subr.bf16.mxu0 %v26103_v47 }
 0x3ae   :  { %20978 = vmatprep.subr.bf16.mxu1 %v26103_v47 }
 0x3af   :  { %18971 = vmatmul.mubr.msk.f32.vlgmr.msra.gmra.mrb[32].mxu0 %vm1206_vm3, %v3522_v19 }
 0x3b0   :  { %18982 = vmatmul.mubr.msk.f32.vlgmr.msra.gmra.mrb[36].mxu1 %vm1206_vm3, %v3522_v19  ;;  %20974 = vmatpush3.bf16.msra.mxu0 %v23379_v8 }
 0x3b1   :  { %20980 = vmatpush3.bf16.msra.mxu1 %v23574_v62  ;;  %20975 = vmatprep.subr.bf16.mxu0 %v26103_v47 }
 0x3b2   :  { %20981 = vmatprep.subr.bf16.mxu1 %v26103_v47  ;;  %18992 = vmatprep.mubr.msk.f32.mxu0 %vm23126_vm2, %v26101_v52 }
 0x3b3   :  { %19003 = vmatprep.mubr.msk.f32.mxu1 %vm23126_vm2, %v26101_v52 }
 0x3b4   :  { %20977 = vmatpush3.bf16.msra.mxu0 %v23381_v9 }
 0x3b5   :  { %20983 = vmatpush3.bf16.msra.mxu1 %v23588_v2  ;;  %20984 = vmatprep.subr.bf16.mxu0 %v26103_v47 }
 0x3b6   :  { %20990 = vmatprep.subr.bf16.mxu1 %v26103_v47 }
 0x45a   :  { %v2853_v4 = vpop.f32.mrb[22].mxu0  ;;  %v2923_v30 = vpop.f32.mrb[26].mxu1 }
 0x45b   :  { %v2854_v5 = vadd.f32 %v23923_v26, %v2853_v4  ;;  %v2924_v31 = vadd.f32 %v2923_v30, %v23649_v42  ;;  %v18862_v6 = vpop.f32.mrb[23].mxu0  ;;  %v18873_v10 = vpop.f32.mrb[27].mxu1 }
 0x45d   :  { %v2998_v11 = vrot.slane %v2854_v5, 6  ;;  %v3008_v29 = vrot.slane %v2924_v31, 6 }
 0x45f   :  { %v3000_v56 = vadd.f32 %v2998_v11, %v23644_v37  ;;  %v3010_v17 = vadd.f32 %v3008_v29, %v23655_v51 }
 0x461   :  { %v17285_v39 = vmul.f32 -1.442695, %v3000_v56  ;;  %v17286_v57 = vmul.f32 -1.442695, %v3010_v17 }
 0x462   :  { %v2993_v40 = vpop.f32.mrb[24].mxu0  ;;  %v3099_v25 = vpop.f32.mrb[28].mxu1 }
 0x463   :  { %22275 = vpow2.f32 %v17285_v39  ;;  %v3100_v27 = vadd.f32 %v23923_v26, %v3099_v25  ;;  %v18884_v43 = vpop.f32.mrb[25].mxu0  ;;  %v18895_v46 = vpop.f32.mrb[29].mxu1  ;;  %v23936_v39 = vld [vmem:[%s26079_s9] sm:$0x1] }
 0x464   :  { %22277 = vpow2.f32 %v17286_v57 }
 0x465   :  { %v3244_v32 = vrot.slane %v3100_v27, 6 }
 0x467   :  { %v3246_v22 = vadd.f32 %v3244_v32, %v23641_v36  ;;  %v2994_v32 = vadd.f32 %v2993_v40, %v23651_v45 }
 0x469   :  { %v17290_v49 = vmul.f32 -1.442695, %v3246_v22 }
 0x46a   :  { %v3169_v50 = vpop.f32.mrb[26].mxu0  ;;  %v3239_v23 = vpop.f32.mrb[30].mxu1 }
 0x46b   :  { %22279 = vpow2.f32 %v17290_v49  ;;  %v3170_v55 = vadd.f32 %v3169_v50, %v23649_v42  ;;  %v18906_v19 = vpop.f32.mrb[27].mxu0  ;;  %v18917_v4 = vpop.f32.mrb[31].mxu1 }
 0x46c   :  { %v3018_v19 = vrot.slane %v2994_v32, 6 }
 0x46d   :  { %v22276_v30 = vpop.eup %22275  ;;  %v3254_v5 = vrot.slane %v3170_v55, 6 }
 0x46e   :  { %v22278_v31 = vpop.eup %22277  ;;  %v3004_v6 = vadd.f32 1.0, %v22276_v30 }
 0x46f   :  { %v3014_v10 = vadd.f32 1.0, %v22278_v31  ;;  %v3256_v11 = vadd.f32 %v3254_v5, %v23653_v24  ;;  %v3025_v5 = vrot.slane %v23820_v41, 7 }
 0x470   :  { %22281 = vrcp.f32 %v3004_v6 }
 0x471   :  { %22283 = vrcp.f32 %v3014_v10  ;;  %v17291_v29 = vmul.f32 -1.442695, %v3256_v11 }
 0x472   :  { %v3345_v56 = vpop.f32.mrb[28].mxu0  ;;  %v3415_v17 = vpop.f32.mrb[32].mxu1 }
 0x473   :  { %22285 = vpow2.f32 %v17291_v29  ;;  %v3346_v57 = vadd.f32 %v23936_v39, %v3345_v56  ;;  %v3416_v25 = vadd.f32 %v3415_v17, %v23660_v60  ;;  %v18928_v27 = vpop.f32.mrb[29].mxu0  ;;  %v18939_v43 = vpop.f32.mrb[33].mxu1 }
 0x474   :  { %v3240_v43 = vadd.f32 %v3239_v23, %v23651_v45 }
 0x475   :  { %v22280_v46 = vpop.eup %22279  ;;  %v3490_v22 = vrot.slane %v3346_v57, 3  ;;  %v3500_v50 = vrot.slane %v3416_v25, 3 }
 0x476   :  { %v3250_v49 = vadd.f32 1.0, %v22280_v46 }
 0x477   :  { %v3492_v55 = vadd.f32 %v3490_v22, %v23670_v33  ;;  %v3502_v31 = vadd.f32 %v3500_v50, %v23664_v14  ;;  %v3264_v50 = vrot.slane %v3240_v43, 6 }
 0x478   :  { %22287 = vrcp.f32 %v3250_v49 }
 0x479   :  { %v17295_v4 = vmul.f32 -1.442695, %v3492_v55  ;;  %v17296_v22 = vmul.f32 -1.442695, %v3502_v31 }
 0x47a   :  { %v22282_v30 = vpop.eup %22281  ;;  %v3485_v6 = vpop.f32.mrb[30].mxu0 }
 0x47b   :  { %v3591_v10 = vpop.f32.mrb[34].mxu1  ;;  %v22284_v11 = vpop.eup %22283  ;;  %v3020_v29 = vmul.f32 %v22282_v30, %v3018_v19  ;;  %22289 = vpow2.f32 %v17295_v4 }
 0x47c   :  { %v3592_v40 = vadd.f32 %v23936_v39, %v3591_v10  ;;  %v18950_v56 = vpop.f32.mrb[31].mxu0  ;;  %v18961_v17 = vpop.f32.mrb[35].mxu1  ;;  %v3027_v57 = vmul.f32 %v22284_v11, %v3025_v5 }
 0x47d   :  { %v22286_v25 = vpop.eup %22285  ;;  %v3021_v27 = vadd.f32 %v3020_v29, %v23681_v61 }
 0x47e   :  { %v3736_v46 = vrot.slane %v3592_v40, 3  ;;  %v3260_v32 = vadd.f32 1.0, %v22286_v25 }
 0x47f   :  { %22291 = vtanh.f32 %v3021_v27  ;;  %v3023_v27 = vsub.f32 1.0, %v22284_v11  ;;  %v8668_v11 = vsel %vm8667_vm4, %v23691_v54, %v23820_v41 }
 0x480   :  { %v3738_v49 = vadd.f32 %v3736_v46, %v23667_v18  ;;  %22293 = vrcp.f32 %v3260_v32  ;;  %v3271_v46 = vrot.slane %v23835_v13, 7 }
 0x481   :  { %22295 = vpow2.f32 %v17296_v22 }
 0x482   :  { %v17300_v55 = vmul.f32 -1.442695, %v3738_v49  ;;  %v22288_v19 = vpop.eup %22287  ;;  %v3661_v4 = vpop.f32.mrb[32].mxu0 }
 0x483   :  { %v3731_v30 = vpop.f32.mrb[36].mxu1  ;;  %v3266_v10 = vmul.f32 %v22288_v19, %v3264_v50  ;;  %v3662_v5 = vadd.f32 %v3661_v4, %v23660_v60  ;;  %v18972_v29 = vpop.f32.mrb[33].mxu0 }
 0x484   :  { %22297 = vpow2.f32 %v17300_v55  ;;  %v18983_v56 = vpop.f32.mrb[37].mxu1 }
 0x485   :  { %v22290_v23 = vpop.eup %22289  ;;  %v3267_v40 = vadd.f32 %v3266_v10, %v23684_v0  ;;  %v3746_v31 = vrot.slane %v3662_v5, 3  ;;  %v3486_v10 = vadd.f32 %v3485_v6, %v23688_v20 }
 0x486   :  { %v3496_v17 = vadd.f32 1.0, %v22290_v23 }
 0x487   :  { %22299 = vtanh.f32 %v3267_v40  ;;  %v3748_v25 = vadd.f32 %v3746_v31, %v23672_v38  ;;  %v3510_v6 = vrot.slane %v3486_v10, 3  ;;  %v3517_v10 = vrot.slane %v23870_v21, 1 }
 0x488   :  { %22301 = vrcp.f32 %v3496_v17 }
 0x489   :  { %v22292_v43 = vpop.eup %22291  ;;  %v17301_v32 = vmul.f32 -1.442695, %v3748_v25 }
 0x48a   :  { %v22294_v22 = vpop.eup %22293  ;;  %v3024_v49 = vmul.f32 %v22292_v43, %v3023_v27  ;;  %v3732_v43 = vadd.f32 %v3731_v30, %v23688_v20 }
 0x48b   :  { %v3273_v50 = vmul.f32 %v22294_v22, %v3271_v46  ;;  %22303 = vpow2.f32 %v17301_v32  ;;  %v22296_v55 = vpop.eup %22295  ;;  %v3269_v40 = vsub.f32 1.0, %v22294_v22  ;;  %v8680_v46 = vsel %vm8667_vm4, %v23696_v58, %v23835_v13 }
 0x48c   :  { %v23952_v19 = vadd.f32 %v3027_v57, %v3024_v49  ;;  %v3506_v23 = vadd.f32 1.0, %v22296_v55  ;;  %v3756_v49 = vrot.slane %v3732_v43, 3 }
 0x48e   :  { %v22298_v4 = vpop.eup %22297  ;;  %v3768_v29 = vrot.slane %v23952_v19, 2  ;;  %v23961_v56 = vsel %vm8669_vm5, %v8668_v11, %v23952_v19 }
 0x48f   :  { %v3742_v5 = vadd.f32 1.0, %v22298_v4 }
 0x490   :  { %18993 = vmatmul.mubr.msk.f32.vlgmr.msra.gmra.mrb[34].mxu0 %vm1206_vm3, %v3768_v29  ;;  %19004 = vmatmul.mubr.msk.f32.vlgmr.msra.gmra.mrb[38].mxu1 %vm1206_vm3, %v3768_v29 }
 0x491   :  { %22305 = vrcp.f32 %v3742_v5  ;;  %v22300_v57 = vpop.eup %22299  ;;  %20986 = vmatpush3.bf16.msra.mxu0 %v23549_v48  ;;  %20992 = vmatpush3.bf16.msra.mxu1 %v23379_v8 }
 0x492   :  { %v22302_v54 = vpop.eup %22301  ;;  %v3270_v41 = vmul.f32 %v22300_v57, %v3269_v40  ;;  %20987 = vmatprep.subr.bf16.mxu0 %v26103_v47  ;;  %20993 = vmatprep.subr.bf16.mxu1 %v26103_v47  ;;  %22307 = vrcp.f32 %v3506_v23 }
 0x493   :  { %v3512_v31 = vmul.f32 %v22302_v54, %v3510_v6  ;;  %19014 = vmatprep.mubr.msk.f32.mxu0 %vm23126_vm2, %v26101_v52  ;;  %19025 = vmatprep.mubr.msk.f32.mxu1 %vm23126_vm2, %v26101_v52  ;;  %v3763_v54 = vrot.slane %v23888_v3, 1 }
 0x494   :  { %v23973_v17 = vadd.f32 %v3273_v50, %v3270_v41 }
 0x495   :  { %v22304_v25 = vpop.eup %22303  ;;  %v3513_v27 = vadd.f32 %v3512_v31, %v23694_v44  ;;  %20989 = vmatpush3.bf16.msra.mxu0 %v23559_v53  ;;  %20995 = vmatpush3.bf16.msra.mxu1 %v23381_v9 }
 0x496   :  { %v4014_v32 = vrot.slane %v23973_v17, 2  ;;  %20996 = vmatprep.subr.bf16.mxu0 %v26103_v47  ;;  %21002 = vmatprep.subr.bf16.mxu1 %v26103_v47  ;;  %v23987_v22 = vsel %vm8669_vm5, %v8680_v46, %v23973_v17  ;;  %v3752_v30 = vadd.f32 1.0, %v22304_v25 }
 0x497   :  { %22309 = vtanh.f32 %v3513_v27 }
 0x498   :  { %19015 = vmatmul.mubr.msk.f32.vlgmr.msra.gmra.mrb[36].mxu0 %vm1206_vm3, %v3768_v29  ;;  %19026 = vmatmul.mubr.msk.f32.vlgmr.msra.gmra.mrb[40].mxu1 %vm1206_vm3, %v4014_v32  ;;  %22311 = vrcp.f32 %v3752_v30 }
 0x499   :  { %20998 = vmatpush3.bf16.msra.mxu0 %v23574_v62  ;;  %21004 = vmatpush3.bf16.msra.mxu1 %v23549_v48 }
 0x49a   :  { %20999 = vmatprep.subr.bf16.mxu0 %v26103_v47  ;;  %21005 = vmatprep.subr.bf16.mxu1 %v26103_v47 }
 0x49b   :  { %v22306_v58 = vpop.eup %22305  ;;  %19036 = vmatprep.mubr.msk.f32.mxu0 %vm23126_vm2, %v26101_v52  ;;  %19047 = vmatprep.mubr.msk.f32.mxu1 %vm23126_vm2, %v26101_v52 }
 0x49c   :  { %v3758_v13 = vmul.f32 %v22306_v58, %v3756_v49  ;;  %v22308_v50 = vpop.eup %22307 }
 0x49d   :  { %21001 = vmatpush3.bf16.msra.mxu0 %v23588_v2  ;;  %21007 = vmatpush3.bf16.msra.mxu1 %v23559_v53  ;;  %v3515_v4 = vsub.f32 1.0, %v22308_v50  ;;  %v3519_v5 = vmul.f32 %v22308_v50, %v3517_v10 }
 0x49e   :  { %v3759_v55 = vadd.f32 %v3758_v13, %v23699_v63  ;;  %21008 = vmatprep.subr.bf16.mxu0 %v26103_v47  ;;  %21014 = vmatprep.subr.bf16.mxu1 %v26103_v47 }
 0x4a0   :  { %22313 = vtanh.f32 %v3759_v55  ;;  %19037 = vmatmul.mubr.msk.f32.vlgmr.msra.gmra.mrb[38].mxu0 %vm1206_vm3, %v4014_v32  ;;  %19048 = vmatmul.mubr.msk.f32.vlgmr.msra.gmra.mrb[42].mxu1 %vm1206_vm3, %v4014_v32 }
 0x4a1   :  { %v22310_v11 = vpop.eup %22309  ;;  %21010 = vmatpush3.bf16.msra.mxu0 %v23403_v15  ;;  %21016 = vmatpush3.bf16.msra.mxu1 %v23570_v59 }
 0x4a2   :  { %v3516_v29 = vmul.f32 %v22310_v11, %v3515_v4  ;;  %21011 = vmatprep.subr.bf16.mxu0 %v26103_v47  ;;  %21017 = vmatprep.subr.bf16.mxu1 %v26103_v47  ;;  %v22312_v40 = vpop.eup %22311 }
 0x4a3   :  { %19058 = vmatprep.mubr.msk.f32.mxu0 %vm23126_vm2, %v26101_v52  ;;  %19069 = vmatprep.mubr.msk.f32.mxu1 %vm23126_vm2, %v26101_v52  ;;  %v3761_v6 = vsub.f32 1.0, %v22312_v40  ;;  %v3765_v31 = vmul.f32 %v22312_v40, %v3763_v54 }
 0x4a4   :  { %v24015_v23 = vadd.f32 %v3519_v5, %v3516_v29 }
 0x4a5   :  { %21013 = vmatpush3.bf16.msra.mxu0 %v23405_v16  ;;  %21019 = vmatpush3.bf16.msra.mxu1 %v23581_v1 }
 0x4a6   :  { %v4260_v57 = vrot.slane %v24015_v23, 5  ;;  %21020 = vmatprep.subr.bf16.mxu0 %v26103_v47  ;;  %21026 = vmatprep.subr.bf16.mxu1 %v26103_v47 }
 0x4a8   :  { %19059 = vmatmul.mubr.msk.f32.vlgmr.msra.gmra.mrb[40].mxu0 %vm1206_vm3, %v4260_v57  ;;  %19070 = vmatmul.mubr.msk.f32.vlgmr.msra.gmra.mrb[44].mxu1 %vm1206_vm3, %v4260_v57 }
 0x4a9   :  { %21022 = vmatpush3.bf16.msra.mxu0 %v23610_v7  ;;  %21028 = vmatpush3.bf16.msra.mxu1 %v23403_v15 }
 0x4aa   :  { %v22314_v41 = vpop.eup %22313  ;;  %21023 = vmatprep.subr.bf16.mxu0 %v26103_v47  ;;  %21029 = vmatprep.subr.bf16.mxu1 %v26103_v47 }
 0x4ab   :  { %v3762_v25 = vmul.f32 %v22314_v41, %v3761_v6  ;;  %19080 = vmatprep.mubr.msk.f32.mxu0 %vm23126_vm2, %v26101_v52  ;;  %19091 = vmatprep.mubr.msk.f32.mxu1 %vm23126_vm2, %v26101_v52 }
 0x4ad   :  { %v24033_v27 = vadd.f32 %v3765_v31, %v3762_v25  ;;  %21025 = vmatpush3.bf16.msra.mxu0 %v23615_v12  ;;  %21031 = vmatpush3.bf16.msra.mxu1 %v23405_v16 }
 0x4ae   :  { %21032 = vmatprep.subr.bf16.mxu0 %v26103_v47  ;;  %21038 = vmatprep.subr.bf16.mxu1 %v26103_v47 }
 0x4af   :  { %26150 = vst [vmem:[#allocation30_spill] sm:$0xff] %v24033_v27  ;;  %v4506_v43 = vrot.slane %v24033_v27, 5 }
 0x4b0   :  { %19081 = vmatmul.mubr.msk.f32.vlgmr.msra.gmra.mrb[42].mxu0 %vm1206_vm3, %v4260_v57 }
 0x4b1   :  { %19092 = vmatmul.mubr.msk.f32.vlgmr.msra.gmra.mrb[46].mxu1 %vm1206_vm3, %v4506_v43  ;;  %21034 = vmatpush3.bf16.msra.mxu0 %v23570_v59 }
 0x4b2   :  { %21040 = vmatpush3.bf16.msra.mxu1 %v23610_v7  ;;  %21035 = vmatprep.subr.bf16.mxu0 %v26103_v47 }
 0x4b3   :  { %21041 = vmatprep.subr.bf16.mxu1 %v26103_v47  ;;  %19102 = vmatprep.mubr.msk.f32.mxu0 %vm23126_vm2, %v26101_v52 }
 0x4b4   :  { %19113 = vmatprep.mubr.msk.f32.mxu1 %vm23126_vm2, %v26101_v52 }
 0x4b5   :  { %21037 = vmatpush3.bf16.msra.mxu0 %v23581_v1 }
 0x4b6   :  { %21043 = vmatpush3.bf16.msra.mxu1 %v23615_v12  ;;  %21044 = vmatprep.subr.bf16.mxu0 %v26103_v47 }
 0x4b7   :  { %21050 = vmatprep.subr.bf16.mxu1 %v26103_v47 }
 0x4b8   :  { %19103 = vmatmul.mubr.msk.f32.vlgmr.msra.gmra.mrb[44].mxu0 %vm1206_vm3, %v4506_v43 }
 0x4b9   :  { %19114 = vmatmul.mubr.msk.f32.vlgmr.msra.gmra.mrb[48].mxu1 %vm1206_vm3, %v4506_v43  ;;  %21046 = vmatpush3.bf16.msra.mxu0 %v23379_v8 }
 0x4ba   :  { %21052 = vmatpush3.bf16.msra.mxu1 %v23574_v62  ;;  %21047 = vmatprep.subr.bf16.mxu0 %v26103_v47 }
 0x4bb   :  { %21053 = vmatprep.subr.bf16.mxu1 %v26103_v47  ;;  %19124 = vmatprep.mubr.msk.f32.mxu0 %vm23126_vm2, %v26101_v52 }
 0x4bc   :  { %19135 = vmatprep.mubr.msk.f32.mxu1 %vm23126_vm2, %v26101_v52 }
 0x4bd   :  { %21049 = vmatpush3.bf16.msra.mxu0 %v23381_v9 }
 0x4be   :  { %21055 = vmatpush3.bf16.msra.mxu1 %v23588_v2  ;;  %21056 = vmatprep.subr.bf16.mxu0 %v26103_v47 }
 0x4bf   :  { %21062 = vmatprep.subr.bf16.mxu1 %v26103_v47 }
 0x563   :  { %v3837_v46 = vpop.f32.mrb[34].mxu0  ;;  %v3907_v32 = vpop.f32.mrb[38].mxu1 }
 0x564   :  { %v3838_v30 = vadd.f32 %v23923_v26, %v3837_v46  ;;  %v3908_v49 = vadd.f32 %v3907_v32, %v23649_v42  ;;  %v18994_v58 = vpop.f32.mrb[35].mxu0  ;;  %v19005_v13 = vpop.f32.mrb[39].mxu1 }
 0x566   :  { %v3982_v50 = vrot.slane %v3838_v30, 5  ;;  %v3992_v55 = vrot.slane %v3908_v49, 5 }
 0x568   :  { %v3984_v4 = vadd.f32 %v3982_v50, %v23644_v37  ;;  %v3994_v10 = vadd.f32 %v3992_v55, %v23655_v51 }
 0x56a   :  { %v17305_v11 = vmul.f32 -1.442695, %v3984_v4  ;;  %v17306_v5 = vmul.f32 -1.442695, %v3994_v10 }
 0x56b   :  { %v3977_v29 = vpop.f32.mrb[36].mxu0  ;;  %v4083_v40 = vpop.f32.mrb[40].mxu1 }
 0x56c   :  { %22315 = vpow2.f32 %v17305_v11  ;;  %v4084_v57 = vadd.f32 %v23923_v26, %v4083_v40  ;;  %v19016_v6 = vpop.f32.mrb[37].mxu0  ;;  %v19027_v54 = vpop.f32.mrb[41].mxu1 }
 0x56d   :  { %22317 = vpow2.f32 %v17306_v5 }
 0x56e   :  { %v4228_v41 = vrot.slane %v4084_v57, 5 }
 0x570   :  { %v4230_v31 = vadd.f32 %v4228_v41, %v23641_v36 }
 0x572   :  { %v17310_v25 = vmul.f32 -1.442695, %v4230_v31 }
 0x573   :  { %v4153_v43 = vpop.f32.mrb[38].mxu0  ;;  %v4223_v46 = vpop.f32.mrb[42].mxu1 }
 0x574   :  { %22319 = vpow2.f32 %v17310_v25  ;;  %v4154_v32 = vadd.f32 %v4153_v43, %v23649_v42  ;;  %v19038_v30 = vpop.f32.mrb[39].mxu0  ;;  %v19049_v49 = vpop.f32.mrb[43].mxu1  ;;  %v3978_v25 = vadd.f32 %v3977_v29, %v23651_v45 }
 0x576   :  { %v22316_v58 = vpop.eup %22315  ;;  %v4238_v13 = vrot.slane %v4154_v32, 5 }
 0x577   :  { %v22318_v50 = vpop.eup %22317  ;;  %v3988_v55 = vadd.f32 1.0, %v22316_v58  ;;  %v4002_v58 = vrot.slane %v3978_v25, 5  ;;  %v4224_v25 = vadd.f32 %v4223_v46, %v23651_v45 }
 0x578   :  { %v3998_v4 = vadd.f32 1.0, %v22318_v50  ;;  %v4240_v10 = vadd.f32 %v4238_v13, %v23653_v24 }
 0x579   :  { %22321 = vrcp.f32 %v3988_v55  ;;  %v4009_v55 = vrot.slane %v23952_v19, 7 }
 0x57a   :  { %22323 = vrcp.f32 %v3998_v4  ;;  %v17311_v11 = vmul.f32 -1.442695, %v4240_v10 }
 0x57b   :  { %v4329_v5 = vpop.f32.mrb[40].mxu0  ;;  %v4399_v40 = vpop.f32.mrb[44].mxu1 }
 0x57c   :  { %22325 = vpow2.f32 %v17311_v11  ;;  %v4330_v57 = vadd.f32 %v23936_v39, %v4329_v5  ;;  %v4400_v6 = vadd.f32 %v4399_v40, %v23660_v60  ;;  %v19060_v54 = vpop.f32.mrb[41].mxu0  ;;  %v19071_v41 = vpop.f32.mrb[45].mxu1 }
 0x57e   :  { %v22320_v31 = vpop.eup %22319  ;;  %v4474_v43 = vrot.slane %v4330_v57, 4  ;;  %v4484_v30 = vrot.slane %v4400_v6, 4 }
 0x57f   :  { %v4234_v32 = vadd.f32 1.0, %v22320_v31 }
 0x580   :  { %v4476_v49 = vadd.f32 %v4474_v43, %v23670_v33  ;;  %v4486_v4 = vadd.f32 %v4484_v30, %v23664_v14 }
 0x581   :  { %22327 = vrcp.f32 %v4234_v32 }
 0x582   :  { %v17315_v13 = vmul.f32 -1.442695, %v4476_v49  ;;  %v17316_v19 = vmul.f32 -1.442695, %v4486_v4  ;;  %v4248_v49 = vrot.slane %v4224_v25, 5 }
 0x583   :  { %v22322_v50 = vpop.eup %22321  ;;  %v4469_v10 = vpop.f32.mrb[42].mxu0 }
 0x584   :  { %v4575_v11 = vpop.f32.mrb[46].mxu1  ;;  %v22324_v5 = vpop.eup %22323  ;;  %v4004_v40 = vmul.f32 %v22322_v50, %v4002_v58  ;;  %22329 = vpow2.f32 %v17315_v13 }
 0x585   :  { %v4576_v29 = vadd.f32 %v23936_v39, %v4575_v11  ;;  %v19082_v57 = vpop.f32.mrb[43].mxu0  ;;  %v19093_v54 = vpop.f32.mrb[47].mxu1  ;;  %v4011_v6 = vmul.f32 %v22324_v5, %v4009_v55  ;;  %v4007_v25 = vsub.f32 1.0, %v22324_v5 }
 0x586   :  { %v22326_v41 = vpop.eup %22325  ;;  %v4005_v31 = vadd.f32 %v4004_v40, %v23681_v61 }
 0x587   :  { %v4720_v43 = vrot.slane %v4576_v29, 4  ;;  %v4244_v32 = vadd.f32 1.0, %v22326_v41 }
 0x588   :  { %22331 = vtanh.f32 %v4005_v31 }
 0x589   :  { %v4722_v30 = vadd.f32 %v4720_v43, %v23667_v18  ;;  %22333 = vrcp.f32 %v4244_v32  ;;  %v4255_v32 = vrot.slane %v23973_v17, 7 }
 0x58a   :  { %22335 = vpow2.f32 %v17316_v19 }
 0x58b   :  { %v17320_v58 = vmul.f32 -1.442695, %v4722_v30  ;;  %v22328_v13 = vpop.eup %22327  ;;  %v4645_v50 = vpop.f32.mrb[44].mxu0 }
 0x58c   :  { %v4715_v11 = vpop.f32.mrb[48].mxu1  ;;  %v4250_v57 = vmul.f32 %v22328_v13, %v4248_v49  ;;  %v4646_v55 = vadd.f32 %v4645_v50, %v23660_v60  ;;  %v19104_v40 = vpop.f32.mrb[45].mxu0 }
 0x58d   :  { %22337 = vpow2.f32 %v17320_v58  ;;  %v19115_v54 = vpop.f32.mrb[49].mxu1 }
 0x58e   :  { %v22330_v46 = vpop.eup %22329  ;;  %v4251_v29 = vadd.f32 %v4250_v57, %v23684_v0  ;;  %v4730_v4 = vrot.slane %v4646_v55, 4  ;;  %v4470_v55 = vadd.f32 %v4469_v10, %v23688_v20 }
 0x58f   :  { %v4480_v41 = vadd.f32 1.0, %v22330_v46 }
 0x590   :  { %22339 = vtanh.f32 %v4251_v29  ;;  %v4732_v31 = vadd.f32 %v4730_v4, %v23672_v38  ;;  %v4494_v29 = vrot.slane %v4470_v55, 4  ;;  %v4501_v55 = vrot.slane %v24015_v23, 1 }
 0x591   :  { %22341 = vrcp.f32 %v4480_v41 }
 0x592   :  { %v22332_v43 = vpop.eup %22331  ;;  %v17321_v19 = vmul.f32 -1.442695, %v4732_v31 }
 0x593   :  { %v22334_v30 = vpop.eup %22333  ;;  %v4008_v49 = vmul.f32 %v22332_v43, %v4007_v25  ;;  %v4716_v43 = vadd.f32 %v4715_v11, %v23688_v20 }
 0x594   :  { %v4257_v58 = vmul.f32 %v22334_v30, %v4255_v32  ;;  %22343 = vpow2.f32 %v17321_v19  ;;  %v22336_v13 = vpop.eup %22335  ;;  %v4253_v46 = vsub.f32 1.0, %v22334_v30 }
 0x595   :  { %v24090_v50 = vadd.f32 %v4011_v6, %v4008_v49  ;;  %v4490_v17 = vadd.f32 1.0, %v22336_v13  ;;  %v4740_v11 = vrot.slane %v4716_v43, 4 }
 0x597   :  { %v22338_v57 = vpop.eup %22337  ;;  %v4752_v54 = vrot.slane %v24090_v50, 3  ;;  %v24097_v5 = vsel %vm8671_vm6, %v23961_v56, %v24090_v50 }
 0x598   :  { %v4726_v40 = vadd.f32 1.0, %v22338_v57 }
 0x599   :  { %19125 = vmatmul.mubr.msk.f32.vlgmr.msra.gmra.mrb[46].mxu0 %vm1206_vm3, %v4752_v54  ;;  %19136 = vmatmul.mubr.msk.f32.vlgmr.msra.gmra.mrb[50].mxu1 %vm1206_vm3, %v4752_v54 }
 0x59a   :  { %22345 = vrcp.f32 %v4726_v40  ;;  %v22340_v6 = vpop.eup %22339  ;;  %21058 = vmatpush3.bf16.msra.mxu0 %v23549_v48  ;;  %21064 = vmatpush3.bf16.msra.mxu1 %v23379_v8 }
 0x59b   :  { %v22342_v10 = vpop.eup %22341  ;;  %v4254_v4 = vmul.f32 %v22340_v6, %v4253_v46  ;;  %21059 = vmatprep.subr.bf16.mxu0 %v26103_v47  ;;  %21065 = vmatprep.subr.bf16.mxu1 %v26103_v47  ;;  %22347 = vrcp.f32 %v4490_v17 }
 0x59c   :  { %v4496_v56 = vmul.f32 %v22342_v10, %v4494_v29  ;;  %19146 = vmatprep.mubr.msk.f32.mxu0 %vm23126_vm2, %v26101_v52  ;;  %19157 = vmatprep.mubr.msk.f32.mxu1 %vm23126_vm2, %v26101_v52 }
 0x59d   :  { %v24109_v41 = vadd.f32 %v4257_v58, %v4254_v4  ;;  %v4747_v4 = vrot.slane %v24033_v27, 1 }
 0x59e   :  { %v22344_v31 = vpop.eup %22343  ;;  %v4497_v25 = vadd.f32 %v4496_v56, %v23694_v44  ;;  %21061 = vmatpush3.bf16.msra.mxu0 %v23559_v53  ;;  %21067 = vmatpush3.bf16.msra.mxu1 %v23381_v9 }
 0x59f   :  { %v4998_v32 = vrot.slane %v24109_v41, 3  ;;  %21068 = vmatprep.subr.bf16.mxu0 %v26103_v47  ;;  %21074 = vmatprep.subr.bf16.mxu1 %v26103_v47  ;;  %v24121_v19 = vsel %vm8671_vm6, %v23987_v22, %v24109_v41  ;;  %v4736_v30 = vadd.f32 1.0, %v22344_v31 }
 0x5a0   :  { %22349 = vtanh.f32 %v4497_v25 }
 0x5a1   :  { %19147 = vmatmul.mubr.msk.f32.vlgmr.msra.gmra.mrb[48].mxu0 %vm1206_vm3, %v4752_v54  ;;  %19158 = vmatmul.mubr.msk.f32.vlgmr.msra.gmra.mrb[52].mxu1 %vm1206_vm3, %v4998_v32  ;;  %22351 = vrcp.f32 %v4736_v30 }
 0x5a2   :  { %21070 = vmatpush3.bf16.msra.mxu0 %v23574_v62  ;;  %21076 = vmatpush3.bf16.msra.mxu1 %v23549_v48 }
 0x5a3   :  { %21071 = vmatprep.subr.bf16.mxu0 %v26103_v47  ;;  %21077 = vmatprep.subr.bf16.mxu1 %v26103_v47 }
 0x5a4   :  { %v22346_v49 = vpop.eup %22345  ;;  %19168 = vmatprep.mubr.msk.f32.mxu0 %vm23126_vm2, %v26101_v52  ;;  %19179 = vmatprep.mubr.msk.f32.mxu1 %vm23126_vm2, %v26101_v52 }
 0x5a5   :  { %v4742_v58 = vmul.f32 %v22346_v49, %v4740_v11  ;;  %v22348_v22 = vpop.eup %22347 }
 0x5a6   :  { %21073 = vmatpush3.bf16.msra.mxu0 %v23588_v2  ;;  %21079 = vmatpush3.bf16.msra.mxu1 %v23559_v53  ;;  %v4499_v57 = vsub.f32 1.0, %v22348_v22  ;;  %v4503_v54 = vmul.f32 %v22348_v22, %v4501_v55 }
 0x5a7   :  { %v4743_v13 = vadd.f32 %v4742_v58, %v23699_v63  ;;  %21080 = vmatprep.subr.bf16.mxu0 %v26103_v47  ;;  %21086 = vmatprep.subr.bf16.mxu1 %v26103_v47 }
 0x5a9   :  { %22353 = vtanh.f32 %v4743_v13  ;;  %19169 = vmatmul.mubr.msk.f32.vlgmr.msra.gmra.mrb[50].mxu0 %vm1206_vm3, %v4998_v32  ;;  %19180 = vmatmul.mubr.msk.f32.vlgmr.msra.gmra.mrb[54].mxu1 %vm1206_vm3, %v4998_v32 }
 0x5aa   :  { %v22350_v40 = vpop.eup %22349  ;;  %21082 = vmatpush3.bf16.msra.mxu0 %v23403_v15  ;;  %21088 = vmatpush3.bf16.msra.mxu1 %v23570_v59 }
 0x5ab   :  { %v4500_v17 = vmul.f32 %v22350_v40, %v4499_v57  ;;  %21083 = vmatprep.subr.bf16.mxu0 %v26103_v47  ;;  %21089 = vmatprep.subr.bf16.mxu1 %v26103_v47  ;;  %v22352_v6 = vpop.eup %22351 }
 0x5ac   :  { %19190 = vmatprep.mubr.msk.f32.mxu0 %vm23126_vm2, %v26101_v52  ;;  %19201 = vmatprep.mubr.msk.f32.mxu1 %vm23126_vm2, %v26101_v52  ;;  %v4745_v10 = vsub.f32 1.0, %v22352_v6  ;;  %v4749_v31 = vmul.f32 %v22352_v6, %v4747_v4 }
 0x5ad   :  { %v24149_v46 = vadd.f32 %v4503_v54, %v4500_v17 }
 0x5ae   :  { %21085 = vmatpush3.bf16.msra.mxu0 %v23405_v16  ;;  %21091 = vmatpush3.bf16.msra.mxu1 %v23581_v1 }
 0x5af   :  { %v5244_v29 = vrot.slane %v24149_v46, 4  ;;  %21092 = vmatprep.subr.bf16.mxu0 %v26103_v47  ;;  %21098 = vmatprep.subr.bf16.mxu1 %v26103_v47 }
 0x5b1   :  { %19191 = vmatmul.mubr.msk.f32.vlgmr.msra.gmra.mrb[52].mxu0 %vm1206_vm3, %v5244_v29  ;;  %19202 = vmatmul.mubr.msk.f32.vlgmr.msra.gmra.mrb[56].mxu1 %vm1206_vm3, %v5244_v29 }
 0x5b2   :  { %21094 = vmatpush3.bf16.msra.mxu0 %v23610_v7  ;;  %21100 = vmatpush3.bf16.msra.mxu1 %v23403_v15 }
 0x5b3   :  { %v22354_v56 = vpop.eup %22353  ;;  %21095 = vmatprep.subr.bf16.mxu0 %v26103_v47  ;;  %21101 = vmatprep.subr.bf16.mxu1 %v26103_v47 }
 0x5b4   :  { %v4746_v25 = vmul.f32 %v22354_v56, %v4745_v10  ;;  %19212 = vmatprep.mubr.msk.f32.mxu0 %vm23126_vm2, %v26101_v52  ;;  %19223 = vmatprep.mubr.msk.f32.mxu1 %vm23126_vm2, %v26101_v52 }
 0x5b6   :  { %v24167_v43 = vadd.f32 %v4749_v31, %v4746_v25  ;;  %21097 = vmatpush3.bf16.msra.mxu0 %v23615_v12  ;;  %21103 = vmatpush3.bf16.msra.mxu1 %v23405_v16 }
 0x5b7   :  { %21104 = vmatprep.subr.bf16.mxu0 %v26103_v47  ;;  %21110 = vmatprep.subr.bf16.mxu1 %v26103_v47 }
 0x5b8   :  { %26151 = vst [vmem:[#allocation31_spill] sm:$0xff] %v24167_v43  ;;  %v5490_v32 = vrot.slane %v24167_v43, 4 }
 0x5b9   :  { %19213 = vmatmul.mubr.msk.f32.vlgmr.msra.gmra.mrb[54].mxu0 %vm1206_vm3, %v5244_v29 }
 0x5ba   :  { %19224 = vmatmul.mubr.msk.f32.vlgmr.msra.gmra.mrb[58].mxu1 %vm1206_vm3, %v5490_v32  ;;  %21106 = vmatpush3.bf16.msra.mxu0 %v23570_v59 }
 0x5bb   :  { %21112 = vmatpush3.bf16.msra.mxu1 %v23610_v7  ;;  %21107 = vmatprep.subr.bf16.mxu0 %v26103_v47 }
 0x5bc   :  { %21113 = vmatprep.subr.bf16.mxu1 %v26103_v47  ;;  %19234 = vmatprep.mubr.msk.f32.mxu0 %vm23126_vm2, %v26101_v52 }
 0x5bd   :  { %19245 = vmatprep.mubr.msk.f32.mxu1 %vm23126_vm2, %v26101_v52 }
 0x5be   :  { %21109 = vmatpush3.bf16.msra.mxu0 %v23581_v1 }
 0x5bf   :  { %21115 = vmatpush3.bf16.msra.mxu1 %v23615_v12  ;;  %21116 = vmatprep.subr.bf16.mxu0 %v26103_v47 }
 0x5c0   :  { %21122 = vmatprep.subr.bf16.mxu1 %v26103_v47 }
 0x5c1   :  { %19235 = vmatmul.mubr.msk.f32.vlgmr.msra.gmra.mrb[56].mxu0 %vm1206_vm3, %v5490_v32 }
 0x5c2   :  { %19246 = vmatmul.mubr.msk.f32.vlgmr.msra.gmra.mrb[60].mxu1 %vm1206_vm3, %v5490_v32  ;;  %21118 = vmatpush3.bf16.msra.mxu0 %v23379_v8 }
 0x5c3   :  { %21124 = vmatpush3.bf16.msra.mxu1 %v23574_v62  ;;  %21119 = vmatprep.subr.bf16.mxu0 %v26103_v47 }
 0x5c4   :  { %21125 = vmatprep.subr.bf16.mxu1 %v26103_v47  ;;  %19256 = vmatprep.mubr.msk.f32.mxu0 %vm23126_vm2, %v26101_v52 }
 0x5c5   :  { %19267 = vmatprep.mubr.msk.f32.mxu1 %vm23126_vm2, %v26101_v52 }
 0x5c6   :  { %21121 = vmatpush3.bf16.msra.mxu0 %v23381_v9 }
 0x5c7   :  { %21127 = vmatpush3.bf16.msra.mxu1 %v23588_v2  ;;  %21128 = vmatprep.subr.bf16.mxu0 %v26103_v47 }
 0x5c8   :  { %21134 = vmatprep.subr.bf16.mxu1 %v26103_v47 }
 0x66c   :  { %v4821_v30 = vpop.f32.mrb[46].mxu0  ;;  %v4891_v11 = vpop.f32.mrb[50].mxu1 }
 0x66d   :  { %v4822_v49 = vadd.f32 %v23923_v26, %v4821_v30  ;;  %v4892_v58 = vadd.f32 %v4891_v11, %v23649_v42  ;;  %v19126_v22 = vpop.f32.mrb[47].mxu0  ;;  %v19137_v13 = vpop.f32.mrb[51].mxu1 }
 0x66f   :  { %v4966_v57 = vrot.slane %v4822_v49, 4  ;;  %v4976_v55 = vrot.slane %v4892_v58, 4 }
 0x671   :  { %v4968_v40 = vadd.f32 %v4966_v57, %v23644_v37  ;;  %v4978_v54 = vadd.f32 %v4976_v55, %v23655_v51 }
 0x673   :  { %v17325_v17 = vmul.f32 -1.442695, %v4968_v40  ;;  %v17326_v6 = vmul.f32 -1.442695, %v4978_v54 }
 0x674   :  { %v4961_v29 = vpop.f32.mrb[48].mxu0  ;;  %v5067_v10 = vpop.f32.mrb[52].mxu1 }
 0x675   :  { %22355 = vpow2.f32 %v17325_v17  ;;  %v5068_v4 = vadd.f32 %v23923_v26, %v5067_v10  ;;  %v19148_v56 = vpop.f32.mrb[49].mxu0  ;;  %v19159_v31 = vpop.f32.mrb[53].mxu1 }
 0x676   :  { %22357 = vpow2.f32 %v17326_v6 }
 0x677   :  { %v5212_v25 = vrot.slane %v5068_v4, 4 }
 0x679   :  { %v5214_v32 = vadd.f32 %v5212_v25, %v23641_v36 }
 0x67b   :  { %v17330_v30 = vmul.f32 -1.442695, %v5214_v32 }
 0x67c   :  { %v5137_v11 = vpop.f32.mrb[50].mxu0  ;;  %v5207_v49 = vpop.f32.mrb[54].mxu1 }
 0x67d   :  { %22359 = vpow2.f32 %v17330_v30  ;;  %v5138_v58 = vadd.f32 %v5137_v11, %v23649_v42  ;;  %v19170_v22 = vpop.f32.mrb[51].mxu0  ;;  %v19181_v13 = vpop.f32.mrb[55].mxu1  ;;  %v4962_v11 = vadd.f32 %v4961_v29, %v23651_v45 }
 0x67f   :  { %v22356_v57 = vpop.eup %22355  ;;  %v5222_v55 = vrot.slane %v5138_v58, 4 }
 0x680   :  { %v22358_v40 = vpop.eup %22357  ;;  %v4972_v54 = vadd.f32 1.0, %v22356_v57 }
 0x681   :  { %v4982_v17 = vadd.f32 1.0, %v22358_v40  ;;  %v5224_v26 = vadd.f32 %v5222_v55, %v23653_v24  ;;  %v4986_v55 = vrot.slane %v4962_v11, 4  ;;  %v5208_v11 = vadd.f32 %v5207_v49, %v23651_v45 }
 0x682   :  { %22361 = vrcp.f32 %v4972_v54 }
 0x683   :  { %22363 = vrcp.f32 %v4982_v17  ;;  %v17331_v6 = vmul.f32 -1.442695, %v5224_v26  ;;  %v4993_v17 = vrot.slane %v24090_v50, 7  ;;  %v5232_v52 = vrot.slane %v5208_v11, 4 }
 0x684   :  { %v5313_v10 = vpop.f32.mrb[52].mxu0  ;;  %v5383_v4 = vpop.f32.mrb[56].mxu1 }
 0x685   :  { %22365 = vpow2.f32 %v17331_v6  ;;  %v5314_v56 = vadd.f32 %v23936_v39, %v5313_v10  ;;  %v5384_v31 = vadd.f32 %v5383_v4, %v23660_v60  ;;  %v19192_v25 = vpop.f32.mrb[53].mxu0  ;;  %v19203_v32 = vpop.f32.mrb[57].mxu1 }
 0x687   :  { %v22360_v30 = vpop.eup %22359  ;;  %v5458_v58 = vrot.slane %v5314_v56, 5  ;;  %v5468_v13 = vrot.slane %v5384_v31, 5 }
 0x688   :  { %v5218_v22 = vadd.f32 1.0, %v22360_v30 }
 0x689   :  { %v5460_v57 = vadd.f32 %v5458_v58, %v23670_v33  ;;  %v5470_v26 = vadd.f32 %v5468_v13, %v23664_v14 }
 0x68a   :  { %22367 = vrcp.f32 %v5218_v22 }
 0x68b   :  { %v17335_v40 = vmul.f32 -1.442695, %v5460_v57  ;;  %v17336_v50 = vmul.f32 -1.442695, %v5470_v26 }
 0x68c   :  { %v22362_v54 = vpop.eup %22361  ;;  %v5453_v6 = vpop.f32.mrb[54].mxu0 }
 0x68d   :  { %v5559_v10 = vpop.f32.mrb[58].mxu1  ;;  %v22364_v4 = vpop.eup %22363  ;;  %v4988_v25 = vmul.f32 %v22362_v54, %v4986_v55  ;;  %22369 = vpow2.f32 %v17335_v40 }
 0x68e   :  { %v5560_v29 = vadd.f32 %v23936_v39, %v5559_v10  ;;  %v19214_v56 = vpop.f32.mrb[55].mxu0  ;;  %v19225_v32 = vpop.f32.mrb[59].mxu1  ;;  %v4995_v31 = vmul.f32 %v22364_v4, %v4993_v17 }
 0x68f   :  { %v22366_v30 = vpop.eup %22365  ;;  %v4989_v58 = vadd.f32 %v4988_v25, %v23681_v61 }
 0x690   :  { %v5704_v22 = vrot.slane %v5560_v29, 5  ;;  %v5228_v57 = vadd.f32 1.0, %v22366_v30 }
 0x691   :  { %22371 = vtanh.f32 %v4989_v58  ;;  %v4991_v58 = vsub.f32 1.0, %v22364_v4 }
 0x692   :  { %v5706_v13 = vadd.f32 %v5704_v22, %v23667_v18  ;;  %22373 = vrcp.f32 %v5228_v57  ;;  %v5239_v22 = vrot.slane %v24109_v41, 7 }
 0x693   :  { %22375 = vpow2.f32 %v17336_v50 }
 0x694   :  { %v17340_v55 = vmul.f32 -1.442695, %v5706_v13  ;;  %v22368_v40 = vpop.eup %22367  ;;  %v5629_v39 = vpop.f32.mrb[56].mxu0 }
 0x695   :  { %v5699_v54 = vpop.f32.mrb[60].mxu1  ;;  %v5234_v10 = vmul.f32 %v22368_v40, %v5232_v52  ;;  %v5630_v17 = vadd.f32 %v5629_v39, %v23660_v60  ;;  %v19236_v25 = vpop.f32.mrb[57].mxu0 }
 0x696   :  { %22377 = vpow2.f32 %v17340_v55  ;;  %v19247_v56 = vpop.f32.mrb[61].mxu1 }
 0x697   :  { %v22370_v49 = vpop.eup %22369  ;;  %v5235_v29 = vadd.f32 %v5234_v10, %v23684_v0  ;;  %v5714_v26 = vrot.slane %v5630_v17, 5  ;;  %v5454_v10 = vadd.f32 %v5453_v6, %v23688_v20 }
 0x698   :  { %v5464_v32 = vadd.f32 1.0, %v22370_v49 }
 0x699   :  { %22379 = vtanh.f32 %v5235_v29  ;;  %v5716_v30 = vadd.f32 %v5714_v26, %v23672_v38  ;;  %v5478_v49 = vrot.slane %v5454_v10, 5  ;;  %v26152_v26 = vmov 0.0  }
 0x69a   :  { %22381 = vrcp.f32 %v5464_v32  ;;  %v5485_v10 = vrot.slane %v24149_v46, 1 }
 0x69b   :  { %v22372_v11 = vpop.eup %22371  ;;  %v17341_v57 = vmul.f32 -1.442695, %v5716_v30 }
 0x69c   :  { %v22374_v52 = vpop.eup %22373  ;;  %v4992_v50 = vmul.f32 %v22372_v11, %v4991_v58  ;;  %v5700_v11 = vadd.f32 %v5699_v54, %v23688_v20 }
 0x69d   :  { %v5241_v13 = vmul.f32 %v22374_v52, %v5239_v22  ;;  %22383 = vpow2.f32 %v17341_v57  ;;  %v22376_v55 = vpop.eup %22375  ;;  %v5237_v56 = vsub.f32 1.0, %v22374_v52 }
 0x69e   :  { %v24224_v40 = vadd.f32 %v4995_v31, %v4992_v50  ;;  %v5474_v41 = vadd.f32 1.0, %v22376_v55  ;;  %v5724_v54 = vrot.slane %v5700_v11, 5 }
 0x6a0   :  { %v22378_v39 = vpop.eup %22377  ;;  %v5736_v25 = vrot.slane %v24224_v40, 4  ;;  %v24231_v4 = vsel %vm209_vm1, %v24097_v5, %v24224_v40 }
 0x6a1   :  { %v5710_v17 = vadd.f32 1.0, %v22378_v39 }
 0x6a2   :  { %19257 = vmatmul.mubr.msk.f32.vlgmr.msra.gmra.mrb[58].mxu0 %vm1206_vm3, %v5736_v25  ;;  %19268 = vmatmul.mubr.msk.f32.vlgmr.msra.gmra.mrb[62].mxu1 %vm1206_vm3, %v5736_v25 }
 0x6a3   :  { %22385 = vrcp.f32 %v5710_v17  ;;  %v22380_v31 = vpop.eup %22379  ;;  %21130 = vmatpush3.bf16.msra.mxu0 %v23549_v48  ;;  %21136 = vmatpush3.bf16.msra.mxu1 %v23379_v8 }
 0x6a4   :  { %v22382_v6 = vpop.eup %22381  ;;  %v5238_v29 = vmul.f32 %v22380_v31, %v5237_v56  ;;  %21131 = vmatprep.subr.bf16.mxu0 %v26103_v47  ;;  %21137 = vmatprep.subr.bf16.mxu1 %v26103_v47  ;;  %22387 = vrcp.f32 %v5474_v41 }
 0x6a5   :  { %v5480_v5 = vmul.f32 %v22382_v6, %v5478_v49  ;;  %19278 = vmatprep.mubr.msk.f32.mxu0 %vm23126_vm2, %v26152_v26  ;;  %19289 = vmatprep.mubr.msk.f32.mxu1 %vm23126_vm2, %v26152_v26 }
 0x6a6   :  { %v24243_v32 = vadd.f32 %v5241_v13, %v5238_v29  ;;  %v5731_v29 = vrot.slane %v24167_v43, 1 }
 0x6a7   :  { %v22384_v30 = vpop.eup %22383  ;;  %v5481_v58 = vadd.f32 %v5480_v5, %v23694_v44  ;;  %21133 = vmatpush3.bf16.msra.mxu0 %v23559_v53  ;;  %21139 = vmatpush3.bf16.msra.mxu1 %v23381_v9 }
 0x6a8   :  { %v5982_v22 = vrot.slane %v24243_v32, 4  ;;  %21140 = vmatprep.subr.bf16.mxu0 %v26103_v47  ;;  %21146 = vmatprep.subr.bf16.mxu1 %v26103_v47  ;;  %v24255_v57 = vsel %vm209_vm1, %v24121_v19, %v24243_v32  ;;  %v5720_v52 = vadd.f32 1.0, %v22384_v30 }
 0x6a9   :  { %22389 = vtanh.f32 %v5481_v58 }
 0x6aa   :  { %19279 = vmatmul.mubr.msk.f32.vlgmr.msra.gmra.mrb[60].mxu0 %vm1206_vm3, %v5736_v25  ;;  %19290 = vmatmul.mubr.msk.f32.vlgmr.msra.gmra.mrb[64].mxu1 %vm1206_vm3, %v5982_v22  ;;  %22391 = vrcp.f32 %v5720_v52 }
 0x6ab   :  { %21142 = vmatpush3.bf16.msra.mxu0 %v23574_v62  ;;  %21148 = vmatpush3.bf16.msra.mxu1 %v23549_v48 }
 0x6ac   :  { %21143 = vmatprep.subr.bf16.mxu0 %v26103_v47  ;;  %21149 = vmatprep.subr.bf16.mxu1 %v26103_v47 }
 0x6ad   :  { %v22386_v50 = vpop.eup %22385  ;;  %19300 = vmatprep.mubr.msk.f32.mxu0 %vm23126_vm2, %v26152_v26  ;;  %19311 = vmatprep.mubr.msk.f32.mxu1 %vm23126_vm2, %v26152_v26 }
 0x6ae   :  { %v5726_v13 = vmul.f32 %v22386_v50, %v5724_v54  ;;  %v22388_v19 = vpop.eup %22387  ;;  %v24336_v50 = vld [vmem:[#allocation7] sm:$0x1] }
 0x6af   :  { %21145 = vmatpush3.bf16.msra.mxu0 %v23588_v2  ;;  %21151 = vmatpush3.bf16.msra.mxu1 %v23559_v53  ;;  %v5483_v39 = vsub.f32 1.0, %v22388_v19  ;;  %v5487_v25 = vmul.f32 %v22388_v19, %v5485_v10 }
 0x6b0   :  { %v5727_v55 = vadd.f32 %v5726_v13, %v23699_v63  ;;  %21152 = vmatprep.subr.bf16.mxu0 %v26103_v47  ;;  %21158 = vmatprep.subr.bf16.mxu1 %v26103_v47 }
 0x6b2   :  { %22393 = vtanh.f32 %v5727_v55  ;;  %19301 = vmatmul.mubr.msk.f32.vlgmr.msra.gmra.mrb[62].mxu0 %vm1206_vm3, %v5982_v22  ;;  %19312 = vmatmul.mubr.msk.f32.vlgmr.msra.gmra.mrb[66].mxu1 %vm1206_vm3, %v5982_v22 }
 0x6b3   :  { %v22390_v17 = vpop.eup %22389  ;;  %21154 = vmatpush3.bf16.msra.mxu0 %v23403_v15  ;;  %21160 = vmatpush3.bf16.msra.mxu1 %v23570_v59 }
 0x6b4   :  { %v5484_v41 = vmul.f32 %v22390_v17, %v5483_v39  ;;  %21155 = vmatprep.subr.bf16.mxu0 %v26103_v47  ;;  %21161 = vmatprep.subr.bf16.mxu1 %v26103_v47  ;;  %v22392_v31 = vpop.eup %22391 }
 0x6b5   :  { %19322 = vmatprep.mubr.msk.f32.mxu0 %vm23126_vm2, %v26152_v26  ;;  %19333 = vmatprep.mubr.msk.f32.mxu1 %vm23126_vm2, %v26152_v26  ;;  %v5729_v6 = vsub.f32 1.0, %v22392_v31  ;;  %v5733_v30 = vmul.f32 %v22392_v31, %v5731_v29 }
 0x6b6   :  { %v24283_v56 = vadd.f32 %v5487_v25, %v5484_v41 }
 0x6b7   :  { %21157 = vmatpush3.bf16.msra.mxu0 %v23405_v16  ;;  %21163 = vmatpush3.bf16.msra.mxu1 %v23581_v1 }
 0x6b8   :  { %v6228_v49 = vrot.slane %v24283_v56, 3  ;;  %21164 = vmatprep.subr.bf16.mxu0 %v26103_v47  ;;  %21170 = vmatprep.subr.bf16.mxu1 %v26103_v47 }
 0x6ba   :  { %19323 = vmatmul.mubr.msk.f32.vlgmr.msra.gmra.mrb[64].mxu0 %vm1206_vm3, %v6228_v49  ;;  %19334 = vmatmul.mubr.msk.f32.vlgmr.msra.gmra.mrb[68].mxu1 %vm1206_vm3, %v6228_v49 }
 0x6bb   :  { %21166 = vmatpush3.bf16.msra.mxu0 %v23610_v7  ;;  %21172 = vmatpush3.bf16.msra.mxu1 %v23403_v15 }
 0x6bc   :  { %v22394_v5 = vpop.eup %22393  ;;  %21167 = vmatprep.subr.bf16.mxu0 %v26103_v47  ;;  %21173 = vmatprep.subr.bf16.mxu1 %v26103_v47 }
 0x6bd   :  { %v5730_v58 = vmul.f32 %v22394_v5, %v5729_v6  ;;  %19344 = vmatprep.mubr.msk.f32.mxu0 %vm23126_vm2, %v26152_v26  ;;  %19355 = vmatprep.mubr.msk.f32.mxu1 %vm23126_vm2, %v26152_v26 }
 0x6bf   :  { %v24301_v11 = vadd.f32 %v5733_v30, %v5730_v58  ;;  %21169 = vmatpush3.bf16.msra.mxu0 %v23615_v12  ;;  %21175 = vmatpush3.bf16.msra.mxu1 %v23405_v16 }
 0x6c0   :  { %21176 = vmatprep.subr.bf16.mxu0 %v26103_v47  ;;  %21182 = vmatprep.subr.bf16.mxu1 %v26103_v47 }
 0x6c1   :  { %26153 = vst [vmem:[#allocation32_spill] sm:$0xff] %v24301_v11  ;;  %v6474_v22 = vrot.slane %v24301_v11, 3 }
 0x6c2   :  { %19345 = vmatmul.mubr.msk.f32.vlgmr.msra.gmra.mrb[66].mxu0 %vm1206_vm3, %v6228_v49 }
 0x6c3   :  { %19356 = vmatmul.mubr.msk.f32.vlgmr.msra.gmra.mrb[70].mxu1 %vm1206_vm3, %v6474_v22  ;;  %21178 = vmatpush3.bf16.msra.mxu0 %v23570_v59 }
 0x6c4   :  { %21184 = vmatpush3.bf16.msra.mxu1 %v23610_v7  ;;  %21179 = vmatprep.subr.bf16.mxu0 %v26103_v47 }
 0x6c5   :  { %21185 = vmatprep.subr.bf16.mxu1 %v26103_v47  ;;  %19366 = vmatprep.mubr.msk.f32.mxu0 %vm23126_vm2, %v26152_v26 }
 0x6c6   :  { %19377 = vmatprep.mubr.msk.f32.mxu1 %vm23126_vm2, %v26152_v26 }
 0x6c7   :  { %21181 = vmatpush3.bf16.msra.mxu0 %v23581_v1 }
 0x6c8   :  { %21187 = vmatpush3.bf16.msra.mxu1 %v23615_v12  ;;  %21188 = vmatprep.subr.bf16.mxu0 %v26103_v47 }
 0x6c9   :  { %21194 = vmatprep.subr.bf16.mxu1 %v26103_v47 }
 0x6ca   :  { %19367 = vmatmul.mubr.msk.f32.vlgmr.msra.gmra.mrb[68].mxu0 %vm1206_vm3, %v6474_v22 }
 0x6cb   :  { %19378 = vmatmul.mubr.msk.f32.vlgmr.msra.gmra.mrb[72].mxu1 %vm1206_vm3, %v6474_v22  ;;  %21190 = vmatpush3.bf16.msra.mxu0 %v23379_v8 }
 0x6cc   :  { %21196 = vmatpush3.bf16.msra.mxu1 %v23574_v62  ;;  %21191 = vmatprep.subr.bf16.mxu0 %v26103_v47 }
 0x6cd   :  { %21197 = vmatprep.subr.bf16.mxu1 %v26103_v47  ;;  %19388 = vmatprep.mubr.msk.f32.mxu0 %vm23126_vm2, %v26152_v26 }
 0x6ce   :  { %19399 = vmatprep.mubr.msk.f32.mxu1 %vm23126_vm2, %v26152_v26 }
 0x6cf   :  { %21193 = vmatpush3.bf16.msra.mxu0 %v23381_v9 }
 0x6d0   :  { %21199 = vmatpush3.bf16.msra.mxu1 %v23588_v2  ;;  %21200 = vmatprep.subr.bf16.mxu0 %v26103_v47 }
 0x6d1   :  { %21206 = vmatprep.subr.bf16.mxu1 %v26103_v47 }
 0x775   :  { %v5805_v52 = vpop.f32.mrb[58].mxu0  ;;  %v5875_v54 = vpop.f32.mrb[62].mxu1 }
 0x776   :  { %v5806_v13 = vadd.f32 %v24336_v50, %v5805_v52  ;;  %v5876_v19 = vadd.f32 %v5875_v54, %v23649_v42  ;;  %v19258_v55 = vpop.f32.mrb[59].mxu0  ;;  %v19269_v39 = vpop.f32.mrb[63].mxu1 }
 0x778   :  { %v5950_v10 = vrot.slane %v5806_v13, 3  ;;  %v5960_v17 = vrot.slane %v5876_v19, 3 }
 0x77a   :  { %v5952_v25 = vadd.f32 %v5950_v10, %v23644_v37  ;;  %v5962_v41 = vadd.f32 %v5960_v17, %v23655_v51 }
 0x77c   :  { %v17345_v31 = vmul.f32 -1.442695, %v5952_v25  ;;  %v17346_v49 = vmul.f32 -1.442695, %v5962_v41 }
 0x77d   :  { %v5945_v6 = vpop.f32.mrb[60].mxu0  ;;  %v6051_v29 = vpop.f32.mrb[64].mxu1 }
 0x77e   :  { %22395 = vpow2.f32 %v17345_v31  ;;  %v6052_v5 = vadd.f32 %v24336_v50, %v6051_v29  ;;  %v19280_v30 = vpop.f32.mrb[61].mxu0  ;;  %v19291_v58 = vpop.f32.mrb[65].mxu1 }
 0x77f   :  { %22397 = vpow2.f32 %v17346_v49  ;;  %v24349_v58 = vld [vmem:[%s26079_s9] sm:$0x1] }
 0x780   :  { %v6196_v22 = vrot.slane %v6052_v5, 3 }
 0x782   :  { %v6198_v52 = vadd.f32 %v6196_v22, %v23641_v36 }
 0x784   :  { %v17350_v54 = vmul.f32 -1.442695, %v6198_v52 }
 0x785   :  { %v6121_v13 = vpop.f32.mrb[62].mxu0  ;;  %v6191_v19 = vpop.f32.mrb[66].mxu1 }
 0x786   :  { %22399 = vpow2.f32 %v17350_v54  ;;  %v6122_v55 = vadd.f32 %v6121_v13, %v23649_v42  ;;  %v19302_v39 = vpop.f32.mrb[63].mxu0  ;;  %v19313_v10 = vpop.f32.mrb[67].mxu1 }
 0x787   :  { %v5946_v39 = vadd.f32 %v5945_v6, %v23651_v45 }
 0x788   :  { %v22396_v17 = vpop.eup %22395  ;;  %v6206_v25 = vrot.slane %v6122_v55, 3 }
 0x789   :  { %v22398_v41 = vpop.eup %22397  ;;  %v5956_v31 = vadd.f32 1.0, %v22396_v17 }
 0x78a   :  { %v5966_v47 = vadd.f32 1.0, %v22398_v41  ;;  %v6208_v29 = vadd.f32 %v6206_v25, %v23653_v24  ;;  %v5970_v41 = vrot.slane %v5946_v39, 3  ;;  %v6192_v39 = vadd.f32 %v6191_v19, %v23651_v45 }
 0x78b   :  { %22401 = vrcp.f32 %v5956_v31 }
 0x78c   :  { %22403 = vrcp.f32 %v5966_v47  ;;  %v17351_v49 = vmul.f32 -1.442695, %v6208_v29  ;;  %v6216_v3 = vrot.slane %v6192_v39, 3 }
 0x78d   :  { %v6297_v5 = vpop.f32.mrb[64].mxu0  ;;  %v6367_v30 = vpop.f32.mrb[68].mxu1 }
 0x78e   :  { %22405 = vpow2.f32 %v17351_v49  ;;  %v6298_v22 = vadd.f32 %v24349_v58, %v6297_v5  ;;  %v6368_v52 = vadd.f32 %v6367_v30, %v23660_v60  ;;  %v19324_v54 = vpop.f32.mrb[65].mxu0  ;;  %v19335_v13 = vpop.f32.mrb[69].mxu1  ;;  %v5977_v49 = vrot.slane %v24224_v40, 7 }
 0x790   :  { %v22400_v55 = vpop.eup %22399  ;;  %v6442_v10 = vrot.slane %v6298_v22, 6  ;;  %v6452_v17 = vrot.slane %v6368_v52, 6 }
 0x791   :  { %v6202_v47 = vadd.f32 1.0, %v22400_v55 }
 0x792   :  { %v6444_v25 = vadd.f32 %v6442_v10, %v23670_v33  ;;  %v6454_v5 = vadd.f32 %v6452_v17, %v23664_v14 }
 0x793   :  { %22407 = vrcp.f32 %v6202_v47 }
 0x794   :  { %v17355_v31 = vmul.f32 -1.442695, %v6444_v25  ;;  %v17356_v40 = vmul.f32 -1.442695, %v6454_v5 }
 0x795   :  { %v22402_v29 = vpop.eup %22401  ;;  %v6437_v28 = vpop.f32.mrb[66].mxu0 }
 0x796   :  { %v6543_v30 = vpop.f32.mrb[70].mxu1  ;;  %v22404_v54 = vpop.eup %22403  ;;  %v5972_v13 = vmul.f32 %v22402_v29, %v5970_v41  ;;  %22409 = vpow2.f32 %v17355_v31 }
 0x797   :  { %v6544_v6 = vadd.f32 %v24349_v58, %v6543_v30  ;;  %v19346_v22 = vpop.f32.mrb[67].mxu0  ;;  %v19357_v55 = vpop.f32.mrb[71].mxu1  ;;  %v5979_v52 = vmul.f32 %v22404_v54, %v5977_v49  ;;  %v5975_v39 = vsub.f32 1.0, %v22404_v54 }
 0x798   :  { %v22406_v35 = vpop.eup %22405  ;;  %v5973_v10 = vadd.f32 %v5972_v13, %v23681_v61 }
 0x799   :  { %v6688_v47 = vrot.slane %v6544_v6, 6  ;;  %v6212_v25 = vadd.f32 1.0, %v22406_v35 }
 0x79a   :  { %22411 = vtanh.f32 %v5973_v10 }
 0x79b   :  { %v6690_v17 = vadd.f32 %v6688_v47, %v23667_v18  ;;  %22413 = vrcp.f32 %v6212_v25  ;;  %v6223_v25 = vrot.slane %v24243_v32, 7 }
 0x79c   :  { %22415 = vpow2.f32 %v17356_v40 }
 0x79d   :  { %v17360_v41 = vmul.f32 -1.442695, %v6690_v17  ;;  %v22408_v31 = vpop.eup %22407  ;;  %v6613_v29 = vpop.f32.mrb[68].mxu0 }
 0x79e   :  { %v6683_v30 = vpop.f32.mrb[72].mxu1  ;;  %v6218_v22 = vmul.f32 %v22408_v31, %v6216_v3  ;;  %v6614_v49 = vadd.f32 %v6613_v29, %v23660_v60  ;;  %v19368_v13 = vpop.f32.mrb[69].mxu0 }
 0x79f   :  { %22417 = vpow2.f32 %v17360_v41  ;;  %v19379_v55 = vpop.f32.mrb[73].mxu1 }
 0x7a0   :  { %v22410_v19 = vpop.eup %22409  ;;  %v6219_v35 = vadd.f32 %v6218_v22, %v23684_v0  ;;  %v6698_v5 = vrot.slane %v6614_v49, 6  ;;  %v6438_v49 = vadd.f32 %v6437_v28, %v23688_v20 }
 0x7a1   :  { %v6448_v6 = vadd.f32 1.0, %v22410_v19 }
 0x7a2   :  { %22419 = vtanh.f32 %v6219_v35  ;;  %v6700_v10 = vadd.f32 %v6698_v5, %v23672_v38  ;;  %v6462_v35 = vrot.slane %v6438_v49, 6 }
 0x7a3   :  { %22421 = vrcp.f32 %v6448_v6  ;;  %v26154_v6 = vmov 0.0|0.0  }
 0x7a4   :  { %v22412_v47 = vpop.eup %22411  ;;  %v17361_v40 = vmul.f32 -1.442695, %v6700_v10 }
 0x7a5   :  { %v22414_v3 = vpop.eup %22413  ;;  %v5976_v17 = vmul.f32 %v22412_v47, %v5975_v39 }
 0x7a6   :  { %v6225_v41 = vmul.f32 %v22414_v3, %v6223_v25  ;;  %22423 = vpow2.f32 %v17361_v40  ;;  %v22416_v31 = vpop.eup %22415  ;;  %v6221_v19 = vsub.f32 1.0, %v22414_v3  ;;  %v6684_v25 = vadd.f32 %v6683_v30, %v23688_v20 }
 0x7a7   :  { %v24365_v29 = vadd.f32 %v5979_v52, %v5976_v17  ;;  %v6458_v32 = vadd.f32 1.0, %v22416_v31 }
 0x7a8   :  { %v6708_v30 = vrot.slane %v6684_v25, 6 }
 0x7a9   :  { %v22418_v22 = vpop.eup %22417  ;;  %v6720_v55 = vrot.slane %v24365_v29, 5  ;;  %v24372_v54 = vsel %vm8674_vm7, %v24231_v4, %v24365_v29 }
 0x7aa   :  { %v6694_v13 = vadd.f32 1.0, %v22418_v22 }
 0x7ab   :  { %19389 = vmatmul.mubr.msk.f32.vlgmr.msra.gmra.mrb[70].mxu0 %vm1206_vm3, %v6720_v55  ;;  %19400 = vmatmul.mubr.msk.f32.vlgmr.msra.gmra.mrb[74].mxu1 %vm1206_vm3, %v6720_v55 }
 0x7ac   :  { %22425 = vrcp.f32 %v6694_v13  ;;  %v22420_v52 = vpop.eup %22419  ;;  %21202 = vmatpush3.bf16.msra.mxu0 %v23549_v48  ;;  %21208 = vmatpush3.bf16.msra.mxu1 %v23379_v8  ;;  %v6469_v13 = vrot.slane %v24283_v56, 1 }
 0x7ad   :  { %v22422_v28 = vpop.eup %22421  ;;  %v6222_v5 = vmul.f32 %v22420_v52, %v6221_v19  ;;  %21203 = vmatprep.subr.bf16.mxu0 %v26154_v6  ;;  %21209 = vmatprep.subr.bf16.mxu1 %v26154_v6  ;;  %22427 = vrcp.f32 %v6458_v32 }
 0x7ae   :  { %v6464_v4 = vmul.f32 %v22422_v28, %v6462_v35  ;;  %19410 = vmatprep.mubr.msk.f32.mxu0 %vm23126_vm2, %v26152_v26  ;;  %19421 = vmatprep.mubr.msk.f32.mxu1 %vm23126_vm2, %v26152_v26 }
 0x7af   :  { %v24384_v10 = vadd.f32 %v6225_v41, %v6222_v5 }
 0x7b0   :  { %v22424_v39 = vpop.eup %22423  ;;  %v6465_v47 = vadd.f32 %v6464_v4, %v23694_v44  ;;  %21205 = vmatpush3.bf16.msra.mxu0 %v23559_v53  ;;  %21211 = vmatpush3.bf16.msra.mxu1 %v23381_v9  ;;  %v6715_v4 = vrot.slane %v24301_v11, 1 }
 0x7b1   :  { %v6966_v40 = vrot.slane %v24384_v10, 5  ;;  %21212 = vmatprep.subr.bf16.mxu0 %v26154_v6  ;;  %21218 = vmatprep.subr.bf16.mxu1 %v26154_v6  ;;  %v24396_v3 = vsel %vm8674_vm7, %v24255_v57, %v24384_v10  ;;  %v6704_v17 = vadd.f32 1.0, %v22424_v39 }
 0x7b2   :  { %22429 = vtanh.f32 %v6465_v47 }
 0x7b3   :  { %19411 = vmatmul.mubr.msk.f32.vlgmr.msra.gmra.mrb[72].mxu0 %vm1206_vm3, %v6720_v55  ;;  %19422 = vmatmul.mubr.msk.f32.vlgmr.msra.gmra.mrb[76].mxu1 %vm1206_vm3, %v6966_v40  ;;  %22431 = vrcp.f32 %v6704_v17 }
 0x7b4   :  { %21214 = vmatpush3.bf16.msra.mxu0 %v23574_v62  ;;  %21220 = vmatpush3.bf16.msra.mxu1 %v23549_v48 }
 0x7b5   :  { %21215 = vmatprep.subr.bf16.mxu0 %v26154_v6  ;;  %21221 = vmatprep.subr.bf16.mxu1 %v26154_v6 }
 0x7b6   :  { %v22426_v41 = vpop.eup %22425  ;;  %19432 = vmatprep.mubr.msk.f32.mxu0 %vm23126_vm2, %v26152_v26  ;;  %19443 = vmatprep.mubr.msk.f32.mxu1 %vm23126_vm2, %v26152_v26 }
 0x7b7   :  { %v6710_v31 = vmul.f32 %v22426_v41, %v6708_v30  ;;  %v22428_v57 = vpop.eup %22427 }
 0x7b8   :  { %21217 = vmatpush3.bf16.msra.mxu0 %v23588_v2  ;;  %21223 = vmatpush3.bf16.msra.mxu1 %v23559_v53  ;;  %v6467_v49 = vsub.f32 1.0, %v22428_v57  ;;  %v6471_v32 = vmul.f32 %v22428_v57, %v6469_v13 }
 0x7b9   :  { %v6711_v22 = vadd.f32 %v6710_v31, %v23699_v63  ;;  %21224 = vmatprep.subr.bf16.mxu0 %v26154_v6  ;;  %21230 = vmatprep.subr.bf16.mxu1 %v26154_v6 }
 0x7bb   :  { %22433 = vtanh.f32 %v6711_v22  ;;  %19433 = vmatmul.mubr.msk.f32.vlgmr.msra.gmra.mrb[74].mxu0 %vm1206_vm3, %v6966_v40  ;;  %19444 = vmatmul.mubr.msk.f32.vlgmr.msra.gmra.mrb[78].mxu1 %vm1206_vm3, %v6966_v40 }
 0x7bc   :  { %v22430_v55 = vpop.eup %22429  ;;  %21226 = vmatpush3.bf16.msra.mxu0 %v23403_v15  ;;  %21232 = vmatpush3.bf16.msra.mxu1 %v23570_v59 }
 0x7bd   :  { %v6468_v19 = vmul.f32 %v22430_v55, %v6467_v49  ;;  %21227 = vmatprep.subr.bf16.mxu0 %v26154_v6  ;;  %21233 = vmatprep.subr.bf16.mxu1 %v26154_v6  ;;  %v22432_v35 = vpop.eup %22431 }
 0x7be   :  { %19454 = vmatprep.mubr.msk.f32.mxu0 %vm23126_vm2, %v26152_v26  ;;  %19465 = vmatprep.mubr.msk.f32.mxu1 %vm23126_vm2, %v26152_v26  ;;  %v6713_v5 = vsub.f32 1.0, %v22432_v35  ;;  %v6717_v47 = vmul.f32 %v22432_v35, %v6715_v4 }
 0x7bf   :  { %v24424_v52 = vadd.f32 %v6471_v32, %v6468_v19 }
 0x7c0   :  { %21229 = vmatpush3.bf16.msra.mxu0 %v23405_v16  ;;  %21235 = vmatpush3.bf16.msra.mxu1 %v23581_v1 }
 0x7c1   :  { %v7212_v28 = vrot.slane %v24424_v52, 2  ;;  %21236 = vmatprep.subr.bf16.mxu0 %v26154_v6  ;;  %21242 = vmatprep.subr.bf16.mxu1 %v26154_v6 }
 0x7c3   :  { %19455 = vmatmul.mubr.msk.f32.vlgmr.msra.gmra.mrb[76].mxu0 %vm1206_vm3, %v7212_v28  ;;  %19466 = vmatmul.mubr.msk.f32.vlgmr.msra.gmra.mrb[80].mxu1 %vm1206_vm3, %v7212_v28 }
 0x7c4   :  { %21238 = vmatpush3.bf16.msra.mxu0 %v23610_v7  ;;  %21244 = vmatpush3.bf16.msra.mxu1 %v23403_v15 }
 0x7c5   :  { %v22434_v39 = vpop.eup %22433  ;;  %21239 = vmatprep.subr.bf16.mxu0 %v26154_v6  ;;  %21245 = vmatprep.subr.bf16.mxu1 %v26154_v6 }
 0x7c6   :  { %v6714_v25 = vmul.f32 %v22434_v39, %v6713_v5  ;;  %19476 = vmatprep.mubr.msk.f32.mxu0 %vm23126_vm2, %v26152_v26  ;;  %19487 = vmatprep.mubr.msk.f32.mxu1 %vm23126_vm2, %v26152_v26 }
 0x7c8   :  { %v24442_v40 = vadd.f32 %v6717_v47, %v6714_v25  ;;  %21241 = vmatpush3.bf16.msra.mxu0 %v23615_v12  ;;  %21247 = vmatpush3.bf16.msra.mxu1 %v23405_v16 }
 0x7c9   :  { %21248 = vmatprep.subr.bf16.mxu0 %v26154_v6  ;;  %21254 = vmatprep.subr.bf16.mxu1 %v26154_v6 }
 0x7ca   :  { %v7458_v17 = vrot.slane %v24442_v40, 2 }
 0x7cb   :  { %19477 = vmatmul.mubr.msk.f32.vlgmr.msra.gmra.mrb[78].mxu0 %vm1206_vm3, %v7212_v28 }
 0x7cc   :  { %19488 = vmatmul.mubr.msk.f32.vlgmr.msra.gmra.mrb[82].mxu1 %vm1206_vm3, %v7458_v17  ;;  %21250 = vmatpush3.bf16.msra.mxu0 %v23570_v59 }
 0x7cd   :  { %21256 = vmatpush3.bf16.msra.mxu1 %v23610_v7  ;;  %21251 = vmatprep.subr.bf16.mxu0 %v26154_v6 }
 0x7ce   :  { %21257 = vmatprep.subr.bf16.mxu1 %v26154_v6  ;;  %19498 = vmatprep.mubr.msk.f32.mxu0 %vm23126_vm2, %v26152_v26 }
 0x7cf   :  { %19509 = vmatprep.mubr.msk.f32.mxu1 %vm23126_vm2, %v26152_v26 }
 0x7d0   :  { %21253 = vmatpush3.bf16.msra.mxu0 %v23581_v1 }
 0x7d1   :  { %21259 = vmatpush3.bf16.msra.mxu1 %v23615_v12  ;;  %21260 = vmatprep.subr.bf16.mxu0 %v26154_v6 }
 0x7d2   :  { %21266 = vmatprep.subr.bf16.mxu1 %v26154_v6 }
 0x7d3   :  { %19499 = vmatmul.mubr.msk.f32.vlgmr.msra.gmra.mrb[80].mxu0 %vm1206_vm3, %v7458_v17 }
 0x7d4   :  { %19510 = vmatmul.mubr.msk.f32.vlgmr.msra.gmra.mrb[84].mxu1 %vm1206_vm3, %v7458_v17  ;;  %21262 = vmatpush3.bf16.msra.mxu0 %v23379_v8 }
 0x7d5   :  { %21268 = vmatpush3.bf16.msra.mxu1 %v23574_v62  ;;  %21263 = vmatprep.subr.bf16.mxu0 %v26154_v6 }
 0x7d6   :  { %21269 = vmatprep.subr.bf16.mxu1 %v26154_v6  ;;  %19520 = vmatprep.mubr.msk.f32.mxu0 %vm23126_vm2, %v26152_v26 }
 0x7d7   :  { %19531 = vmatprep.mubr.msk.f32.mxu1 %vm23126_vm2, %v26152_v26 }
 0x7d8   :  { %21265 = vmatpush3.bf16.msra.mxu0 %v23381_v9 }
 0x7d9   :  { %21271 = vmatpush3.bf16.msra.mxu1 %v23588_v2  ;;  %21272 = vmatprep.subr.bf16.mxu0 %v26154_v6 }
 0x7da   :  { %21278 = vmatprep.subr.bf16.mxu1 %v26154_v6 }
 0x87e   :  { %v6789_v30 = vpop.f32.mrb[70].mxu0  ;;  %v6859_v41 = vpop.f32.mrb[74].mxu1 }
 0x87f   :  { %v6790_v31 = vadd.f32 %v24336_v50, %v6789_v30  ;;  %v6860_v57 = vadd.f32 %v6859_v41, %v23649_v42  ;;  %v19390_v22 = vpop.f32.mrb[71].mxu0  ;;  %v19401_v49 = vpop.f32.mrb[75].mxu1 }
 0x881   :  { %v6934_v13 = vrot.slane %v6790_v31, 2  ;;  %v6944_v55 = vrot.slane %v6860_v57, 2 }
 0x883   :  { %v6936_v32 = vadd.f32 %v6934_v13, %v23644_v37  ;;  %v6946_v19 = vadd.f32 %v6944_v55, %v23655_v51 }
 0x885   :  { %v17365_v35 = vmul.f32 -1.442695, %v6936_v32  ;;  %v17366_v28 = vmul.f32 -1.442695, %v6946_v19 }
 0x886   :  { %v6929_v5 = vpop.f32.mrb[72].mxu0  ;;  %v7035_v4 = vpop.f32.mrb[76].mxu1 }
 0x887   :  { %22435 = vpow2.f32 %v17365_v35  ;;  %v7036_v39 = vadd.f32 %v24336_v50, %v7035_v4  ;;  %v19412_v47 = vpop.f32.mrb[73].mxu0  ;;  %v19423_v25 = vpop.f32.mrb[77].mxu1 }
 0x888   :  { %22437 = vpow2.f32 %v17366_v28 }
 0x889   :  { %v7180_v17 = vrot.slane %v7036_v39, 2 }
 0x88b   :  { %v7182_v30 = vadd.f32 %v7180_v17, %v23641_v36 }
 0x88d   :  { %v17370_v41 = vmul.f32 -1.442695, %v7182_v30 }
 0x88e   :  { %v7105_v31 = vpop.f32.mrb[74].mxu0  ;;  %v7175_v57 = vpop.f32.mrb[78].mxu1 }
 0x88f   :  { %22439 = vpow2.f32 %v17370_v41  ;;  %v7106_v22 = vadd.f32 %v7105_v31, %v23649_v42  ;;  %v19434_v49 = vpop.f32.mrb[75].mxu0  ;;  %v19445_v13 = vpop.f32.mrb[79].mxu1 }
 0x891   :  { %v22436_v55 = vpop.eup %22435  ;;  %v7190_v32 = vrot.slane %v7106_v22, 2  ;;  %v6930_v22 = vadd.f32 %v6929_v5, %v23651_v45 }
 0x892   :  { %v22438_v19 = vpop.eup %22437  ;;  %v6940_v35 = vadd.f32 1.0, %v22436_v55 }
 0x893   :  { %v6950_v27 = vadd.f32 1.0, %v22438_v19  ;;  %v7192_v4 = vadd.f32 %v7190_v32, %v23653_v24 }
 0x894   :  { %22441 = vrcp.f32 %v6940_v35 }
 0x895   :  { %22443 = vrcp.f32 %v6950_v27  ;;  %v17371_v28 = vmul.f32 -1.442695, %v7192_v4  ;;  %v6954_v27 = vrot.slane %v6930_v22, 2  ;;  %v6961_v4 = vrot.slane %v24365_v29, 7 }
 0x896   :  { %v7281_v39 = vpop.f32.mrb[76].mxu0  ;;  %v7351_v47 = vpop.f32.mrb[80].mxu1  ;;  %v7176_v22 = vadd.f32 %v7175_v57, %v23651_v45 }
 0x897   :  { %22445 = vpow2.f32 %v17371_v28  ;;  %v7282_v25 = vadd.f32 %v24349_v58, %v7281_v39  ;;  %v7352_v17 = vadd.f32 %v7351_v47, %v23660_v60  ;;  %v19456_v30 = vpop.f32.mrb[77].mxu0  ;;  %v19467_v41 = vpop.f32.mrb[81].mxu1 }
 0x898   :  { %v7200_v11 = vrot.slane %v7176_v22, 2 }
 0x899   :  { %v22440_v31 = vpop.eup %22439  ;;  %v7426_v49 = vrot.slane %v7282_v25, 7  ;;  %v7436_v55 = vrot.slane %v7352_v17, 7 }
 0x89a   :  { %v7186_v13 = vadd.f32 1.0, %v22440_v31 }
 0x89b   :  { %v7428_v32 = vadd.f32 %v7426_v49, %v23670_v33  ;;  %v7438_v28 = vadd.f32 %v7436_v55, %v23664_v14 }
 0x89c   :  { %22447 = vrcp.f32 %v7186_v13 }
 0x89d   :  { %v17375_v19 = vmul.f32 -1.442695, %v7428_v32  ;;  %v17376_v29 = vmul.f32 -1.442695, %v7438_v28 }
 0x89e   :  { %v22442_v35 = vpop.eup %22441  ;;  %v7421_v39 = vpop.f32.mrb[78].mxu0 }
 0x89f   :  { %v7527_v47 = vpop.f32.mrb[82].mxu1  ;;  %v22444_v30 = vpop.eup %22443  ;;  %v6956_v41 = vmul.f32 %v22442_v35, %v6954_v27  ;;  %22449 = vpow2.f32 %v17375_v19 }
 0x8a0   :  { %v7528_v5 = vadd.f32 %v24349_v58, %v7527_v47  ;;  %v19478_v25 = vpop.f32.mrb[79].mxu0  ;;  %v19489_v31 = vpop.f32.mrb[83].mxu1  ;;  %v6963_v17 = vmul.f32 %v22444_v30, %v6961_v4 }
 0x8a1   :  { %v22446_v43 = vpop.eup %22445  ;;  %v6957_v49 = vadd.f32 %v6956_v41, %v23681_v61 }
 0x8a2   :  { %v7672_v13 = vrot.slane %v7528_v5, 7  ;;  %v7196_v32 = vadd.f32 1.0, %v22446_v43 }
 0x8a3   :  { %22451 = vtanh.f32 %v6957_v49  ;;  %v6959_v49 = vsub.f32 1.0, %v22444_v30 }
 0x8a4   :  { %v7674_v55 = vadd.f32 %v7672_v13, %v23667_v18  ;;  %22453 = vrcp.f32 %v7196_v32  ;;  %v7207_v13 = vrot.slane %v24384_v10, 7 }
 0x8a5   :  { %22455 = vpow2.f32 %v17376_v29 }
 0x8a6   :  { %v17380_v27 = vmul.f32 -1.442695, %v7674_v55  ;;  %v22448_v19 = vpop.eup %22447  ;;  %v7597_v58 = vpop.f32.mrb[80].mxu0 }
 0x8a7   :  { %v7667_v35 = vpop.f32.mrb[84].mxu1  ;;  %v7202_v47 = vmul.f32 %v22448_v19, %v7200_v11  ;;  %v7598_v4 = vadd.f32 %v7597_v58, %v23660_v60  ;;  %v19500_v41 = vpop.f32.mrb[81].mxu0 }
 0x8a8   :  { %22457 = vpow2.f32 %v17380_v27  ;;  %v19511_v25 = vpop.f32.mrb[85].mxu1 }
 0x8a9   :  { %v22450_v57 = vpop.eup %22449  ;;  %v7203_v43 = vadd.f32 %v7202_v47, %v23684_v0  ;;  %v7682_v28 = vrot.slane %v7598_v4, 7  ;;  %v7422_v47 = vadd.f32 %v7421_v39, %v23688_v20 }
 0x8aa   :  { %v7432_v5 = vadd.f32 1.0, %v22450_v57 }
 0x8ab   :  { %22459 = vtanh.f32 %v7203_v43  ;;  %v7684_v31 = vadd.f32 %v7682_v28, %v23672_v38  ;;  %v7446_v57 = vrot.slane %v7422_v47, 7 }
 0x8ac   :  { %22461 = vrcp.f32 %v7432_v5 }
 0x8ad   :  { %v22452_v22 = vpop.eup %22451  ;;  %v17381_v32 = vmul.f32 -1.442695, %v7684_v31 }
 0x8ae   :  { %v22454_v11 = vpop.eup %22453  ;;  %v6960_v29 = vmul.f32 %v22452_v22, %v6959_v49 }
 0x8af   :  { %v7209_v55 = vmul.f32 %v22454_v11, %v7207_v13  ;;  %22463 = vpow2.f32 %v17381_v32  ;;  %v22456_v27 = vpop.eup %22455  ;;  %v7205_v25 = vsub.f32 1.0, %v22454_v11 }
 0x8b0   :  { %v24499_v19 = vadd.f32 %v6963_v17, %v6960_v29  ;;  %v7442_v10 = vadd.f32 1.0, %v22456_v27 }
 0x8b2   :  { %v22458_v58 = vpop.eup %22457  ;;  %v7704_v41 = vrot.slane %v24499_v19, 6  ;;  %v24506_v30 = vsel %vm8676_vm8, %v24372_v54, %v24499_v19 }
 0x8b3   :  { %v7678_v4 = vadd.f32 1.0, %v22458_v58 }
 0x8b4   :  { %19521 = vmatmul.mubr.msk.f32.vlgmr.msra.gmra.mrb[82].mxu0 %vm1206_vm3, %v7704_v41  ;;  %19532 = vmatmul.mubr.msk.f32.vlgmr.msra.gmra.mrb[86].mxu1 %vm1206_vm3, %v7704_v41 }
 0x8b5   :  { %22465 = vrcp.f32 %v7678_v4  ;;  %v22460_v17 = vpop.eup %22459  ;;  %21274 = vmatpush3.bf16.msra.mxu0 %v23549_v48  ;;  %21280 = vmatpush3.bf16.msra.mxu1 %v23379_v8  ;;  %v7668_v8 = vadd.f32 %v7667_v35, %v23688_v20  ;;  %v7699_v4 = vrot.slane %v24442_v40, 1 }
 0x8b6   :  { %v22462_v39 = vpop.eup %22461  ;;  %v7206_v43 = vmul.f32 %v22460_v17, %v7205_v25  ;;  %21275 = vmatprep.subr.bf16.mxu0 %v26154_v6  ;;  %21281 = vmatprep.subr.bf16.mxu1 %v26154_v6  ;;  %22467 = vrcp.f32 %v7442_v10 }
 0x8b7   :  { %v7448_v54 = vmul.f32 %v22462_v39, %v7446_v57  ;;  %19542 = vmatprep.mubr.msk.f32.mxu0 %vm23126_vm2, %v26152_v26  ;;  %19553 = vmatprep.mubr.msk.f32.mxu1 %vm23126_vm2, %v26152_v26  ;;  %v7692_v35 = vrot.slane %v7668_v8, 7  ;;  %v8707_v57 = vld [vmem:[#allocation14 + $0x30] sm:$0xff]  ;;  %v8708_v39 = vld [vmem:[#allocation14 + $0x38] sm:$0xff] }
 0x8b8   :  { %v24518_v28 = vadd.f32 %v7209_v55, %v7206_v43  ;;  %v21336_v43 = vpack.c.bf16 %v8708_v39, %v8707_v57  ;;  %v24623_v8 = vld [vmem:[%s26080_s10] sm:$0xff]  ;;  %v24690_v39 = vld [vmem:[%s26084_s14 + $0x8] sm:$0xff] }
 0x8b9   :  { %v22464_v5 = vpop.eup %22463  ;;  %v7449_v31 = vadd.f32 %v7448_v54, %v23694_v44  ;;  %21277 = vmatpush3.bf16.msra.mxu0 %v23559_v53  ;;  %21283 = vmatpush3.bf16.msra.mxu1 %v23381_v9  ;;  %v8701_v54 = vld [vmem:[#allocation14] sm:$0xff]  ;;  %v24685_v57 = vld [vmem:[%s26084_s14] sm:$0xff]  ;;  %26159 = vst [vmem:[#allocation37_spill] sm:$0xff] %v24690_v39 }
 0x8ba   :  { %v7950_v49 = vrot.slane %v24518_v28, 6  ;;  %21284 = vmatprep.subr.bf16.mxu0 %v26154_v6  ;;  %21290 = vmatprep.subr.bf16.mxu1 %v26154_v6  ;;  %v24530_v22 = vsel %vm8676_vm8, %v24396_v3, %v24518_v28  ;;  %v7688_v13 = vadd.f32 1.0, %v22464_v5 }
 0x8bb   :  { %22469 = vtanh.f32 %v7449_v31  ;;  %v24618_v31 = vld [vmem:[%s26080_s10 + $0x18] sm:$0xff] }
 0x8bc   :  { %19543 = vmatmul.mubr.msk.f32.vlgmr.msra.gmra.mrb[84].mxu0 %vm1206_vm3, %v7704_v41  ;;  %19554 = vmatmul.mubr.msk.f32.vlgmr.msra.gmra.mrb[88].mxu1 %vm1206_vm3, %v7950_v49  ;;  %22471 = vrcp.f32 %v7688_v13  ;;  %v24630_v13 = vld [vmem:[%s26080_s10 + $0x8] sm:$0xff] }
 0x8bd   :  { %21286 = vmatpush3.bf16.msra.mxu0 %v23574_v62  ;;  %21292 = vmatpush3.bf16.msra.mxu1 %v23549_v48  ;;  %v7453_v62 = vrot.slane %v24424_v52, 1 }
 0x8be   :  { %21287 = vmatprep.subr.bf16.mxu0 %v26154_v6  ;;  %21293 = vmatprep.subr.bf16.mxu1 %v26154_v6 }
 0x8bf   :  { %v22466_v9 = vpop.eup %22465  ;;  %19564 = vmatprep.mubr.msk.f32.mxu0 %vm23126_vm2, %v26152_v26  ;;  %19575 = vmatprep.mubr.msk.f32.mxu1 %vm23126_vm2, %v26152_v26 }
 0x8c0   :  { %v7694_v32 = vmul.f32 %v22466_v9, %v7692_v35  ;;  %v22468_v3 = vpop.eup %22467  ;;  %v22075_v35 = vpack.i.bf16 %v24630_v13, %v24623_v8  ;;  %v24638_v9 = vld [vmem:[%s26080_s10 + $0x20] sm:$0xff] }
 0x8c1   :  { %21289 = vmatpush3.bf16.msra.mxu0 %v23588_v2  ;;  %21295 = vmatpush3.bf16.msra.mxu1 %v23559_v53  ;;  %v7451_v48 = vsub.f32 1.0, %v22468_v3  ;;  %v7455_v2 = vmul.f32 %v22468_v3, %v7453_v62  ;;  %v9197_v62 = vld [vmem:[#allocation10] sm:$0xff] }
 0x8c2   :  { %v7695_v11 = vadd.f32 %v7694_v32, %v23699_v63  ;;  %21296 = vmatprep.subr.bf16.mxu0 %v26154_v6  ;;  %21302 = vmatprep.subr.bf16.mxu1 %v26154_v6  ;;  %v24643_v32 = vld [vmem:[%s26080_s10 + $0x28] sm:$0xff] }
 0x8c3   :  { %22076 = vrot.lane.b32.xlu0 %v22075_v35, %s23124_s13  ;;  %v22085_v3 = vpack.i.bf16 %v24643_v32, %v24638_v9 }
 0x8c4   :  { %22473 = vtanh.f32 %v7695_v11  ;;  %19565 = vmatmul.mubr.msk.f32.vlgmr.msra.gmra.mrb[86].mxu0 %vm1206_vm3, %v7950_v49  ;;  %19576 = vmatmul.mubr.msk.f32.vlgmr.msra.gmra.mrb[90].mxu1 %vm1206_vm3, %v7950_v49  ;;  %v24651_v11 = vld [vmem:[%s26080_s10 + $0x30] sm:$0xff] }
 0x8c5   :  { %v22470_v29 = vpop.eup %22469  ;;  %21298 = vmatpush3.bf16.msra.mxu0 %v23403_v15  ;;  %21304 = vmatpush3.bf16.msra.mxu1 %v23570_v59 }
 0x8c6   :  { %21299 = vmatprep.subr.bf16.mxu0 %v26154_v6  ;;  %21305 = vmatprep.subr.bf16.mxu1 %v26154_v6  ;;  %v7452_v53 = vmul.f32 %v22470_v29, %v7451_v48  ;;  %v22472_v27 = vpop.eup %22471  ;;  %v24656_v48 = vld [vmem:[%s26080_s10 + $0x38] sm:$0xff] }
 0x8c7   :  { %19586 = vmatprep.mubr.msk.f32.mxu0 %vm23126_vm2, %v26152_v26  ;;  %19597 = vmatprep.mubr.msk.f32.mxu1 %vm23126_vm2, %v26152_v26  ;;  %v7697_v47 = vsub.f32 1.0, %v22472_v27  ;;  %v7701_v25 = vmul.f32 %v22472_v27, %v7699_v4  ;;  %v9198_v29 = vld [vmem:[#allocation10 + $0x8] sm:$0xff]  ;;  %v9200_v27 = vld [vmem:[#allocation10 + $0x18] sm:$0xff] }
 0x8c8   :  { %v24558_v55 = vadd.f32 %v7455_v2, %v7452_v53  ;;  %v24658_v53 = vpack.c.bf16 %v9198_v29, %v9197_v62  ;;  %v9199_v2 = vld [vmem:[#allocation10 + $0x10] sm:$0xff]  ;;  %22086 = vrot.lane.b32.xlu0 %v22085_v3, %s23124_s13 }
 0x8c9   :  { %21301 = vmatpush3.bf16.msra.mxu0 %v23405_v16  ;;  %21307 = vmatpush3.bf16.msra.mxu1 %v23581_v1  ;;  %v24664_v4 = vpack.c.bf16 %v9200_v27, %v9199_v2 }
 0x8ca   :  { %v24563_v58 = vrot.slane %v24558_v55, 1  ;;  %21308 = vmatprep.subr.bf16.mxu0 %v26154_v6  ;;  %21314 = vmatprep.subr.bf16.mxu1 %v26154_v6  ;;  %26155 = vst [vmem:[#allocation33_spill] sm:$0xff] %v24658_v53  ;;  %v22145_v53 = vpack.i.bf16 %v9198_v29, %v9197_v62 }
 0x8cb   :  { %26156 = vst [vmem:[#allocation34_spill] sm:$0xff] %v24664_v4 }
 0x8cc   :  { %19587 = vmatmul.mubr.msk.f32.vlgmr.msra.gmra.mrb[88].mxu0 %vm1206_vm3, %v24563_v58  ;;  %19598 = vmatmul.mubr.msk.f32.vlgmr.msra.gmra.mrb[92].mxu1 %vm1206_vm3, %v24563_v58 }
 0x8cd   :  { %21310 = vmatpush3.bf16.msra.mxu0 %v23610_v7  ;;  %21316 = vmatpush3.bf16.msra.mxu1 %v23403_v15 }
 0x8ce   :  { %v22474_v41 = vpop.eup %22473  ;;  %21311 = vmatprep.subr.bf16.mxu0 %v26154_v6  ;;  %21317 = vmatprep.subr.bf16.mxu1 %v26154_v6 }
 0x8cf   :  { %v7698_v10 = vmul.f32 %v22474_v41, %v7697_v47  ;;  %19608 = vmatprep.mubr.msk.f32.mxu0 %vm23126_vm2, %v26152_v26  ;;  %19619 = vmatprep.mubr.msk.f32.mxu1 %vm23126_vm2, %v26152_v26  ;;  %v9504_v47 = vld [vmem:[%s26085_s15] sm:$0xff]  ;;  %v9505_v41 = vld [vmem:[%s26085_s15 + $0x8] sm:$0xff] }
 0x8d1   :  { %v24580_v17 = vadd.f32 %v7701_v25, %v7698_v10  ;;  %21313 = vmatpush3.bf16.msra.mxu0 %v23615_v12  ;;  %21319 = vmatpush3.bf16.msra.mxu1 %v23405_v16  ;;  %v8705_v16 = vld [vmem:[#allocation14 + $0x20] sm:$0xff] }
 0x8d2   :  { %21320 = vmatprep.subr.bf16.mxu0 %v26154_v6  ;;  %21326 = vmatprep.subr.bf16.mxu1 %v26154_v6  ;;  %v9506_v10 = vld [vmem:[%s26085_s15 + $0x10] sm:$0xff]  ;;  %v9507_v25 = vld [vmem:[%s26085_s15 + $0x18] sm:$0xff] }
 0x8d3   :  { %v24585_v15 = vrot.slane %v24580_v17, 1 }
 0x8d4   :  { %19609 = vmatmul.mubr.msk.f32.vlgmr.msra.gmra.mrb[90].mxu0 %vm1206_vm3, %v24563_v58 }
 0x8d5   :  { %19620 = vmatmul.mubr.msk.f32.vlgmr.msra.gmra.mrb[94].mxu1 %vm1206_vm3, %v24585_v15  ;;  %21322 = vmatpush3.bf16.msra.mxu0 %v23570_v59  ;;  %v8706_v59 = vld [vmem:[#allocation14 + $0x28] sm:$0xff] }
 0x8d6   :  { %21328 = vmatpush3.bf16.msra.mxu1 %v23610_v7  ;;  %21323 = vmatprep.subr.bf16.mxu0 %v26154_v6  ;;  %v21332_v7 = vpack.c.bf16 %v8706_v59, %v8705_v16  ;;  %v22095_v16 = vpack.i.bf16 %v24656_v48, %v24651_v11  ;;  %v24678_v59 = vpack.c.bf16 %v9505_v41, %v9504_v47 }
 0x8d7   :  { %21329 = vmatprep.subr.bf16.mxu1 %v26154_v6  ;;  %19630 = vmatprep.mubr.msk.f32.mxu0 %vm23126_vm2, %v26152_v26 }
 0x8d8   :  { %19641 = vmatprep.mubr.msk.f32.mxu1 %vm23126_vm2, %v26152_v26  ;;  %26157 = vst [vmem:[#allocation35_spill] sm:$0xff] %v24678_v59  ;;  %22096 = vrot.lane.b32.xlu0 %v22095_v16, %s23124_s13  ;;  %v24723_v59 = vld [vmem:[%s26084_s14 + $0x20] sm:$0xff] }
 0x8d9   :  { %21325 = vmatpush3.bf16.msra.mxu0 %v23581_v1  ;;  %v8702_v1 = vld [vmem:[#allocation14 + $0x8] sm:$0xff]  ;;  %26164 = vst [vmem:[#allocation42_spill] sm:$0xff] %v24723_v59 }
 0x8da   :  { %21331 = vmatpush3.bf16.msra.mxu1 %v23615_v12  ;;  %21333 = vmatprep.subr.bf16.mxu0 %v21332_v7  ;;  %v24607_v5 = vpack.c.bf16 %v8702_v1, %v8701_v54  ;;  %v24613_v12 = vld [vmem:[%s26080_s10 + $0x10] sm:$0xff]  ;;  %v24704_v1 = vld [vmem:[%s26084_s14 + $0x18] sm:$0xff] }
 0x8db   :  { %v22080_v49 = vpack.i.bf16 %v24618_v31, %v24613_v12  ;;  %v24699_v54 = vld [vmem:[%s26084_s14 + $0x10] sm:$0xff]  ;;  %26161 = vst [vmem:[#allocation39_spill] sm:$0xff] %v24704_v1 }
 0x8dc   :  { %19631 = vmatmul.mubr.msk.f32.vlgmr.msra.gmra.mrb[92].mxu0 %vm1206_vm3, %v24585_v15  ;;  %26160 = vst [vmem:[#allocation38_spill] sm:$0xff] %v24699_v54 }
 0x8dd   :  { %19642 = vmatmul.mubr.msk.f32.vlgmr.msra.gmra.mrb[96].mxu1 %vm1206_vm3, %v24585_v15  ;;  %21335 = vmatpush3.bf16.msra.mxu0 %v21332_v7  ;;  %v24680_v7 = vpack.c.bf16 %v9507_v25, %v9506_v10 }
 0x8de   :  { %21337 = vmatprep.subr.bf16.mxu0 %v21336_v43  ;;  %22081 = vrot.lane.b32.xlu1 %v22080_v49, %s23124_s13 }
 0x8df   :  { %26158 = vst [vmem:[#allocation36_spill] sm:$0xff] %v24680_v7  ;;  %v24718_v7 = vld [vmem:[%s26084_s14 + $0x38] sm:$0xff] }
 0x8e0   :  { %26163 = vst [vmem:[#allocation41_spill] sm:$0xff] %v24718_v7 }
 0x8e1   :  { %21339 = vmatpush3.bf16.msra.mxu0 %v21336_v43  ;;  %v22105_v43 = vpack.i.bf16 %v24690_v39, %v24685_v57 }
 0x8e2   :  { %21341 = vmatprep.subr.bf16.mxu0 %v24607_v5  ;;  %22091 = vrot.lane.b32.xlu1 %v22075_v35, %s23123_s16  ;;  %v24713_v35 = vld [vmem:[%s26084_s14 + $0x30] sm:$0xff] }
 0x8e3   :  { %22106 = vrot.lane.b32.xlu0 %v22105_v43, %s23123_s16  ;;  %26162 = vst [vmem:[#allocation40_spill] sm:$0xff] %v24713_v35  ;;  %v22130_v4 = vpack.i.bf16 %v24718_v7, %v24713_v35 }
 0x8e6   :  { %22101 = vrot.lane.b32.xlu1 %v22080_v49, %s23123_s16  ;;  %v22115_v49 = vpack.i.bf16 %v24704_v1, %v24699_v54 }
 0x8e8   :  { %22116 = vrot.lane.b32.xlu0 %v22115_v49, %s23123_s16 }
 0x8ea   :  { %22111 = vrot.lane.b32.xlu1 %v22085_v3, %s23123_s16  ;;  %v24728_v3 = vld [vmem:[%s26084_s14 + $0x28] sm:$0xff]  ;;  %s23128_s14 = smov 4  }
 0x8eb   :  { %26165 = vst [vmem:[#allocation43_spill] sm:$0xff] %v24728_v3  ;;  %v22125_v26 = vpack.i.bf16 %v24728_v3, %v24723_v59  ;;  %v22155_v3 = vpack.i.bf16 %v9200_v27, %v9199_v2 }
 0x8ed   :  { %22126 = vrot.lane.b32.xlu0 %v22125_v26, %s23123_s16 }
 0x8ee   :  { %22121 = vrot.lane.b32.xlu1 %v22095_v16, %s23123_s16 }
 0x8f1   :  { %22136 = vrot.lane.b32.xlu0 %v22105_v43, %s23124_s13 }
 0x8f2   :  { %22131 = vrot.lane.b32.xlu1 %v22130_v4, %s23123_s16 }
 0x8f5   :  { %22146 = vrot.lane.b32.xlu0 %v22145_v53, %s23123_s16 }
 0x8f6   :  { %22141 = vrot.lane.b32.xlu1 %v22115_v49, %s23124_s13 }
 0x8f9   :  { %22156 = vrot.lane.b32.xlu0 %v22155_v3, %s23123_s16 }
 0x8fa   :  { %22151 = vrot.lane.b32.xlu1 %v22125_v26, %s23124_s13 }
 0x8fd   :  { %22166 = vrot.lane.b32.xlu0 %v22145_v53, %s23124_s13 }
 0x8fe   :  { %22161 = vrot.lane.b32.xlu1 %v22130_v4, %s23124_s13  ;;  %v22175_v4 = vpack.i.bf16 %v9505_v41, %v9504_v47 }
 0x901   :  { %22176 = vrot.lane.b32.xlu0 %v22175_v4, %s23123_s16 }
 0x902   :  { %22171 = vrot.lane.b32.xlu1 %v22155_v3, %s23124_s13 }
 0x905   :  { %22186 = vrot.lane.b32.xlu0 %v22175_v4, %s23124_s13 }
 0x987   :  { %v7773_v6 = vpop.f32.mrb[82].mxu0  ;;  %v7843_v1 = vpop.f32.mrb[86].mxu1 }
 0x988   :  { %v7774_v16 = vadd.f32 %v24336_v50, %v7773_v6  ;;  %v7844_v7 = vadd.f32 %v7843_v1, %v23649_v42  ;;  %v19522_v35 = vpop.f32.mrb[83].mxu0  ;;  %v19533_v54 = vpop.f32.mrb[87].mxu1  ;;  %v22847_v1 = vld [vmem:[#allocation7] sm:$0x1] }
 0x989   :  { %v22180_v54 = vpack.i.bf16 %v9507_v25, %v9506_v10 }
 0x98a   :  { %v7918_v59 = vrot.slane %v7774_v16, 1  ;;  %v7928_v39 = vrot.slane %v7844_v7, 1 }
 0x98b   :  { %22181 = vrot.lane.b32.xlu1 %v22180_v54, %s23123_s16 }
 0x98c   :  { %v7920_v43 = vadd.f32 %v7918_v59, %v23644_v37  ;;  %v7930_v62 = vadd.f32 %v7928_v39, %v23655_v51 }
 0x98e   :  { %v17385_v26 = vmul.f32 -1.442695, %v7920_v43  ;;  %v17386_v29 = vmul.f32 -1.442695, %v7930_v62 }
 0x98f   :  { %v7913_v50 = vpop.f32.mrb[84].mxu0  ;;  %v8019_v6 = vpop.f32.mrb[88].mxu1  ;;  %22191 = vrot.lane.b32.xlu1 %v22180_v54, %s23124_s13 }
 0x990   :  { %22475 = vpow2.f32 %v17385_v26  ;;  %v8020_v2 = vadd.f32 %v22847_v1, %v8019_v6  ;;  %v19544_v27 = vpop.f32.mrb[85].mxu0  ;;  %v19555_v7 = vpop.f32.mrb[89].mxu1 }
 0x991   :  { %22477 = vpow2.f32 %v17386_v29  ;;  %v7914_v27 = vadd.f32 %v7913_v50, %v23651_v45 }
 0x992   :  { %v8164_v37 = vrot.slane %v8020_v2, 1 }
 0x994   :  { %v8166_v51 = vadd.f32 %v8164_v37, %v23641_v36 }
 0x996   :  { %v17390_v59 = vmul.f32 -1.442695, %v8166_v51  ;;  %v7938_v51 = vrot.slane %v7914_v27, 1 }
 0x997   :  { %v8089_v39 = vpop.f32.mrb[86].mxu0  ;;  %v8159_v49 = vpop.f32.mrb[90].mxu1 }
 0x998   :  { %22479 = vpow2.f32 %v17390_v59  ;;  %v8090_v10 = vadd.f32 %v8089_v39, %v23649_v42  ;;  %v19566_v25 = vpop.f32.mrb[87].mxu0  ;;  %v19577_v35 = vpop.f32.mrb[91].mxu1  ;;  %v22848_v42 = vld [vmem:[%s26079_s9] sm:$0x1]  ;;  %s17199_s9 = sshll.u32 %s23129_s8, 4  ;;  %s17200_s9 = int_to_ptr.vmem [resolvable:$true] %s17199_s9 }
 0x999   :  { %v7945_v35 = vrot.slane %v24499_v19, 7  ;;  %p23080_p11 = scmp.lt.s32.totalorder %s17200_s9, %s17200_s9 }
 0x99a   :  { %v22476_v53 = vpop.eup %22475  ;;  %v8174_v47 = vrot.slane %v8090_v10, 1 }
 0x99b   :  { %v22478_v41 = vpop.eup %22477  ;;  %v7924_v3 = vadd.f32 1.0, %v22476_v53 }
 0x99c   :  { %v7934_v16 = vadd.f32 1.0, %v22478_v41  ;;  %v8176_v36 = vadd.f32 %v8174_v47, %v23653_v24 }
 0x99d   :  { %22481 = vrcp.f32 %v7924_v3 }
 0x99e   :  { %22483 = vrcp.f32 %v7934_v16  ;;  %v17391_v43 = vmul.f32 -1.442695, %v8176_v36 }
 0x99f   :  { %v8265_v62 = vpop.f32.mrb[88].mxu0  ;;  %v8335_v26 = vpop.f32.mrb[92].mxu1 }
 0x9a0   :  { %22485 = vpow2.f32 %v17391_v43  ;;  %v8266_v29 = vadd.f32 %v22848_v42, %v8265_v62  ;;  %v8336_v6 = vadd.f32 %v8335_v26, %v23660_v60  ;;  %v19588_v54 = vpop.f32.mrb[89].mxu0  ;;  %v19599_v1 = vpop.f32.mrb[93].mxu1 }
 0x9a2   :  { %v22480_v2 = vpop.eup %22479  ;;  %v8409_v24 = vadd.f32 %v8266_v29, %v23670_v33  ;;  %v8416_v4 = vadd.f32 %v8336_v6, %v23664_v14  ;;  %v8160_v14 = vadd.f32 %v8159_v49, %v23651_v45 }
 0x9a3   :  { %v8170_v7 = vadd.f32 1.0, %v22480_v2 }
 0x9a4   :  { %v17395_v37 = vmul.f32 -1.442695, %v8409_v24  ;;  %v17396_v39 = vmul.f32 -1.442695, %v8416_v4  ;;  %v8184_v29 = vrot.slane %v8160_v14, 1 }
 0x9a5   :  { %22487 = vrcp.f32 %v8170_v7 }
 0x9a6   :  { %22489 = vpow2.f32 %v17395_v37 }
 0x9a7   :  { %v22482_v59 = vpop.eup %22481  ;;  %v8405_v10 = vpop.f32.mrb[90].mxu0  ;;  %22491 = vpow2.f32 %v17396_v39 }
 0x9a8   :  { %v8501_v25 = vpop.f32.mrb[94].mxu1  ;;  %v22484_v53 = vpop.eup %22483  ;;  %v7940_v47 = vmul.f32 %v22482_v59, %v7938_v51  ;;  %v8191_v51 = vrot.slane %v24518_v28, 7 }
 0x9a9   :  { %v8502_v41 = vadd.f32 %v22848_v42, %v8501_v25  ;;  %v19610_v3 = vpop.f32.mrb[91].mxu0  ;;  %v19621_v50 = vpop.f32.mrb[95].mxu1  ;;  %v7947_v16 = vmul.f32 %v22484_v53, %v7945_v35  ;;  %v7943_v4 = vsub.f32 1.0, %v22484_v53 }
 0x9aa   :  { %v22486_v33 = vpop.eup %22485  ;;  %v7941_v36 = vadd.f32 %v7940_v47, %v23681_v61 }
 0x9ab   :  { %v8645_v43 = vadd.f32 %v8502_v41, %v23667_v18  ;;  %v8180_v62 = vadd.f32 1.0, %v22486_v33 }
 0x9ac   :  { %22493 = vtanh.f32 %v7941_v36 }
 0x9ad   :  { %v17400_v26 = vmul.f32 -1.442695, %v8645_v43  ;;  %22495 = vrcp.f32 %v8180_v62 }
 0x9af   :  { %22497 = vpow2.f32 %v17400_v26  ;;  %v22488_v19 = vpop.eup %22487  ;;  %v8571_v6 = vpop.f32.mrb[92].mxu0 }
 0x9b0   :  { %v8641_v42 = vpop.f32.mrb[96].mxu1  ;;  %v22490_v54 = vpop.eup %22489  ;;  %v8186_v1 = vmul.f32 %v22488_v19, %v8184_v29  ;;  %v8572_v2 = vadd.f32 %v8571_v6, %v23660_v60 }
 0x9b1   :  { %v19632_v27 = vpop.f32.mrb[93].mxu0  ;;  %v19643_v61 = vpop.f32.mrb[97].mxu1  ;;  %v8413_v24 = vadd.f32 1.0, %v22490_v54  ;;  %v8642_v26 = vadd.f32 %v8641_v42, %v23688_v20 }
 0x9b2   :  { %v8187_v45 = vadd.f32 %v8186_v1, %v23684_v0  ;;  %v8652_v18 = vadd.f32 %v8572_v2, %v23672_v38  ;;  %v22492_v7 = vpop.eup %22491  ;;  %v8406_v0 = vadd.f32 %v8405_v10, %v23688_v20 }
 0x9b3   :  { %22499 = vrcp.f32 %v8413_v24  ;;  %v8420_v41 = vadd.f32 1.0, %v22492_v7 }
 0x9b4   :  { %22501 = vtanh.f32 %v8187_v45  ;;  %v17401_v49 = vmul.f32 -1.442695, %v8652_v18 }
 0x9b6   :  { %v22494_v37 = vpop.eup %22493  ;;  %22503 = vpow2.f32 %v17401_v49 }
 0x9b7   :  { %v22496_v59 = vpop.eup %22495  ;;  %v7944_v39 = vmul.f32 %v22494_v37, %v7943_v4  ;;  %v8703_v4 = vld [vmem:[#allocation14 + $0x10] sm:$0xff] }
 0x9b8   :  { %v8193_v60 = vmul.f32 %v22496_v59, %v8191_v51  ;;  %v8189_v53 = vsub.f32 1.0, %v22496_v59  ;;  %v26167_v37 = vld [vmem:[#allocation31_spill] sm:$0xff]  ;;  %v26168_v51 = vld [vmem:[#allocation30_spill] sm:$0xff] }
 0x9b9   :  { %v22498_v25 = vpop.eup %22497  ;;  %v7948_v47 = vadd.f32 %v7947_v16, %v7944_v39  ;;  %v26169_v39 = vld [vmem:[#allocation29_spill] sm:$0xff] }
 0x9ba   :  { %v8649_v35 = vadd.f32 1.0, %v22498_v25 }
 0x9bb   :  { %v8679_v38 = vsel %vm8678_vm9, %v24506_v30, %v7948_v47 }
 0x9bc   :  { %22505 = vrcp.f32 %v8649_v35 }
 0x9bd   :  { %v22500_v3 = vpop.eup %22499  ;;  %22507 = vrcp.f32 %v8420_v41 }
 0x9be   :  { %v22502_v50 = vpop.eup %22501  ;;  %v8423_v33 = vmul.f32 %v22500_v3, %v8406_v0  ;;  %v21348_v3 = vpack.c.bf16 %v24630_v13, %v24623_v8 }
 0x9bf   :  { %v8190_v28 = vmul.f32 %v22502_v50, %v8189_v53 }
 0x9c0   :  { %v22504_v36 = vpop.eup %22503  ;;  %v8424_v14 = vadd.f32 %v8423_v33, %v23694_v44  ;;  %21349 = vmatprep.subr.bf16.mxu1 %v21348_v3 }
 0x9c1   :  { %v8194_v43 = vadd.f32 %v8193_v60, %v8190_v28  ;;  %v8656_v62 = vadd.f32 1.0, %v22504_v36  ;;  %v26170_v60 = vld [vmem:[#allocation28_spill] sm:$0xff]  ;;  %21351 = vmatpush3.bf16.msra.mxu1 %v21348_v3  ;;  %v21356_v28 = vpack.c.bf16 %v24643_v32, %v24638_v9 }
 0x9c2   :  { %22509 = vtanh.f32 %v8424_v14 }
 0x9c3   :  { %v8686_v16 = vsel %vm8678_vm9, %v24530_v22, %v8194_v43  ;;  %22511 = vrcp.f32 %v8656_v62  ;;  %v22077_v62 = vpop.permute.xlu0 %22076 }
 0x9c4   :  { %v22079_v13 = vunpack.i.h.bf16 %v22077_v62 }
 0x9c6   :  { %v22506_v30 = vpop.eup %22505 }
 0x9c7   :  { %v8659_v10 = vmul.f32 %v22506_v30, %v8642_v26  ;;  %v22508_v29 = vpop.eup %22507 }
 0x9c8   :  { %v8426_v6 = vsub.f32 1.0, %v22508_v29  ;;  %v8429_v1 = vmul.f32 %v22508_v29, %v24563_v58 }
 0x9c9   :  { %v8660_v19 = vadd.f32 %v8659_v10, %v23699_v63  ;;  %v26171_v10 = vld [vmem:[#allocation37_spill] sm:$0xff] }
 0x9ca   :  { %v21396_v29 = vpack.c.bf16 %v26171_v10, %v24685_v57 }
 0x9cb   :  { %22513 = vtanh.f32 %v8660_v19  ;;  %v24827_v19 = vld [vmem:[#allocation11] ss:$0 sm:$0xff] }
 0x9cc   :  { %v22510_v54 = vpop.eup %22509  ;;  %9017 = vrot.lane.b32.xlu0 %v24827_v19, %s23123_s16 }
 0x9cd   :  { %v8427_v44 = vmul.f32 %v22510_v54, %v8426_v6  ;;  %v22512_v27 = vpop.eup %22511  ;;  %v24838_v54 = vld [vmem:[%s26087_s17] sm:$0x1] }
 0x9ce   :  { %v8662_v22 = vsub.f32 1.0, %v22512_v27  ;;  %v8665_v45 = vmul.f32 %v22512_v27, %v24585_v15  ;;  %v26166_v15 = vld [vmem:[#allocation32_spill] sm:$0xff] }
 0x9cf   :  { %v8430_v2 = vadd.f32 %v8429_v1, %v8427_v44  ;;  %v24849_v1 = vld [vmem:[%s26173_s22] ss:$0 sm:$0xff]  ;;  %v22087_v44 = vpop.permute.xlu0 %22086 }
 0x9d1   :  { %v8687_v61 = vsel %vm8667_vm4, %v8430_v2, %v24558_v55  ;;  %v17406_v2 = vld [vmem:[#allocation16] ss:$0 sm:$0xff] }
 0x9d2   :  { %v8688_v20 = vsel %vm8669_vm5, %v8687_v61, %v24424_v52 }
 0x9d3   :  { %v8689_v42 = vsel %vm8671_vm6, %v8688_v20, %v24283_v56  ;;  %v22097_v27 = vpop.permute.xlu0 %22096 }
 0x9d4   :  { %v8690_v63 = vsel %vm209_vm1, %v8689_v42, %v24149_v46 }
 0x9d5   :  { %v22514_v24 = vpop.eup %22513  ;;  %v8691_v18 = vsel %vm8674_vm7, %v8690_v63, %v24015_v23  ;;  %v8704_v23 = vld [vmem:[#allocation14 + $0x18] sm:$0xff] }
 0x9d6   :  { %v8663_v58 = vmul.f32 %v22514_v24, %v8662_v22  ;;  %v8692_v55 = vsel %vm8676_vm8, %v8691_v18, %v23870_v21 }
 0x9d7   :  { %v8693_v52 = vsel %vm8678_vm9, %v8692_v55, %v23739_v34  ;;  %v24807_v34 = vpop.permute.xlu1 %22081  ;;  %v22107_v24 = vpop.permute.xlu0 %22106 }
 0x9d8   :  { %v8666_v49 = vadd.f32 %v8665_v45, %v8663_v58  ;;  %19652 = vmatprep.mubr.msk.f32.mxu0 %vm1206_vm3, %v8693_v52  ;;  %v22084_v18 = vunpack.i.h.bf16 %v24807_v34  ;;  %v22083_v55 = vunpack.i.l.bf16 %v24807_v34  ;;  %v22099_v34 = vunpack.i.h.bf16 %v22097_v27 }
 0x9d9   :  { %v22108_v3 = vunpack.i.l.bf16 %v22107_v24 }
 0x9da   :  { %v8694_v56 = vsel %vm8667_vm4, %v8666_v49, %v24580_v17  ;;  %v21344_v17 = vpack.c.bf16 %v8704_v23, %v8703_v4  ;;  %v21384_v23 = vpack.c.bf16 %v22084_v18, %v22083_v55  ;;  %v26180_v55 = vmov 0.0|0.0  }
 0x9db   :  { %v8695_v46 = vsel %vm8669_vm5, %v8694_v56, %v24442_v40  ;;  %v22092_v35 = vpop.permute.xlu1 %22091  ;;  %v24857_v63 = vpop.permute.xlu0 %22116 }
 0x9dc   :  { %v8696_v7 = vsel %vm8671_vm6, %v8695_v46, %v26166_v15  ;;  %v22094_v47 = vunpack.i.h.bf16 %v22092_v35  ;;  %v22093_v41 = vunpack.i.l.bf16 %v22092_v35  ;;  %v22089_v46 = vunpack.i.h.bf16 %v22087_v44 }
 0x9dd   :  { %v8697_v21 = vsel %vm209_vm1, %v8696_v7, %v26167_v37  ;;  %v22088_v15 = vunpack.i.l.bf16 %v22087_v44 }
 0x9de   :  { %v8698_v59 = vsel %vm8674_vm7, %v8697_v21, %v26168_v51  ;;  %v21364_v0 = vpack.c.bf16 %v22094_v47, %v22093_v41  ;;  %v26174_v21 = vld [vmem:[#allocation38_spill] sm:$0xff]  ;;  %v26175_v51 = vld [vmem:[#allocation39_spill] sm:$0xff] }
 0x9df   :  { %v8699_v25 = vsel %vm8676_vm8, %v8698_v59, %v26169_v39  ;;  %v22102_v53 = vpop.permute.xlu1 %22101  ;;  %v24861_v56 = vpop.permute.xlu0 %22126  ;;  %v21400_v59 = vpack.c.bf16 %v26175_v51, %v26174_v21  ;;  %v22098_v39 = vunpack.i.l.bf16 %v22097_v27 }
 0x9e0   :  { %v8700_v40 = vsel %vm8678_vm9, %v8699_v25, %v26170_v60  ;;  %v22104_v50 = vunpack.i.h.bf16 %v22102_v53  ;;  %v22103_v33 = vunpack.i.l.bf16 %v22102_v53  ;;  %v21388_v25 = vpack.c.bf16 %v22089_v46, %v22088_v15  ;;  %v26177_v60 = vld [vmem:[#allocation43_spill] sm:$0xff]  ;;  %v26181_v46 = vld [vmem:[#allocation33_spill] sm:$0xff] }
 0x9e1   :  { %19653 = vmatmul.mubr.msk.f32.vlgmr.msra.gmra.mrb[94].mxu0 %vm1206_vm3, %v8700_v40  ;;  %v21392_v41 = vpack.c.bf16 %v22099_v34, %v22098_v39  ;;  %v26183_v34 = vld [vmem:[#allocation34_spill] sm:$0xff] }
 0x9e2   :  { %21343 = vmatpush3.bf16.msra.mxu0 %v24607_v5  ;;  %19663 = vmatprep.mubr.msk.f32.mxu0 %vm1206_vm3, %v8679_v38  ;;  %v21352_v5 = vpack.c.bf16 %v24618_v31, %v24613_v12  ;;  %v21368_v38 = vpack.c.bf16 %v22104_v50, %v22103_v33  ;;  %v21360_v12 = vpack.c.bf16 %v24656_v48, %v24651_v11  ;;  %v24829_v11 = vld [vmem:[#allocation13] sm:$0x1]  ;;  %v26172_v48 = vld [vmem:[#allocation27_spill] sm:$0xff] }
 0x9e3   :  { %21345 = vmatprep.subr.bf16.mxu0 %v21344_v17  ;;  %v22112_v36 = vpop.permute.xlu1 %22111  ;;  %v9599_v6 = vrot.slane %v24829_v11, %v26172_v48  ;;  %v9890_v57 = vrot.slane %v24838_v54, %v26172_v48  ;;  %v22137_v35 = vpop.permute.xlu0 %22136  ;;  %v26178_v33 = vld [vmem:[#allocation40_spill] sm:$0xff] }
 0x9e4   :  { %21353 = vmatprep.subr.bf16.mxu1 %v21352_v5  ;;  %v22114_v14 = vunpack.i.h.bf16 %v22112_v36  ;;  %v22113_v43 = vunpack.i.l.bf16 %v22112_v36  ;;  %v22139_v53 = vunpack.i.h.bf16 %v22137_v35  ;;  %v22138_v50 = vunpack.i.l.bf16 %v22137_v35 }
 0x9e5   :  { %21355 = vmatpush3.bf16.msra.mxu1 %v21352_v5  ;;  %9600 = vrot.lane.b32.xlu1 %v9599_v6, %s23123_s16  ;;  %v26179_v5 = vld [vmem:[#allocation41_spill] sm:$0xff] }
 0x9e6   :  { %21347 = vmatpush3.bf16.msra.mxu0 %v21344_v17  ;;  %v21372_v8 = vpack.c.bf16 %v22114_v14, %v22113_v43  ;;  %21357 = vmatprep.subr.bf16.mxu1 %v21356_v28  ;;  %v26176_v17 = vld [vmem:[#allocation42_spill] sm:$0xff]  ;;  %v21428_v36 = vpack.c.bf16 %v22139_v53, %v22138_v50  ;;  %v22119_v43 = vunpack.i.h.bf16 %v24857_v63  ;;  %v26185_v50 = vld [vmem:[#allocation36_spill] sm:$0xff] }
 0x9e7   :  { %21365 = vmatprep.subr.bf16.mxu0 %v21364_v0  ;;  %v22122_v31 = vpop.permute.xlu1 %22121  ;;  %9685 = vrot.lane.b32.xlu0 %v9599_v6, %s23124_s13  ;;  %v21404_v40 = vpack.c.bf16 %v26177_v60, %v26176_v17 }
 0x9e8   :  { %v22124_v26 = vunpack.i.h.bf16 %v22122_v31  ;;  %v22123_v30 = vunpack.i.l.bf16 %v22122_v31  ;;  %v22128_v31 = vunpack.i.l.bf16 %v24861_v56 }
 0x9e9   :  { %19664 = vmatmul.mubr.msk.f32.vlgmr.msra.gmra.mrb[94].mxu0 %vm1206_vm3, %v8686_v16  ;;  %v22078_v16 = vunpack.i.l.bf16 %v22077_v62  ;;  %21359 = vmatpush3.bf16.msra.mxu1 %v21356_v28  ;;  %v22118_v62 = vunpack.i.l.bf16 %v24857_v63 }
 0x9ea   :  { %21367 = vmatpush3.bf16.msra.mxu0 %v21364_v0  ;;  %v21376_v32 = vpack.c.bf16 %v22124_v26, %v22123_v30  ;;  %21361 = vmatprep.subr.bf16.mxu1 %v21360_v12  ;;  %v22109_v0 = vunpack.i.h.bf16 %v22107_v24 }
 0x9eb   :  { %21369 = vmatprep.subr.bf16.mxu0 %v21368_v38  ;;  %v21380_v9 = vpack.c.bf16 %v22079_v13, %v22078_v16  ;;  %9119 = vrot.lane.b32.xlu1 %v24827_v19, %s23124_s13  ;;  %v24865_v4 = vpop.permute.xlu1 %22131  ;;  %v24889_v16 = vpop.permute.xlu0 %22146  ;;  %v21416_v26 = vpack.c.bf16 %v22119_v43, %v22118_v62 }
 0x9ec   :  { %9891 = vrot.lane.b32.xlu0 %v9890_v57, %s23123_s16  ;;  %v21412_v28 = vpack.c.bf16 %v22109_v0, %v22108_v3  ;;  %v22134_v6 = vunpack.i.h.bf16 %v24865_v4 }
 0x9ed   :  { %21363 = vmatpush3.bf16.msra.mxu1 %v21360_v12  ;;  %v22129_v12 = vunpack.i.h.bf16 %v24861_v56  ;;  %v22148_v56 = vunpack.i.l.bf16 %v24889_v16 }
 0x9ee   :  { %21371 = vmatpush3.bf16.msra.mxu0 %v21368_v38  ;;  %21381 = vmatprep.subr.bf16.mxu1 %v21380_v9  ;;  %v21408_v38 = vpack.c.bf16 %v26179_v5, %v26178_v33 }
 0x9ef   :  { %21373 = vmatprep.subr.bf16.mxu0 %v21372_v8  ;;  %9324 = vrot.lane.b32.xlu1 %v24849_v1, %s23123_s16  ;;  %v22142_v47 = vpop.permute.xlu1 %22141  ;;  %v21420_v48 = vpack.c.bf16 %v22129_v12, %v22128_v31  ;;  %s23075_s16 = scalar_lea.vmem %s17200_s9, 256 }
 0x9f0   :  { %9976 = vrot.lane.b32.xlu0 %v9890_v57, %s23124_s13  ;;  %v22143_v13 = vunpack.i.l.bf16 %v22142_v47  ;;  %v22133_v57 = vunpack.i.l.bf16 %v24865_v4  ;;  %p23076_p10 = scmp.ne.s32.totalorder %s17200_s9, %s23075_s16  ;;  %p23081_p12 = scmp.lt.s32.totalorder %s23075_s16, %s23075_s16 }
 0x9f2   :  { %21375 = vmatpush3.bf16.msra.mxu0 %v21372_v8  ;;  %v22144_v8 = vunpack.i.h.bf16 %v22142_v47  ;;  %v26184_v47 = vld [vmem:[#allocation35_spill] sm:$0xff]  ;;  %p23082_p13 = por %p23081_p12, %p23080_p11 }
 0x9f3   :  { %21377 = vmatprep.subr.bf16.mxu0 %v21376_v32  ;;  %9426 = vrot.lane.b32.xlu1 %v24849_v1, %s23124_s13  ;;  %v22152_v14 = vpop.permute.xlu1 %22151 }
 0x9f4   :  { %v21432_v30 = vpack.c.bf16 %v22144_v8, %v22143_v13  ;;  %p23083_p0 = pnand %p23082_p13, %p23076_p10 }
 0x9f6   :  { %21379 = vmatpush3.bf16.msra.mxu0 %v21376_v32  ;;  %v22153_v32 = vunpack.i.l.bf16 %v22152_v14 }
 0x9f7   :  { %21397 = vmatprep.subr.bf16.mxu0 %v21396_v29  ;;  %v22162_v10 = vpop.permute.xlu1 %22161 }
 0x9f8   :  { %v22163_v27 = vunpack.i.l.bf16 %v22162_v10 }
 0x9fb   :  { %v22172_v63 = vpop.permute.xlu1 %22171 }
 0x9fc   :  { %v22173_v18 = vunpack.i.l.bf16 %v22172_v63 }
 0x9ff   :  { %v22182_v21 = vpop.permute.xlu1 %22181 }
 0xa00   :  { %v22183_v17 = vunpack.i.l.bf16 %v22182_v21 }
 0xa03   :  { %v22192_v3 = vpop.permute.xlu1 %22191 }
 0xa04   :  { %v22194_v33 = vunpack.i.h.bf16 %v22192_v3  ;;  %v22193_v5 = vunpack.i.l.bf16 %v22192_v3 }
 0xabc   :  { %v19665_v61 = vpop.f32.mrb[94].mxu0 }
 0xabd   :  { %v8879_v20 = vadd.f32 %v19665_v61, %v17406_v2  ;;  %v8862_v22 = vpop.f32.mrb[95].mxu0  ;;  %v21424_v61 = vpack.c.bf16 %v22134_v6, %v22133_v57 }
 0xabe   :  { %v8878_v42 = vadd.f32 %v17406_v2, %v8862_v22  ;;  %v22164_v2 = vunpack.i.h.bf16 %v22162_v10 }
 0xabf   :  { %22515 = vtanh.f32 %v8879_v20 }
 0xac0   :  { %22517 = vtanh.f32 %v8878_v42  ;;  %v21440_v20 = vpack.c.bf16 %v22164_v2, %v22163_v27 }
 0xac9   :  { %v22516_v45 = vpop.eup %22515 }
 0xaca   :  { %v22518_v58 = vpop.eup %22517  ;;  %v8885_v49 = vmul.f32 0.2, %v22516_v45  ;;  %vm8883_vm12 = vcmp.ge.f32.partialorder %v22516_v45, 0.0 }
 0xacb   :  { %vm8882_vm10 = vcmp.ge.f32.partialorder %v22518_v58, 0.0  ;;  %v8884_v52 = vmul.f32 0.2, %v22518_v58 }
 0xacc   :  { %v24871_v37 = vsel %vm8883_vm12, %v22516_v45, %v8885_v49 }
 0xacd   :  { %v24863_v7 = vsel %vm8882_vm10, %v22518_v58, %v8884_v52  ;;  %v22174_v58 = vunpack.i.h.bf16 %v22172_v63  ;;  %v22149_v52 = vunpack.i.h.bf16 %v24889_v16 }
 0xace   :  { %19682 = vmatprep.mubr.msk.f32.mxu1 %vm8903_vm11, %v24863_v7  ;;  %19701 = vmatprep.mubr.msk.f32.mxu0 %vm8903_vm11, %v24863_v7 }
 0xacf   :  { %19683 = vmatmul.mubr.msk.f32.vlgmr.msra.gmra.mrb[98].mxu1 %vm8903_vm11, %v24871_v37  ;;  %19702 = vmatmul.mubr.msk.f32.vlgmr.msra.gmra.mrb[96].mxu0 %vm8903_vm11, %v24871_v37  ;;  %v24914_v15 = vpack.c.bf16 %v22174_v58, %v22173_v18 }
 0xad0   :  { %21383 = vmatpush3.bf16.msra.mxu1 %v21380_v9  ;;  %21399 = vmatpush3.bf16.msra.mxu0 %v21396_v29  ;;  %v22154_v9 = vunpack.i.h.bf16 %v22152_v14  ;;  %v22157_v29 = vpop.permute.xlu0 %22156 }
 0xad1   :  { %19720 = vmatprep.mubr.msk.f32.mxu1 %vm8903_vm11, %v24863_v7  ;;  %19739 = vmatprep.mubr.msk.f32.mxu0 %vm8903_vm11, %v24863_v7  ;;  %v22159_v51 = vunpack.i.h.bf16 %v22157_v29 }
 0xad2   :  { %21385 = vmatprep.subr.bf16.mxu1 %v21384_v23  ;;  %21401 = vmatprep.subr.bf16.mxu0 %v21400_v59  ;;  %v21436_v44 = vpack.c.bf16 %v22154_v9, %v22153_v32 }
 0xad4   :  { %21387 = vmatpush3.bf16.msra.mxu1 %v21384_v23  ;;  %21403 = vmatpush3.bf16.msra.mxu0 %v21400_v59  ;;  %v22167_v22 = vpop.permute.xlu0 %22166  ;;  %v26182_v23 = vmov 0.0   ;;  %v22158_v59 = vunpack.i.l.bf16 %v22157_v29 }
 0xad5   :  { %21389 = vmatprep.subr.bf16.mxu1 %v21388_v25  ;;  %21405 = vmatprep.subr.bf16.mxu0 %v21404_v40  ;;  %v22169_v42 = vunpack.i.h.bf16 %v22167_v22  ;;  %v22168_v24 = vunpack.i.l.bf16 %v22167_v22 }
 0xad6   :  { %v24932_v60 = vpack.c.bf16 %v22159_v51, %v22158_v59 }
 0xad7   :  { %v24903_v45 = vpack.c.bf16 %v22169_v42, %v22168_v24  ;;  %v25000_v42 = vpop.permute.xlu1 %9600 }
 0xad8   :  { %21391 = vmatpush3.bf16.msra.mxu1 %v21388_v25  ;;  %21407 = vmatpush3.bf16.msra.mxu0 %v21404_v40  ;;  %v22177_v49 = vpop.permute.xlu0 %22176  ;;  %v22184_v25 = vunpack.i.h.bf16 %v22182_v21 }
 0xad9   :  { %21393 = vmatprep.subr.bf16.mxu1 %v21392_v41  ;;  %21409 = vmatprep.subr.bf16.mxu0 %v21408_v38  ;;  %v22178_v4 = vunpack.i.l.bf16 %v22177_v49 }
 0xada   :  { %v24936_v40 = vpack.c.bf16 %v22184_v25, %v22183_v17 }
 0xadb   :  { %v9120_v25 = vpop.permute.xlu1 %9119 }
 0xadc   :  { %21395 = vmatpush3.bf16.msra.mxu1 %v21392_v41  ;;  %21411 = vmatpush3.bf16.msra.mxu0 %v21408_v38  ;;  %v22187_v35 = vpop.permute.xlu0 %22186  ;;  %v24966_v38 = vpack.c.bf16 %v22194_v33, %v22193_v5 }
 0xadd   :  { %21413 = vmatprep.subr.bf16.mxu1 %v21412_v28  ;;  %21429 = vmatprep.subr.bf16.mxu0 %v21428_v36  ;;  %v22189_v41 = vunpack.i.h.bf16 %v22187_v35  ;;  %v22188_v0 = vunpack.i.l.bf16 %v22187_v35 }
 0xadf   :  { %19721 = vmatmul.mubr.msk.f32.vlgmr.msra.gmra.mrb[100].mxu1 %vm8903_vm11, %v24871_v37  ;;  %19740 = vmatmul.mubr.msk.f32.vlgmr.msra.gmra.mrb[98].mxu0 %vm8903_vm11, %v24871_v37  ;;  %v24959_v53 = vpack.c.bf16 %v22189_v41, %v22188_v0 }
 0xae0   :  { %21415 = vmatpush3.bf16.msra.mxu1 %v21412_v28  ;;  %19758 = vmatprep.mubr.msk.f32.mxu1 %vm8903_vm11, %v24863_v7  ;;  %v9018_v9 = vpop.permute.xlu0 %9017 }
 0xae1   :  { %21431 = vmatpush3.bf16.msra.mxu0 %v21428_v36  ;;  %19777 = vmatprep.mubr.msk.f32.mxu0 %vm8903_vm11, %v24863_v7  ;;  %v22179_v7 = vunpack.i.h.bf16 %v22177_v49 }
 0xae2   :  { %21417 = vmatprep.subr.bf16.mxu1 %v21416_v26  ;;  %21433 = vmatprep.subr.bf16.mxu0 %v21432_v30 }
 0xae3   :  { %v24926_v39 = vpack.c.bf16 %v22179_v7, %v22178_v4 }
 0xae4   :  { %21419 = vmatpush3.bf16.msra.mxu1 %v21416_v26  ;;  %v24998_v22 = vpop.permute.xlu0 %9685 }
 0xae5   :  { %21435 = vmatpush3.bf16.msra.mxu0 %v21432_v30  ;;  %21421 = vmatprep.subr.bf16.mxu1 %v21420_v48 }
 0xae6   :  { %21437 = vmatprep.subr.bf16.mxu0 %v21436_v44 }
 0xae8   :  { %21423 = vmatpush3.bf16.msra.mxu1 %v21420_v48 }
 0xae9   :  { %21439 = vmatpush3.bf16.msra.mxu0 %v21436_v44  ;;  %21425 = vmatprep.subr.bf16.mxu1 %v21424_v61 }
 0xaea   :  { %21441 = vmatprep.subr.bf16.mxu0 %v21440_v20 }
 0xaec   :  { %21427 = vmatpush3.bf16.msra.mxu1 %v21424_v61 }
 0xaed   :  { %21443 = vmatpush3.bf16.msra.mxu0 %v21440_v20  ;;  %21444 = vmatprep.subr.bf16.mxu1 %v26180_v55 }
 0xaee   :  { %21456 = vmatprep.subr.bf16.mxu0 %v26180_v55 }
 0xaef   :  { %19759 = vmatmul.mubr.msk.f32.vlgmr.msra.gmra.mrb[102].mxu1 %vm8903_vm11, %v24871_v37 }
 0xaf0   :  { %19778 = vmatmul.mubr.msk.f32.vlgmr.msra.gmra.mrb[100].mxu0 %vm8903_vm11, %v24871_v37  ;;  %21446 = vmatpush3.bf16.msra.mxu1 %v26181_v46  ;;  %v24923_v37 = vpack.c.bf16 %v22149_v52, %v22148_v56  ;;  %v25007_v56 = vpop.permute.xlu0 %9891 }
 0xaf1   :  { %21458 = vmatpush3.bf16.msra.mxu0 %v24903_v45  ;;  %21447 = vmatprep.subr.bf16.mxu1 %v26180_v55 }
 0xaf2   :  { %21459 = vmatprep.subr.bf16.mxu0 %v26180_v55  ;;  %19788 = vmatprep.mubr.msk.f32.mxu1 %vm23126_vm2, %v26182_v23 }
 0xaf3   :  { %19810 = vmatprep.mubr.msk.f32.mxu0 %vm23126_vm2, %v26182_v23 }
 0xaf4   :  { %21449 = vmatpush3.bf16.msra.mxu1 %v26183_v34 }
 0xaf5   :  { %21461 = vmatpush3.bf16.msra.mxu0 %v24914_v15  ;;  %21450 = vmatprep.subr.bf16.mxu1 %v26180_v55 }
 0xaf6   :  { %21468 = vmatprep.subr.bf16.mxu0 %v26180_v55 }
 0xaf7   :  { %19789 = vmatmul.mubr.f32.vlgmr.msra.gmra.mrb[104].mxu1 %v26182_v23 }
 0xaf8   :  { %21452 = vmatpush3.bf16.msra.mxu1 %v24923_v37  ;;  %19811 = vmatmul.mubr.f32.vlgmr.msra.gmra.mrb[102].mxu0 %v26182_v23 }
 0xaf9   :  { %21470 = vmatpush3.bf16.msra.mxu0 %v24926_v39  ;;  %21453 = vmatprep.subr.bf16.mxu1 %v26180_v55 }
 0xafa   :  { %21471 = vmatprep.subr.bf16.mxu0 %v26180_v55  ;;  %19799 = vmatprep.mubr.msk.f32.mxu1 %vm23126_vm2, %v26182_v23 }
 0xafb   :  { %19832 = vmatprep.mubr.msk.f32.mxu0 %vm23126_vm2, %v26182_v23 }
 0xafc   :  { %21455 = vmatpush3.bf16.msra.mxu1 %v24932_v60 }
 0xafd   :  { %21473 = vmatpush3.bf16.msra.mxu0 %v24936_v40  ;;  %21462 = vmatprep.subr.bf16.mxu1 %v26180_v55 }
 0xafe   :  { %21480 = vmatprep.subr.bf16.mxu0 %v26180_v55 }
 0xaff   :  { %19800 = vmatmul.mubr.f32.vlgmr.msra.gmra.mrb[106].mxu1 %v26182_v23 }
 0xb00   :  { %19833 = vmatmul.mubr.f32.vlgmr.msra.gmra.mrb[104].mxu0 %v26182_v23  ;;  %21464 = vmatpush3.bf16.msra.mxu1 %v26184_v47 }
 0xb01   :  { %21465 = vmatprep.subr.bf16.mxu1 %v26180_v55  ;;  %19821 = vmatprep.mubr.msk.f32.mxu1 %vm23126_vm2, %v26182_v23 }
 0xb02   :  { %21482 = vmatpush3.bf16.msra.mxu0 %v26181_v46  ;;  %19854 = vmatprep.mubr.msk.f32.mxu0 %vm23126_vm2, %v26182_v23 }
 0xb03   :  { %21483 = vmatprep.subr.bf16.mxu0 %v26180_v55 }
 0xb04   :  { %21467 = vmatpush3.bf16.msra.mxu1 %v26185_v50 }
 0xb05   :  { %21474 = vmatprep.subr.bf16.mxu1 %v26180_v55 }
 0xb06   :  { %21485 = vmatpush3.bf16.msra.mxu0 %v26183_v34 }
 0xb07   :  { %19822 = vmatmul.mubr.f32.vlgmr.msra.gmra.mrb[108].mxu1 %v26182_v23  ;;  %21492 = vmatprep.subr.bf16.mxu0 %v26180_v55 }
 0xb08   :  { %21476 = vmatpush3.bf16.msra.mxu1 %v24959_v53  ;;  %19843 = vmatprep.mubr.msk.f32.mxu1 %vm23126_vm2, %v26182_v23 }
 0xb09   :  { %21477 = vmatprep.subr.bf16.mxu1 %v26180_v55 }
 0xb0c   :  { %21479 = vmatpush3.bf16.msra.mxu1 %v24966_v38 }
 0xb0d   :  { %21486 = vmatprep.subr.bf16.mxu1 %v26180_v55 }
 0xb0f   :  { %19844 = vmatmul.mubr.f32.vlgmr.msra.gmra.mrb[110].mxu1 %v26182_v23 }
 0xb10   :  { %21488 = vmatpush3.bf16.msra.mxu1 %v24923_v37  ;;  %19865 = vmatprep.mubr.msk.f32.mxu1 %vm23126_vm2, %v26182_v23 }
 0xb11   :  { %21489 = vmatprep.subr.bf16.mxu1 %v26180_v55 }
 0xb14   :  { %21491 = vmatpush3.bf16.msra.mxu1 %v24932_v60 }
 0xb15   :  { %21498 = vmatprep.subr.bf16.mxu1 %v26180_v55 }
 0xba2   :  { %v19684_v28 = vpop.f32.mrb[98].mxu1  ;;  %v19703_v36 = vpop.f32.mrb[96].mxu0 }
 0xba3   :  { %v8976_v14 = vpop.f32.mrb[99].mxu1  ;;  %v9086_v43 = vpop.f32.mrb[97].mxu0  ;;  %v24990_v10 = vadd.f32 %v19684_v28, %v24827_v19 }
 0xba4   :  { %v24993_v29 = vadd.f32 %v24827_v19, %v8976_v14  ;;  %v25002_v19 = vadd.f32 %v19703_v36, %v9018_v9  ;;  %v25004_v63 = vadd.f32 %v9086_v43, %v9018_v9  ;;  %v9325_v14 = vpop.permute.xlu1 %9324 }
 0xbb2   :  { %v24981_v62 = vpop.f32.mrb[100].mxu1  ;;  %v19741_v8 = vpop.f32.mrb[98].mxu0 }
 0xbb3   :  { %v24983_v13 = vpop.f32.mrb[101].mxu1  ;;  %v9283_v16 = vpop.f32.mrb[99].mxu0  ;;  %v25014_v28 = vadd.f32 %v19741_v8, %v24849_v1 }
 0xbb4   :  { %v25017_v36 = vadd.f32 %v24849_v1, %v9283_v16 }
 0xbc2   :  { %v19760_v12 = vpop.f32.mrb[102].mxu1 }
 0xbc3   :  { %v24985_v31 = vpop.f32.mrb[100].mxu0  ;;  %v9393_v26 = vpop.f32.mrb[103].mxu1 }
 0xbc4   :  { %v24987_v30 = vpop.f32.mrb[101].mxu0 }
 0xbca   :  { %v9575_v32 = vpop.f32.mrb[104].mxu1 }
 0xbcb   :  { %v9576_v48 = vadd.f32 %v9575_v32, %v24829_v11  ;;  %v19790_v6 = vpop.f32.mrb[105].mxu1  ;;  %v9754_v57 = vpop.f32.mrb[102].mxu0  ;;  %v25019_v32 = vadd.f32 %v9393_v26, %v9325_v14 }
 0xbcc   :  { %v19812_v44 = vpop.f32.mrb[103].mxu0 }
 0xbcd   :  { %v9758_v2 = vadd.f32 %v9576_v48, %v24993_v29  ;;  %v9779_v27 = vadd.f32 %v9576_v48, %v24990_v10 }
 0xbcf   :  { %v17421_v61 = vmul.f32 -1.442695, %v9758_v2  ;;  %v17423_v20 = vmul.f32 -1.442695, %v9779_v27  ;;  %v25024_v2 = vadd.f32 %v19760_v12, %v9325_v14 }
 0xbd1   :  { %22519 = vpow2.f32 %v17421_v61 }
 0xbd2   :  { %22521 = vpow2.f32 %v17423_v20  ;;  %v9669_v24 = vpop.f32.mrb[106].mxu1 }
 0xbd3   :  { %v9670_v58 = vadd.f32 %v9669_v24, %v25000_v42  ;;  %v9960_v18 = vpop.f32.mrb[104].mxu0  ;;  %v19801_v49 = vpop.f32.mrb[107].mxu1 }
 0xbd4   :  { %v19834_v52 = vpop.f32.mrb[105].mxu0  ;;  %v9961_v59 = vadd.f32 %v9960_v18, %v25007_v56  ;;  %v9755_v49 = vadd.f32 %v9754_v57, %v24998_v22 }
 0xbd5   :  { %v9765_v7 = vadd.f32 %v9670_v58, %v25004_v63  ;;  %v9786_v4 = vadd.f32 %v9670_v58, %v25002_v19 }
 0xbd6   :  { %v10060_v5 = vrot.slane %v9961_v59, 1 }
 0xbd7   :  { %v17422_v21 = vmul.f32 -1.442695, %v9765_v7  ;;  %v17424_v51 = vmul.f32 -1.442695, %v9786_v4  ;;  %v25029_v4 = vadd.f32 %v24983_v13, %v9120_v25  ;;  %v25036_v13 = vpop.permute.xlu0 %9976 }
 0xbd8   :  { %v10062_v44 = vadd.f32 %v10060_v5, %v25019_v32  ;;  %v10086_v16 = vadd.f32 %v10060_v5, %v25024_v2 }
 0xbd9   :  { %22523 = vpow2.f32 %v17422_v21 }
 0xbda   :  { %22525 = vpow2.f32 %v17424_v51  ;;  %v9866_v17 = vpop.f32.mrb[108].mxu1  ;;  %v17426_v24 = vmul.f32 -1.442695, %v10062_v44  ;;  %v17428_v52 = vmul.f32 -1.442695, %v10086_v16  ;;  %v25032_v51 = vadd.f32 %v24981_v62, %v9120_v25 }
 0xbdb   :  { %v22520_v35 = vpop.eup %22519  ;;  %v9867_v41 = vadd.f32 %v9866_v17, %v24838_v54  ;;  %v19823_v0 = vpop.f32.mrb[109].mxu1 }
 0xbdc   :  { %v22522_v3 = vpop.eup %22521  ;;  %v9762_v33 = vadd.f32 1.0, %v22520_v35 }
 0xbdd   :  { %v9783_v43 = vadd.f32 1.0, %v22522_v3  ;;  %v10050_v9 = vrot.slane %v9867_v41, 1 }
 0xbde   :  { %22527 = vrcp.f32 %v9762_v33 }
 0xbdf   :  { %22529 = vrcp.f32 %v9783_v43  ;;  %v10052_v48 = vadd.f32 %v10050_v9, %v25017_v36  ;;  %v10079_v6 = vadd.f32 %v10050_v9, %v25014_v28 }
 0xbe1   :  { %v17425_v8 = vmul.f32 -1.442695, %v10052_v48  ;;  %v17427_v27 = vmul.f32 -1.442695, %v10079_v6 }
 0xbe2   :  { %v10045_v61 = vpop.f32.mrb[110].mxu1 }
 0xbe3   :  { %v22524_v1 = vpop.eup %22523  ;;  %22531 = vpow2.f32 %v17425_v8  ;;  %v19845_v20 = vpop.f32.mrb[111].mxu1  ;;  %v10046_v25 = vadd.f32 %v10045_v61, %v25036_v13 }
 0xbe4   :  { %v22526_v26 = vpop.eup %22525  ;;  %22533 = vpow2.f32 %v17427_v27  ;;  %v9769_v58 = vadd.f32 1.0, %v22524_v1  ;;  %v9427_v27 = vpop.permute.xlu1 %9426 }
 0xbe5   :  { %v9790_v18 = vadd.f32 1.0, %v22526_v26  ;;  %22535 = vpow2.f32 %v17426_v24  ;;  %v10070_v6 = vrot.slane %v10046_v25, 1  ;;  %v25042_v61 = vadd.f32 %v24987_v30, %v9427_v27 }
 0xbe6   :  { %22537 = vrcp.f32 %v9769_v58 }
 0xbe7   :  { %22539 = vrcp.f32 %v9790_v18 }
 0xbe8   :  { %v22528_v7 = vpop.eup %22527  ;;  %22541 = vpow2.f32 %v17428_v52 }
 0xbe9   :  { %v22530_v12 = vpop.eup %22529  ;;  %v9772_v21 = vmul.f32 %v22528_v7, %v9755_v49 }
 0xbea   :  { %v9793_v59 = vmul.f32 %v22530_v12, %v9755_v49  ;;  %v25047_v12 = vadd.f32 %v24985_v31, %v9427_v27 }
 0xbeb   :  { %v9773_v17 = vadd.f32 %v9772_v21, %v25029_v4 }
 0xbec   :  { %v9794_v35 = vadd.f32 %v9793_v59, %v25032_v51 }
 0xbed   :  { %v22532_v57 = vpop.eup %22531  ;;  %22543 = vtanh.f32 %v9773_v17 }
 0xbee   :  { %v22534_v41 = vpop.eup %22533  ;;  %22545 = vtanh.f32 %v9794_v35  ;;  %v10056_v0 = vadd.f32 1.0, %v22532_v57 }
 0xbef   :  { %v10083_v3 = vadd.f32 1.0, %v22534_v41  ;;  %v22536_v33 = vpop.eup %22535 }
 0xbf0   :  { %22547 = vrcp.f32 %v10056_v0  ;;  %v22538_v62 = vpop.eup %22537  ;;  %v10066_v48 = vadd.f32 1.0, %v22536_v33 }
 0xbf1   :  { %22549 = vrcp.f32 %v10083_v3  ;;  %v22540_v5 = vpop.eup %22539  ;;  %v9775_v43 = vsub.f32 1.0, %v22538_v62  ;;  %v9777_v20 = vmul.f32 0.0, %v22538_v62 }
 0xbf2   :  { %v22542_v14 = vpop.eup %22541  ;;  %v9796_v44 = vsub.f32 1.0, %v22540_v5  ;;  %v9798_v24 = vmul.f32 0.0, %v22540_v5  ;;  %22551 = vrcp.f32 %v10066_v48 }
 0xbf3   :  { %v10090_v1 = vadd.f32 1.0, %v22542_v14 }
 0xbf5   :  { %22553 = vrcp.f32 %v10090_v1 }
 0xbf7   :  { %v22544_v9 = vpop.eup %22543 }
 0xbf8   :  { %v22546_v8 = vpop.eup %22545  ;;  %v9776_v16 = vmul.f32 %v22544_v9, %v9775_v43 }
 0xbf9   :  { %v9797_v26 = vmul.f32 %v22546_v8, %v9796_v44 }
 0xbfa   :  { %v22548_v58 = vpop.eup %22547  ;;  %v25039_v18 = vadd.f32 %v9777_v20, %v9776_v16 }
 0xbfb   :  { %v22550_v49 = vpop.eup %22549  ;;  %v10072_v52 = vmul.f32 %v22548_v58, %v10070_v6  ;;  %v25044_v7 = vadd.f32 %v9798_v24, %v9797_v26 }
 0xbfc   :  { %v10093_v21 = vmul.f32 %v22550_v49, %v10070_v6  ;;  %19855 = vmatmul.mubr.msk.f32.vlgmr.msra.gmra.mrb[106].mxu0 %vm1206_vm3, %v25039_v18  ;;  %19866 = vmatmul.mubr.msk.f32.vlgmr.msra.gmra.mrb[112].mxu1 %vm1206_vm3, %v25039_v18  ;;  %v22552_v31 = vpop.eup %22551 }
 0xbfd   :  { %v10073_v59 = vadd.f32 %v10072_v52, %v25042_v61  ;;  %21494 = vmatpush3.bf16.msra.mxu0 %v24903_v45  ;;  %21500 = vmatpush3.bf16.msra.mxu1 %v26181_v46  ;;  %v10075_v35 = vsub.f32 1.0, %v22552_v31  ;;  %v10077_v3 = vmul.f32 0.0, %v22552_v31 }
 0xbfe   :  { %v10094_v30 = vadd.f32 %v10093_v21, %v25047_v12  ;;  %21495 = vmatprep.subr.bf16.mxu0 %v26180_v55  ;;  %21501 = vmatprep.subr.bf16.mxu1 %v26180_v55 }
 0xbff   :  { %22555 = vtanh.f32 %v10073_v59  ;;  %19876 = vmatprep.mubr.msk.f32.mxu0 %vm23126_vm2, %v26182_v23  ;;  %19887 = vmatprep.mubr.msk.f32.mxu1 %vm23126_vm2, %v26182_v23  ;;  %v22554_v17 = vpop.eup %22553 }
 0xc00   :  { %22557 = vtanh.f32 %v10094_v30  ;;  %v10096_v41 = vsub.f32 1.0, %v22554_v17  ;;  %v10098_v62 = vmul.f32 0.0, %v22554_v17 }
 0xc01   :  { %21497 = vmatpush3.bf16.msra.mxu0 %v24914_v15  ;;  %21503 = vmatpush3.bf16.msra.mxu1 %v26183_v34 }
 0xc02   :  { %21504 = vmatprep.subr.bf16.mxu0 %v26180_v55  ;;  %21510 = vmatprep.subr.bf16.mxu1 %v26180_v55 }
 0xc04   :  { %19877 = vmatmul.mubr.msk.f32.vlgmr.msra.gmra.mrb[108].mxu0 %vm1206_vm3, %v25039_v18  ;;  %19888 = vmatmul.mubr.msk.f32.vlgmr.msra.gmra.mrb[114].mxu1 %vm1206_vm3, %v25044_v7 }
 0xc05   :  { %21506 = vmatpush3.bf16.msra.mxu0 %v24923_v37  ;;  %21512 = vmatpush3.bf16.msra.mxu1 %v24903_v45 }
 0xc06   :  { %21507 = vmatprep.subr.bf16.mxu0 %v26180_v55  ;;  %21513 = vmatprep.subr.bf16.mxu1 %v26180_v55 }
 0xc07   :  { %19898 = vmatprep.mubr.msk.f32.mxu0 %vm23126_vm2, %v26182_v23  ;;  %19909 = vmatprep.mubr.msk.f32.mxu1 %vm23126_vm2, %v26182_v23 }
 0xc09   :  { %v22556_v57 = vpop.eup %22555  ;;  %21509 = vmatpush3.bf16.msra.mxu0 %v24932_v60  ;;  %21515 = vmatpush3.bf16.msra.mxu1 %v24914_v15 }
 0xc0a   :  { %v22558_v0 = vpop.eup %22557  ;;  %v10076_v33 = vmul.f32 %v22556_v57, %v10075_v35  ;;  %21516 = vmatprep.subr.bf16.mxu0 %v26180_v55  ;;  %21522 = vmatprep.subr.bf16.mxu1 %v26180_v55 }
 0xc0b   :  { %v10097_v25 = vmul.f32 %v22558_v0, %v10096_v41 }
 0xc0c   :  { %19899 = vmatmul.mubr.msk.f32.vlgmr.msra.gmra.mrb[110].mxu0 %vm1206_vm3, %v25044_v7  ;;  %19910 = vmatmul.mubr.msk.f32.vlgmr.msra.gmra.mrb[116].mxu1 %vm1206_vm3, %v25044_v7  ;;  %v25087_v5 = vadd.f32 %v10077_v3, %v10076_v33 }
 0xc0d   :  { %21518 = vmatpush3.bf16.msra.mxu0 %v26184_v47  ;;  %21524 = vmatpush3.bf16.msra.mxu1 %v24926_v39  ;;  %v25091_v14 = vadd.f32 %v10098_v62, %v10097_v25 }
 0xc0e   :  { %21519 = vmatprep.subr.bf16.mxu0 %v26180_v55  ;;  %21525 = vmatprep.subr.bf16.mxu1 %v26180_v55  ;;  %v10591_v43 = vrot.slane %v25087_v5, 7 }
 0xc0f   :  { %26186 = vst [vmem:[#allocation32_spill] sm:$0xff] %v25091_v14  ;;  %19920 = vmatprep.mubr.msk.f32.mxu0 %vm23126_vm2, %v26182_v23  ;;  %19931 = vmatprep.mubr.msk.f32.mxu1 %vm23126_vm2, %v26182_v23  ;;  %v10837_v9 = vrot.slane %v25091_v14, 7 }
 0xc11   :  { %21521 = vmatpush3.bf16.msra.mxu0 %v26185_v50  ;;  %21527 = vmatpush3.bf16.msra.mxu1 %v24936_v40 }
 0xc12   :  { %21528 = vmatprep.subr.bf16.mxu0 %v26180_v55  ;;  %21534 = vmatprep.subr.bf16.mxu1 %v26180_v55 }
 0xc14   :  { %19921 = vmatmul.mubr.msk.f32.vlgmr.msra.gmra.mrb[112].mxu0 %vm1206_vm3, %v10591_v43  ;;  %19932 = vmatmul.mubr.msk.f32.vlgmr.msra.gmra.mrb[118].mxu1 %vm1206_vm3, %v10591_v43 }
 0xc15   :  { %21530 = vmatpush3.bf16.msra.mxu0 %v24959_v53  ;;  %21536 = vmatpush3.bf16.msra.mxu1 %v26184_v47 }
 0xc16   :  { %21531 = vmatprep.subr.bf16.mxu0 %v26180_v55  ;;  %21537 = vmatprep.subr.bf16.mxu1 %v26180_v55 }
 0xc17   :  { %19942 = vmatprep.mubr.msk.f32.mxu0 %vm23126_vm2, %v26182_v23  ;;  %19953 = vmatprep.mubr.msk.f32.mxu1 %vm23126_vm2, %v26182_v23 }
 0xc19   :  { %21533 = vmatpush3.bf16.msra.mxu0 %v24966_v38  ;;  %21539 = vmatpush3.bf16.msra.mxu1 %v26185_v50 }
 0xc1a   :  { %21540 = vmatprep.subr.bf16.mxu0 %v26180_v55  ;;  %21546 = vmatprep.subr.bf16.mxu1 %v26180_v55 }
 0xc1c   :  { %19943 = vmatmul.mubr.msk.f32.vlgmr.msra.gmra.mrb[114].mxu0 %vm1206_vm3, %v10591_v43  ;;  %19954 = vmatmul.mubr.msk.f32.vlgmr.msra.gmra.mrb[120].mxu1 %vm1206_vm3, %v10837_v9 }
 0xc1d   :  { %21542 = vmatpush3.bf16.msra.mxu0 %v24926_v39  ;;  %21548 = vmatpush3.bf16.msra.mxu1 %v24959_v53 }
 0xc1e   :  { %21543 = vmatprep.subr.bf16.mxu0 %v26180_v55  ;;  %21549 = vmatprep.subr.bf16.mxu1 %v26180_v55 }
 0xc1f   :  { %19964 = vmatprep.mubr.msk.f32.mxu0 %vm23126_vm2, %v26182_v23  ;;  %19975 = vmatprep.mubr.msk.f32.mxu1 %vm23126_vm2, %v26182_v23 }
 0xc21   :  { %21545 = vmatpush3.bf16.msra.mxu0 %v24936_v40  ;;  %21551 = vmatpush3.bf16.msra.mxu1 %v24966_v38 }
 0xc22   :  { %21558 = vmatprep.subr.bf16.mxu1 %v26180_v55  ;;  %21552 = vmatprep.subr.bf16.mxu0 %v26180_v55 }
 0xc24   :  { %19965 = vmatmul.mubr.msk.f32.vlgmr.msra.gmra.mrb[116].mxu0 %vm1206_vm3, %v10837_v9  ;;  %19976 = vmatmul.mubr.msk.f32.vlgmr.msra.gmra.mrb[122].mxu1 %vm1206_vm3, %v10837_v9 }
 0xc25   :  { %21560 = vmatpush3.bf16.msra.mxu1 %v24923_v37  ;;  %21554 = vmatpush3.bf16.msra.mxu0 %v26181_v46 }
 0xc26   :  { %21561 = vmatprep.subr.bf16.mxu1 %v26180_v55  ;;  %21555 = vmatprep.subr.bf16.mxu0 %v26180_v55 }
 0xc27   :  { %19986 = vmatprep.mubr.msk.f32.mxu0 %vm23126_vm2, %v26182_v23  ;;  %19997 = vmatprep.mubr.msk.f32.mxu1 %vm23126_vm2, %v26182_v23 }
 0xc29   :  { %21563 = vmatpush3.bf16.msra.mxu1 %v24932_v60  ;;  %21557 = vmatpush3.bf16.msra.mxu0 %v26183_v34 }
 0xc2a   :  { %21564 = vmatprep.subr.bf16.mxu0 %v26180_v55  ;;  %21570 = vmatprep.subr.bf16.mxu1 %v26180_v55 }
 0xccf   :  { %v10169_v48 = vpop.f32.mrb[106].mxu0  ;;  %v10239_v6 = vpop.f32.mrb[112].mxu1 }
 0xcd0   :  { %v10170_v44 = vadd.f32 %v10169_v48, %v24829_v11  ;;  %v10240_v8 = vadd.f32 %v10239_v6, %v25000_v42  ;;  %v19856_v27 = vpop.f32.mrb[107].mxu0  ;;  %v19867_v1 = vpop.f32.mrb[113].mxu1 }
 0xcd2   :  { %v10314_v16 = vrot.slane %v10170_v44, 7  ;;  %v10324_v20 = vrot.slane %v10240_v8, 7 }
 0xcd4   :  { %v10316_v26 = vadd.f32 %v10314_v16, %v24993_v29  ;;  %v10326_v58 = vadd.f32 %v10324_v20, %v25004_v63 }
 0xcd6   :  { %v17432_v24 = vmul.f32 -1.442695, %v10316_v26  ;;  %v17433_v31 = vmul.f32 -1.442695, %v10326_v58 }
 0xcd7   :  { %v10309_v49 = vpop.f32.mrb[108].mxu0  ;;  %v10414_v52 = vpop.f32.mrb[114].mxu1 }
 0xcd8   :  { %22559 = vpow2.f32 %v17432_v24  ;;  %v10415_v21 = vadd.f32 %v10414_v52, %v24829_v11  ;;  %v19878_v59 = vpop.f32.mrb[109].mxu0  ;;  %v19889_v30 = vpop.f32.mrb[115].mxu1  ;;  %v10310_v24 = vadd.f32 %v10309_v49, %v24998_v22 }
 0xcd9   :  { %22561 = vpow2.f32 %v17433_v31 }
 0xcda   :  { %v10559_v17 = vrot.slane %v10415_v21, 7  ;;  %v10334_v31 = vrot.slane %v10310_v24, 7 }
 0xcdc   :  { %v10561_v35 = vadd.f32 %v10559_v17, %v24990_v10 }
 0xcde   :  { %v17437_v57 = vmul.f32 -1.442695, %v10561_v35 }
 0xcdf   :  { %v10484_v41 = vpop.f32.mrb[110].mxu0  ;;  %v10554_v0 = vpop.f32.mrb[116].mxu1 }
 0xce0   :  { %22563 = vpow2.f32 %v17437_v57  ;;  %v10485_v3 = vadd.f32 %v10484_v41, %v25000_v42  ;;  %v19900_v33 = vpop.f32.mrb[111].mxu0  ;;  %v19911_v62 = vpop.f32.mrb[117].mxu1 }
 0xce2   :  { %v22560_v25 = vpop.eup %22559  ;;  %v10569_v43 = vrot.slane %v10485_v3, 7 }
 0xce3   :  { %v10320_v9 = vadd.f32 1.0, %v22560_v25  ;;  %v22562_v8 = vpop.eup %22561 }
 0xce4   :  { %v10571_v11 = vadd.f32 %v10569_v43, %v25002_v19  ;;  %v10330_v21 = vadd.f32 1.0, %v22562_v8 }
 0xce5   :  { %22565 = vrcp.f32 %v10320_v9 }
 0xce6   :  { %v17438_v48 = vmul.f32 -1.442695, %v10571_v11  ;;  %v10555_v11 = vadd.f32 %v10554_v0, %v24998_v22 }
 0xce7   :  { %v10660_v6 = vpop.f32.mrb[112].mxu0  ;;  %v10730_v44 = vpop.f32.mrb[118].mxu1 }
 0xce8   :  { %22567 = vpow2.f32 %v17438_v48  ;;  %v10661_v27 = vadd.f32 %v10660_v6, %v24838_v54  ;;  %v10731_v1 = vadd.f32 %v10730_v44, %v25007_v56  ;;  %v19922_v16 = vpop.f32.mrb[113].mxu0  ;;  %v19933_v20 = vpop.f32.mrb[119].mxu1 }
 0xcea   :  { %v22564_v26 = vpop.eup %22563  ;;  %v10805_v58 = vrot.slane %v10661_v27, 2  ;;  %v10815_v52 = vrot.slane %v10731_v1, 2  ;;  %v10579_v27 = vrot.slane %v10555_v11, 7 }
 0xceb   :  { %v10565_v59 = vadd.f32 1.0, %v22564_v26 }
 0xcec   :  { %v10807_v30 = vadd.f32 %v10805_v58, %v25017_v36  ;;  %v10817_v35 = vadd.f32 %v10815_v52, %v25019_v32 }
 0xced   :  { %22569 = vrcp.f32 %v10565_v59 }
 0xcee   :  { %v17442_v17 = vmul.f32 -1.442695, %v10807_v30  ;;  %22571 = vrcp.f32 %v10330_v21  ;;  %v17443_v48 = vmul.f32 -1.442695, %v10817_v35 }
 0xcef   :  { %v22566_v57 = vpop.eup %22565  ;;  %v10800_v41 = vpop.f32.mrb[114].mxu0 }
 0xcf0   :  { %v10906_v3 = vpop.f32.mrb[120].mxu1  ;;  %v10336_v33 = vmul.f32 %v22566_v57, %v10334_v31  ;;  %22573 = vpow2.f32 %v17442_v17  ;;  %v19944_v49 = vpop.f32.mrb[115].mxu0  ;;  %v10341_v57 = vrot.slane %v25039_v18, 7 }
 0xcf1   :  { %v10907_v62 = vadd.f32 %v10906_v3, %v24838_v54  ;;  %v19955_v25 = vpop.f32.mrb[121].mxu1 }
 0xcf2   :  { %v22568_v43 = vpop.eup %22567  ;;  %v10337_v9 = vadd.f32 %v10336_v33, %v25029_v4 }
 0xcf3   :  { %v11051_v6 = vrot.slane %v10907_v62, 2  ;;  %v10575_v44 = vadd.f32 1.0, %v22568_v43 }
 0xcf4   :  { %22575 = vtanh.f32 %v10337_v9 }
 0xcf5   :  { %v11053_v8 = vadd.f32 %v11051_v6, %v25014_v28  ;;  %22577 = vpow2.f32 %v17443_v48  ;;  %v10801_v48 = vadd.f32 %v10800_v41, %v25036_v13 }
 0xcf6   :  { %22579 = vrcp.f32 %v10575_v44 }
 0xcf7   :  { %v17447_v1 = vmul.f32 -1.442695, %v11053_v8  ;;  %v22570_v16 = vpop.eup %22569  ;;  %v10976_v20 = vpop.f32.mrb[116].mxu0 }
 0xcf8   :  { %v11046_v54 = vpop.f32.mrb[122].mxu1  ;;  %v10581_v26 = vmul.f32 %v22570_v16, %v10579_v27  ;;  %v10977_v24 = vadd.f32 %v10976_v20, %v25007_v56  ;;  %v19966_v58 = vpop.f32.mrb[117].mxu0  ;;  %v10825_v20 = vrot.slane %v10801_v48, 2 }
 0xcf9   :  { %22581 = vpow2.f32 %v17447_v1  ;;  %v19977_v52 = vpop.f32.mrb[123].mxu1  ;;  %v22572_v0 = vpop.eup %22571  ;;  %v10586_v1 = vrot.slane %v25044_v7, 7 }
 0xcfa   :  { %v22574_v21 = vpop.eup %22573  ;;  %v10582_v59 = vadd.f32 %v10581_v26, %v25032_v51  ;;  %v11061_v30 = vrot.slane %v10977_v24, 2  ;;  %v10339_v35 = vsub.f32 1.0, %v22572_v0  ;;  %v10343_v62 = vmul.f32 %v22572_v0, %v10341_v57 }
 0xcfb   :  { %v10811_v31 = vadd.f32 1.0, %v22574_v21 }
 0xcfc   :  { %22583 = vtanh.f32 %v10582_v59  ;;  %v11063_v17 = vadd.f32 %v11061_v30, %v25024_v2  ;;  %v11047_v59 = vadd.f32 %v11046_v54, %v25036_v13 }
 0xcfd   :  { %22585 = vrcp.f32 %v10811_v31 }
 0xcfe   :  { %v22576_v3 = vpop.eup %22575  ;;  %v17448_v33 = vmul.f32 -1.442695, %v11063_v17  ;;  %v11071_v17 = vrot.slane %v11047_v59, 2 }
 0xcff   :  { %v10340_v49 = vmul.f32 %v22576_v3, %v10339_v35  ;;  %v22578_v25 = vpop.eup %22577 }
 0xd00   :  { %22587 = vpow2.f32 %v17448_v33  ;;  %v22580_v43 = vpop.eup %22579  ;;  %v10821_v8 = vadd.f32 1.0, %v22578_v25 }
 0xd01   :  { %v25168_v9 = vadd.f32 %v10343_v62, %v10340_v49  ;;  %v10584_v27 = vsub.f32 1.0, %v22580_v43  ;;  %v10588_v41 = vmul.f32 %v22580_v43, %v10586_v1  ;;  %v10832_v62 = vrot.slane %v25087_v5, 1 }
 0xd03   :  { %v22582_v11 = vpop.eup %22581  ;;  %v11083_v44 = vrot.slane %v25168_v9, 1 }
 0xd04   :  { %v11057_v6 = vadd.f32 1.0, %v22582_v11 }
 0xd05   :  { %19987 = vmatmul.mubr.msk.f32.vlgmr.msra.gmra.mrb[118].mxu0 %vm1206_vm3, %v11083_v44  ;;  %19998 = vmatmul.mubr.msk.f32.vlgmr.msra.gmra.mrb[124].mxu1 %vm1206_vm3, %v11083_v44 }
 0xd06   :  { %22589 = vrcp.f32 %v11057_v6  ;;  %v22584_v16 = vpop.eup %22583  ;;  %21566 = vmatpush3.bf16.msra.mxu0 %v24903_v45  ;;  %21572 = vmatpush3.bf16.msra.mxu1 %v26181_v46 }
 0xd07   :  { %v22586_v26 = vpop.eup %22585  ;;  %v10585_v24 = vmul.f32 %v22584_v16, %v10584_v27  ;;  %21567 = vmatprep.subr.bf16.mxu0 %v26180_v55  ;;  %21573 = vmatprep.subr.bf16.mxu1 %v26180_v55  ;;  %22591 = vrcp.f32 %v10821_v8  ;;  %v11078_v8 = vrot.slane %v25091_v14, 1 }
 0xd08   :  { %v10827_v58 = vmul.f32 %v22586_v26, %v10825_v20  ;;  %20008 = vmatprep.mubr.msk.f32.mxu0 %vm23126_vm2, %v26182_v23  ;;  %20019 = vmatprep.mubr.msk.f32.mxu1 %vm23126_vm2, %v26182_v23 }
 0xd09   :  { %v25183_v52 = vadd.f32 %v10588_v41, %v10585_v24 }
 0xd0a   :  { %v22588_v0 = vpop.eup %22587  ;;  %v10828_v21 = vadd.f32 %v10827_v58, %v25042_v61  ;;  %21569 = vmatpush3.bf16.msra.mxu0 %v24914_v15  ;;  %21575 = vmatpush3.bf16.msra.mxu1 %v26183_v34  ;;  %v25271_v58 = vld [vmem:[#allocation13] sm:$0x1] }
 0xd0b   :  { %v11329_v30 = vrot.slane %v25183_v52, 1  ;;  %21576 = vmatprep.subr.bf16.mxu0 %v26180_v55  ;;  %21582 = vmatprep.subr.bf16.mxu1 %v26180_v55  ;;  %v11067_v31 = vadd.f32 1.0, %v22588_v0 }
 0xd0c   :  { %22593 = vtanh.f32 %v10828_v21 }
 0xd0d   :  { %20009 = vmatmul.mubr.msk.f32.vlgmr.msra.gmra.mrb[120].mxu0 %vm1206_vm3, %v11083_v44  ;;  %20020 = vmatmul.mubr.msk.f32.vlgmr.msra.gmra.mrb[126].mxu1 %vm1206_vm3, %v11329_v30  ;;  %22595 = vrcp.f32 %v11067_v31 }
 0xd0e   :  { %21578 = vmatpush3.bf16.msra.mxu0 %v24923_v37  ;;  %21584 = vmatpush3.bf16.msra.mxu1 %v24903_v45 }
 0xd0f   :  { %21579 = vmatprep.subr.bf16.mxu0 %v26180_v55  ;;  %21585 = vmatprep.subr.bf16.mxu1 %v26180_v55 }
 0xd10   :  { %v22590_v54 = vpop.eup %22589  ;;  %20030 = vmatprep.mubr.msk.f32.mxu0 %vm23126_vm2, %v26182_v23  ;;  %20041 = vmatprep.mubr.msk.f32.mxu1 %vm23126_vm2, %v26182_v23 }
 0xd11   :  { %v11073_v35 = vmul.f32 %v22590_v54, %v11071_v17  ;;  %v22592_v57 = vpop.eup %22591 }
 0xd12   :  { %21581 = vmatpush3.bf16.msra.mxu0 %v24932_v60  ;;  %21587 = vmatpush3.bf16.msra.mxu1 %v24914_v15  ;;  %v10830_v33 = vsub.f32 1.0, %v22592_v57  ;;  %v10834_v25 = vmul.f32 %v22592_v57, %v10832_v62 }
 0xd13   :  { %v11074_v3 = vadd.f32 %v11073_v35, %v25047_v12  ;;  %21588 = vmatprep.subr.bf16.mxu0 %v26180_v55  ;;  %21594 = vmatprep.subr.bf16.mxu1 %v26180_v55 }
 0xd15   :  { %22597 = vtanh.f32 %v11074_v3  ;;  %20031 = vmatmul.mubr.msk.f32.vlgmr.msra.gmra.mrb[122].mxu0 %vm1206_vm3, %v11329_v30  ;;  %20042 = vmatmul.mubr.msk.f32.vlgmr.msra.gmra.mrb[128].mxu1 %vm1206_vm3, %v11329_v30 }
 0xd16   :  { %v22594_v49 = vpop.eup %22593  ;;  %21590 = vmatpush3.bf16.msra.mxu0 %v26184_v47  ;;  %21596 = vmatpush3.bf16.msra.mxu1 %v24926_v39 }
 0xd17   :  { %v10831_v43 = vmul.f32 %v22594_v49, %v10830_v33  ;;  %21591 = vmatprep.subr.bf16.mxu0 %v26180_v55  ;;  %21597 = vmatprep.subr.bf16.mxu1 %v26180_v55  ;;  %v22596_v48 = vpop.eup %22595 }
 0xd18   :  { %20052 = vmatprep.mubr.msk.f32.mxu0 %vm23126_vm2, %v26182_v23  ;;  %20063 = vmatprep.mubr.msk.f32.mxu1 %vm23126_vm2, %v26182_v23  ;;  %v11076_v44 = vsub.f32 1.0, %v22596_v48  ;;  %v11080_v1 = vmul.f32 %v22596_v48, %v11078_v8 }
 0xd19   :  { %v25218_v11 = vadd.f32 %v10834_v25, %v10831_v43 }
 0xd1a   :  { %21593 = vmatpush3.bf16.msra.mxu0 %v26185_v50  ;;  %21599 = vmatpush3.bf16.msra.mxu1 %v24936_v40 }
 0xd1b   :  { %v11575_v6 = vrot.slane %v25218_v11, 6  ;;  %21600 = vmatprep.subr.bf16.mxu0 %v26180_v55  ;;  %21606 = vmatprep.subr.bf16.mxu1 %v26180_v55 }
 0xd1d   :  { %20053 = vmatmul.mubr.msk.f32.vlgmr.msra.gmra.mrb[124].mxu0 %vm1206_vm3, %v11575_v6  ;;  %20064 = vmatmul.mubr.msk.f32.vlgmr.msra.gmra.mrb[130].mxu1 %vm1206_vm3, %v11575_v6 }
 0xd1e   :  { %21602 = vmatpush3.bf16.msra.mxu0 %v24959_v53  ;;  %21608 = vmatpush3.bf16.msra.mxu1 %v26184_v47 }
 0xd1f   :  { %v22598_v27 = vpop.eup %22597  ;;  %21603 = vmatprep.subr.bf16.mxu0 %v26180_v55  ;;  %21609 = vmatprep.subr.bf16.mxu1 %v26180_v55 }
 0xd20   :  { %v11077_v16 = vmul.f32 %v22598_v27, %v11076_v44  ;;  %20074 = vmatprep.mubr.msk.f32.mxu0 %vm23126_vm2, %v26182_v23  ;;  %20085 = vmatprep.mubr.msk.f32.mxu1 %vm23126_vm2, %v26182_v23 }
 0xd22   :  { %v25236_v20 = vadd.f32 %v11080_v1, %v11077_v16  ;;  %21605 = vmatpush3.bf16.msra.mxu0 %v24966_v38  ;;  %21611 = vmatpush3.bf16.msra.mxu1 %v26185_v50 }
 0xd23   :  { %21612 = vmatprep.subr.bf16.mxu0 %v26180_v55  ;;  %21618 = vmatprep.subr.bf16.mxu1 %v26180_v55 }
 0xd24   :  { %26187 = vst [vmem:[#allocation31_spill] sm:$0xff] %v25236_v20  ;;  %v11821_v26 = vrot.slane %v25236_v20, 6 }
 0xd25   :  { %20075 = vmatmul.mubr.msk.f32.vlgmr.msra.gmra.mrb[126].mxu0 %vm1206_vm3, %v11575_v6 }
 0xd26   :  { %20086 = vmatmul.mubr.msk.f32.vlgmr.msra.gmra.mrb[132].mxu1 %vm1206_vm3, %v11821_v26  ;;  %21614 = vmatpush3.bf16.msra.mxu0 %v24926_v39 }
 0xd27   :  { %21620 = vmatpush3.bf16.msra.mxu1 %v24959_v53  ;;  %21615 = vmatprep.subr.bf16.mxu0 %v26180_v55 }
 0xd28   :  { %21621 = vmatprep.subr.bf16.mxu1 %v26180_v55  ;;  %20096 = vmatprep.mubr.msk.f32.mxu0 %vm23126_vm2, %v26182_v23 }
 0xd29   :  { %20107 = vmatprep.mubr.msk.f32.mxu1 %vm23126_vm2, %v26182_v23 }
 0xd2a   :  { %21617 = vmatpush3.bf16.msra.mxu0 %v24936_v40 }
 0xd2b   :  { %21623 = vmatpush3.bf16.msra.mxu1 %v24966_v38  ;;  %21624 = vmatprep.subr.bf16.mxu0 %v26180_v55 }
 0xd2c   :  { %21630 = vmatprep.subr.bf16.mxu1 %v26180_v55 }
 0xd2d   :  { %20097 = vmatmul.mubr.msk.f32.vlgmr.msra.gmra.mrb[128].mxu0 %vm1206_vm3, %v11821_v26 }
 0xd2e   :  { %20108 = vmatmul.mubr.msk.f32.vlgmr.msra.gmra.mrb[134].mxu1 %vm1206_vm3, %v11821_v26  ;;  %21626 = vmatpush3.bf16.msra.mxu0 %v26181_v46 }
 0xd2f   :  { %21632 = vmatpush3.bf16.msra.mxu1 %v24923_v37  ;;  %21627 = vmatprep.subr.bf16.mxu0 %v26180_v55 }
 0xd30   :  { %21633 = vmatprep.subr.bf16.mxu1 %v26180_v55  ;;  %20118 = vmatprep.mubr.msk.f32.mxu0 %vm23126_vm2, %v26182_v23 }
 0xd31   :  { %20129 = vmatprep.mubr.msk.f32.mxu1 %vm23126_vm2, %v26182_v23 }
 0xd32   :  { %21629 = vmatpush3.bf16.msra.mxu0 %v26183_v34 }
 0xd33   :  { %21635 = vmatpush3.bf16.msra.mxu1 %v24932_v60  ;;  %21636 = vmatprep.subr.bf16.mxu0 %v26180_v55 }
 0xd34   :  { %21642 = vmatprep.subr.bf16.mxu1 %v26180_v55 }
 0xdd8   :  { %v11152_v41 = vpop.f32.mrb[118].mxu0  ;;  %v11222_v24 = vpop.f32.mrb[124].mxu1 }
 0xdd9   :  { %v11153_v0 = vadd.f32 %v25271_v58, %v11152_v41  ;;  %v11223_v21 = vadd.f32 %v11222_v24, %v25000_v42  ;;  %v19988_v59 = vpop.f32.mrb[119].mxu0  ;;  %v19999_v30 = vpop.f32.mrb[125].mxu1 }
 0xddb   :  { %v11297_v31 = vrot.slane %v11153_v0, 6  ;;  %v11307_v17 = vrot.slane %v11223_v21, 6 }
 0xddd   :  { %v11299_v54 = vadd.f32 %v11297_v31, %v24993_v29  ;;  %v11309_v35 = vadd.f32 %v11307_v17, %v25004_v63 }
 0xddf   :  { %v17452_v57 = vmul.f32 -1.442695, %v11299_v54  ;;  %v17453_v3 = vmul.f32 -1.442695, %v11309_v35  ;;  %v25284_v35 = vld [vmem:[%s26087_s17] sm:$0x1] }
 0xde0   :  { %v11292_v33 = vpop.f32.mrb[120].mxu0  ;;  %v11398_v62 = vpop.f32.mrb[126].mxu1 }
 0xde1   :  { %22599 = vpow2.f32 %v17452_v57  ;;  %v11399_v49 = vadd.f32 %v25271_v58, %v11398_v62  ;;  %v20010_v25 = vpop.f32.mrb[121].mxu0  ;;  %v20021_v43 = vpop.f32.mrb[127].mxu1 }
 0xde2   :  { %22601 = vpow2.f32 %v17453_v3  ;;  %v11293_v43 = vadd.f32 %v11292_v33, %v24998_v22 }
 0xde3   :  { %v11543_v48 = vrot.slane %v11399_v49, 6 }
 0xde5   :  { %v11545_v6 = vadd.f32 %v11543_v48, %v24990_v10 }
 0xde7   :  { %v17457_v44 = vmul.f32 -1.442695, %v11545_v6 }
 0xde8   :  { %v11468_v8 = vpop.f32.mrb[122].mxu0  ;;  %v11538_v27 = vpop.f32.mrb[128].mxu1 }
 0xde9   :  { %22603 = vpow2.f32 %v17457_v44  ;;  %v11469_v1 = vadd.f32 %v11468_v8, %v25000_v42  ;;  %v20032_v16 = vpop.f32.mrb[123].mxu0  ;;  %v20043_v26 = vpop.f32.mrb[129].mxu1 }
 0xdeb   :  { %v22600_v41 = vpop.eup %22599  ;;  %v11553_v24 = vrot.slane %v11469_v1, 6  ;;  %v11317_v1 = vrot.slane %v11293_v43, 6 }
 0xdec   :  { %v22602_v0 = vpop.eup %22601  ;;  %v11303_v21 = vadd.f32 1.0, %v22600_v41  ;;  %v11324_v41 = vrot.slane %v25168_v9, 7 }
 0xded   :  { %v11313_v59 = vadd.f32 1.0, %v22602_v0  ;;  %v11555_v30 = vadd.f32 %v11553_v24, %v25002_v19 }
 0xdee   :  { %22605 = vrcp.f32 %v11303_v21 }
 0xdef   :  { %22607 = vrcp.f32 %v11313_v59  ;;  %v17458_v31 = vmul.f32 -1.442695, %v11555_v30 }
 0xdf0   :  { %v11644_v17 = vpop.f32.mrb[124].mxu0  ;;  %v11714_v54 = vpop.f32.mrb[130].mxu1 }
 0xdf1   :  { %22609 = vpow2.f32 %v17458_v31  ;;  %v11645_v57 = vadd.f32 %v25284_v35, %v11644_v17  ;;  %v11715_v3 = vadd.f32 %v11714_v54, %v25007_v56  ;;  %v20054_v62 = vpop.f32.mrb[125].mxu0  ;;  %v20065_v49 = vpop.f32.mrb[131].mxu1 }
 0xdf2   :  { %v11539_v62 = vadd.f32 %v11538_v27, %v24998_v22 }
 0xdf3   :  { %v22604_v25 = vpop.eup %22603  ;;  %v11789_v48 = vrot.slane %v11645_v57, 3  ;;  %v11799_v44 = vrot.slane %v11715_v3, 3 }
 0xdf4   :  { %v11549_v6 = vadd.f32 1.0, %v22604_v25 }
 0xdf5   :  { %v11791_v8 = vadd.f32 %v11789_v48, %v25017_v36  ;;  %v11801_v24 = vadd.f32 %v11799_v44, %v25019_v32 }
 0xdf6   :  { %22611 = vrcp.f32 %v11549_v6  ;;  %v11563_v6 = vrot.slane %v11539_v62, 6  ;;  %v11570_v62 = vrot.slane %v25183_v52, 7 }
 0xdf7   :  { %v17462_v16 = vmul.f32 -1.442695, %v11791_v8  ;;  %v17463_v43 = vmul.f32 -1.442695, %v11801_v24 }
 0xdf8   :  { %v22606_v26 = vpop.eup %22605  ;;  %v11784_v0 = vpop.f32.mrb[126].mxu0 }
 0xdf9   :  { %v11890_v21 = vpop.f32.mrb[132].mxu1  ;;  %v22608_v59 = vpop.eup %22607  ;;  %v11319_v30 = vmul.f32 %v22606_v26, %v11317_v1  ;;  %22613 = vpow2.f32 %v17462_v16 }
 0xdfa   :  { %v11891_v33 = vadd.f32 %v25284_v35, %v11890_v21  ;;  %v20076_v31 = vpop.f32.mrb[127].mxu0  ;;  %v20087_v17 = vpop.f32.mrb[133].mxu1  ;;  %v11326_v54 = vmul.f32 %v22608_v59, %v11324_v41 }
 0xdfb   :  { %v22610_v57 = vpop.eup %22609  ;;  %v11320_v3 = vadd.f32 %v11319_v30, %v25029_v4 }
 0xdfc   :  { %v12035_v49 = vrot.slane %v11891_v33, 3  ;;  %v11559_v25 = vadd.f32 1.0, %v22610_v57  ;;  %v11322_v57 = vsub.f32 1.0, %v22608_v59 }
 0xdfd   :  { %22615 = vtanh.f32 %v11320_v3 }
 0xdfe   :  { %v12037_v48 = vadd.f32 %v12035_v49, %v25014_v28  ;;  %22617 = vrcp.f32 %v11559_v25 }
 0xdff   :  { %22619 = vpow2.f32 %v17463_v43 }
 0xe00   :  { %v17467_v44 = vmul.f32 -1.442695, %v12037_v48  ;;  %v22612_v8 = vpop.eup %22611  ;;  %v11960_v1 = vpop.f32.mrb[128].mxu0 }
 0xe01   :  { %v12030_v16 = vpop.f32.mrb[134].mxu1  ;;  %v11565_v26 = vmul.f32 %v22612_v8, %v11563_v6  ;;  %v11961_v41 = vadd.f32 %v11960_v1, %v25007_v56  ;;  %v20098_v21 = vpop.f32.mrb[129].mxu0  ;;  %v11785_v1 = vadd.f32 %v11784_v0, %v25036_v13 }
 0xe02   :  { %22621 = vpow2.f32 %v17467_v44  ;;  %v20109_v30 = vpop.f32.mrb[135].mxu1 }
 0xe03   :  { %v22614_v27 = vpop.eup %22613  ;;  %v11566_v33 = vadd.f32 %v11565_v26, %v25032_v51  ;;  %v12045_v24 = vrot.slane %v11961_v41, 3  ;;  %v16966_v26 = vsel %vm8667_vm4, %v25039_v18, %v25168_v9  ;;  %v11809_v0 = vrot.slane %v11785_v1, 3 }
 0xe04   :  { %v11795_v31 = vadd.f32 1.0, %v22614_v27 }
 0xe05   :  { %22623 = vtanh.f32 %v11566_v33  ;;  %v12047_v17 = vadd.f32 %v12045_v24, %v25024_v2 }
 0xe06   :  { %22625 = vrcp.f32 %v11795_v31 }
 0xe07   :  { %v22616_v3 = vpop.eup %22615  ;;  %v17468_v49 = vmul.f32 -1.442695, %v12047_v17 }
 0xe08   :  { %v22618_v25 = vpop.eup %22617  ;;  %v11323_v43 = vmul.f32 %v22616_v3, %v11322_v57  ;;  %v12031_v57 = vadd.f32 %v12030_v16, %v25036_v13  ;;  %v16973_v3 = vsel %vm8667_vm4, %v25044_v7, %v25183_v52 }
 0xe09   :  { %v11572_v48 = vmul.f32 %v22618_v25, %v11570_v62  ;;  %22627 = vpow2.f32 %v17468_v49  ;;  %v22620_v6 = vpop.eup %22619  ;;  %v11568_v27 = vsub.f32 1.0, %v22618_v25 }
 0xe0a   :  { %v25300_v44 = vadd.f32 %v11326_v54, %v11323_v43  ;;  %v11805_v30 = vadd.f32 1.0, %v22620_v6  ;;  %v12055_v25 = vrot.slane %v12031_v57, 3 }
 0xe0c   :  { %v22622_v8 = vpop.eup %22621  ;;  %v12067_v41 = vrot.slane %v25300_v44, 2  ;;  %v25309_v21 = vsel %vm8669_vm5, %v16966_v26, %v25300_v44 }
 0xe0d   :  { %v12041_v59 = vadd.f32 1.0, %v22622_v8  ;;  %v11816_v8 = vrot.slane %v25218_v11, 1 }
 0xe0e   :  { %20119 = vmatmul.mubr.msk.f32.vlgmr.msra.gmra.mrb[130].mxu0 %vm1206_vm3, %v12067_v41  ;;  %20130 = vmatmul.mubr.msk.f32.vlgmr.msra.gmra.mrb[136].mxu1 %vm1206_vm3, %v12067_v41 }
 0xe0f   :  { %22629 = vrcp.f32 %v12041_v59  ;;  %v22624_v54 = vpop.eup %22623  ;;  %21638 = vmatpush3.bf16.msra.mxu0 %v24903_v45  ;;  %21644 = vmatpush3.bf16.msra.mxu1 %v26181_v46 }
 0xe10   :  { %v22626_v18 = vpop.eup %22625  ;;  %v11569_v9 = vmul.f32 %v22624_v54, %v11568_v27  ;;  %21639 = vmatprep.subr.bf16.mxu0 %v26180_v55  ;;  %21645 = vmatprep.subr.bf16.mxu1 %v26180_v55  ;;  %22631 = vrcp.f32 %v11805_v30 }
 0xe11   :  { %v11811_v33 = vmul.f32 %v22626_v18, %v11809_v0  ;;  %20140 = vmatprep.mubr.msk.f32.mxu0 %vm23126_vm2, %v26182_v23  ;;  %20151 = vmatprep.mubr.msk.f32.mxu1 %vm23126_vm2, %v26182_v23  ;;  %v12062_v0 = vrot.slane %v25236_v20, 1 }
 0xe12   :  { %v25321_v24 = vadd.f32 %v11572_v48, %v11569_v9 }
 0xe13   :  { %v22628_v31 = vpop.eup %22627  ;;  %v11812_v17 = vadd.f32 %v11811_v33, %v25042_v61  ;;  %21641 = vmatpush3.bf16.msra.mxu0 %v24914_v15  ;;  %21647 = vmatpush3.bf16.msra.mxu1 %v26183_v34 }
 0xe14   :  { %v12313_v62 = vrot.slane %v25321_v24, 2  ;;  %21648 = vmatprep.subr.bf16.mxu0 %v26180_v55  ;;  %21654 = vmatprep.subr.bf16.mxu1 %v26180_v55  ;;  %v25335_v49 = vsel %vm8669_vm5, %v16973_v3, %v25321_v24  ;;  %v12051_v16 = vadd.f32 1.0, %v22628_v31 }
 0xe15   :  { %22633 = vtanh.f32 %v11812_v17 }
 0xe16   :  { %20141 = vmatmul.mubr.msk.f32.vlgmr.msra.gmra.mrb[132].mxu0 %vm1206_vm3, %v12067_v41  ;;  %20152 = vmatmul.mubr.msk.f32.vlgmr.msra.gmra.mrb[138].mxu1 %vm1206_vm3, %v12313_v62  ;;  %22635 = vrcp.f32 %v12051_v16 }
 0xe17   :  { %21650 = vmatpush3.bf16.msra.mxu0 %v24923_v37  ;;  %21656 = vmatpush3.bf16.msra.mxu1 %v24903_v45 }
 0xe18   :  { %21651 = vmatprep.subr.bf16.mxu0 %v26180_v55  ;;  %21657 = vmatprep.subr.bf16.mxu1 %v26180_v55 }
 0xe19   :  { %v22630_v7 = vpop.eup %22629  ;;  %20162 = vmatprep.mubr.msk.f32.mxu0 %vm23126_vm2, %v26182_v23  ;;  %20173 = vmatprep.mubr.msk.f32.mxu1 %vm23126_vm2, %v26182_v23 }
 0xe1a   :  { %v12057_v52 = vmul.f32 %v22630_v7, %v12055_v25  ;;  %v22632_v43 = vpop.eup %22631 }
 0xe1b   :  { %21653 = vmatpush3.bf16.msra.mxu0 %v24932_v60  ;;  %21659 = vmatpush3.bf16.msra.mxu1 %v24914_v15  ;;  %v11814_v6 = vsub.f32 1.0, %v22632_v43  ;;  %v11818_v26 = vmul.f32 %v22632_v43, %v11816_v8 }
 0xe1c   :  { %v12058_v48 = vadd.f32 %v12057_v52, %v25047_v12  ;;  %21660 = vmatprep.subr.bf16.mxu0 %v26180_v55  ;;  %21666 = vmatprep.subr.bf16.mxu1 %v26180_v55 }
 0xe1e   :  { %22637 = vtanh.f32 %v12058_v48  ;;  %20163 = vmatmul.mubr.msk.f32.vlgmr.msra.gmra.mrb[134].mxu0 %vm1206_vm3, %v12313_v62  ;;  %20174 = vmatmul.mubr.msk.f32.vlgmr.msra.gmra.mrb[140].mxu1 %vm1206_vm3, %v12313_v62 }
 0xe1f   :  { %v22634_v1 = vpop.eup %22633  ;;  %21662 = vmatpush3.bf16.msra.mxu0 %v26184_v47  ;;  %21668 = vmatpush3.bf16.msra.mxu1 %v24926_v39 }
 0xe20   :  { %v11815_v59 = vmul.f32 %v22634_v1, %v11814_v6  ;;  %21663 = vmatprep.subr.bf16.mxu0 %v26180_v55  ;;  %21669 = vmatprep.subr.bf16.mxu1 %v26180_v55  ;;  %v22636_v30 = vpop.eup %22635 }
 0xe21   :  { %20184 = vmatprep.mubr.msk.f32.mxu0 %vm23126_vm2, %v26182_v23  ;;  %20195 = vmatprep.mubr.msk.f32.mxu1 %vm23126_vm2, %v26182_v23  ;;  %v12060_v54 = vsub.f32 1.0, %v22636_v30  ;;  %v12064_v9 = vmul.f32 %v22636_v30, %v12062_v0 }
 0xe22   :  { %v25363_v41 = vadd.f32 %v11818_v26, %v11815_v59 }
 0xe23   :  { %21665 = vmatpush3.bf16.msra.mxu0 %v26185_v50  ;;  %21671 = vmatpush3.bf16.msra.mxu1 %v24936_v40 }
 0xe24   :  { %v12559_v27 = vrot.slane %v25363_v41, 5  ;;  %21672 = vmatprep.subr.bf16.mxu0 %v26180_v55  ;;  %21678 = vmatprep.subr.bf16.mxu1 %v26180_v55 }
 0xe26   :  { %20185 = vmatmul.mubr.msk.f32.vlgmr.msra.gmra.mrb[136].mxu0 %vm1206_vm3, %v12559_v27  ;;  %20196 = vmatmul.mubr.msk.f32.vlgmr.msra.gmra.mrb[142].mxu1 %vm1206_vm3, %v12559_v27 }
 0xe27   :  { %21674 = vmatpush3.bf16.msra.mxu0 %v24959_v53  ;;  %21680 = vmatpush3.bf16.msra.mxu1 %v26184_v47 }
 0xe28   :  { %v22638_v18 = vpop.eup %22637  ;;  %21675 = vmatprep.subr.bf16.mxu0 %v26180_v55  ;;  %21681 = vmatprep.subr.bf16.mxu1 %v26180_v55 }
 0xe29   :  { %v12061_v33 = vmul.f32 %v22638_v18, %v12060_v54  ;;  %20206 = vmatprep.mubr.msk.f32.mxu0 %vm23126_vm2, %v26182_v23  ;;  %20217 = vmatprep.mubr.msk.f32.mxu1 %vm23126_vm2, %v26182_v23 }
 0xe2b   :  { %v25381_v31 = vadd.f32 %v12064_v9, %v12061_v33  ;;  %21677 = vmatpush3.bf16.msra.mxu0 %v24966_v38  ;;  %21683 = vmatpush3.bf16.msra.mxu1 %v26185_v50 }
 0xe2c   :  { %21684 = vmatprep.subr.bf16.mxu0 %v26180_v55  ;;  %21690 = vmatprep.subr.bf16.mxu1 %v26180_v55 }
 0xe2d   :  { %26188 = vst [vmem:[#allocation30_spill] sm:$0xff] %v25381_v31  ;;  %v12805_v17 = vrot.slane %v25381_v31, 5 }
 0xe2e   :  { %20207 = vmatmul.mubr.msk.f32.vlgmr.msra.gmra.mrb[138].mxu0 %vm1206_vm3, %v12559_v27 }
 0xe2f   :  { %20218 = vmatmul.mubr.msk.f32.vlgmr.msra.gmra.mrb[144].mxu1 %vm1206_vm3, %v12805_v17  ;;  %21686 = vmatpush3.bf16.msra.mxu0 %v24926_v39 }
 0xe30   :  { %21692 = vmatpush3.bf16.msra.mxu1 %v24959_v53  ;;  %21687 = vmatprep.subr.bf16.mxu0 %v26180_v55 }
 0xe31   :  { %21693 = vmatprep.subr.bf16.mxu1 %v26180_v55  ;;  %20228 = vmatprep.mubr.msk.f32.mxu0 %vm23126_vm2, %v26182_v23 }
 0xe32   :  { %20239 = vmatprep.mubr.msk.f32.mxu1 %vm23126_vm2, %v26182_v23 }
 0xe33   :  { %21689 = vmatpush3.bf16.msra.mxu0 %v24936_v40 }
 0xe34   :  { %21695 = vmatpush3.bf16.msra.mxu1 %v24966_v38  ;;  %21696 = vmatprep.subr.bf16.mxu0 %v26180_v55 }
 0xe35   :  { %21702 = vmatprep.subr.bf16.mxu1 %v26180_v55 }
 0xe36   :  { %20229 = vmatmul.mubr.msk.f32.vlgmr.msra.gmra.mrb[140].mxu0 %vm1206_vm3, %v12805_v17 }
 0xe37   :  { %20240 = vmatmul.mubr.msk.f32.vlgmr.msra.gmra.mrb[146].mxu1 %vm1206_vm3, %v12805_v17  ;;  %21698 = vmatpush3.bf16.msra.mxu0 %v26181_v46 }
 0xe38   :  { %21704 = vmatpush3.bf16.msra.mxu1 %v24923_v37  ;;  %21699 = vmatprep.subr.bf16.mxu0 %v26180_v55 }
 0xe39   :  { %21705 = vmatprep.subr.bf16.mxu1 %v26180_v55  ;;  %20250 = vmatprep.mubr.msk.f32.mxu0 %vm23126_vm2, %v26182_v23 }
 0xe3a   :  { %20261 = vmatprep.mubr.msk.f32.mxu1 %vm23126_vm2, %v26182_v23 }
 0xe3b   :  { %21701 = vmatpush3.bf16.msra.mxu0 %v26183_v34 }
 0xe3c   :  { %21707 = vmatpush3.bf16.msra.mxu1 %v24932_v60  ;;  %21708 = vmatprep.subr.bf16.mxu0 %v26180_v55 }
 0xe3d   :  { %21714 = vmatprep.subr.bf16.mxu1 %v26180_v55 }
 0xee1   :  { %v12136_v57 = vpop.f32.mrb[130].mxu0  ;;  %v12206_v3 = vpop.f32.mrb[136].mxu1 }
 0xee2   :  { %v12137_v62 = vadd.f32 %v25271_v58, %v12136_v57  ;;  %v12207_v16 = vadd.f32 %v12206_v3, %v25000_v42  ;;  %v20120_v25 = vpop.f32.mrb[131].mxu0  ;;  %v20131_v7 = vpop.f32.mrb[137].mxu1 }
 0xee4   :  { %v12281_v52 = vrot.slane %v12137_v62, 5  ;;  %v12291_v43 = vrot.slane %v12207_v16, 5 }
 0xee6   :  { %v12283_v48 = vadd.f32 %v12281_v52, %v24993_v29  ;;  %v12293_v6 = vadd.f32 %v12291_v43, %v25004_v63 }
 0xee8   :  { %v17472_v8 = vmul.f32 -1.442695, %v12283_v48  ;;  %v17473_v1 = vmul.f32 -1.442695, %v12293_v6 }
 0xee9   :  { %v12276_v26 = vpop.f32.mrb[132].mxu0  ;;  %v12382_v59 = vpop.f32.mrb[138].mxu1 }
 0xeea   :  { %22639 = vpow2.f32 %v17472_v8  ;;  %v12383_v30 = vadd.f32 %v25271_v58, %v12382_v59  ;;  %v20142_v27 = vpop.f32.mrb[133].mxu0  ;;  %v20153_v54 = vpop.f32.mrb[139].mxu1 }
 0xeeb   :  { %22641 = vpow2.f32 %v17473_v1 }
 0xeec   :  { %v12527_v0 = vrot.slane %v12383_v30, 5 }
 0xeee   :  { %v12529_v18 = vadd.f32 %v12527_v0, %v24990_v10 }
 0xef0   :  { %v17477_v9 = vmul.f32 -1.442695, %v12529_v18  ;;  %v12277_v18 = vadd.f32 %v12276_v26, %v24998_v22 }
 0xef1   :  { %v12452_v33 = vpop.f32.mrb[134].mxu0  ;;  %v12522_v17 = vpop.f32.mrb[140].mxu1 }
 0xef2   :  { %22643 = vpow2.f32 %v17477_v9  ;;  %v12453_v57 = vadd.f32 %v12452_v33, %v25000_v42  ;;  %v20164_v3 = vpop.f32.mrb[135].mxu0  ;;  %v20175_v62 = vpop.f32.mrb[141].mxu1 }
 0xef3   :  { %v12301_v62 = vrot.slane %v12277_v18, 5 }
 0xef4   :  { %v22640_v16 = vpop.eup %22639  ;;  %v12537_v25 = vrot.slane %v12453_v57, 5 }
 0xef5   :  { %v22642_v7 = vpop.eup %22641  ;;  %v12287_v52 = vadd.f32 1.0, %v22640_v16 }
 0xef6   :  { %v12297_v43 = vadd.f32 1.0, %v22642_v7  ;;  %v12539_v48 = vadd.f32 %v12537_v25, %v25002_v19  ;;  %v12308_v7 = vrot.slane %v25300_v44, 7 }
 0xef7   :  { %22645 = vrcp.f32 %v12287_v52 }
 0xef8   :  { %22647 = vrcp.f32 %v12297_v43  ;;  %v17478_v6 = vmul.f32 -1.442695, %v12539_v48 }
 0xef9   :  { %v12628_v8 = vpop.f32.mrb[136].mxu0  ;;  %v12698_v1 = vpop.f32.mrb[142].mxu1 }
 0xefa   :  { %22649 = vpow2.f32 %v17478_v6  ;;  %v12629_v59 = vadd.f32 %v25284_v35, %v12628_v8  ;;  %v12699_v30 = vadd.f32 %v12698_v1, %v25007_v56  ;;  %v20186_v27 = vpop.f32.mrb[137].mxu0  ;;  %v20197_v54 = vpop.f32.mrb[143].mxu1 }
 0xefc   :  { %v22644_v0 = vpop.eup %22643  ;;  %v12773_v9 = vrot.slane %v12629_v59, 4  ;;  %v12783_v57 = vrot.slane %v12699_v30, 4 }
 0xefd   :  { %v12533_v33 = vadd.f32 1.0, %v22644_v0  ;;  %v12523_v0 = vadd.f32 %v12522_v17, %v24998_v22 }
 0xefe   :  { %v12775_v3 = vadd.f32 %v12773_v9, %v25017_v36  ;;  %v12785_v52 = vadd.f32 %v12783_v57, %v25019_v32 }
 0xeff   :  { %22651 = vrcp.f32 %v12533_v33  ;;  %v12547_v57 = vrot.slane %v12523_v0, 5 }
 0xf00   :  { %v17482_v16 = vmul.f32 -1.442695, %v12775_v3  ;;  %v17483_v44 = vmul.f32 -1.442695, %v12785_v52 }
 0xf01   :  { %v22646_v25 = vpop.eup %22645  ;;  %v12768_v43 = vpop.f32.mrb[138].mxu0 }
 0xf02   :  { %v12874_v48 = vpop.f32.mrb[144].mxu1  ;;  %v22648_v6 = vpop.eup %22647  ;;  %v12303_v8 = vmul.f32 %v22646_v25, %v12301_v62  ;;  %22653 = vpow2.f32 %v17482_v16 }
 0xf03   :  { %v12875_v26 = vadd.f32 %v25284_v35, %v12874_v48  ;;  %v20208_v1 = vpop.f32.mrb[139].mxu0  ;;  %v20219_v59 = vpop.f32.mrb[145].mxu1  ;;  %v12310_v30 = vmul.f32 %v22648_v6, %v12308_v7 }
 0xf04   :  { %v22650_v27 = vpop.eup %22649  ;;  %v12304_v54 = vadd.f32 %v12303_v8, %v25029_v4 }
 0xf05   :  { %v13019_v18 = vrot.slane %v12875_v26, 4  ;;  %v12543_v9 = vadd.f32 1.0, %v22650_v27 }
 0xf06   :  { %22655 = vtanh.f32 %v12304_v54  ;;  %v12306_v54 = vsub.f32 1.0, %v22648_v6 }
 0xf07   :  { %v13021_v33 = vadd.f32 %v13019_v18, %v25014_v28  ;;  %22657 = vrcp.f32 %v12543_v9  ;;  %v12554_v18 = vrot.slane %v25321_v24, 7 }
 0xf08   :  { %22659 = vpow2.f32 %v17483_v44 }
 0xf09   :  { %v17487_v3 = vmul.f32 -1.442695, %v13021_v33  ;;  %v22652_v62 = vpop.eup %22651  ;;  %v12944_v16 = vpop.f32.mrb[140].mxu0 }
 0xf0a   :  { %v13014_v25 = vpop.f32.mrb[146].mxu1  ;;  %v12549_v48 = vmul.f32 %v22652_v62, %v12547_v57  ;;  %v12945_v7 = vadd.f32 %v12944_v16, %v25007_v56  ;;  %v20230_v8 = vpop.f32.mrb[141].mxu0 }
 0xf0b   :  { %22661 = vpow2.f32 %v17487_v3  ;;  %v20241_v1 = vpop.f32.mrb[147].mxu1 }
 0xf0c   :  { %v22654_v17 = vpop.eup %22653  ;;  %v12550_v26 = vadd.f32 %v12549_v48, %v25032_v51  ;;  %v13029_v52 = vrot.slane %v12945_v7, 4  ;;  %v12769_v48 = vadd.f32 %v12768_v43, %v25036_v13 }
 0xf0d   :  { %v12779_v59 = vadd.f32 1.0, %v22654_v17 }
 0xf0e   :  { %22663 = vtanh.f32 %v12550_v26  ;;  %v13031_v27 = vadd.f32 %v13029_v52, %v25024_v2  ;;  %v12793_v17 = vrot.slane %v12769_v48, 4 }
 0xf0f   :  { %22665 = vrcp.f32 %v12779_v59 }
 0xf10   :  { %v22656_v0 = vpop.eup %22655  ;;  %v17488_v9 = vmul.f32 -1.442695, %v13031_v27 }
 0xf11   :  { %v22658_v44 = vpop.eup %22657  ;;  %v12307_v33 = vmul.f32 %v22656_v0, %v12306_v54  ;;  %v13015_v54 = vadd.f32 %v13014_v25, %v25036_v13 }
 0xf12   :  { %v12556_v57 = vmul.f32 %v22658_v44, %v12554_v18  ;;  %22667 = vpow2.f32 %v17488_v9  ;;  %v22660_v3 = vpop.eup %22659  ;;  %v12552_v1 = vsub.f32 1.0, %v22658_v44 }
 0xf13   :  { %v25438_v62 = vadd.f32 %v12310_v30, %v12307_v33  ;;  %v12789_v24 = vadd.f32 1.0, %v22660_v3  ;;  %v13039_v25 = vrot.slane %v13015_v54, 4 }
 0xf15   :  { %v22662_v16 = vpop.eup %22661  ;;  %v13051_v8 = vrot.slane %v25438_v62, 3  ;;  %v25445_v6 = vsel %vm8671_vm6, %v25309_v21, %v25438_v62 }
 0xf16   :  { %v13025_v7 = vadd.f32 1.0, %v22662_v16  ;;  %v12800_v16 = vrot.slane %v25363_v41, 1 }
 0xf17   :  { %20251 = vmatmul.mubr.msk.f32.vlgmr.msra.gmra.mrb[142].mxu0 %vm1206_vm3, %v13051_v8  ;;  %20262 = vmatmul.mubr.msk.f32.vlgmr.msra.gmra.mrb[148].mxu1 %vm1206_vm3, %v13051_v8 }
 0xf18   :  { %22669 = vrcp.f32 %v13025_v7  ;;  %v22664_v30 = vpop.eup %22663  ;;  %21710 = vmatpush3.bf16.msra.mxu0 %v24903_v45  ;;  %21716 = vmatpush3.bf16.msra.mxu1 %v26181_v46 }
 0xf19   :  { %v22666_v43 = vpop.eup %22665  ;;  %v12553_v26 = vmul.f32 %v22664_v30, %v12552_v1  ;;  %21711 = vmatprep.subr.bf16.mxu0 %v26180_v55  ;;  %21717 = vmatprep.subr.bf16.mxu1 %v26180_v55  ;;  %22671 = vrcp.f32 %v12789_v24 }
 0xf1a   :  { %v12795_v21 = vmul.f32 %v22666_v43, %v12793_v17  ;;  %20272 = vmatprep.mubr.msk.f32.mxu0 %vm23126_vm2, %v26182_v23  ;;  %20283 = vmatprep.mubr.msk.f32.mxu1 %vm23126_vm2, %v26182_v23  ;;  %v13046_v43 = vrot.slane %v25381_v31, 1 }
 0xf1b   :  { %v25457_v52 = vadd.f32 %v12556_v57, %v12553_v26 }
 0xf1c   :  { %v22668_v59 = vpop.eup %22667  ;;  %v12796_v27 = vadd.f32 %v12795_v21, %v25042_v61  ;;  %21713 = vmatpush3.bf16.msra.mxu0 %v24914_v15  ;;  %21719 = vmatpush3.bf16.msra.mxu1 %v26183_v34 }
 0xf1d   :  { %v13297_v0 = vrot.slane %v25457_v52, 3  ;;  %21720 = vmatprep.subr.bf16.mxu0 %v26180_v55  ;;  %21726 = vmatprep.subr.bf16.mxu1 %v26180_v55  ;;  %v25469_v18 = vsel %vm8671_vm6, %v25335_v49, %v25457_v52  ;;  %v13035_v9 = vadd.f32 1.0, %v22668_v59 }
 0xf1e   :  { %22673 = vtanh.f32 %v12796_v27 }
 0xf1f   :  { %20273 = vmatmul.mubr.msk.f32.vlgmr.msra.gmra.mrb[144].mxu0 %vm1206_vm3, %v13051_v8  ;;  %20284 = vmatmul.mubr.msk.f32.vlgmr.msra.gmra.mrb[150].mxu1 %vm1206_vm3, %v13297_v0  ;;  %22675 = vrcp.f32 %v13035_v9 }
 0xf20   :  { %21722 = vmatpush3.bf16.msra.mxu0 %v24923_v37  ;;  %21728 = vmatpush3.bf16.msra.mxu1 %v24903_v45 }
 0xf21   :  { %21723 = vmatprep.subr.bf16.mxu0 %v26180_v55  ;;  %21729 = vmatprep.subr.bf16.mxu1 %v26180_v55 }
 0xf22   :  { %v22670_v44 = vpop.eup %22669  ;;  %20294 = vmatprep.mubr.msk.f32.mxu0 %vm23126_vm2, %v26182_v23  ;;  %20305 = vmatprep.mubr.msk.f32.mxu1 %vm23126_vm2, %v26182_v23 }
 0xf23   :  { %v13041_v33 = vmul.f32 %v22670_v44, %v13039_v25  ;;  %v22672_v49 = vpop.eup %22671 }
 0xf24   :  { %21725 = vmatpush3.bf16.msra.mxu0 %v24932_v60  ;;  %21731 = vmatpush3.bf16.msra.mxu1 %v24914_v15  ;;  %v12798_v3 = vsub.f32 1.0, %v22672_v49  ;;  %v12802_v7 = vmul.f32 %v22672_v49, %v12800_v16 }
 0xf25   :  { %v13042_v57 = vadd.f32 %v13041_v33, %v25047_v12  ;;  %21732 = vmatprep.subr.bf16.mxu0 %v26180_v55  ;;  %21738 = vmatprep.subr.bf16.mxu1 %v26180_v55 }
 0xf27   :  { %22677 = vtanh.f32 %v13042_v57  ;;  %20295 = vmatmul.mubr.msk.f32.vlgmr.msra.gmra.mrb[146].mxu0 %vm1206_vm3, %v13297_v0  ;;  %20306 = vmatmul.mubr.msk.f32.vlgmr.msra.gmra.mrb[152].mxu1 %vm1206_vm3, %v13297_v0 }
 0xf28   :  { %v22674_v48 = vpop.eup %22673  ;;  %21734 = vmatpush3.bf16.msra.mxu0 %v26184_v47  ;;  %21740 = vmatpush3.bf16.msra.mxu1 %v24926_v39 }
 0xf29   :  { %v12799_v8 = vmul.f32 %v22674_v48, %v12798_v3  ;;  %21735 = vmatprep.subr.bf16.mxu0 %v26180_v55  ;;  %21741 = vmatprep.subr.bf16.mxu1 %v26180_v55  ;;  %v22676_v1 = vpop.eup %22675 }
 0xf2a   :  { %20316 = vmatprep.mubr.msk.f32.mxu0 %vm23126_vm2, %v26182_v23  ;;  %20327 = vmatprep.mubr.msk.f32.mxu1 %vm23126_vm2, %v26182_v23  ;;  %v13044_v17 = vsub.f32 1.0, %v22676_v1  ;;  %v13048_v21 = vmul.f32 %v22676_v1, %v13046_v43 }
 0xf2b   :  { %v25497_v24 = vadd.f32 %v12802_v7, %v12799_v8 }
 0xf2c   :  { %21737 = vmatpush3.bf16.msra.mxu0 %v26185_v50  ;;  %21743 = vmatpush3.bf16.msra.mxu1 %v24936_v40 }
 0xf2d   :  { %v13543_v30 = vrot.slane %v25497_v24, 4  ;;  %21744 = vmatprep.subr.bf16.mxu0 %v26180_v55  ;;  %21750 = vmatprep.subr.bf16.mxu1 %v26180_v55 }
 0xf2f   :  { %20317 = vmatmul.mubr.msk.f32.vlgmr.msra.gmra.mrb[148].mxu0 %vm1206_vm3, %v13543_v30  ;;  %20328 = vmatmul.mubr.msk.f32.vlgmr.msra.gmra.mrb[154].mxu1 %vm1206_vm3, %v13543_v30 }
 0xf30   :  { %21746 = vmatpush3.bf16.msra.mxu0 %v24959_v53  ;;  %21752 = vmatpush3.bf16.msra.mxu1 %v26184_v47 }
 0xf31   :  { %v22678_v26 = vpop.eup %22677  ;;  %21747 = vmatprep.subr.bf16.mxu0 %v26180_v55  ;;  %21753 = vmatprep.subr.bf16.mxu1 %v26180_v55 }
 0xf32   :  { %v13045_v59 = vmul.f32 %v22678_v26, %v13044_v17  ;;  %20338 = vmatprep.mubr.msk.f32.mxu0 %vm23126_vm2, %v26182_v23  ;;  %20349 = vmatprep.mubr.msk.f32.mxu1 %vm23126_vm2, %v26182_v23 }
 0xf34   :  { %v25515_v27 = vadd.f32 %v13048_v21, %v13045_v59  ;;  %21749 = vmatpush3.bf16.msra.mxu0 %v24966_v38  ;;  %21755 = vmatpush3.bf16.msra.mxu1 %v26185_v50 }
 0xf35   :  { %21756 = vmatprep.subr.bf16.mxu0 %v26180_v55  ;;  %21762 = vmatprep.subr.bf16.mxu1 %v26180_v55 }
 0xf36   :  { %26189 = vst [vmem:[#allocation29_spill] sm:$0xff] %v25515_v27  ;;  %v13789_v54 = vrot.slane %v25515_v27, 4 }
 0xf37   :  { %20339 = vmatmul.mubr.msk.f32.vlgmr.msra.gmra.mrb[150].mxu0 %vm1206_vm3, %v13543_v30 }
 0xf38   :  { %20350 = vmatmul.mubr.msk.f32.vlgmr.msra.gmra.mrb[156].mxu1 %vm1206_vm3, %v13789_v54  ;;  %21758 = vmatpush3.bf16.msra.mxu0 %v24926_v39 }
 0xf39   :  { %21764 = vmatpush3.bf16.msra.mxu1 %v24959_v53  ;;  %21759 = vmatprep.subr.bf16.mxu0 %v26180_v55 }
 0xf3a   :  { %21765 = vmatprep.subr.bf16.mxu1 %v26180_v55  ;;  %20360 = vmatprep.mubr.msk.f32.mxu0 %vm23126_vm2, %v26182_v23 }
 0xf3b   :  { %20371 = vmatprep.mubr.msk.f32.mxu1 %vm23126_vm2, %v26182_v23 }
 0xf3c   :  { %21761 = vmatpush3.bf16.msra.mxu0 %v24936_v40 }
 0xf3d   :  { %21767 = vmatpush3.bf16.msra.mxu1 %v24966_v38  ;;  %21768 = vmatprep.subr.bf16.mxu0 %v26180_v55 }
 0xf3e   :  { %21774 = vmatprep.subr.bf16.mxu1 %v26180_v55 }
 0xf3f   :  { %20361 = vmatmul.mubr.msk.f32.vlgmr.msra.gmra.mrb[152].mxu0 %vm1206_vm3, %v13789_v54 }
 0xf40   :  { %20372 = vmatmul.mubr.msk.f32.vlgmr.msra.gmra.mrb[158].mxu1 %vm1206_vm3, %v13789_v54  ;;  %21770 = vmatpush3.bf16.msra.mxu0 %v26181_v46 }
 0xf41   :  { %21776 = vmatpush3.bf16.msra.mxu1 %v24923_v37  ;;  %21771 = vmatprep.subr.bf16.mxu0 %v26180_v55 }
 0xf42   :  { %21777 = vmatprep.subr.bf16.mxu1 %v26180_v55  ;;  %20382 = vmatprep.mubr.msk.f32.mxu0 %vm23126_vm2, %v26182_v23 }
 0xf43   :  { %20393 = vmatprep.mubr.msk.f32.mxu1 %vm23126_vm2, %v26182_v23 }
 0xf44   :  { %21773 = vmatpush3.bf16.msra.mxu0 %v26183_v34 }
 0xf45   :  { %21779 = vmatpush3.bf16.msra.mxu1 %v24932_v60  ;;  %21780 = vmatprep.subr.bf16.mxu0 %v26180_v55 }
 0xf46   :  { %21786 = vmatprep.subr.bf16.mxu1 %v26180_v55 }
 0xfea   :  { %v13120_v0 = vpop.f32.mrb[142].mxu0  ;;  %v13190_v9 = vpop.f32.mrb[148].mxu1 }
 0xfeb   :  { %v13121_v25 = vadd.f32 %v25271_v58, %v13120_v0  ;;  %v13191_v44 = vadd.f32 %v13190_v9, %v25000_v42  ;;  %v20252_v33 = vpop.f32.mrb[143].mxu0  ;;  %v20263_v49 = vpop.f32.mrb[149].mxu1 }
 0xfed   :  { %v13265_v57 = vrot.slane %v13121_v25, 4  ;;  %v13275_v3 = vrot.slane %v13191_v44, 4 }
 0xfef   :  { %v13267_v16 = vadd.f32 %v13265_v57, %v24993_v29  ;;  %v13277_v48 = vadd.f32 %v13275_v3, %v25004_v63 }
 0xff1   :  { %v17492_v7 = vmul.f32 -1.442695, %v13267_v16  ;;  %v17493_v8 = vmul.f32 -1.442695, %v13277_v48 }
 0xff2   :  { %v13260_v1 = vpop.f32.mrb[144].mxu0  ;;  %v13366_v30 = vpop.f32.mrb[150].mxu1 }
 0xff3   :  { %22679 = vpow2.f32 %v17492_v7  ;;  %v13367_v17 = vadd.f32 %v25271_v58, %v13366_v30  ;;  %v20274_v43 = vpop.f32.mrb[145].mxu0  ;;  %v20285_v26 = vpop.f32.mrb[151].mxu1 }
 0xff4   :  { %22681 = vpow2.f32 %v17493_v8 }
 0xff5   :  { %v13511_v21 = vrot.slane %v13367_v17, 4 }
 0xff7   :  { %v13513_v59 = vadd.f32 %v13511_v21, %v24990_v10 }
 0xff9   :  { %v17497_v54 = vmul.f32 -1.442695, %v13513_v59 }
 0xffa   :  { %v13436_v0 = vpop.f32.mrb[146].mxu0  ;;  %v13506_v9 = vpop.f32.mrb[152].mxu1 }
 0xffb   :  { %22683 = vpow2.f32 %v17497_v54  ;;  %v13437_v25 = vadd.f32 %v13436_v0, %v25000_v42  ;;  %v20296_v44 = vpop.f32.mrb[147].mxu0  ;;  %v20307_v33 = vpop.f32.mrb[153].mxu1  ;;  %v13261_v54 = vadd.f32 %v13260_v1, %v24998_v22 }
 0xffd   :  { %v22680_v49 = vpop.eup %22679  ;;  %v13521_v57 = vrot.slane %v13437_v25, 4 }
 0xffe   :  { %v22682_v3 = vpop.eup %22681  ;;  %v13271_v16 = vadd.f32 1.0, %v22680_v49  ;;  %v13285_v49 = vrot.slane %v13261_v54, 4  ;;  %v13507_v54 = vadd.f32 %v13506_v9, %v24998_v22 }
 0xfff   :  { %v13281_v48 = vadd.f32 1.0, %v22682_v3  ;;  %v13523_v58 = vadd.f32 %v13521_v57, %v25002_v19 }
0x1000   :  { %22685 = vrcp.f32 %v13271_v16  ;;  %v13292_v16 = vrot.slane %v25438_v62, 7 }
0x1001   :  { %22687 = vrcp.f32 %v13281_v48  ;;  %v17498_v7 = vmul.f32 -1.442695, %v13523_v58 }
0x1002   :  { %v13612_v8 = vpop.f32.mrb[148].mxu0  ;;  %v13682_v30 = vpop.f32.mrb[154].mxu1 }
0x1003   :  { %22689 = vpow2.f32 %v17498_v7  ;;  %v13613_v17 = vadd.f32 %v25284_v35, %v13612_v8  ;;  %v13683_v43 = vadd.f32 %v13682_v30, %v25007_v56  ;;  %v20318_v26 = vpop.f32.mrb[149].mxu0  ;;  %v20329_v21 = vpop.f32.mrb[155].mxu1 }
0x1005   :  { %v22684_v59 = vpop.eup %22683  ;;  %v13757_v0 = vrot.slane %v13613_v17, 5  ;;  %v13767_v44 = vrot.slane %v13683_v43, 5 }
0x1006   :  { %v13517_v25 = vadd.f32 1.0, %v22684_v59 }
0x1007   :  { %v13759_v33 = vadd.f32 %v13757_v0, %v25017_v36  ;;  %v13769_v48 = vadd.f32 %v13767_v44, %v25019_v32 }
0x1008   :  { %22691 = vrcp.f32 %v13517_v25 }
0x1009   :  { %v17502_v57 = vmul.f32 -1.442695, %v13759_v33  ;;  %v17503_v62 = vmul.f32 -1.442695, %v13769_v48  ;;  %v13531_v33 = vrot.slane %v13507_v54, 4 }
0x100a   :  { %v22686_v3 = vpop.eup %22685  ;;  %v13752_v58 = vpop.f32.mrb[150].mxu0 }
0x100b   :  { %v13858_v7 = vpop.f32.mrb[156].mxu1  ;;  %v22688_v8 = vpop.eup %22687  ;;  %v13287_v30 = vmul.f32 %v22686_v3, %v13285_v49  ;;  %22693 = vpow2.f32 %v17502_v57 }
0x100c   :  { %v13859_v1 = vadd.f32 %v25284_v35, %v13858_v7  ;;  %v20340_v17 = vpop.f32.mrb[151].mxu0  ;;  %v20351_v26 = vpop.f32.mrb[157].mxu1  ;;  %v13294_v43 = vmul.f32 %v22688_v8, %v13292_v16 }
0x100d   :  { %v22690_v21 = vpop.eup %22689  ;;  %v13288_v59 = vadd.f32 %v13287_v30, %v25029_v4 }
0x100e   :  { %v14003_v0 = vrot.slane %v13859_v1, 5  ;;  %v13527_v25 = vadd.f32 1.0, %v22690_v21 }
0x100f   :  { %22695 = vtanh.f32 %v13288_v59  ;;  %v13290_v59 = vsub.f32 1.0, %v22688_v8 }
0x1010   :  { %v14005_v44 = vadd.f32 %v14003_v0, %v25014_v28  ;;  %22697 = vrcp.f32 %v13527_v25  ;;  %v13538_v0 = vrot.slane %v25457_v52, 7 }
0x1011   :  { %22699 = vpow2.f32 %v17503_v62 }
0x1012   :  { %v17507_v49 = vmul.f32 -1.442695, %v14005_v44  ;;  %v22692_v57 = vpop.eup %22691  ;;  %v13928_v35 = vpop.f32.mrb[152].mxu0 }
0x1013   :  { %v13998_v3 = vpop.f32.mrb[158].mxu1  ;;  %v13533_v7 = vmul.f32 %v22692_v57, %v13531_v33  ;;  %v13929_v16 = vadd.f32 %v13928_v35, %v25007_v56  ;;  %v20362_v30 = vpop.f32.mrb[153].mxu0 }
0x1014   :  { %22701 = vpow2.f32 %v17507_v49  ;;  %v20373_v17 = vpop.f32.mrb[159].mxu1 }
0x1015   :  { %v22694_v9 = vpop.eup %22693  ;;  %v13534_v1 = vadd.f32 %v13533_v7, %v25032_v51  ;;  %v14013_v48 = vrot.slane %v13929_v16, 5  ;;  %v13753_v7 = vadd.f32 %v13752_v58, %v25036_v13 }
0x1016   :  { %v13763_v26 = vadd.f32 1.0, %v22694_v9 }
0x1017   :  { %22703 = vtanh.f32 %v13534_v1  ;;  %v14015_v21 = vadd.f32 %v14013_v48, %v25024_v2  ;;  %v13777_v9 = vrot.slane %v13753_v7, 5 }
0x1018   :  { %22705 = vrcp.f32 %v13763_v26 }
0x1019   :  { %v22696_v54 = vpop.eup %22695  ;;  %v17508_v25 = vmul.f32 -1.442695, %v14015_v21 }
0x101a   :  { %v22698_v62 = vpop.eup %22697  ;;  %v13291_v44 = vmul.f32 %v22696_v54, %v13290_v59  ;;  %v13999_v59 = vadd.f32 %v13998_v3, %v25036_v13 }
0x101b   :  { %v13540_v33 = vmul.f32 %v22698_v62, %v13538_v0  ;;  %22707 = vpow2.f32 %v17508_v25  ;;  %v22700_v49 = vpop.eup %22699  ;;  %v13536_v17 = vsub.f32 1.0, %v22698_v62 }
0x101c   :  { %v25572_v57 = vadd.f32 %v13294_v43, %v13291_v44  ;;  %v13773_v52 = vadd.f32 1.0, %v22700_v49  ;;  %v14023_v3 = vrot.slane %v13999_v59, 5 }
0x101e   :  { %v22702_v35 = vpop.eup %22701  ;;  %v14035_v30 = vrot.slane %v25572_v57, 4  ;;  %v25579_v8 = vsel %vm209_vm1, %v25445_v6, %v25572_v57 }
0x101f   :  { %v14009_v16 = vadd.f32 1.0, %v22702_v35  ;;  %v13784_v35 = vrot.slane %v25497_v24, 1 }
0x1020   :  { %20383 = vmatmul.mubr.msk.f32.vlgmr.msra.gmra.mrb[154].mxu0 %vm1206_vm3, %v14035_v30  ;;  %20394 = vmatmul.mubr.msk.f32.vlgmr.msra.gmra.mrb[160].mxu1 %vm1206_vm3, %v14035_v30 }
0x1021   :  { %22709 = vrcp.f32 %v14009_v16  ;;  %v22704_v43 = vpop.eup %22703  ;;  %21782 = vmatpush3.bf16.msra.mxu0 %v24903_v45  ;;  %21788 = vmatpush3.bf16.msra.mxu1 %v26181_v46 }
0x1022   :  { %v22706_v58 = vpop.eup %22705  ;;  %v13537_v1 = vmul.f32 %v22704_v43, %v13536_v17  ;;  %21783 = vmatprep.subr.bf16.mxu0 %v26180_v55  ;;  %21789 = vmatprep.subr.bf16.mxu1 %v26180_v55  ;;  %22711 = vrcp.f32 %v13773_v52 }
0x1023   :  { %v13779_v6 = vmul.f32 %v22706_v58, %v13777_v9  ;;  %20404 = vmatprep.mubr.msk.f32.mxu0 %vm23126_vm2, %v26182_v23  ;;  %20415 = vmatprep.mubr.msk.f32.mxu1 %vm23126_vm2, %v26182_v23  ;;  %v14030_v58 = vrot.slane %v25515_v27, 1 }
0x1024   :  { %v25591_v48 = vadd.f32 %v13540_v33, %v13537_v1 }
0x1025   :  { %v22708_v26 = vpop.eup %22707  ;;  %v13780_v21 = vadd.f32 %v13779_v6, %v25042_v61  ;;  %21785 = vmatpush3.bf16.msra.mxu0 %v24914_v15  ;;  %21791 = vmatpush3.bf16.msra.mxu1 %v26183_v34 }
0x1026   :  { %v14281_v54 = vrot.slane %v25591_v48, 4  ;;  %21792 = vmatprep.subr.bf16.mxu0 %v26180_v55  ;;  %21798 = vmatprep.subr.bf16.mxu1 %v26180_v55  ;;  %v25603_v0 = vsel %vm209_vm1, %v25469_v18, %v25591_v48  ;;  %v14019_v25 = vadd.f32 1.0, %v22708_v26 }
0x1027   :  { %22713 = vtanh.f32 %v13780_v21 }
0x1028   :  { %20405 = vmatmul.mubr.msk.f32.vlgmr.msra.gmra.mrb[156].mxu0 %vm1206_vm3, %v14035_v30  ;;  %20416 = vmatmul.mubr.msk.f32.vlgmr.msra.gmra.mrb[162].mxu1 %vm1206_vm3, %v14281_v54  ;;  %22715 = vrcp.f32 %v14019_v25 }
0x1029   :  { %21794 = vmatpush3.bf16.msra.mxu0 %v24923_v37  ;;  %21800 = vmatpush3.bf16.msra.mxu1 %v24903_v45 }
0x102a   :  { %21795 = vmatprep.subr.bf16.mxu0 %v26180_v55  ;;  %21801 = vmatprep.subr.bf16.mxu1 %v26180_v55 }
0x102b   :  { %v22710_v62 = vpop.eup %22709  ;;  %20426 = vmatprep.mubr.msk.f32.mxu0 %vm23126_vm2, %v26182_v23  ;;  %20437 = vmatprep.mubr.msk.f32.mxu1 %vm23126_vm2, %v26182_v23 }
0x102c   :  { %v14025_v44 = vmul.f32 %v22710_v62, %v14023_v3  ;;  %v22712_v18 = vpop.eup %22711  ;;  %v25684_v3 = vld [vmem:[#allocation13] sm:$0x1] }
0x102d   :  { %21797 = vmatpush3.bf16.msra.mxu0 %v24932_v60  ;;  %21803 = vmatpush3.bf16.msra.mxu1 %v24914_v15  ;;  %v13782_v49 = vsub.f32 1.0, %v22712_v18  ;;  %v13786_v16 = vmul.f32 %v22712_v18, %v13784_v35 }
0x102e   :  { %v14026_v33 = vadd.f32 %v14025_v44, %v25047_v12  ;;  %21804 = vmatprep.subr.bf16.mxu0 %v26180_v55  ;;  %21810 = vmatprep.subr.bf16.mxu1 %v26180_v55 }
0x1030   :  { %22717 = vtanh.f32 %v14026_v33  ;;  %20427 = vmatmul.mubr.msk.f32.vlgmr.msra.gmra.mrb[158].mxu0 %vm1206_vm3, %v14281_v54  ;;  %20438 = vmatmul.mubr.msk.f32.vlgmr.msra.gmra.mrb[164].mxu1 %vm1206_vm3, %v14281_v54 }
0x1031   :  { %v22714_v7 = vpop.eup %22713  ;;  %21806 = vmatpush3.bf16.msra.mxu0 %v26184_v47  ;;  %21812 = vmatpush3.bf16.msra.mxu1 %v24926_v39 }
0x1032   :  { %v13783_v30 = vmul.f32 %v22714_v7, %v13782_v49  ;;  %21807 = vmatprep.subr.bf16.mxu0 %v26180_v55  ;;  %21813 = vmatprep.subr.bf16.mxu1 %v26180_v55  ;;  %v22716_v17 = vpop.eup %22715 }
0x1033   :  { %20448 = vmatprep.mubr.msk.f32.mxu0 %vm23126_vm2, %v26182_v23  ;;  %20459 = vmatprep.mubr.msk.f32.mxu1 %vm23126_vm2, %v26182_v23  ;;  %v14028_v9 = vsub.f32 1.0, %v22716_v17  ;;  %v14032_v6 = vmul.f32 %v22716_v17, %v14030_v58 }
0x1034   :  { %v25631_v52 = vadd.f32 %v13786_v16, %v13783_v30 }
0x1035   :  { %21809 = vmatpush3.bf16.msra.mxu0 %v26185_v50  ;;  %21815 = vmatpush3.bf16.msra.mxu1 %v24936_v40 }
0x1036   :  { %v14527_v43 = vrot.slane %v25631_v52, 3  ;;  %21816 = vmatprep.subr.bf16.mxu0 %v26180_v55  ;;  %21822 = vmatprep.subr.bf16.mxu1 %v26180_v55 }
0x1038   :  { %20449 = vmatmul.mubr.msk.f32.vlgmr.msra.gmra.mrb[160].mxu0 %vm1206_vm3, %v14527_v43  ;;  %20460 = vmatmul.mubr.msk.f32.vlgmr.msra.gmra.mrb[166].mxu1 %vm1206_vm3, %v14527_v43 }
0x1039   :  { %21818 = vmatpush3.bf16.msra.mxu0 %v24959_v53  ;;  %21824 = vmatpush3.bf16.msra.mxu1 %v26184_v47 }
0x103a   :  { %v22718_v1 = vpop.eup %22717  ;;  %21819 = vmatprep.subr.bf16.mxu0 %v26180_v55  ;;  %21825 = vmatprep.subr.bf16.mxu1 %v26180_v55 }
0x103b   :  { %v14029_v26 = vmul.f32 %v22718_v1, %v14028_v9  ;;  %20470 = vmatprep.mubr.msk.f32.mxu0 %vm23126_vm2, %v26182_v23  ;;  %20481 = vmatprep.mubr.msk.f32.mxu1 %vm23126_vm2, %v26182_v23 }
0x103d   :  { %v25649_v21 = vadd.f32 %v14032_v6, %v14029_v26  ;;  %21821 = vmatpush3.bf16.msra.mxu0 %v24966_v38  ;;  %21827 = vmatpush3.bf16.msra.mxu1 %v26185_v50 }
0x103e   :  { %21828 = vmatprep.subr.bf16.mxu0 %v26180_v55  ;;  %21834 = vmatprep.subr.bf16.mxu1 %v26180_v55 }
0x103f   :  { %26190 = vst [vmem:[#allocation28_spill] sm:$0xff] %v25649_v21  ;;  %v14773_v59 = vrot.slane %v25649_v21, 3 }
0x1040   :  { %20471 = vmatmul.mubr.msk.f32.vlgmr.msra.gmra.mrb[162].mxu0 %vm1206_vm3, %v14527_v43 }
0x1041   :  { %20482 = vmatmul.mubr.msk.f32.vlgmr.msra.gmra.mrb[168].mxu1 %vm1206_vm3, %v14773_v59  ;;  %21830 = vmatpush3.bf16.msra.mxu0 %v24926_v39 }
0x1042   :  { %21836 = vmatpush3.bf16.msra.mxu1 %v24959_v53  ;;  %21831 = vmatprep.subr.bf16.mxu0 %v26180_v55 }
0x1043   :  { %21837 = vmatprep.subr.bf16.mxu1 %v26180_v55  ;;  %20492 = vmatprep.mubr.msk.f32.mxu0 %vm23126_vm2, %v26182_v23 }
0x1044   :  { %20503 = vmatprep.mubr.msk.f32.mxu1 %vm23126_vm2, %v26182_v23 }
0x1045   :  { %21833 = vmatpush3.bf16.msra.mxu0 %v24936_v40 }
0x1046   :  { %21839 = vmatpush3.bf16.msra.mxu1 %v24966_v38  ;;  %21840 = vmatprep.subr.bf16.mxu0 %v26180_v55 }
0x1047   :  { %21846 = vmatprep.subr.bf16.mxu1 %v26180_v55 }
0x1048   :  { %20493 = vmatmul.mubr.msk.f32.vlgmr.msra.gmra.mrb[164].mxu0 %vm1206_vm3, %v14773_v59 }
0x1049   :  { %20504 = vmatmul.mubr.msk.f32.vlgmr.msra.gmra.mrb[170].mxu1 %vm1206_vm3, %v14773_v59  ;;  %21842 = vmatpush3.bf16.msra.mxu0 %v26181_v46 }
0x104a   :  { %21848 = vmatpush3.bf16.msra.mxu1 %v24923_v37  ;;  %21843 = vmatprep.subr.bf16.mxu0 %v26180_v55 }
0x104b   :  { %21849 = vmatprep.subr.bf16.mxu1 %v26180_v55  ;;  %20514 = vmatprep.mubr.msk.f32.mxu0 %vm23126_vm2, %v26182_v23 }
0x104c   :  { %20525 = vmatprep.mubr.msk.f32.mxu1 %vm23126_vm2, %v26182_v23 }
0x104d   :  { %21845 = vmatpush3.bf16.msra.mxu0 %v26183_v34 }
0x104e   :  { %21851 = vmatpush3.bf16.msra.mxu1 %v24932_v60  ;;  %21852 = vmatprep.subr.bf16.mxu0 %v26180_v55 }
0x104f   :  { %21858 = vmatprep.subr.bf16.mxu1 %v26180_v55 }
0x10f3   :  { %v14104_v54 = vpop.f32.mrb[154].mxu0  ;;  %v14174_v25 = vpop.f32.mrb[160].mxu1 }
0x10f4   :  { %v14105_v62 = vadd.f32 %v25684_v3, %v14104_v54  ;;  %v14175_v44 = vadd.f32 %v14174_v25, %v25000_v42  ;;  %v20384_v18 = vpop.f32.mrb[155].mxu0  ;;  %v20395_v33 = vpop.f32.mrb[161].mxu1 }
0x10f6   :  { %v14249_v49 = vrot.slane %v14105_v62, 3  ;;  %v14259_v35 = vrot.slane %v14175_v44, 3 }
0x10f8   :  { %v14251_v7 = vadd.f32 %v14249_v49, %v24993_v29  ;;  %v14261_v16 = vadd.f32 %v14259_v35, %v25004_v63 }
0x10fa   :  { %v17512_v30 = vmul.f32 -1.442695, %v14251_v7  ;;  %v17513_v17 = vmul.f32 -1.442695, %v14261_v16 }
0x10fb   :  { %v14244_v43 = vpop.f32.mrb[156].mxu0  ;;  %v14350_v9 = vpop.f32.mrb[162].mxu1 }
0x10fc   :  { %22719 = vpow2.f32 %v17512_v30  ;;  %v14351_v58 = vadd.f32 %v25684_v3, %v14350_v9  ;;  %v20406_v1 = vpop.f32.mrb[157].mxu0  ;;  %v20417_v6 = vpop.f32.mrb[163].mxu1 }
0x10fd   :  { %22721 = vpow2.f32 %v17513_v17  ;;  %v25697_v6 = vld [vmem:[%s26087_s17] sm:$0x1] }
0x10fe   :  { %v14495_v26 = vrot.slane %v14351_v58, 3 }
0x1100   :  { %v14497_v59 = vadd.f32 %v14495_v26, %v24990_v10 }
0x1102   :  { %v17517_v54 = vmul.f32 -1.442695, %v14497_v59 }
0x1103   :  { %v14420_v25 = vpop.f32.mrb[158].mxu0  ;;  %v14490_v62 = vpop.f32.mrb[164].mxu1 }
0x1104   :  { %22723 = vpow2.f32 %v17517_v54  ;;  %v14421_v44 = vadd.f32 %v14420_v25, %v25000_v42  ;;  %v20428_v18 = vpop.f32.mrb[159].mxu0  ;;  %v20439_v33 = vpop.f32.mrb[165].mxu1 }
0x1105   :  { %v14245_v18 = vadd.f32 %v14244_v43, %v24998_v22 }
0x1106   :  { %v22720_v49 = vpop.eup %22719  ;;  %v14505_v35 = vrot.slane %v14421_v44, 3 }
0x1107   :  { %v22722_v7 = vpop.eup %22721  ;;  %v14255_v16 = vadd.f32 1.0, %v22720_v49 }
0x1108   :  { %v14265_v30 = vadd.f32 1.0, %v22722_v7  ;;  %v14507_v9 = vadd.f32 %v14505_v35, %v25002_v19 }
0x1109   :  { %22725 = vrcp.f32 %v14255_v16  ;;  %v14269_v16 = vrot.slane %v14245_v18, 3  ;;  %v14491_v18 = vadd.f32 %v14490_v62, %v24998_v22 }
0x110a   :  { %22727 = vrcp.f32 %v14265_v30  ;;  %v17518_v17 = vmul.f32 -1.442695, %v14507_v9 }
0x110b   :  { %v14596_v58 = vpop.f32.mrb[160].mxu0  ;;  %v14666_v1 = vpop.f32.mrb[166].mxu1  ;;  %v14515_v31 = vrot.slane %v14491_v18, 3 }
0x110c   :  { %22729 = vpow2.f32 %v17518_v17  ;;  %v14597_v26 = vadd.f32 %v25697_v6, %v14596_v58  ;;  %v14667_v59 = vadd.f32 %v14666_v1, %v25007_v56  ;;  %v20450_v54 = vpop.f32.mrb[161].mxu0  ;;  %v20461_v25 = vpop.f32.mrb[167].mxu1  ;;  %v14276_v17 = vrot.slane %v25572_v57, 7 }
0x110e   :  { %v22724_v44 = vpop.eup %22723  ;;  %v14741_v33 = vrot.slane %v14597_v26, 6  ;;  %v14751_v35 = vrot.slane %v14667_v59, 6 }
0x110f   :  { %v14501_v49 = vadd.f32 1.0, %v22724_v44 }
0x1110   :  { %v14743_v7 = vadd.f32 %v14741_v33, %v25017_v36  ;;  %v14753_v58 = vadd.f32 %v14751_v35, %v25019_v32 }
0x1111   :  { %22731 = vrcp.f32 %v14501_v49 }
0x1112   :  { %v17522_v30 = vmul.f32 -1.442695, %v14743_v7  ;;  %v17523_v57 = vmul.f32 -1.442695, %v14753_v58 }
0x1113   :  { %v22726_v9 = vpop.eup %22725  ;;  %v14736_v14 = vpop.f32.mrb[162].mxu0 }
0x1114   :  { %v14842_v1 = vpop.f32.mrb[168].mxu1  ;;  %v22728_v54 = vpop.eup %22727  ;;  %v14271_v25 = vmul.f32 %v22726_v9, %v14269_v16  ;;  %22733 = vpow2.f32 %v17522_v30 }
0x1115   :  { %v14843_v43 = vadd.f32 %v25697_v6, %v14842_v1  ;;  %v20472_v26 = vpop.f32.mrb[163].mxu0  ;;  %v20483_v44 = vpop.f32.mrb[169].mxu1  ;;  %v14278_v59 = vmul.f32 %v22728_v54, %v14276_v17  ;;  %v14274_v18 = vsub.f32 1.0, %v22728_v54 }
0x1116   :  { %v22730_v20 = vpop.eup %22729  ;;  %v14272_v33 = vadd.f32 %v14271_v25, %v25029_v4 }
0x1117   :  { %v14987_v49 = vrot.slane %v14843_v43, 6  ;;  %v14511_v7 = vadd.f32 1.0, %v22730_v20 }
0x1118   :  { %22735 = vtanh.f32 %v14272_v33 }
0x1119   :  { %v14989_v35 = vadd.f32 %v14987_v49, %v25014_v28  ;;  %22737 = vrcp.f32 %v14511_v7  ;;  %v14522_v7 = vrot.slane %v25591_v48, 7 }
0x111a   :  { %22739 = vpow2.f32 %v17523_v57 }
0x111b   :  { %v17527_v16 = vmul.f32 -1.442695, %v14989_v35  ;;  %v22732_v30 = vpop.eup %22731  ;;  %v14912_v9 = vpop.f32.mrb[164].mxu0 }
0x111c   :  { %v14982_v1 = vpop.f32.mrb[170].mxu1  ;;  %v14517_v26 = vmul.f32 %v22732_v30, %v14515_v31  ;;  %v14913_v17 = vadd.f32 %v14912_v9, %v25007_v56  ;;  %v20494_v25 = vpop.f32.mrb[165].mxu0 }
0x111d   :  { %22741 = vpow2.f32 %v17527_v16  ;;  %v20505_v44 = vpop.f32.mrb[171].mxu1 }
0x111e   :  { %v22734_v62 = vpop.eup %22733  ;;  %v14518_v20 = vadd.f32 %v14517_v26, %v25032_v51  ;;  %v14997_v58 = vrot.slane %v14913_v17, 6  ;;  %v14737_v26 = vadd.f32 %v14736_v14, %v25036_v13 }
0x111f   :  { %v14747_v43 = vadd.f32 1.0, %v22734_v62 }
0x1120   :  { %22743 = vtanh.f32 %v14518_v20  ;;  %v14999_v33 = vadd.f32 %v14997_v58, %v25024_v2  ;;  %v14761_v20 = vrot.slane %v14737_v26, 6  ;;  %v14768_v26 = vrot.slane %v25631_v52, 1 }
0x1121   :  { %22745 = vrcp.f32 %v14747_v43 }
0x1122   :  { %v22736_v49 = vpop.eup %22735  ;;  %v17528_v57 = vmul.f32 -1.442695, %v14999_v33 }
0x1123   :  { %v22738_v31 = vpop.eup %22737  ;;  %v14275_v35 = vmul.f32 %v22736_v49, %v14274_v18  ;;  %v14983_v49 = vadd.f32 %v14982_v1, %v25036_v13 }
0x1124   :  { %v14524_v16 = vmul.f32 %v22738_v31, %v14522_v7  ;;  %22747 = vpow2.f32 %v17528_v57  ;;  %v22740_v30 = vpop.eup %22739  ;;  %v14520_v62 = vsub.f32 1.0, %v22738_v31 }
0x1125   :  { %v25713_v9 = vadd.f32 %v14278_v59, %v14275_v35  ;;  %v14757_v48 = vadd.f32 1.0, %v22740_v30  ;;  %v15007_v1 = vrot.slane %v14983_v49, 6 }
0x1127   :  { %v22742_v25 = vpop.eup %22741  ;;  %v15019_v44 = vrot.slane %v25713_v9, 5  ;;  %v25720_v54 = vsel %vm8674_vm7, %v25579_v8, %v25713_v9 }
0x1128   :  { %v14993_v17 = vadd.f32 1.0, %v22742_v25 }
0x1129   :  { %20515 = vmatmul.mubr.msk.f32.vlgmr.msra.gmra.mrb[166].mxu0 %vm1206_vm3, %v15019_v44  ;;  %20526 = vmatmul.mubr.msk.f32.vlgmr.msra.gmra.mrb[172].mxu1 %vm1206_vm3, %v15019_v44 }
0x112a   :  { %22749 = vrcp.f32 %v14993_v17  ;;  %v22744_v59 = vpop.eup %22743  ;;  %21854 = vmatpush3.bf16.msra.mxu0 %v24903_v45  ;;  %21860 = vmatpush3.bf16.msra.mxu1 %v26181_v46 }
0x112b   :  { %v22746_v14 = vpop.eup %22745  ;;  %v14521_v58 = vmul.f32 %v22744_v59, %v14520_v62  ;;  %21855 = vmatprep.subr.bf16.mxu0 %v26180_v55  ;;  %21861 = vmatprep.subr.bf16.mxu1 %v26180_v55  ;;  %22751 = vrcp.f32 %v14757_v48 }
0x112c   :  { %v14763_v8 = vmul.f32 %v22746_v14, %v14761_v20  ;;  %20536 = vmatprep.mubr.msk.f32.mxu0 %vm23126_vm2, %v26182_v23  ;;  %20547 = vmatprep.mubr.msk.f32.mxu1 %vm23126_vm2, %v26182_v23 }
0x112d   :  { %v25732_v43 = vadd.f32 %v14524_v16, %v14521_v58  ;;  %v15014_v58 = vrot.slane %v25649_v21, 1 }
0x112e   :  { %v22748_v33 = vpop.eup %22747  ;;  %v14764_v18 = vadd.f32 %v14763_v8, %v25042_v61  ;;  %21857 = vmatpush3.bf16.msra.mxu0 %v24914_v15  ;;  %21863 = vmatpush3.bf16.msra.mxu1 %v26183_v34 }
0x112f   :  { %v15265_v7 = vrot.slane %v25732_v43, 5  ;;  %21864 = vmatprep.subr.bf16.mxu0 %v26180_v55  ;;  %21870 = vmatprep.subr.bf16.mxu1 %v26180_v55  ;;  %v25744_v57 = vsel %vm8674_vm7, %v25603_v0, %v25732_v43  ;;  %v15003_v31 = vadd.f32 1.0, %v22748_v33 }
0x1130   :  { %22753 = vtanh.f32 %v14764_v18 }
0x1131   :  { %20537 = vmatmul.mubr.msk.f32.vlgmr.msra.gmra.mrb[168].mxu0 %vm1206_vm3, %v15019_v44  ;;  %20548 = vmatmul.mubr.msk.f32.vlgmr.msra.gmra.mrb[174].mxu1 %vm1206_vm3, %v15265_v7  ;;  %22755 = vrcp.f32 %v15003_v31 }
0x1132   :  { %21866 = vmatpush3.bf16.msra.mxu0 %v24923_v37  ;;  %21872 = vmatpush3.bf16.msra.mxu1 %v24903_v45 }
0x1133   :  { %21867 = vmatprep.subr.bf16.mxu0 %v26180_v55  ;;  %21873 = vmatprep.subr.bf16.mxu1 %v26180_v55 }
0x1134   :  { %v22750_v35 = vpop.eup %22749  ;;  %20558 = vmatprep.mubr.msk.f32.mxu0 %vm23126_vm2, %v26182_v23  ;;  %20569 = vmatprep.mubr.msk.f32.mxu1 %vm23126_vm2, %v26182_v23 }
0x1135   :  { %v15009_v16 = vmul.f32 %v22750_v35, %v15007_v1  ;;  %v22752_v0 = vpop.eup %22751 }
0x1136   :  { %21869 = vmatpush3.bf16.msra.mxu0 %v24932_v60  ;;  %21875 = vmatpush3.bf16.msra.mxu1 %v24914_v15  ;;  %v14766_v25 = vsub.f32 1.0, %v22752_v0  ;;  %v14770_v44 = vmul.f32 %v22752_v0, %v14768_v26 }
0x1137   :  { %v15010_v30 = vadd.f32 %v15009_v16, %v25047_v12  ;;  %21876 = vmatprep.subr.bf16.mxu0 %v26180_v55  ;;  %21882 = vmatprep.subr.bf16.mxu1 %v26180_v55 }
0x1139   :  { %22757 = vtanh.f32 %v15010_v30  ;;  %20559 = vmatmul.mubr.msk.f32.vlgmr.msra.gmra.mrb[170].mxu0 %vm1206_vm3, %v15265_v7  ;;  %20570 = vmatmul.mubr.msk.f32.vlgmr.msra.gmra.mrb[176].mxu1 %vm1206_vm3, %v15265_v7 }
0x113a   :  { %v22754_v17 = vpop.eup %22753  ;;  %21878 = vmatpush3.bf16.msra.mxu0 %v26184_v47  ;;  %21884 = vmatpush3.bf16.msra.mxu1 %v24926_v39 }
0x113b   :  { %v14767_v48 = vmul.f32 %v22754_v17, %v14766_v25  ;;  %21879 = vmatprep.subr.bf16.mxu0 %v26180_v55  ;;  %21885 = vmatprep.subr.bf16.mxu1 %v26180_v55  ;;  %v22756_v59 = vpop.eup %22755 }
0x113c   :  { %20580 = vmatprep.mubr.msk.f32.mxu0 %vm23126_vm2, %v26182_v23  ;;  %20591 = vmatprep.mubr.msk.f32.mxu1 %vm23126_vm2, %v26182_v23  ;;  %v15012_v14 = vsub.f32 1.0, %v22756_v59  ;;  %v15016_v33 = vmul.f32 %v22756_v59, %v15014_v58 }
0x113d   :  { %v25772_v62 = vadd.f32 %v14770_v44, %v14767_v48 }
0x113e   :  { %21881 = vmatpush3.bf16.msra.mxu0 %v26185_v50  ;;  %21887 = vmatpush3.bf16.msra.mxu1 %v24936_v40 }
0x113f   :  { %v15511_v20 = vrot.slane %v25772_v62, 2  ;;  %21888 = vmatprep.subr.bf16.mxu0 %v26180_v55  ;;  %21894 = vmatprep.subr.bf16.mxu1 %v26180_v55 }
0x1141   :  { %20581 = vmatmul.mubr.msk.f32.vlgmr.msra.gmra.mrb[172].mxu0 %vm1206_vm3, %v15511_v20  ;;  %20592 = vmatmul.mubr.msk.f32.vlgmr.msra.gmra.mrb[178].mxu1 %vm1206_vm3, %v15511_v20 }
0x1142   :  { %21890 = vmatpush3.bf16.msra.mxu0 %v24959_v53  ;;  %21896 = vmatpush3.bf16.msra.mxu1 %v26184_v47 }
0x1143   :  { %v22758_v8 = vpop.eup %22757  ;;  %21891 = vmatprep.subr.bf16.mxu0 %v26180_v55  ;;  %21897 = vmatprep.subr.bf16.mxu1 %v26180_v55 }
0x1144   :  { %v15013_v18 = vmul.f32 %v22758_v8, %v15012_v14  ;;  %20602 = vmatprep.mubr.msk.f32.mxu0 %vm23126_vm2, %v26182_v23  ;;  %20613 = vmatprep.mubr.msk.f32.mxu1 %vm23126_vm2, %v26182_v23 }
0x1146   :  { %v25790_v49 = vadd.f32 %v15016_v33, %v15013_v18  ;;  %21893 = vmatpush3.bf16.msra.mxu0 %v24966_v38  ;;  %21899 = vmatpush3.bf16.msra.mxu1 %v26185_v50 }
0x1147   :  { %21900 = vmatprep.subr.bf16.mxu0 %v26180_v55  ;;  %21906 = vmatprep.subr.bf16.mxu1 %v26180_v55 }
0x1148   :  { %v15757_v7 = vrot.slane %v25790_v49, 2 }
0x1149   :  { %20603 = vmatmul.mubr.msk.f32.vlgmr.msra.gmra.mrb[174].mxu0 %vm1206_vm3, %v15511_v20 }
0x114a   :  { %20614 = vmatmul.mubr.msk.f32.vlgmr.msra.gmra.mrb[180].mxu1 %vm1206_vm3, %v15757_v7  ;;  %21902 = vmatpush3.bf16.msra.mxu0 %v24926_v39 }
0x114b   :  { %21908 = vmatpush3.bf16.msra.mxu1 %v24959_v53  ;;  %21903 = vmatprep.subr.bf16.mxu0 %v26180_v55 }
0x114c   :  { %21909 = vmatprep.subr.bf16.mxu1 %v26180_v55  ;;  %20624 = vmatprep.mubr.msk.f32.mxu0 %vm23126_vm2, %v26182_v23 }
0x114d   :  { %20635 = vmatprep.mubr.msk.f32.mxu1 %vm23126_vm2, %v26182_v23 }
0x114e   :  { %21905 = vmatpush3.bf16.msra.mxu0 %v24936_v40 }
0x114f   :  { %21911 = vmatpush3.bf16.msra.mxu1 %v24966_v38  ;;  %21912 = vmatprep.subr.bf16.mxu0 %v26180_v55 }
0x1150   :  { %21918 = vmatprep.subr.bf16.mxu1 %v26180_v55 }
0x1151   :  { %20625 = vmatmul.mubr.msk.f32.vlgmr.msra.gmra.mrb[176].mxu0 %vm1206_vm3, %v15757_v7 }
0x1152   :  { %20636 = vmatmul.mubr.msk.f32.vlgmr.msra.gmra.mrb[182].mxu1 %vm1206_vm3, %v15757_v7  ;;  %21914 = vmatpush3.bf16.msra.mxu0 %v26181_v46 }
0x1153   :  { %21920 = vmatpush3.bf16.msra.mxu1 %v24923_v37  ;;  %21915 = vmatprep.subr.bf16.mxu0 %v26180_v55 }
0x1154   :  { %21921 = vmatprep.subr.bf16.mxu1 %v26180_v55  ;;  %20646 = vmatprep.mubr.msk.f32.mxu0 %vm23126_vm2, %v26182_v23 }
0x1155   :  { %20657 = vmatprep.mubr.msk.f32.mxu1 %vm23126_vm2, %v26182_v23 }
0x1156   :  { %21917 = vmatpush3.bf16.msra.mxu0 %v26183_v34 }
0x1157   :  { %21923 = vmatpush3.bf16.msra.mxu1 %v24932_v60  ;;  %21924 = vmatprep.subr.bf16.mxu0 %v26180_v55 }
0x1158   :  { %21930 = vmatprep.subr.bf16.mxu1 %v26180_v55 }
0x11fc   :  { %v15088_v31 = vpop.f32.mrb[166].mxu0  ;;  %v15158_v1 = vpop.f32.mrb[172].mxu1 }
0x11fd   :  { %v15089_v35 = vadd.f32 %v25684_v3, %v15088_v31  ;;  %v15159_v16 = vadd.f32 %v15158_v1, %v25000_v42  ;;  %v20516_v0 = vpop.f32.mrb[167].mxu0  ;;  %v20527_v30 = vpop.f32.mrb[173].mxu1 }
0x11ff   :  { %v15233_v25 = vrot.slane %v15089_v35, 2  ;;  %v15243_v26 = vrot.slane %v15159_v16, 2 }
0x1201   :  { %v15235_v17 = vadd.f32 %v15233_v25, %v24993_v29  ;;  %v15245_v44 = vadd.f32 %v15243_v26, %v25004_v63 }
0x1203   :  { %v17532_v48 = vmul.f32 -1.442695, %v15235_v17  ;;  %v17533_v59 = vmul.f32 -1.442695, %v15245_v44 }
0x1204   :  { %v15228_v20 = vpop.f32.mrb[168].mxu0  ;;  %v15334_v14 = vpop.f32.mrb[174].mxu1 }
0x1205   :  { %22759 = vpow2.f32 %v17532_v48  ;;  %v15335_v58 = vadd.f32 %v25684_v3, %v15334_v14  ;;  %v20538_v8 = vpop.f32.mrb[169].mxu0  ;;  %v20549_v33 = vpop.f32.mrb[175].mxu1 }
0x1206   :  { %22761 = vpow2.f32 %v17533_v59 }
0x1207   :  { %v15479_v18 = vrot.slane %v15335_v58, 2 }
0x1209   :  { %v15481_v7 = vadd.f32 %v15479_v18, %v24990_v10 }
0x120b   :  { %v17537_v31 = vmul.f32 -1.442695, %v15481_v7 }
0x120c   :  { %v15404_v1 = vpop.f32.mrb[170].mxu0  ;;  %v15474_v35 = vpop.f32.mrb[176].mxu1 }
0x120d   :  { %22763 = vpow2.f32 %v17537_v31  ;;  %v15405_v16 = vadd.f32 %v15404_v1, %v25000_v42  ;;  %v20560_v0 = vpop.f32.mrb[171].mxu0  ;;  %v20571_v30 = vpop.f32.mrb[177].mxu1 }
0x120f   :  { %v22760_v25 = vpop.eup %22759  ;;  %v15489_v26 = vrot.slane %v15405_v16, 2  ;;  %v15229_v16 = vadd.f32 %v15228_v20, %v24998_v22 }
0x1210   :  { %v22762_v17 = vpop.eup %22761  ;;  %v15239_v44 = vadd.f32 1.0, %v22760_v25 }
0x1211   :  { %v15249_v48 = vadd.f32 1.0, %v22762_v17  ;;  %v15491_v14 = vadd.f32 %v15489_v26, %v25002_v19  ;;  %v15253_v17 = vrot.slane %v15229_v16, 2  ;;  %v15475_v16 = vadd.f32 %v15474_v35, %v24998_v22 }
0x1212   :  { %22765 = vrcp.f32 %v15239_v44 }
0x1213   :  { %22767 = vrcp.f32 %v15249_v48  ;;  %v17538_v59 = vmul.f32 -1.442695, %v15491_v14  ;;  %v15260_v14 = vrot.slane %v25713_v9, 7  ;;  %v15499_v21 = vrot.slane %v15475_v16, 2 }
0x1214   :  { %v15580_v58 = vpop.f32.mrb[172].mxu0  ;;  %v15650_v8 = vpop.f32.mrb[178].mxu1 }
0x1215   :  { %22769 = vpow2.f32 %v17538_v59  ;;  %v15581_v33 = vadd.f32 %v25697_v6, %v15580_v58  ;;  %v15651_v18 = vadd.f32 %v15650_v8, %v25007_v56  ;;  %v20582_v7 = vpop.f32.mrb[173].mxu0  ;;  %v20593_v31 = vpop.f32.mrb[179].mxu1 }
0x1217   :  { %v22764_v1 = vpop.eup %22763  ;;  %v15725_v0 = vrot.slane %v15581_v33, 7  ;;  %v15735_v25 = vrot.slane %v15651_v18, 7 }
0x1218   :  { %v15485_v30 = vadd.f32 1.0, %v22764_v1 }
0x1219   :  { %v15727_v26 = vadd.f32 %v15725_v0, %v25017_v36  ;;  %v15737_v59 = vadd.f32 %v15735_v25, %v25019_v32 }
0x121a   :  { %22771 = vrcp.f32 %v15485_v30 }
0x121b   :  { %v17542_v44 = vmul.f32 -1.442695, %v15727_v26  ;;  %v17543_v9 = vmul.f32 -1.442695, %v15737_v59 }
0x121c   :  { %v22766_v48 = vpop.eup %22765  ;;  %v15720_v58 = vpop.f32.mrb[174].mxu0 }
0x121d   :  { %v15826_v8 = vpop.f32.mrb[180].mxu1  ;;  %v22768_v7 = vpop.eup %22767  ;;  %v15255_v31 = vmul.f32 %v22766_v48, %v15253_v17  ;;  %22773 = vpow2.f32 %v17542_v44 }
0x121e   :  { %v15827_v20 = vadd.f32 %v25697_v6, %v15826_v8  ;;  %v20604_v33 = vpop.f32.mrb[175].mxu0  ;;  %v20615_v1 = vpop.f32.mrb[181].mxu1  ;;  %v15262_v18 = vmul.f32 %v22768_v7, %v15260_v14  ;;  %v15258_v16 = vsub.f32 1.0, %v22768_v7 }
0x121f   :  { %v22770_v27 = vpop.eup %22769  ;;  %v15256_v0 = vadd.f32 %v15255_v31, %v25029_v4 }
0x1220   :  { %v15971_v30 = vrot.slane %v15827_v20, 7  ;;  %v15495_v26 = vadd.f32 1.0, %v22770_v27 }
0x1221   :  { %22775 = vtanh.f32 %v15256_v0 }
0x1222   :  { %v15973_v25 = vadd.f32 %v15971_v30, %v25014_v28  ;;  %22777 = vrcp.f32 %v15495_v26  ;;  %v15506_v26 = vrot.slane %v25732_v43, 7 }
0x1223   :  { %22779 = vpow2.f32 %v17543_v9 }
0x1224   :  { %v17547_v17 = vmul.f32 -1.442695, %v15973_v25  ;;  %v22772_v44 = vpop.eup %22771  ;;  %v15896_v48 = vpop.f32.mrb[176].mxu0 }
0x1225   :  { %v15966_v8 = vpop.f32.mrb[182].mxu1  ;;  %v15501_v33 = vmul.f32 %v22772_v44, %v15499_v21  ;;  %v15897_v14 = vadd.f32 %v15896_v48, %v25007_v56  ;;  %v20626_v31 = vpop.f32.mrb[177].mxu0 }
0x1226   :  { %22781 = vpow2.f32 %v17547_v17  ;;  %v20637_v1 = vpop.f32.mrb[183].mxu1 }
0x1227   :  { %v22774_v35 = vpop.eup %22773  ;;  %v15502_v27 = vadd.f32 %v15501_v33, %v25032_v51  ;;  %v15981_v59 = vrot.slane %v15897_v14, 7  ;;  %v15721_v33 = vadd.f32 %v15720_v58, %v25036_v13 }
0x1228   :  { %v15731_v20 = vadd.f32 1.0, %v22774_v35 }
0x1229   :  { %22783 = vtanh.f32 %v15502_v27  ;;  %v15983_v0 = vadd.f32 %v15981_v59, %v25024_v2  ;;  %v15745_v27 = vrot.slane %v15721_v33, 7 }
0x122a   :  { %22785 = vrcp.f32 %v15731_v20 }
0x122b   :  { %v22776_v30 = vpop.eup %22775  ;;  %v17548_v9 = vmul.f32 -1.442695, %v15983_v0 }
0x122c   :  { %v22778_v21 = vpop.eup %22777  ;;  %v15259_v25 = vmul.f32 %v22776_v30, %v15258_v16 }
0x122d   :  { %v15508_v17 = vmul.f32 %v22778_v21, %v15506_v26  ;;  %22787 = vpow2.f32 %v17548_v9  ;;  %v22780_v44 = vpop.eup %22779  ;;  %v15504_v35 = vsub.f32 1.0, %v22778_v21 }
0x122e   :  { %v25847_v48 = vadd.f32 %v15262_v18, %v15259_v25  ;;  %v15741_v43 = vadd.f32 1.0, %v22780_v44 }
0x1230   :  { %v22782_v31 = vpop.eup %22781  ;;  %v16003_v1 = vrot.slane %v25847_v48, 6  ;;  %v25854_v7 = vsel %vm8676_vm8, %v25720_v54, %v25847_v48 }
0x1231   :  { %v15977_v14 = vadd.f32 1.0, %v22782_v31 }
0x1232   :  { %20647 = vmatmul.mubr.msk.f32.vlgmr.msra.gmra.mrb[178].mxu0 %vm1206_vm3, %v16003_v1  ;;  %20658 = vmatmul.mubr.msk.f32.vlgmr.msra.gmra.mrb[184].mxu1 %vm1206_vm3, %v16003_v1 }
0x1233   :  { %22789 = vrcp.f32 %v15977_v14  ;;  %v22784_v18 = vpop.eup %22783  ;;  %21926 = vmatpush3.bf16.msra.mxu0 %v24903_v45  ;;  %21932 = vmatpush3.bf16.msra.mxu1 %v26181_v46  ;;  %v15967_v46 = vadd.f32 %v15966_v8, %v25036_v13 }
0x1234   :  { %v22786_v58 = vpop.eup %22785  ;;  %v15505_v59 = vmul.f32 %v22784_v18, %v15504_v35  ;;  %21927 = vmatprep.subr.bf16.mxu0 %v26180_v55  ;;  %21933 = vmatprep.subr.bf16.mxu1 %v26180_v55  ;;  %22791 = vrcp.f32 %v15741_v43 }
0x1235   :  { %v15747_v54 = vmul.f32 %v22786_v58, %v15745_v27  ;;  %20668 = vmatprep.mubr.msk.f32.mxu0 %vm23126_vm2, %v26182_v23  ;;  %20679 = vmatprep.mubr.msk.f32.mxu1 %vm23126_vm2, %v26182_v23  ;;  %v15991_v8 = vrot.slane %v15967_v46, 7  ;;  %v16995_v58 = vld [vmem:[%s26191_s11 + $0x8] sm:$0xff] }
0x1236   :  { %v25866_v20 = vadd.f32 %v15508_v17, %v15505_v59 }
0x1237   :  { %v22788_v0 = vpop.eup %22787  ;;  %v15748_v16 = vadd.f32 %v15747_v54, %v25042_v61  ;;  %21929 = vmatpush3.bf16.msra.mxu0 %v24914_v15  ;;  %21935 = vmatpush3.bf16.msra.mxu1 %v26183_v34 }
0x1238   :  { %v16249_v30 = vrot.slane %v25866_v20, 6  ;;  %21936 = vmatprep.subr.bf16.mxu0 %v26180_v55  ;;  %21942 = vmatprep.subr.bf16.mxu1 %v26180_v55  ;;  %v25878_v26 = vsel %vm8676_vm8, %v25744_v57, %v25866_v20  ;;  %v15987_v9 = vadd.f32 1.0, %v22788_v0 }
0x1239   :  { %22793 = vtanh.f32 %v15748_v16 }
0x123a   :  { %20669 = vmatmul.mubr.msk.f32.vlgmr.msra.gmra.mrb[180].mxu0 %vm1206_vm3, %v16003_v1  ;;  %20680 = vmatmul.mubr.msk.f32.vlgmr.msra.gmra.mrb[186].mxu1 %vm1206_vm3, %v16249_v30  ;;  %22795 = vrcp.f32 %v15987_v9  ;;  %v15998_v1 = vrot.slane %v25790_v49, 1 }
0x123b   :  { %21938 = vmatpush3.bf16.msra.mxu0 %v24923_v37  ;;  %21944 = vmatpush3.bf16.msra.mxu1 %v24903_v45  ;;  %v15752_v37 = vrot.slane %v25772_v62, 1 }
0x123c   :  { %21939 = vmatprep.subr.bf16.mxu0 %v26180_v55  ;;  %21945 = vmatprep.subr.bf16.mxu1 %v26180_v55 }
0x123d   :  { %v22790_v34 = vpop.eup %22789  ;;  %20690 = vmatprep.mubr.msk.f32.mxu0 %vm23126_vm2, %v26182_v23  ;;  %20701 = vmatprep.mubr.msk.f32.mxu1 %vm23126_vm2, %v26182_v23 }
0x123e   :  { %v15993_v21 = vmul.f32 %v22790_v34, %v15991_v8  ;;  %v22792_v57 = vpop.eup %22791 }
0x123f   :  { %21941 = vmatpush3.bf16.msra.mxu0 %v24932_v60  ;;  %21947 = vmatpush3.bf16.msra.mxu1 %v24914_v15  ;;  %v15750_v45 = vsub.f32 1.0, %v22792_v57  ;;  %v15754_v60 = vmul.f32 %v22792_v57, %v15752_v37 }
0x1240   :  { %v15994_v25 = vadd.f32 %v15993_v21, %v25047_v12  ;;  %21948 = vmatprep.subr.bf16.mxu0 %v26180_v55  ;;  %21954 = vmatprep.subr.bf16.mxu1 %v26180_v55 }
0x1242   :  { %22797 = vtanh.f32 %v15994_v25  ;;  %20691 = vmatmul.mubr.msk.f32.vlgmr.msra.gmra.mrb[182].mxu0 %vm1206_vm3, %v16249_v30  ;;  %20702 = vmatmul.mubr.msk.f32.vlgmr.msra.gmra.mrb[188].mxu1 %vm1206_vm3, %v16249_v30 }
0x1243   :  { %v22794_v17 = vpop.eup %22793  ;;  %21950 = vmatpush3.bf16.msra.mxu0 %v26184_v47  ;;  %21956 = vmatpush3.bf16.msra.mxu1 %v24926_v39 }
0x1244   :  { %21951 = vmatprep.subr.bf16.mxu0 %v26180_v55  ;;  %21957 = vmatprep.subr.bf16.mxu1 %v26180_v55  ;;  %v15751_v15 = vmul.f32 %v22794_v17, %v15750_v45  ;;  %v22796_v31 = vpop.eup %22795 }
0x1245   :  { %20712 = vmatprep.mubr.msk.f32.mxu0 %vm23126_vm2, %v26182_v23  ;;  %20723 = vmatprep.mubr.msk.f32.mxu1 %vm23126_vm2, %v26182_v23  ;;  %v15996_v14 = vsub.f32 1.0, %v22796_v31  ;;  %v16000_v18 = vmul.f32 %v22796_v31, %v15998_v1 }
0x1246   :  { %v25906_v44 = vadd.f32 %v15754_v60, %v15751_v15 }
0x1247   :  { %21953 = vmatpush3.bf16.msra.mxu0 %v26185_v50  ;;  %21959 = vmatpush3.bf16.msra.mxu1 %v24936_v40 }
0x1248   :  { %v25911_v33 = vrot.slane %v25906_v44, 1  ;;  %21960 = vmatprep.subr.bf16.mxu0 %v26180_v55  ;;  %21966 = vmatprep.subr.bf16.mxu1 %v26180_v55 }
0x124a   :  { %20713 = vmatmul.mubr.msk.f32.vlgmr.msra.gmra.mrb[184].mxu0 %vm1206_vm3, %v25911_v33  ;;  %20724 = vmatmul.mubr.msk.f32.vlgmr.msra.gmra.mrb[190].mxu1 %vm1206_vm3, %v25911_v33 }
0x124b   :  { %21962 = vmatpush3.bf16.msra.mxu0 %v24959_v53  ;;  %21968 = vmatpush3.bf16.msra.mxu1 %v26184_v47 }
0x124c   :  { %v22798_v43 = vpop.eup %22797  ;;  %21963 = vmatprep.subr.bf16.mxu0 %v26180_v55  ;;  %21969 = vmatprep.subr.bf16.mxu1 %v26180_v55 }
0x124d   :  { %v15997_v35 = vmul.f32 %v22798_v43, %v15996_v14  ;;  %20734 = vmatprep.mubr.msk.f32.mxu0 %vm23126_vm2, %v26182_v23  ;;  %20745 = vmatprep.mubr.msk.f32.mxu1 %vm23126_vm2, %v26182_v23 }
0x124f   :  { %v25928_v27 = vadd.f32 %v16000_v18, %v15997_v35  ;;  %21965 = vmatpush3.bf16.msra.mxu0 %v24966_v38  ;;  %21971 = vmatpush3.bf16.msra.mxu1 %v26185_v50 }
0x1250   :  { %21972 = vmatprep.subr.bf16.mxu0 %v26180_v55  ;;  %21978 = vmatprep.subr.bf16.mxu1 %v26180_v55 }
0x1251   :  { %v25933_v47 = vrot.slane %v25928_v27, 1 }
0x1252   :  { %20735 = vmatmul.mubr.msk.f32.vlgmr.msra.gmra.mrb[186].mxu0 %vm1206_vm3, %v25911_v33 }
0x1253   :  { %20746 = vmatmul.mubr.msk.f32.vlgmr.msra.gmra.mrb[192].mxu1 %vm1206_vm3, %v25933_v47  ;;  %21974 = vmatpush3.bf16.msra.mxu0 %v24926_v39  ;;  %v16999_v39 = vld [vmem:[%s26191_s11 + $0x28] sm:$0xff] }
0x1254   :  { %21980 = vmatpush3.bf16.msra.mxu1 %v24959_v53  ;;  %21975 = vmatprep.subr.bf16.mxu0 %v26180_v55 }
0x1255   :  { %21981 = vmatprep.subr.bf16.mxu1 %v26180_v55  ;;  %20756 = vmatprep.mubr.msk.f32.mxu0 %vm23126_vm2, %v26182_v23  ;;  %v16998_v55 = vld [vmem:[%s26191_s11 + $0x20] sm:$0xff] }
0x1256   :  { %20767 = vmatprep.mubr.msk.f32.mxu1 %vm23126_vm2, %v26182_v23  ;;  %v21984_v53 = vpack.c.bf16 %v16999_v39, %v16998_v55  ;;  %v17000_v23 = vld [vmem:[%s26191_s11 + $0x30] sm:$0xff] }
0x1257   :  { %21977 = vmatpush3.bf16.msra.mxu0 %v24936_v40  ;;  %v17001_v40 = vld [vmem:[%s26191_s11 + $0x38] sm:$0xff] }
0x1258   :  { %21983 = vmatpush3.bf16.msra.mxu1 %v24966_v38  ;;  %v21988_v50 = vpack.c.bf16 %v17001_v40, %v17000_v23  ;;  %21985 = vmatprep.subr.bf16.mxu0 %v21984_v53  ;;  %v16994_v38 = vld [vmem:[%s26191_s11] sm:$0xff] }
0x1259   :  { %v25973_v59 = vpack.c.bf16 %v16995_v58, %v16994_v38 }
0x125a   :  { %20757 = vmatmul.mubr.msk.f32.vlgmr.msra.gmra.mrb[188].mxu0 %vm1206_vm3, %v25933_v47 }
0x125b   :  { %20768 = vmatmul.mubr.msk.f32.vlgmr.msra.gmra.mrb[194].mxu1 %vm1206_vm3, %v25933_v47  ;;  %21987 = vmatpush3.bf16.msra.mxu0 %v21984_v53 }
0x125c   :  { %21989 = vmatprep.subr.bf16.mxu0 %v21988_v50 }
0x125f   :  { %21991 = vmatpush3.bf16.msra.mxu0 %v21988_v50 }
0x1260   :  { %21993 = vmatprep.subr.bf16.mxu0 %v25973_v59 }
0x1305   :  { %v16072_v54 = vpop.f32.mrb[178].mxu0  ;;  %v16142_v0 = vpop.f32.mrb[184].mxu1 }
0x1306   :  { %v16073_v16 = vadd.f32 %v25684_v3, %v16072_v54  ;;  %v16143_v46 = vadd.f32 %v16142_v0, %v25000_v42  ;;  %v20648_v30 = vpop.f32.mrb[179].mxu0  ;;  %v20659_v9 = vpop.f32.mrb[185].mxu1 }
0x1308   :  { %v16217_v8 = vrot.slane %v16073_v16, 1  ;;  %v16227_v34 = vrot.slane %v16143_v46, 1 }
0x130a   :  { %v16219_v21 = vadd.f32 %v16217_v8, %v24993_v29  ;;  %v16229_v57 = vadd.f32 %v16227_v34, %v25004_v63 }
0x130c   :  { %v17552_v25 = vmul.f32 -1.442695, %v16219_v21  ;;  %v17553_v45 = vmul.f32 -1.442695, %v16229_v57 }
0x130d   :  { %v16212_v37 = vpop.f32.mrb[180].mxu0  ;;  %v16318_v17 = vpop.f32.mrb[186].mxu1 }
0x130e   :  { %22799 = vpow2.f32 %v17552_v25  ;;  %v16319_v15 = vadd.f32 %v25684_v3, %v16318_v17  ;;  %v20670_v60 = vpop.f32.mrb[181].mxu0  ;;  %v20681_v31 = vpop.f32.mrb[187].mxu1  ;;  %v16213_v30 = vadd.f32 %v16212_v37, %v24998_v22 }
0x130f   :  { %22801 = vpow2.f32 %v17553_v45 }
0x1310   :  { %v16463_v14 = vrot.slane %v16319_v15, 1  ;;  %v16237_v21 = vrot.slane %v16213_v30, 1  ;;  %v16244_v15 = vrot.slane %v25847_v48, 7 }
0x1312   :  { %v16465_v1 = vadd.f32 %v16463_v14, %v24990_v10 }
0x1314   :  { %v17557_v43 = vmul.f32 -1.442695, %v16465_v1 }
0x1315   :  { %v16388_v35 = vpop.f32.mrb[182].mxu0  ;;  %v16458_v18 = vpop.f32.mrb[188].mxu1 }
0x1316   :  { %22803 = vpow2.f32 %v17557_v43  ;;  %v16389_v29 = vadd.f32 %v16388_v35, %v25000_v42  ;;  %v20692_v63 = vpop.f32.mrb[183].mxu0  ;;  %v20703_v55 = vpop.f32.mrb[189].mxu1  ;;  %v16459_v35 = vadd.f32 %v16458_v18, %v24998_v22 }
0x1318   :  { %v22800_v39 = vpop.eup %22799  ;;  %v16473_v53 = vrot.slane %v16389_v29, 1  ;;  %v16483_v48 = vrot.slane %v16459_v35, 1 }
0x1319   :  { %v22802_v23 = vpop.eup %22801  ;;  %v16223_v40 = vadd.f32 1.0, %v22800_v39 }
0x131a   :  { %v16233_v50 = vadd.f32 1.0, %v22802_v23  ;;  %v16475_v3 = vadd.f32 %v16473_v53, %v25002_v19 }
0x131b   :  { %22805 = vrcp.f32 %v16223_v40 }
0x131c   :  { %22807 = vrcp.f32 %v16233_v50  ;;  %v17558_v38 = vmul.f32 -1.442695, %v16475_v3 }
0x131d   :  { %v16564_v58 = vpop.f32.mrb[184].mxu0  ;;  %v16634_v10 = vpop.f32.mrb[190].mxu1 }
0x131e   :  { %22809 = vpow2.f32 %v17558_v38  ;;  %v16565_v54 = vadd.f32 %v25697_v6, %v16564_v58  ;;  %v16635_v0 = vadd.f32 %v16634_v10, %v25007_v56  ;;  %v20714_v42 = vpop.f32.mrb[185].mxu0  ;;  %v20725_v16 = vpop.f32.mrb[191].mxu1 }
0x1320   :  { %v22804_v46 = vpop.eup %22803  ;;  %v16708_v9 = vadd.f32 %v16565_v54, %v25017_v36  ;;  %v16715_v19 = vadd.f32 %v16635_v0, %v25019_v32  ;;  %v16490_v0 = vrot.slane %v25866_v20, 7 }
0x1321   :  { %v16469_v8 = vadd.f32 1.0, %v22804_v46 }
0x1322   :  { %v17562_v34 = vmul.f32 -1.442695, %v16708_v9  ;;  %v17563_v25 = vmul.f32 -1.442695, %v16715_v19 }
0x1323   :  { %22811 = vrcp.f32 %v16469_v8 }
0x1324   :  { %22813 = vpow2.f32 %v17562_v34 }
0x1325   :  { %v22806_v57 = vpop.eup %22805  ;;  %v16704_v45 = vpop.f32.mrb[186].mxu0  ;;  %22815 = vpow2.f32 %v17563_v25 }
0x1326   :  { %v16800_v17 = vpop.f32.mrb[192].mxu1  ;;  %v22808_v60 = vpop.eup %22807  ;;  %v16239_v31 = vmul.f32 %v22806_v57, %v16237_v21 }
0x1327   :  { %v16801_v14 = vadd.f32 %v25697_v6, %v16800_v17  ;;  %v20736_v37 = vpop.f32.mrb[187].mxu0  ;;  %v20747_v1 = vpop.f32.mrb[193].mxu1  ;;  %v16246_v36 = vmul.f32 %v22808_v60, %v16244_v15  ;;  %v16242_v10 = vsub.f32 1.0, %v22808_v60 }
0x1328   :  { %v22810_v43 = vpop.eup %22809  ;;  %v16240_v32 = vadd.f32 %v16239_v31, %v25029_v4 }
0x1329   :  { %v16944_v29 = vadd.f32 %v16801_v14, %v25014_v28  ;;  %v16479_v63 = vadd.f32 1.0, %v22810_v43 }
0x132a   :  { %22817 = vtanh.f32 %v16240_v32 }
0x132b   :  { %v17567_v55 = vmul.f32 -1.442695, %v16944_v29  ;;  %22819 = vrcp.f32 %v16479_v63 }
0x132d   :  { %22821 = vpow2.f32 %v17567_v55  ;;  %v22812_v39 = vpop.eup %22811  ;;  %v16870_v53 = vpop.f32.mrb[188].mxu0 }
0x132e   :  { %v16940_v6 = vpop.f32.mrb[194].mxu1  ;;  %v22814_v23 = vpop.eup %22813  ;;  %v16485_v40 = vmul.f32 %v22812_v39, %v16483_v48  ;;  %v16871_v50 = vadd.f32 %v16870_v53, %v25007_v56 }
0x132f   :  { %v20758_v3 = vpop.f32.mrb[189].mxu0  ;;  %v20769_v4 = vpop.f32.mrb[195].mxu1  ;;  %v16712_v38 = vadd.f32 1.0, %v22814_v23  ;;  %v16941_v14 = vadd.f32 %v16940_v6, %v25036_v13 }
0x1330   :  { %v16486_v22 = vadd.f32 %v16485_v40, %v25032_v51  ;;  %v16951_v28 = vadd.f32 %v16871_v50, %v25024_v2  ;;  %v22816_v58 = vpop.eup %22815  ;;  %v16705_v51 = vadd.f32 %v16704_v45, %v25036_v13  ;;  %v26194_v50 = vld [vmem:[#allocation30_spill] sm:$0xff]  ;;  %v26195_v3 = vld [vmem:[#allocation31_spill] sm:$0xff] }
0x1331   :  { %22823 = vrcp.f32 %v16712_v38  ;;  %v16719_v8 = vadd.f32 1.0, %v22816_v58  ;;  %v26196_v38 = vld [vmem:[#allocation32_spill] sm:$0xff] }
0x1332   :  { %22825 = vtanh.f32 %v16486_v22  ;;  %v17568_v18 = vmul.f32 -1.442695, %v16951_v28  ;;  %v17573_v28 = vld [vmem:[#allocation17] ss:$0 sm:$0xff] }
0x1334   :  { %v22818_v54 = vpop.eup %22817  ;;  %22827 = vpow2.f32 %v17568_v18 }
0x1335   :  { %v22820_v42 = vpop.eup %22819  ;;  %v16243_v16 = vmul.f32 %v22818_v54, %v16242_v10 }
0x1336   :  { %v16492_v56 = vmul.f32 %v22820_v42, %v16490_v0  ;;  %v16488_v34 = vsub.f32 1.0, %v22820_v42 }
0x1337   :  { %v22822_v46 = vpop.eup %22821  ;;  %v16247_v9 = vadd.f32 %v16246_v36, %v16243_v16 }
0x1338   :  { %v16948_v30 = vadd.f32 1.0, %v22822_v46 }
0x1339   :  { %v16972_v2 = vsel %vm8678_vm9, %v25854_v7, %v16247_v9  ;;  %v22853_v9 = vld [vmem:[%s26144_s23 + $0x8] sm:$0xff] }
0x133a   :  { %22829 = vrcp.f32 %v16948_v30 }
0x133b   :  { %v22824_v19 = vpop.eup %22823  ;;  %22831 = vrcp.f32 %v16719_v8 }
0x133c   :  { %v22826_v21 = vpop.eup %22825  ;;  %v16722_v57 = vmul.f32 %v22824_v19, %v16705_v51  ;;  %v22854_v51 = vld [vmem:[%s26144_s23] sm:$0xff] }
0x133d   :  { %v16489_v25 = vmul.f32 %v22826_v21, %v16488_v34 }
0x133e   :  { %v22828_v20 = vpop.eup %22827  ;;  %v16723_v17 = vadd.f32 %v16722_v57, %v25042_v61 }
0x133f   :  { %v16493_v15 = vadd.f32 %v16492_v56, %v16489_v25  ;;  %v16955_v60 = vadd.f32 1.0, %v22828_v20 }
0x1340   :  { %22833 = vtanh.f32 %v16723_v17 }
0x1341   :  { %v16979_v31 = vsel %vm8678_vm9, %v25878_v26, %v16493_v15  ;;  %22835 = vrcp.f32 %v16955_v60 }
0x1344   :  { %v22830_v7 = vpop.eup %22829 }
0x1345   :  { %v16958_v45 = vmul.f32 %v22830_v7, %v16941_v14  ;;  %v22832_v37 = vpop.eup %22831 }
0x1346   :  { %v16725_v36 = vsub.f32 1.0, %v22832_v37  ;;  %v16728_v32 = vmul.f32 %v22832_v37, %v25911_v33 }
0x1347   :  { %v16959_v1 = vadd.f32 %v16958_v45, %v25047_v12 }
0x1349   :  { %22837 = vtanh.f32 %v16959_v1 }
0x134a   :  { %v22834_v43 = vpop.eup %22833 }
0x134b   :  { %v16726_v61 = vmul.f32 %v22834_v43, %v16725_v36  ;;  %v22836_v29 = vpop.eup %22835 }
0x134c   :  { %v16961_v26 = vsub.f32 1.0, %v22836_v29  ;;  %v16964_v39 = vmul.f32 %v22836_v29, %v25933_v47  ;;  %v26192_v47 = vld [vmem:[#allocation28_spill] sm:$0xff] }
0x134d   :  { %v16729_v35 = vadd.f32 %v16728_v32, %v16726_v61 }
0x134f   :  { %v16980_v63 = vsel %vm8667_vm4, %v16729_v35, %v25906_v44 }
0x1350   :  { %v16981_v13 = vsel %vm8669_vm5, %v16980_v63, %v25772_v62 }
0x1351   :  { %v16982_v55 = vsel %vm8671_vm6, %v16981_v13, %v25631_v52 }
0x1352   :  { %v16983_v12 = vsel %vm209_vm1, %v16982_v55, %v25497_v24 }
0x1353   :  { %v22838_v48 = vpop.eup %22837  ;;  %v16984_v53 = vsel %vm8674_vm7, %v16983_v12, %v25363_v41  ;;  %v16996_v41 = vld [vmem:[%s26191_s11 + $0x10] sm:$0xff] }
0x1354   :  { %v16962_v33 = vmul.f32 %v22838_v48, %v16961_v26  ;;  %v16985_v44 = vsel %vm8676_vm8, %v16984_v53, %v25218_v11  ;;  %v16997_v11 = vld [vmem:[%s26191_s11 + $0x18] sm:$0xff] }
0x1355   :  { %v16986_v62 = vsel %vm8678_vm9, %v16985_v44, %v25087_v5  ;;  %v26193_v5 = vld [vmem:[#allocation29_spill] sm:$0xff]  ;;  %v21996_v4 = vpack.c.bf16 %v16997_v11, %v16996_v41 }
0x1356   :  { %v16965_v6 = vadd.f32 %v16964_v39, %v16962_v33  ;;  %20778 = vmatprep.mubr.msk.f32.mxu0 %vm1206_vm3, %v16986_v62 }
0x1358   :  { %v16987_v52 = vsel %vm8667_vm4, %v16965_v6, %v25928_v27 }
0x1359   :  { %v16988_v24 = vsel %vm8669_vm5, %v16987_v52, %v25790_v49 }
0x135a   :  { %v16989_v23 = vsel %vm8671_vm6, %v16988_v24, %v26192_v47 }
0x135b   :  { %v16990_v40 = vsel %vm209_vm1, %v16989_v23, %v26193_v5 }
0x135c   :  { %v16991_v27 = vsel %vm8674_vm7, %v16990_v40, %v26194_v50 }
0x135d   :  { %v16992_v49 = vsel %vm8676_vm8, %v16991_v27, %v26195_v3 }
0x135e   :  { %v16993_v22 = vsel %vm8678_vm9, %v16992_v49, %v26196_v38 }
0x135f   :  { %20779 = vmatmul.mubr.msk.f32.vlgmr.msra.gmra.mrb[190].mxu0 %vm1206_vm3, %v16993_v22 }
0x1360   :  { %21995 = vmatpush3.bf16.msra.mxu0 %v25973_v59  ;;  %20789 = vmatprep.mubr.msk.f32.mxu0 %vm1206_vm3, %v16972_v2 }
0x1361   :  { %21997 = vmatprep.subr.bf16.mxu0 %v21996_v4 }
0x1364   :  { %21999 = vmatpush3.bf16.msra.mxu0 %v21996_v4 }
0x1367   :  { %20790 = vmatmul.mubr.msk.f32.vlgmr.msra.gmra.mrb[190].mxu0 %vm1206_vm3, %v16979_v31 }
0x143a   :  { %v20791_v18 = vpop.f32.mrb[190].mxu0 }
0x143b   :  { %v17172_v58 = vadd.f32 %v20791_v18, %v17573_v28  ;;  %v17155_v10 = vpop.f32.mrb[191].mxu0 }
0x143c   :  { %v17171_v54 = vadd.f32 %v17573_v28, %v17155_v10 }
0x143d   :  { %22839 = vtanh.f32 %v17172_v58 }
0x143e   :  { %22841 = vtanh.f32 %v17171_v54 }
0x1447   :  { %v22840_v0 = vpop.eup %22839 }
0x1448   :  { %v22842_v42 = vpop.eup %22841  ;;  %vm17176_vm13 = vcmp.ge.f32.partialorder %v22840_v0, 0.0  ;;  %v17178_v16 = vmul.f32 0.2, %v22840_v0 }
0x1449   :  { %vm17175_vm14 = vcmp.ge.f32.partialorder %v22842_v42, 0.0  ;;  %v17177_v46 = vmul.f32 0.2, %v22842_v42 }
0x144a   :  { %v17180_v59 = vsel %vm17176_vm13, %v22840_v0, %v17178_v16 }
0x144b   :  { %17185 = vrot.lane.b32.xlu1 %v17180_v59, %s23128_s14  ;;  %v17179_v56 = vsel %vm17175_vm14, %v22842_v42, %v17177_v46 }
0x144c   :  { %17183 = vrot.lane.b32.xlu0 %v17179_v56, %s23128_s14 }
0x14bd   :  { %v17186_v30 = vpop.permute.xlu1 %17185 }
0x14be   :  { %v17190_v8 = vsel %vm202_vm0, %v22853_v9, %v17186_v30  ;;  %v17184_v2 = vpop.permute.xlu0 %17183 }
0x14bf   :  { %v17189_v19 = vsel %vm202_vm0, %v22854_v51, %v17184_v2  ;;  %17193 = vst.msk [vmem:[#allocation19 + $0x8] sm:$0xff] %vm17191_vm15, %v17190_v8 }
0x14c0   :  { %17192 = vst.msk [vmem:[#allocation19] sm:$0xff] %vm17191_vm15, %v17189_v19 }
0x14c1   :  { %23086 = shalt.err (!%p23083_p0)
}
0x14c2   :  { %s26197_s28 = sld [smem:[#allocation53_spill]] }
0x14c8   :  { %s23087_s17 = scalar_lea.hbm %s26197_s28, 256 }
0x14c9   :  { %p23088_p1 = scmp.ne.s32.totalorder %s26197_s28, %s23087_s17  ;;  %p23091_p2 = scmp.lt.u32.totalorder %s23087_s17, %s26197_s28 }
0x14cb   :  { %p23093_p3 = pnand %p23091_p2, %p23088_p1 }
0x14cd   :  { %23096 = shalt.err (!%p23093_p3)
}
0x14ce   :  { %17205 = dma.vmem_to_hbm [thread:$0]  %s17200_s9, 256, %s26197_s28, [#allocation4], %s23112_s25, %s23112_s25, %s23113_s26  }
0x14cf   :  { %23109 = dma.done.wait [#allocation4], 256  }
0x14d0   :  { %23110 = vsyncadd [#allocation4], 4294967040 }
0x14d1   :  { %17209 = vsyncpa [#allocation3], 1 }
0x14d2   :  { %17210 = vsyncpa [#allocation6], 1 }
0x14d3   :  { %17211 = vsyncpa [#allocation9], 1 }
0x14d4   :  { %17212 = vsyncpa [#allocation12], 1 }
0x14d5   :  { %17213 = vsyncpa [#allocation15], 1 }
0x14d6   :  { %17214 = vsyncpa [#allocation18], 1 }
0x14d7   :  { %17215 = vsyncpa [#allocation4], 1 }

</bundles_post_ra>
